<compile_context>
chip_gen: v7x
topology: tpu7x:2x2x1
jax: 0.10.0
libtpu: 0.0.40
codegen_flags: <defaults>
</compile_context>

<pallas_src>
import functools

import jax
import jax.numpy as jnp
import numpy as np
from jax import lax
from jax.experimental import pallas as pl
from jax.experimental.pallas import tpu as pltpu


# ----------------------------- Pallas kernels ------------------------------

def _conv_kernel(relu, x_ref, w_ref, b_ref, o_ref):
    """Fused conv (im2col matmul) + bias [+ ReLU] [+ 2x2 maxpool].

    x_ref: (P, TB, K) bf16 with P=1 (no pool) or P=4 (the 4 maxpool phases).
    w_ref: (K, Cout) bf16.  b_ref: (1, Cout) f32.  o_ref: (TB, Cout) f32.
    """
    P = x_ref.shape[0]
    w = w_ref[...]
    out = None
    for p in range(P):                       # static unroll over pool phases
        y = jnp.dot(x_ref[p], w, preferred_element_type=jnp.float32) + b_ref[...]
        if relu:
            y = jnp.maximum(y, 0.0)
        out = y if out is None else jnp.maximum(out, y)   # 2x2 maxpool
    o_ref[...] = out


def _conv_bn_kernel(x_ref, w_ref, g_ref, b_ref, o_ref):
    """Fused conv (no bias) + train-mode BatchNorm + ReLU [+ 2x2 maxpool]."""
    P = x_ref.shape[0]
    w = w_ref[...]
    ys = [jnp.dot(x_ref[p], w, preferred_element_type=jnp.float32)
          for p in range(P)]
    # Batch statistics over all N*H*W positions (each phase has equal rows).
    mean = sum(jnp.mean(y, axis=0, keepdims=True) for y in ys) / P
    ex2 = sum(jnp.mean(y * y, axis=0, keepdims=True) for y in ys) / P
    inv = lax.rsqrt(ex2 - mean * mean + 1e-5)
    out = None
    for y in ys:
        z = jnp.maximum((y - mean) * inv * g_ref[...] + b_ref[...], 0.0)
        out = z if out is None else jnp.maximum(out, z)   # 2x2 maxpool
    o_ref[...] = out


def _head_kernel(x_ref, w_ref, b_ref, g_ref, be_ref, avg_ref, wl_ref, bl_ref,
                 o_ref):
    """conv7 + bias + BN + ReLU + global avgpool + ReLU + Linear -> (N, 1)."""
    y = jnp.dot(x_ref[...], w_ref[...],
                preferred_element_type=jnp.float32) + b_ref[...]
    mean = jnp.mean(y, axis=0, keepdims=True)
    var = jnp.mean(y * y, axis=0, keepdims=True) - mean * mean
    y = jnp.maximum((y - mean) * lax.rsqrt(var + 1e-5) * g_ref[...]
                    + be_ref[...], 0.0)
    if avg_ref.shape[0] == avg_ref.shape[1]:
        feat = y                                 # spatial size 1: avgpool is identity
    else:
        feat = jnp.dot(avg_ref[...], y, preferred_element_type=jnp.float32)
    feat = jnp.maximum(feat, 0.0)                # F.relu before the linear head
    o_ref[...] = jnp.dot(feat, wl_ref[...],
                         preferred_element_type=jnp.float32) + bl_ref[...]


# ----------------------------- XLA glue (im2col) ---------------------------

def _im2col(x_nhwc, stride, pad, pool):
    """Build the im2col slab, bf16, shaped (P, M_out, 9*C).

    P=4 when a 2x2 maxpool follows (block p holds the conv rows of the spatial
    phase (p//2, p%2)); P=1 otherwise.  In both cases the second dim enumerates
    the *post-pool* output positions in (n, i, j) row-major order.
    """
    N, H, W, C = x_nhwc.shape
    xp = jnp.pad(x_nhwc, ((0, 0), (pad, pad), (pad, pad), (0, 0)))
    Ho = (H + 2 * pad - 3) // stride + 1
    Wo = (W + 2 * pad - 3) // stride + 1
    taps = []
    for kh in range(3):
        for kw in range(3):
            taps.append(xp[:, kh:kh + stride * (Ho - 1) + 1:stride,
                            kw:kw + stride * (Wo - 1) + 1:stride, :])
    col = jnp.concatenate(taps, axis=-1).astype(jnp.bfloat16)   # (N,Ho,Wo,9C)
    K = 9 * C
    if pool:
        Hq, Wq = Ho // 2, Wo // 2
        col = col.reshape(N, Hq, 2, Wq, 2, K)
        col = col.transpose(2, 4, 0, 1, 3, 5).reshape(4, N * Hq * Wq, K)
        return col, Hq, Wq
    return col.reshape(1, N * Ho * Wo, K), Ho, Wo


def _repack_weight(w_oihw):
    cout, cin = w_oihw.shape[0], w_oihw.shape[1]
    return (jnp.transpose(w_oihw, (2, 3, 1, 0))
            .reshape(9 * cin, cout).astype(jnp.bfloat16))


# ----------------------------- Fused layer wrappers ------------------------

def conv_block(x_nhwc, w_oihw, b, *, stride=1, pad=1, relu=True, pool=False):
    N = x_nhwc.shape[0]
    Cout = w_oihw.shape[0]
    col, Hout, Wout = _im2col(x_nhwc, stride, pad, pool)
    P, M, K = col.shape
    w_col = _repack_weight(w_oihw)
    # 2-way row split for big slabs: lets v7x's two TensorCores both get work.
    nb = 2 if (M % 32 == 0 and M >= 256) else 1
    TB = M // nb
    out = pl.pallas_call(
        functools.partial(_conv_kernel, relu),
        out_shape=jax.ShapeDtypeStruct((M, Cout), jnp.float32),
        grid=(nb,),
        in_specs=[
            pl.BlockSpec((P, TB, K), lambda i: (0, i, 0)),
            pl.BlockSpec((K, Cout), lambda i: (0, 0)),
            pl.BlockSpec((1, Cout), lambda i: (0, 0)),
        ],
        out_specs=pl.BlockSpec((TB, Cout), lambda i: (i, 0)),
        compiler_params=pltpu.CompilerParams(
            dimension_semantics=("parallel",)),
    )(col, w_col, b.reshape(1, Cout).astype(jnp.float32))
    return out.reshape(N, Hout, Wout, Cout)


def conv_bn_block(x_nhwc, w_oihw, gamma, beta, *, pool=False):
    N = x_nhwc.shape[0]
    Cout = w_oihw.shape[0]
    col, Hout, Wout = _im2col(x_nhwc, 1, 1, pool)
    P, M, K = col.shape
    w_col = _repack_weight(w_oihw)
    out = pl.pallas_call(
        _conv_bn_kernel,
        out_shape=jax.ShapeDtypeStruct((M, Cout), jnp.float32),
        grid=(1,),
        in_specs=[
            pl.BlockSpec((P, M, K), lambda i: (0, 0, 0)),
            pl.BlockSpec((K, Cout), lambda i: (0, 0)),
            pl.BlockSpec((1, Cout), lambda i: (0, 0)),
            pl.BlockSpec((1, Cout), lambda i: (0, 0)),
        ],
        out_specs=pl.BlockSpec((M, Cout), lambda i: (0, 0)),
        compiler_params=pltpu.CompilerParams(
            dimension_semantics=("arbitrary",)),
    )(col, w_col, gamma.reshape(1, Cout), beta.reshape(1, Cout))
    return out.reshape(N, Hout, Wout, Cout)


def head_block(x_nhwc, w_oihw, b, gamma, beta, wl, bl):
    N = x_nhwc.shape[0]
    Cout = w_oihw.shape[0]
    col, Ho, Wo = _im2col(x_nhwc, 1, 0, False)
    _, M, K = col.shape
    col2 = col.reshape(M, K)
    S = Ho * Wo
    w_col = _repack_weight(w_oihw)
    avg = jnp.repeat(jnp.eye(N, dtype=jnp.float32), S, axis=1) / float(S)
    return pl.pallas_call(
        _head_kernel,
        out_shape=jax.ShapeDtypeStruct((N, 1), jnp.float32),
        grid=(1,),
        in_specs=[
            pl.BlockSpec((M, K), lambda i: (0, 0)),
            pl.BlockSpec((K, Cout), lambda i: (0, 0)),
            pl.BlockSpec((1, Cout), lambda i: (0, 0)),
            pl.BlockSpec((1, Cout), lambda i: (0, 0)),
            pl.BlockSpec((1, Cout), lambda i: (0, 0)),
            pl.BlockSpec((N, M), lambda i: (0, 0)),
            pl.BlockSpec((Cout, 1), lambda i: (0, 0)),
            pl.BlockSpec((1, 1), lambda i: (0, 0)),
        ],
        out_specs=pl.BlockSpec((N, 1), lambda i: (0, 0)),
        compiler_params=pltpu.CompilerParams(
            dimension_semantics=("arbitrary",)),
    )(col2, w_col, b.reshape(1, Cout), gamma.reshape(1, Cout),
      beta.reshape(1, Cout), avg, wl.T.astype(jnp.float32), bl.reshape(1, 1))


# ----------------------------- Full forward --------------------------------

def pretrain_net_pallas(x_nchw, p):
    x = jnp.transpose(x_nchw, (0, 2, 3, 1))                    # NCHW -> NHWC
    x = conv_block(x, p['w1'], p['b1'], stride=2, pad=1, relu=True, pool=True)
    x = conv_block(x, p['w2'], p['b2'], relu=True, pool=True)
    x = conv_block(x, p['w3'], p['b3'], relu=True, pool=False)
    x = conv_block(x, p['w4'], p['b4'], relu=False, pool=True)   # no ReLU here
    x = conv_bn_block(x, p['w5'], p['g5'], p['be5'], pool=False)  # bias=False
    x = conv_bn_block(x, p['w6'], p['g6'], p['be6'], pool=True)   # bias=False
    return head_block(x, p['w7'], p['b7'], p['g7'], p['be7'],
                      p['wl'], p['bl'])                          # (N, 1)


# ----------------------------- Pure-JAX reference --------------------------

def _ref_conv(x, w, b, stride, pad):
    y = lax.conv_general_dilated(
        x, w, (stride, stride), ((pad, pad), (pad, pad)),
        dimension_numbers=('NCHW', 'OIHW', 'NCHW'),
        precision=lax.Precision.HIGHEST)
    if b is not None:
        y = y + b[None, :, None, None]
    return y


def _ref_maxpool(x):
    return lax.reduce_window(x, -jnp.inf, lax.max,
                             (1, 1, 2, 2), (1, 1, 2, 2), 'VALID')


def _ref_bn_relu(x, g, b):
    mean = x.mean(axis=(0, 2, 3), keepdims=True)
    var = ((x - mean) ** 2).mean(axis=(0, 2, 3), keepdims=True)
    y = (x - mean) * lax.rsqrt(var + 1e-5)
    return jnp.maximum(y * g[None, :, None, None] + b[None, :, None, None], 0.0)


def pretrain_net_ref(x, p):
    y = jnp.maximum(_ref_conv(x, p['w1'], p['b1'], 2, 1), 0.0)
    y = _ref_maxpool(y)
    y = jnp.maximum(_ref_conv(y, p['w2'], p['b2'], 1, 1), 0.0)
    y = _ref_maxpool(y)
    y = jnp.maximum(_ref_conv(y, p['w3'], p['b3'], 1, 1), 0.0)
    y = _ref_conv(y, p['w4'], p['b4'], 1, 1)
    y = _ref_maxpool(y)
    y = _ref_conv(y, p['w5'], None, 1, 1)
    y = _ref_bn_relu(y, p['g5'], p['be5'])
    y = _ref_conv(y, p['w6'], None, 1, 1)
    y = _ref_bn_relu(y, p['g6'], p['be6'])
    y = _ref_maxpool(y)
    y = _ref_conv(y, p['w7'], p['b7'], 1, 0)
    y = _ref_bn_relu(y, p['g7'], p['be7'])
    y = y.mean(axis=(2, 3))                                       # (N, 32)
    return jnp.maximum(y, 0.0) @ p['wl'].T + p['bl']


# ----------------------------- Parameter init ------------------------------

def init_params(key):
    chans = [(3, 4), (4, 8), (8, 16), (16, 16), (16, 32), (32, 32), (32, 32)]
    p = {}
    for idx, (cin, cout) in enumerate(chans, start=1):
        key, k1, k2 = jax.random.split(key, 3)
        p[f'w{idx}'] = (jax.random.normal(k1, (cout, cin, 3, 3), jnp.float32)
                        * (1.0 / np.sqrt(cin * 9)))
        p[f'b{idx}'] = jax.random.normal(k2, (cout,), jnp.float32) * 0.05
    for idx in (5, 6, 7):
        key, k1, k2 = jax.random.split(key, 3)
        p[f'g{idx}'] = 1.0 + 0.1 * jax.random.normal(k1, (32,), jnp.float32)
        p[f'be{idx}'] = 0.05 * jax.random.normal(k2, (32,), jnp.float32)
    key, k1, k2 = jax.random.split(key, 3)
    p['wl'] = jax.random.normal(k1, (1, 32), jnp.float32) * (1.0 / np.sqrt(32))
    p['bl'] = jax.random.normal(k2, (1,), jnp.float32) * 0.05
    return p


# ----------------------------- Main -----------------------------------------

if __name__ == "__main__":
    key = jax.random.PRNGKey(0)
    key, kx = jax.random.split(key)
    # Smallest spatial size that survives the 4 maxpools + final pad-0 conv.
    x = jax.random.normal(kx, (2, 3, 96, 96), jnp.float32)
    params = init_params(key)

    out = jax.jit(pretrain_net_pallas)(x, params)
    out = jax.block_until_ready(out)

    ref = jax.block_until_ready(pretrain_net_ref(x, params))
    # bf16 MXU operands (single pass, f32 accumulation) vs. f32-HIGHEST reference.
    np.testing.assert_allclose(np.asarray(out), np.asarray(ref),
                               rtol=2e-2, atol=2e-2)
    assert out.shape == (2, 1)
    print("KERNEL_OK")
</pallas_src>

<mosaic_0001>
module attributes {stable_mosaic.version = 11 : i64} {
  func.func @_conv_kernel(%arg0: i32, %arg1: memref<4x576x27xbf16, #tpu.memory_space<vmem>>, %arg2: memref<27x4xbf16, #tpu.memory_space<vmem>>, %arg3: memref<1x4xf32, #tpu.memory_space<vmem>>, %arg4: memref<576x4xf32, #tpu.memory_space<vmem>>) attributes {dimension_semantics = [#tpu.dimension_semantics<parallel>], iteration_bounds = array<i64: 2>, scalar_prefetch = 0 : i64, scratch_operands = 0 : i64, tpu.core_type = #tpu.core_type<tc>, window_params = [{transform_indices = @transform_0, window_bounds = array<i64: 4, 576, 27>}, {pipeline_mode = #tpu.pipeline_mode<synchronous>, transform_indices = @transform_1, window_bounds = array<i64: 27, 4>}, {pipeline_mode = #tpu.pipeline_mode<synchronous>, transform_indices = @transform_2, window_bounds = array<i64: 1, 4>}, {transform_indices = @transform_3, window_bounds = array<i64: 576, 4>}]} {
    %c0 = arith.constant 0 : index
    %c0_0 = arith.constant 0 : index
    %0 = vector.load %arg2[%c0, %c0_0] : memref<27x4xbf16, #tpu.memory_space<vmem>>, vector<27x4xbf16>
    %c0_1 = arith.constant 0 : index
    %c0_2 = arith.constant 0 : index
    %c0_3 = arith.constant 0 : index
    %1 = vector.load %arg1[%c0_1, %c0_2, %c0_3] : memref<4x576x27xbf16, #tpu.memory_space<vmem>>, vector<1x576x27xbf16>
    %2 = vector.shape_cast %1 : vector<1x576x27xbf16> to vector<576x27xbf16>
    %cst = arith.constant dense<0.000000e+00> : vector<576x4xf32>
    %3 = tpu.matmul %2, %0, %cst {dimension_numbers = #tpu.dot_dimension_numbers<[1], [0], [0], [1], [0, 0, 1, 1], [], []>} : vector<576x27xbf16>, vector<27x4xbf16>, vector<576x4xf32> -> vector<576x4xf32>
    %c0_4 = arith.constant 0 : index
    %c0_5 = arith.constant 0 : index
    %4 = vector.load %arg3[%c0_4, %c0_5] : memref<1x4xf32, #tpu.memory_space<vmem>>, vector<1x4xf32>
    %5 = vector.broadcast %4 : vector<1x4xf32> to vector<576x4xf32>
    %6 = arith.addf %3, %5 : vector<576x4xf32>
    %cst_6 = arith.constant 0.000000e+00 : f32
    %7 = vector.broadcast %cst_6 : f32 to vector<576x4xf32>
    %8 = arith.maximumf %6, %7 : vector<576x4xf32>
    %c1 = arith.constant 1 : index
    %c0_7 = arith.constant 0 : index
    %c0_8 = arith.constant 0 : index
    %9 = vector.load %arg1[%c1, %c0_7, %c0_8] : memref<4x576x27xbf16, #tpu.memory_space<vmem>>, vector<1x576x27xbf16>
    %10 = vector.shape_cast %9 : vector<1x576x27xbf16> to vector<576x27xbf16>
    %cst_9 = arith.constant dense<0.000000e+00> : vector<576x4xf32>
    %11 = tpu.matmul %10, %0, %cst_9 {dimension_numbers = #tpu.dot_dimension_numbers<[1], [0], [0], [1], [0, 0, 1, 1], [], []>} : vector<576x27xbf16>, vector<27x4xbf16>, vector<576x4xf32> -> vector<576x4xf32>
    %c0_10 = arith.constant 0 : index
    %c0_11 = arith.constant 0 : index
    %12 = vector.load %arg3[%c0_10, %c0_11] : memref<1x4xf32, #tpu.memory_space<vmem>>, vector<1x4xf32>
    %13 = vector.broadcast %12 : vector<1x4xf32> to vector<576x4xf32>
    %14 = arith.addf %11, %13 : vector<576x4xf32>
    %cst_12 = arith.constant 0.000000e+00 : f32
    %15 = vector.broadcast %cst_12 : f32 to vector<576x4xf32>
    %16 = arith.maximumf %14, %15 : vector<576x4xf32>
    %17 = arith.maximumf %8, %16 : vector<576x4xf32>
    %c2 = arith.constant 2 : index
    %c0_13 = arith.constant 0 : index
    %c0_14 = arith.constant 0 : index
    %18 = vector.load %arg1[%c2, %c0_13, %c0_14] : memref<4x576x27xbf16, #tpu.memory_space<vmem>>, vector<1x576x27xbf16>
    %19 = vector.shape_cast %18 : vector<1x576x27xbf16> to vector<576x27xbf16>
    %cst_15 = arith.constant dense<0.000000e+00> : vector<576x4xf32>
    %20 = tpu.matmul %19, %0, %cst_15 {dimension_numbers = #tpu.dot_dimension_numbers<[1], [0], [0], [1], [0, 0, 1, 1], [], []>} : vector<576x27xbf16>, vector<27x4xbf16>, vector<576x4xf32> -> vector<576x4xf32>
    %c0_16 = arith.constant 0 : index
    %c0_17 = arith.constant 0 : index
    %21 = vector.load %arg3[%c0_16, %c0_17] : memref<1x4xf32, #tpu.memory_space<vmem>>, vector<1x4xf32>
    %22 = vector.broadcast %21 : vector<1x4xf32> to vector<576x4xf32>
    %23 = arith.addf %20, %22 : vector<576x4xf32>
    %cst_18 = arith.constant 0.000000e+00 : f32
    %24 = vector.broadcast %cst_18 : f32 to vector<576x4xf32>
    %25 = arith.maximumf %23, %24 : vector<576x4xf32>
    %26 = arith.maximumf %17, %25 : vector<576x4xf32>
    %c3 = arith.constant 3 : index
    %c0_19 = arith.constant 0 : index
    %c0_20 = arith.constant 0 : index
    %27 = vector.load %arg1[%c3, %c0_19, %c0_20] : memref<4x576x27xbf16, #tpu.memory_space<vmem>>, vector<1x576x27xbf16>
    %28 = vector.shape_cast %27 : vector<1x576x27xbf16> to vector<576x27xbf16>
    %cst_21 = arith.constant dense<0.000000e+00> : vector<576x4xf32>
    %29 = tpu.matmul %28, %0, %cst_21 {dimension_numbers = #tpu.dot_dimension_numbers<[1], [0], [0], [1], [0, 0, 1, 1], [], []>} : vector<576x27xbf16>, vector<27x4xbf16>, vector<576x4xf32> -> vector<576x4xf32>
    %c0_22 = arith.constant 0 : index
    %c0_23 = arith.constant 0 : index
    %30 = vector.load %arg3[%c0_22, %c0_23] : memref<1x4xf32, #tpu.memory_space<vmem>>, vector<1x4xf32>
    %31 = vector.broadcast %30 : vector<1x4xf32> to vector<576x4xf32>
    %32 = arith.addf %29, %31 : vector<576x4xf32>
    %cst_24 = arith.constant 0.000000e+00 : f32
    %33 = vector.broadcast %cst_24 : f32 to vector<576x4xf32>
    %34 = arith.maximumf %32, %33 : vector<576x4xf32>
    %35 = arith.maximumf %26, %34 : vector<576x4xf32>
    %c0_25 = arith.constant 0 : index
    %c0_26 = arith.constant 0 : index
    %36 = vector.load %arg4[%c0_25, %c0_26] : memref<576x4xf32, #tpu.memory_space<vmem>>, vector<576x4xf32>
    tpu.vector_store %arg4[%c0_25, %c0_26], %35 {strides = array<i32>} : memref<576x4xf32, #tpu.memory_space<vmem>>, vector<576x4xf32>,
    return
  }
  func.func @transform_0(%arg0: i32) -> (i32, i32, i32) {
    %c0_i32 = arith.constant 0 : i32
    %c0_i32_0 = arith.constant 0 : i32
    %c0_i32_1 = arith.constant 0 : i32
    return %c0_i32, %arg0, %c0_i32_0 : i32, i32, i32
  }
  func.func @transform_1(%arg0: i32) -> (i32, i32) {
    %c0_i32 = arith.constant 0 : i32
    %c0_i32_0 = arith.constant 0 : i32
    %c0_i32_1 = arith.constant 0 : i32
    return %c0_i32, %c0_i32_0 : i32, i32
  }
  func.func @transform_2(%arg0: i32) -> (i32, i32) {
    %c0_i32 = arith.constant 0 : i32
    %c0_i32_0 = arith.constant 0 : i32
    %c0_i32_1 = arith.constant 0 : i32
    return %c0_i32, %c0_i32_0 : i32, i32
  }
  func.func @transform_3(%arg0: i32) -> (i32, i32) {
    %c0_i32 = arith.constant 0 : i32
    %c0_i32_0 = arith.constant 0 : i32
    return %arg0, %c0_i32 : i32, i32
  }
}

module attributes {stable_mosaic.version = 11 : i64} {
  func.func @_conv_kernel(%arg0: i32, %arg1: memref<4x144x36xbf16, #tpu.memory_space<vmem>>, %arg2: memref<36x8xbf16, #tpu.memory_space<vmem>>, %arg3: memref<1x8xf32, #tpu.memory_space<vmem>>, %arg4: memref<144x8xf32, #tpu.memory_space<vmem>>) attributes {dimension_semantics = [#tpu.dimension_semantics<parallel>], iteration_bounds = array<i64: 2>, scalar_prefetch = 0 : i64, scratch_operands = 0 : i64, tpu.core_type = #tpu.core_type<tc>, window_params = [{transform_indices = @transform_0, window_bounds = array<i64: 4, 144, 36>}, {pipeline_mode = #tpu.pipeline_mode<synchronous>, transform_indices = @transform_1, window_bounds = array<i64: 36, 8>}, {pipeline_mode = #tpu.pipeline_mode<synchronous>, transform_indices = @transform_2, window_bounds = array<i64: 1, 8>}, {transform_indices = @transform_3, window_bounds = array<i64: 144, 8>}]} {
    %c0 = arith.constant 0 : index
    %c0_0 = arith.constant 0 : index
    %0 = vector.load %arg2[%c0, %c0_0] : memref<36x8xbf16, #tpu.memory_space<vmem>>, vector<36x8xbf16>
    %c0_1 = arith.constant 0 : index
    %c0_2 = arith.constant 0 : index
    %c0_3 = arith.constant 0 : index
    %1 = vector.load %arg1[%c0_1, %c0_2, %c0_3] : memref<4x144x36xbf16, #tpu.memory_space<vmem>>, vector<1x144x36xbf16>
    %2 = vector.shape_cast %1 : vector<1x144x36xbf16> to vector<144x36xbf16>
    %cst = arith.constant dense<0.000000e+00> : vector<144x8xf32>
    %3 = tpu.matmul %2, %0, %cst {dimension_numbers = #tpu.dot_dimension_numbers<[1], [0], [0], [1], [0, 0, 1, 1], [], []>} : vector<144x36xbf16>, vector<36x8xbf16>, vector<144x8xf32> -> vector<144x8xf32>
    %c0_4 = arith.constant 0 : index
    %c0_5 = arith.constant 0 : index
    %4 = vector.load %arg3[%c0_4, %c0_5] : memref<1x8xf32, #tpu.memory_space<vmem>>, vector<1x8xf32>
    %5 = vector.broadcast %4 : vector<1x8xf32> to vector<144x8xf32>
    %6 = arith.addf %3, %5 : vector<144x8xf32>
    %cst_6 = arith.constant 0.000000e+00 : f32
    %7 = vector.broadcast %cst_6 : f32 to vector<144x8xf32>
    %8 = arith.maximumf %6, %7 : vector<144x8xf32>
    %c1 = arith.constant 1 : index
    %c0_7 = arith.constant 0 : index
    %c0_8 = arith.constant 0 : index
    %9 = vector.load %arg1[%c1, %c0_7, %c0_8] : memref<4x144x36xbf16, #tpu.memory_space<vmem>>, vector<1x144x36xbf16>
    %10 = vector.shape_cast %9 : vector<1x144x36xbf16> to vector<144x36xbf16>
    %cst_9 = arith.constant dense<0.000000e+00> : vector<144x8xf32>
    %11 = tpu.matmul %10, %0, %cst_9 {dimension_numbers = #tpu.dot_dimension_numbers<[1], [0], [0], [1], [0, 0, 1, 1], [], []>} : vector<144x36xbf16>, vector<36x8xbf16>, vector<144x8xf32> -> vector<144x8xf32>
    %c0_10 = arith.constant 0 : index
    %c0_11 = arith.constant 0 : index
    %12 = vector.load %arg3[%c0_10, %c0_11] : memref<1x8xf32, #tpu.memory_space<vmem>>, vector<1x8xf32>
    %13 = vector.broadcast %12 : vector<1x8xf32> to vector<144x8xf32>
    %14 = arith.addf %11, %13 : vector<144x8xf32>
    %cst_12 = arith.constant 0.000000e+00 : f32
    %15 = vector.broadcast %cst_12 : f32 to vector<144x8xf32>
    %16 = arith.maximumf %14, %15 : vector<144x8xf32>
    %17 = arith.maximumf %8, %16 : vector<144x8xf32>
    %c2 = arith.constant 2 : index
    %c0_13 = arith.constant 0 : index
    %c0_14 = arith.constant 0 : index
    %18 = vector.load %arg1[%c2, %c0_13, %c0_14] : memref<4x144x36xbf16, #tpu.memory_space<vmem>>, vector<1x144x36xbf16>
    %19 = vector.shape_cast %18 : vector<1x144x36xbf16> to vector<144x36xbf16>
    %cst_15 = arith.constant dense<0.000000e+00> : vector<144x8xf32>
    %20 = tpu.matmul %19, %0, %cst_15 {dimension_numbers = #tpu.dot_dimension_numbers<[1], [0], [0], [1], [0, 0, 1, 1], [], []>} : vector<144x36xbf16>, vector<36x8xbf16>, vector<144x8xf32> -> vector<144x8xf32>
    %c0_16 = arith.constant 0 : index
    %c0_17 = arith.constant 0 : index
    %21 = vector.load %arg3[%c0_16, %c0_17] : memref<1x8xf32, #tpu.memory_space<vmem>>, vector<1x8xf32>
    %22 = vector.broadcast %21 : vector<1x8xf32> to vector<144x8xf32>
    %23 = arith.addf %20, %22 : vector<144x8xf32>
    %cst_18 = arith.constant 0.000000e+00 : f32
    %24 = vector.broadcast %cst_18 : f32 to vector<144x8xf32>
    %25 = arith.maximumf %23, %24 : vector<144x8xf32>
    %26 = arith.maximumf %17, %25 : vector<144x8xf32>
    %c3 = arith.constant 3 : index
    %c0_19 = arith.constant 0 : index
    %c0_20 = arith.constant 0 : index
    %27 = vector.load %arg1[%c3, %c0_19, %c0_20] : memref<4x144x36xbf16, #tpu.memory_space<vmem>>, vector<1x144x36xbf16>
    %28 = vector.shape_cast %27 : vector<1x144x36xbf16> to vector<144x36xbf16>
    %cst_21 = arith.constant dense<0.000000e+00> : vector<144x8xf32>
    %29 = tpu.matmul %28, %0, %cst_21 {dimension_numbers = #tpu.dot_dimension_numbers<[1], [0], [0], [1], [0, 0, 1, 1], [], []>} : vector<144x36xbf16>, vector<36x8xbf16>, vector<144x8xf32> -> vector<144x8xf32>
    %c0_22 = arith.constant 0 : index
    %c0_23 = arith.constant 0 : index
    %30 = vector.load %arg3[%c0_22, %c0_23] : memref<1x8xf32, #tpu.memory_space<vmem>>, vector<1x8xf32>
    %31 = vector.broadcast %30 : vector<1x8xf32> to vector<144x8xf32>
    %32 = arith.addf %29, %31 : vector<144x8xf32>
    %cst_24 = arith.constant 0.000000e+00 : f32
    %33 = vector.broadcast %cst_24 : f32 to vector<144x8xf32>
    %34 = arith.maximumf %32, %33 : vector<144x8xf32>
    %35 = arith.maximumf %26, %34 : vector<144x8xf32>
    %c0_25 = arith.constant 0 : index
    %c0_26 = arith.constant 0 : index
    %36 = vector.load %arg4[%c0_25, %c0_26] : memref<144x8xf32, #tpu.memory_space<vmem>>, vector<144x8xf32>
    tpu.vector_store %arg4[%c0_25, %c0_26], %35 {strides = array<i32>} : memref<144x8xf32, #tpu.memory_space<vmem>>, vector<144x8xf32>,
    return
  }
  func.func @transform_0(%arg0: i32) -> (i32, i32, i32) {
    %c0_i32 = arith.constant 0 : i32
    %c0_i32_0 = arith.constant 0 : i32
    %c0_i32_1 = arith.constant 0 : i32
    return %c0_i32, %arg0, %c0_i32_0 : i32, i32, i32
  }
  func.func @transform_1(%arg0: i32) -> (i32, i32) {
    %c0_i32 = arith.constant 0 : i32
    %c0_i32_0 = arith.constant 0 : i32
    %c0_i32_1 = arith.constant 0 : i32
    return %c0_i32, %c0_i32_0 : i32, i32
  }
  func.func @transform_2(%arg0: i32) -> (i32, i32) {
    %c0_i32 = arith.constant 0 : i32
    %c0_i32_0 = arith.constant 0 : i32
    %c0_i32_1 = arith.constant 0 : i32
    return %c0_i32, %c0_i32_0 : i32, i32
  }
  func.func @transform_3(%arg0: i32) -> (i32, i32) {
    %c0_i32 = arith.constant 0 : i32
    %c0_i32_0 = arith.constant 0 : i32
    return %arg0, %c0_i32 : i32, i32
  }
}

module attributes {stable_mosaic.version = 11 : i64} {
  func.func @_conv_kernel(%arg0: i32, %arg1: memref<1x144x72xbf16, #tpu.memory_space<vmem>>, %arg2: memref<72x16xbf16, #tpu.memory_space<vmem>>, %arg3: memref<1x16xf32, #tpu.memory_space<vmem>>, %arg4: memref<144x16xf32, #tpu.memory_space<vmem>>) attributes {dimension_semantics = [#tpu.dimension_semantics<parallel>], iteration_bounds = array<i64: 2>, scalar_prefetch = 0 : i64, scratch_operands = 0 : i64, tpu.core_type = #tpu.core_type<tc>, window_params = [{transform_indices = @transform_0, window_bounds = array<i64: 1, 144, 72>}, {pipeline_mode = #tpu.pipeline_mode<synchronous>, transform_indices = @transform_1, window_bounds = array<i64: 72, 16>}, {pipeline_mode = #tpu.pipeline_mode<synchronous>, transform_indices = @transform_2, window_bounds = array<i64: 1, 16>}, {transform_indices = @transform_3, window_bounds = array<i64: 144, 16>}]} {
    %c0 = arith.constant 0 : index
    %c0_0 = arith.constant 0 : index
    %0 = vector.load %arg2[%c0, %c0_0] : memref<72x16xbf16, #tpu.memory_space<vmem>>, vector<72x16xbf16>
    %c0_1 = arith.constant 0 : index
    %c0_2 = arith.constant 0 : index
    %c0_3 = arith.constant 0 : index
    %1 = vector.load %arg1[%c0_1, %c0_2, %c0_3] : memref<1x144x72xbf16, #tpu.memory_space<vmem>>, vector<1x144x72xbf16>
    %2 = vector.shape_cast %1 : vector<1x144x72xbf16> to vector<144x72xbf16>
    %cst = arith.constant dense<0.000000e+00> : vector<144x16xf32>
    %3 = tpu.matmul %2, %0, %cst {dimension_numbers = #tpu.dot_dimension_numbers<[1], [0], [0], [1], [0, 0, 1, 1], [], []>} : vector<144x72xbf16>, vector<72x16xbf16>, vector<144x16xf32> -> vector<144x16xf32>
    %c0_4 = arith.constant 0 : index
    %c0_5 = arith.constant 0 : index
    %4 = vector.load %arg3[%c0_4, %c0_5] : memref<1x16xf32, #tpu.memory_space<vmem>>, vector<1x16xf32>
    %5 = vector.broadcast %4 : vector<1x16xf32> to vector<144x16xf32>
    %6 = arith.addf %3, %5 : vector<144x16xf32>
    %cst_6 = arith.constant 0.000000e+00 : f32
    %7 = vector.broadcast %cst_6 : f32 to vector<144x16xf32>
    %8 = arith.maximumf %6, %7 : vector<144x16xf32>
    %c0_7 = arith.constant 0 : index
    %c0_8 = arith.constant 0 : index
    %9 = vector.load %arg4[%c0_7, %c0_8] : memref<144x16xf32, #tpu.memory_space<vmem>>, vector<144x16xf32>
    tpu.vector_store %arg4[%c0_7, %c0_8], %8 {strides = array<i32>} : memref<144x16xf32, #tpu.memory_space<vmem>>, vector<144x16xf32>,
    return
  }
  func.func @transform_0(%arg0: i32) -> (i32, i32, i32) {
    %c0_i32 = arith.constant 0 : i32
    %c0_i32_0 = arith.constant 0 : i32
    %c0_i32_1 = arith.constant 0 : i32
    return %c0_i32, %arg0, %c0_i32_0 : i32, i32, i32
  }
  func.func @transform_1(%arg0: i32) -> (i32, i32) {
    %c0_i32 = arith.constant 0 : i32
    %c0_i32_0 = arith.constant 0 : i32
    %c0_i32_1 = arith.constant 0 : i32
    return %c0_i32, %c0_i32_0 : i32, i32
  }
  func.func @transform_2(%arg0: i32) -> (i32, i32) {
    %c0_i32 = arith.constant 0 : i32
    %c0_i32_0 = arith.constant 0 : i32
    %c0_i32_1 = arith.constant 0 : i32
    return %c0_i32, %c0_i32_0 : i32, i32
  }
  func.func @transform_3(%arg0: i32) -> (i32, i32) {
    %c0_i32 = arith.constant 0 : i32
    %c0_i32_0 = arith.constant 0 : i32
    return %arg0, %c0_i32 : i32, i32
  }
}

module attributes {stable_mosaic.version = 11 : i64} {
  func.func @_conv_kernel(%arg0: i32, %arg1: memref<4x72x144xbf16, #tpu.memory_space<vmem>>, %arg2: memref<144x16xbf16, #tpu.memory_space<vmem>>, %arg3: memref<1x16xf32, #tpu.memory_space<vmem>>, %arg4: memref<72x16xf32, #tpu.memory_space<vmem>>) attributes {dimension_semantics = [#tpu.dimension_semantics<parallel>], iteration_bounds = array<i64: 1>, scalar_prefetch = 0 : i64, scratch_operands = 0 : i64, tpu.core_type = #tpu.core_type<tc>, window_params = [{transform_indices = @transform_0, window_bounds = array<i64: 4, 72, 144>}, {pipeline_mode = #tpu.pipeline_mode<synchronous>, transform_indices = @transform_1, window_bounds = array<i64: 144, 16>}, {pipeline_mode = #tpu.pipeline_mode<synchronous>, transform_indices = @transform_2, window_bounds = array<i64: 1, 16>}, {transform_indices = @transform_3, window_bounds = array<i64: 72, 16>}]} {
    %c0 = arith.constant 0 : index
    %c0_0 = arith.constant 0 : index
    %0 = vector.load %arg2[%c0, %c0_0] : memref<144x16xbf16, #tpu.memory_space<vmem>>, vector<144x16xbf16>
    %c0_1 = arith.constant 0 : index
    %c0_2 = arith.constant 0 : index
    %c0_3 = arith.constant 0 : index
    %1 = vector.load %arg1[%c0_1, %c0_2, %c0_3] : memref<4x72x144xbf16, #tpu.memory_space<vmem>>, vector<1x72x144xbf16>
    %2 = vector.shape_cast %1 : vector<1x72x144xbf16> to vector<72x144xbf16>
    %cst = arith.constant dense<0.000000e+00> : vector<72x16xf32>
    %3 = tpu.matmul %2, %0, %cst {dimension_numbers = #tpu.dot_dimension_numbers<[1], [0], [0], [1], [0, 0, 1, 1], [], []>} : vector<72x144xbf16>, vector<144x16xbf16>, vector<72x16xf32> -> vector<72x16xf32>
    %c0_4 = arith.constant 0 : index
    %c0_5 = arith.constant 0 : index
    %4 = vector.load %arg3[%c0_4, %c0_5] : memref<1x16xf32, #tpu.memory_space<vmem>>, vector<1x16xf32>
    %5 = vector.broadcast %4 : vector<1x16xf32> to vector<72x16xf32>
    %6 = arith.addf %3, %5 : vector<72x16xf32>
    %c1 = arith.constant 1 : index
    %c0_6 = arith.constant 0 : index
    %c0_7 = arith.constant 0 : index
    %7 = vector.load %arg1[%c1, %c0_6, %c0_7] : memref<4x72x144xbf16, #tpu.memory_space<vmem>>, vector<1x72x144xbf16>
    %8 = vector.shape_cast %7 : vector<1x72x144xbf16> to vector<72x144xbf16>
    %cst_8 = arith.constant dense<0.000000e+00> : vector<72x16xf32>
    %9 = tpu.matmul %8, %0, %cst_8 {dimension_numbers = #tpu.dot_dimension_numbers<[1], [0], [0], [1], [0, 0, 1, 1], [], []>} : vector<72x144xbf16>, vector<144x16xbf16>, vector<72x16xf32> -> vector<72x16xf32>
    %c0_9 = arith.constant 0 : index
    %c0_10 = arith.constant 0 : index
    %10 = vector.load %arg3[%c0_9, %c0_10] : memref<1x16xf32, #tpu.memory_space<vmem>>, vector<1x16xf32>
    %11 = vector.broadcast %10 : vector<1x16xf32> to vector<72x16xf32>
    %12 = arith.addf %9, %11 : vector<72x16xf32>
    %13 = arith.maximumf %6, %12 : vector<72x16xf32>
    %c2 = arith.constant 2 : index
    %c0_11 = arith.constant 0 : index
    %c0_12 = arith.constant 0 : index
    %14 = vector.load %arg1[%c2, %c0_11, %c0_12] : memref<4x72x144xbf16, #tpu.memory_space<vmem>>, vector<1x72x144xbf16>
    %15 = vector.shape_cast %14 : vector<1x72x144xbf16> to vector<72x144xbf16>
    %cst_13 = arith.constant dense<0.000000e+00> : vector<72x16xf32>
    %16 = tpu.matmul %15, %0, %cst_13 {dimension_numbers = #tpu.dot_dimension_numbers<[1], [0], [0], [1], [0, 0, 1, 1], [], []>} : vector<72x144xbf16>, vector<144x16xbf16>, vector<72x16xf32> -> vector<72x16xf32>
    %c0_14 = arith.constant 0 : index
    %c0_15 = arith.constant 0 : index
    %17 = vector.load %arg3[%c0_14, %c0_15] : memref<1x16xf32, #tpu.memory_space<vmem>>, vector<1x16xf32>
    %18 = vector.broadcast %17 : vector<1x16xf32> to vector<72x16xf32>
    %19 = arith.addf %16, %18 : vector<72x16xf32>
    %20 = arith.maximumf %13, %19 : vector<72x16xf32>
    %c3 = arith.constant 3 : index
    %c0_16 = arith.constant 0 : index
    %c0_17 = arith.constant 0 : index
    %21 = vector.load %arg1[%c3, %c0_16, %c0_17] : memref<4x72x144xbf16, #tpu.memory_space<vmem>>, vector<1x72x144xbf16>
    %22 = vector.shape_cast %21 : vector<1x72x144xbf16> to vector<72x144xbf16>
    %cst_18 = arith.constant dense<0.000000e+00> : vector<72x16xf32>
    %23 = tpu.matmul %22, %0, %cst_18 {dimension_numbers = #tpu.dot_dimension_numbers<[1], [0], [0], [1], [0, 0, 1, 1], [], []>} : vector<72x144xbf16>, vector<144x16xbf16>, vector<72x16xf32> -> vector<72x16xf32>
    %c0_19 = arith.constant 0 : index
    %c0_20 = arith.constant 0 : index
    %24 = vector.load %arg3[%c0_19, %c0_20] : memref<1x16xf32, #tpu.memory_space<vmem>>, vector<1x16xf32>
    %25 = vector.broadcast %24 : vector<1x16xf32> to vector<72x16xf32>
    %26 = arith.addf %23, %25 : vector<72x16xf32>
    %27 = arith.maximumf %20, %26 : vector<72x16xf32>
    %c0_21 = arith.constant 0 : index
    %c0_22 = arith.constant 0 : index
    %28 = vector.load %arg4[%c0_21, %c0_22] : memref<72x16xf32, #tpu.memory_space<vmem>>, vector<72x16xf32>
    tpu.vector_store %arg4[%c0_21, %c0_22], %27 {strides = array<i32>} : memref<72x16xf32, #tpu.memory_space<vmem>>, vector<72x16xf32>,
    return
  }
  func.func @transform_0(%arg0: i32) -> (i32, i32, i32) {
    %c0_i32 = arith.constant 0 : i32
    %c0_i32_0 = arith.constant 0 : i32
    %c0_i32_1 = arith.constant 0 : i32
    return %c0_i32, %arg0, %c0_i32_0 : i32, i32, i32
  }
  func.func @transform_1(%arg0: i32) -> (i32, i32) {
    %c0_i32 = arith.constant 0 : i32
    %c0_i32_0 = arith.constant 0 : i32
    %c0_i32_1 = arith.constant 0 : i32
    return %c0_i32, %c0_i32_0 : i32, i32
  }
  func.func @transform_2(%arg0: i32) -> (i32, i32) {
    %c0_i32 = arith.constant 0 : i32
    %c0_i32_0 = arith.constant 0 : i32
    %c0_i32_1 = arith.constant 0 : i32
    return %c0_i32, %c0_i32_0 : i32, i32
  }
  func.func @transform_3(%arg0: i32) -> (i32, i32) {
    %c0_i32 = arith.constant 0 : i32
    %c0_i32_0 = arith.constant 0 : i32
    return %arg0, %c0_i32 : i32, i32
  }
}

module attributes {stable_mosaic.version = 11 : i64} {
  func.func @_conv_bn_kernel(%arg0: i32, %arg1: memref<1x72x144xbf16, #tpu.memory_space<vmem>>, %arg2: memref<144x32xbf16, #tpu.memory_space<vmem>>, %arg3: memref<1x32xf32, #tpu.memory_space<vmem>>, %arg4: memref<1x32xf32, #tpu.memory_space<vmem>>, %arg5: memref<72x32xf32, #tpu.memory_space<vmem>>) attributes {dimension_semantics = [#tpu.dimension_semantics<arbitrary>], iteration_bounds = array<i64: 1>, scalar_prefetch = 0 : i64, scratch_operands = 0 : i64, tpu.core_type = #tpu.core_type<tc>, window_params = [{pipeline_mode = #tpu.pipeline_mode<synchronous>, transform_indices = @transform_0, window_bounds = array<i64: 1, 72, 144>}, {pipeline_mode = #tpu.pipeline_mode<synchronous>, transform_indices = @transform_1, window_bounds = array<i64: 144, 32>}, {pipeline_mode = #tpu.pipeline_mode<synchronous>, transform_indices = @transform_2, window_bounds = array<i64: 1, 32>}, {pipeline_mode = #tpu.pipeline_mode<synchronous>, transform_indices = @transform_3, window_bounds = array<i64: 1, 32>}, {pipeline_mode = #tpu.pipeline_mode<synchronous>, transform_indices = @transform_4, window_bounds = array<i64: 72, 32>}]} {
    %c0 = arith.constant 0 : index
    %c0_0 = arith.constant 0 : index
    %0 = vector.load %arg2[%c0, %c0_0] : memref<144x32xbf16, #tpu.memory_space<vmem>>, vector<144x32xbf16>
    %c0_1 = arith.constant 0 : index
    %c0_2 = arith.constant 0 : index
    %c0_3 = arith.constant 0 : index
    %1 = vector.load %arg1[%c0_1, %c0_2, %c0_3] : memref<1x72x144xbf16, #tpu.memory_space<vmem>>, vector<1x72x144xbf16>
    %2 = vector.shape_cast %1 : vector<1x72x144xbf16> to vector<72x144xbf16>
    %cst = arith.constant dense<0.000000e+00> : vector<72x32xf32>
    %3 = tpu.matmul %2, %0, %cst {dimension_numbers = #tpu.dot_dimension_numbers<[1], [0], [0], [1], [0, 0, 1, 1], [], []>} : vector<72x144xbf16>, vector<144x32xbf16>, vector<72x32xf32> -> vector<72x32xf32>
    %cst_4 = arith.constant dense<0.000000e+00> : vector<32xf32>
    %4 = vector.multi_reduction <add>, %3, %cst_4 [0] : vector<72x32xf32> to vector<32xf32>
    %5 = vector.shape_cast %4 : vector<32xf32> to vector<1x32xf32>
    %cst_5 = arith.constant 7.200000e+01 : f32
    %6 = vector.broadcast %cst_5 : f32 to vector<1x32xf32>
    %7 = arith.divf %5, %6 : vector<1x32xf32>
    %cst_6 = arith.constant 0.000000e+00 : f32
    %8 = vector.broadcast %cst_6 : f32 to vector<1x32xf32>
    %9 = arith.addf %8, %7 : vector<1x32xf32>
    %cst_7 = arith.constant 1.000000e+00 : f32
    %10 = vector.broadcast %cst_7 : f32 to vector<1x32xf32>
    %11 = arith.divf %9, %10 : vector<1x32xf32>
    %12 = arith.mulf %3, %3 : vector<72x32xf32>
    %cst_8 = arith.constant dense<0.000000e+00> : vector<32xf32>
    %13 = vector.multi_reduction <add>, %12, %cst_8 [0] : vector<72x32xf32> to vector<32xf32>
    %14 = vector.shape_cast %13 : vector<32xf32> to vector<1x32xf32>
    %cst_9 = arith.constant 7.200000e+01 : f32
    %15 = vector.broadcast %cst_9 : f32 to vector<1x32xf32>
    %16 = arith.divf %14, %15 : vector<1x32xf32>
    %cst_10 = arith.constant 0.000000e+00 : f32
    %17 = vector.broadcast %cst_10 : f32 to vector<1x32xf32>
    %18 = arith.addf %17, %16 : vector<1x32xf32>
    %cst_11 = arith.constant 1.000000e+00 : f32
    %19 = vector.broadcast %cst_11 : f32 to vector<1x32xf32>
    %20 = arith.divf %18, %19 : vector<1x32xf32>
    %21 = arith.mulf %11, %11 : vector<1x32xf32>
    %22 = arith.subf %20, %21 : vector<1x32xf32>
    %cst_12 = arith.constant 9.99999974E-6 : f32
    %23 = vector.broadcast %cst_12 : f32 to vector<1x32xf32>
    %24 = arith.addf %22, %23 : vector<1x32xf32>
    %25 = math.rsqrt %24 : vector<1x32xf32>
    %26 = vector.broadcast %11 : vector<1x32xf32> to vector<72x32xf32>
    %27 = arith.subf %3, %26 : vector<72x32xf32>
    %28 = vector.broadcast %25 : vector<1x32xf32> to vector<72x32xf32>
    %29 = arith.mulf %27, %28 : vector<72x32xf32>
    %c0_13 = arith.constant 0 : index
    %c0_14 = arith.constant 0 : index
    %30 = vector.load %arg3[%c0_13, %c0_14] : memref<1x32xf32, #tpu.memory_space<vmem>>, vector<1x32xf32>
    %31 = vector.broadcast %30 : vector<1x32xf32> to vector<72x32xf32>
    %32 = arith.mulf %29, %31 : vector<72x32xf32>
    %c0_15 = arith.constant 0 : index
    %c0_16 = arith.constant 0 : index
    %33 = vector.load %arg4[%c0_15, %c0_16] : memref<1x32xf32, #tpu.memory_space<vmem>>, vector<1x32xf32>
    %34 = vector.broadcast %33 : vector<1x32xf32> to vector<72x32xf32>
    %35 = arith.addf %32, %34 : vector<72x32xf32>
    %cst_17 = arith.constant 0.000000e+00 : f32
    %36 = vector.broadcast %cst_17 : f32 to vector<72x32xf32>
    %37 = arith.maximumf %35, %36 : vector<72x32xf32>
    %c0_18 = arith.constant 0 : index
    %c0_19 = arith.constant 0 : index
    %38 = vector.load %arg5[%c0_18, %c0_19] : memref<72x32xf32, #tpu.memory_space<vmem>>, vector<72x32xf32>
    tpu.vector_store %arg5[%c0_18, %c0_19], %37 {strides = array<i32>} : memref<72x32xf32, #tpu.memory_space<vmem>>, vector<72x32xf32>,
    return
  }
  func.func @transform_0(%arg0: i32) -> (i32, i32, i32) {
    %c0_i32 = arith.constant 0 : i32
    %c0_i32_0 = arith.constant 0 : i32
    %c0_i32_1 = arith.constant 0 : i32
    %c0_i32_2 = arith.constant 0 : i32
    return %c0_i32, %c0_i32_0, %c0_i32_1 : i32, i32, i32
  }
  func.func @transform_1(%arg0: i32) -> (i32, i32) {
    %c0_i32 = arith.constant 0 : i32
    %c0_i32_0 = arith.constant 0 : i32
    %c0_i32_1 = arith.constant 0 : i32
    return %c0_i32, %c0_i32_0 : i32, i32
  }
  func.func @transform_2(%arg0: i32) -> (i32, i32) {
    %c0_i32 = arith.constant 0 : i32
    %c0_i32_0 = arith.constant 0 : i32
    %c0_i32_1 = arith.constant 0 : i32
    return %c0_i32, %c0_i32_0 : i32, i32
  }
  func.func @transform_3(%arg0: i32) -> (i32, i32) {
    %c0_i32 = arith.constant 0 : i32
    %c0_i32_0 = arith.constant 0 : i32
    %c0_i32_1 = arith.constant 0 : i32
    return %c0_i32, %c0_i32_0 : i32, i32
  }
  func.func @transform_4(%arg0: i32) -> (i32, i32) {
    %c0_i32 = arith.constant 0 : i32
    %c0_i32_0 = arith.constant 0 : i32
    %c0_i32_1 = arith.constant 0 : i32
    return %c0_i32, %c0_i32_0 : i32, i32
  }
}

module attributes {stable_mosaic.version = 11 : i64} {
  func.func @_conv_bn_kernel(%arg0: i32, %arg1: memref<4x18x288xbf16, #tpu.memory_space<vmem>>, %arg2: memref<288x32xbf16, #tpu.memory_space<vmem>>, %arg3: memref<1x32xf32, #tpu.memory_space<vmem>>, %arg4: memref<1x32xf32, #tpu.memory_space<vmem>>, %arg5: memref<18x32xf32, #tpu.memory_space<vmem>>) attributes {dimension_semantics = [#tpu.dimension_semantics<arbitrary>], iteration_bounds = array<i64: 1>, scalar_prefetch = 0 : i64, scratch_operands = 0 : i64, tpu.core_type = #tpu.core_type<tc>, window_params = [{pipeline_mode = #tpu.pipeline_mode<synchronous>, transform_indices = @transform_0, window_bounds = array<i64: 4, 18, 288>}, {pipeline_mode = #tpu.pipeline_mode<synchronous>, transform_indices = @transform_1, window_bounds = array<i64: 288, 32>}, {pipeline_mode = #tpu.pipeline_mode<synchronous>, transform_indices = @transform_2, window_bounds = array<i64: 1, 32>}, {pipeline_mode = #tpu.pipeline_mode<synchronous>, transform_indices = @transform_3, window_bounds = array<i64: 1, 32>}, {pipeline_mode = #tpu.pipeline_mode<synchronous>, transform_indices = @transform_4, window_bounds = array<i64: 18, 32>}]} {
    %c0 = arith.constant 0 : index
    %c0_0 = arith.constant 0 : index
    %0 = vector.load %arg2[%c0, %c0_0] : memref<288x32xbf16, #tpu.memory_space<vmem>>, vector<288x32xbf16>
    %c0_1 = arith.constant 0 : index
    %c0_2 = arith.constant 0 : index
    %c0_3 = arith.constant 0 : index
    %1 = vector.load %arg1[%c0_1, %c0_2, %c0_3] : memref<4x18x288xbf16, #tpu.memory_space<vmem>>, vector<1x18x288xbf16>
    %2 = vector.shape_cast %1 : vector<1x18x288xbf16> to vector<18x288xbf16>
    %cst = arith.constant dense<0.000000e+00> : vector<18x32xf32>
    %3 = tpu.matmul %2, %0, %cst {dimension_numbers = #tpu.dot_dimension_numbers<[1], [0], [0], [1], [0, 0, 1, 1], [], []>} : vector<18x288xbf16>, vector<288x32xbf16>, vector<18x32xf32> -> vector<18x32xf32>
    %c1 = arith.constant 1 : index
    %c0_4 = arith.constant 0 : index
    %c0_5 = arith.constant 0 : index
    %4 = vector.load %arg1[%c1, %c0_4, %c0_5] : memref<4x18x288xbf16, #tpu.memory_space<vmem>>, vector<1x18x288xbf16>
    %5 = vector.shape_cast %4 : vector<1x18x288xbf16> to vector<18x288xbf16>
    %cst_6 = arith.constant dense<0.000000e+00> : vector<18x32xf32>
    %6 = tpu.matmul %5, %0, %cst_6 {dimension_numbers = #tpu.dot_dimension_numbers<[1], [0], [0], [1], [0, 0, 1, 1], [], []>} : vector<18x288xbf16>, vector<288x32xbf16>, vector<18x32xf32> -> vector<18x32xf32>
    %c2 = arith.constant 2 : index
    %c0_7 = arith.constant 0 : index
    %c0_8 = arith.constant 0 : index
    %7 = vector.load %arg1[%c2, %c0_7, %c0_8] : memref<4x18x288xbf16, #tpu.memory_space<vmem>>, vector<1x18x288xbf16>
    %8 = vector.shape_cast %7 : vector<1x18x288xbf16> to vector<18x288xbf16>
    %cst_9 = arith.constant dense<0.000000e+00> : vector<18x32xf32>
    %9 = tpu.matmul %8, %0, %cst_9 {dimension_numbers = #tpu.dot_dimension_numbers<[1], [0], [0], [1], [0, 0, 1, 1], [], []>} : vector<18x288xbf16>, vector<288x32xbf16>, vector<18x32xf32> -> vector<18x32xf32>
    %c3 = arith.constant 3 : index
    %c0_10 = arith.constant 0 : index
    %c0_11 = arith.constant 0 : index
    %10 = vector.load %arg1[%c3, %c0_10, %c0_11] : memref<4x18x288xbf16, #tpu.memory_space<vmem>>, vector<1x18x288xbf16>
    %11 = vector.shape_cast %10 : vector<1x18x288xbf16> to vector<18x288xbf16>
    %cst_12 = arith.constant dense<0.000000e+00> : vector<18x32xf32>
    %12 = tpu.matmul %11, %0, %cst_12 {dimension_numbers = #tpu.dot_dimension_numbers<[1], [0], [0], [1], [0, 0, 1, 1], [], []>} : vector<18x288xbf16>, vector<288x32xbf16>, vector<18x32xf32> -> vector<18x32xf32>
    %cst_13 = arith.constant dense<0.000000e+00> : vector<32xf32>
    %13 = vector.multi_reduction <add>, %3, %cst_13 [0] : vector<18x32xf32> to vector<32xf32>
    %14 = vector.shape_cast %13 : vector<32xf32> to vector<1x32xf32>
    %cst_14 = arith.constant 1.800000e+01 : f32
    %15 = vector.broadcast %cst_14 : f32 to vector<1x32xf32>
    %16 = arith.divf %14, %15 : vector<1x32xf32>
    %cst_15 = arith.constant 0.000000e+00 : f32
    %17 = vector.broadcast %cst_15 : f32 to vector<1x32xf32>
    %18 = arith.addf %17, %16 : vector<1x32xf32>
    %cst_16 = arith.constant dense<0.000000e+00> : vector<32xf32>
    %19 = vector.multi_reduction <add>, %6, %cst_16 [0] : vector<18x32xf32> to vector<32xf32>
    %20 = vector.shape_cast %19 : vector<32xf32> to vector<1x32xf32>
    %cst_17 = arith.constant 1.800000e+01 : f32
    %21 = vector.broadcast %cst_17 : f32 to vector<1x32xf32>
    %22 = arith.divf %20, %21 : vector<1x32xf32>
    %23 = arith.addf %18, %22 : vector<1x32xf32>
    %cst_18 = arith.constant dense<0.000000e+00> : vector<32xf32>
    %24 = vector.multi_reduction <add>, %9, %cst_18 [0] : vector<18x32xf32> to vector<32xf32>
    %25 = vector.shape_cast %24 : vector<32xf32> to vector<1x32xf32>
    %cst_19 = arith.constant 1.800000e+01 : f32
    %26 = vector.broadcast %cst_19 : f32 to vector<1x32xf32>
    %27 = arith.divf %25, %26 : vector<1x32xf32>
    %28 = arith.addf %23, %27 : vector<1x32xf32>
    %cst_20 = arith.constant dense<0.000000e+00> : vector<32xf32>
    %29 = vector.multi_reduction <add>, %12, %cst_20 [0] : vector<18x32xf32> to vector<32xf32>
    %30 = vector.shape_cast %29 : vector<32xf32> to vector<1x32xf32>
    %cst_21 = arith.constant 1.800000e+01 : f32
    %31 = vector.broadcast %cst_21 : f32 to vector<1x32xf32>
    %32 = arith.divf %30, %31 : vector<1x32xf32>
    %33 = arith.addf %28, %32 : vector<1x32xf32>
    %cst_22 = arith.constant 4.000000e+00 : f32
    %34 = vector.broadcast %cst_22 : f32 to vector<1x32xf32>
    %35 = arith.divf %33, %34 : vector<1x32xf32>
    %36 = arith.mulf %3, %3 : vector<18x32xf32>
    %cst_23 = arith.constant dense<0.000000e+00> : vector<32xf32>
    %37 = vector.multi_reduction <add>, %36, %cst_23 [0] : vector<18x32xf32> to vector<32xf32>
    %38 = vector.shape_cast %37 : vector<32xf32> to vector<1x32xf32>
    %cst_24 = arith.constant 1.800000e+01 : f32
    %39 = vector.broadcast %cst_24 : f32 to vector<1x32xf32>
    %40 = arith.divf %38, %39 : vector<1x32xf32>
    %cst_25 = arith.constant 0.000000e+00 : f32
    %41 = vector.broadcast %cst_25 : f32 to vector<1x32xf32>
    %42 = arith.addf %41, %40 : vector<1x32xf32>
    %43 = arith.mulf %6, %6 : vector<18x32xf32>
    %cst_26 = arith.constant dense<0.000000e+00> : vector<32xf32>
    %44 = vector.multi_reduction <add>, %43, %cst_26 [0] : vector<18x32xf32> to vector<32xf32>
    %45 = vector.shape_cast %44 : vector<32xf32> to vector<1x32xf32>
    %cst_27 = arith.constant 1.800000e+01 : f32
    %46 = vector.broadcast %cst_27 : f32 to vector<1x32xf32>
    %47 = arith.divf %45, %46 : vector<1x32xf32>
    %48 = arith.addf %42, %47 : vector<1x32xf32>
    %49 = arith.mulf %9, %9 : vector<18x32xf32>
    %cst_28 = arith.constant dense<0.000000e+00> : vector<32xf32>
    %50 = vector.multi_reduction <add>, %49, %cst_28 [0] : vector<18x32xf32> to vector<32xf32>
    %51 = vector.shape_cast %50 : vector<32xf32> to vector<1x32xf32>
    %cst_29 = arith.constant 1.800000e+01 : f32
    %52 = vector.broadcast %cst_29 : f32 to vector<1x32xf32>
    %53 = arith.divf %51, %52 : vector<1x32xf32>
    %54 = arith.addf %48, %53 : vector<1x32xf32>
    %55 = arith.mulf %12, %12 : vector<18x32xf32>
    %cst_30 = arith.constant dense<0.000000e+00> : vector<32xf32>
    %56 = vector.multi_reduction <add>, %55, %cst_30 [0] : vector<18x32xf32> to vector<32xf32>
    %57 = vector.shape_cast %56 : vector<32xf32> to vector<1x32xf32>
    %cst_31 = arith.constant 1.800000e+01 : f32
    %58 = vector.broadcast %cst_31 : f32 to vector<1x32xf32>
    %59 = arith.divf %57, %58 : vector<1x32xf32>
    %60 = arith.addf %54, %59 : vector<1x32xf32>
    %cst_32 = arith.constant 4.000000e+00 : f32
    %61 = vector.broadcast %cst_32 : f32 to vector<1x32xf32>
    %62 = arith.divf %60, %61 : vector<1x32xf32>
    %63 = arith.mulf %35, %35 : vector<1x32xf32>
    %64 = arith.subf %62, %63 : vector<1x32xf32>
    %cst_33 = arith.constant 9.99999974E-6 : f32
    %65 = vector.broadcast %cst_33 : f32 to vector<1x32xf32>
    %66 = arith.addf %64, %65 : vector<1x32xf32>
    %67 = math.rsqrt %66 : vector<1x32xf32>
    %68 = vector.broadcast %35 : vector<1x32xf32> to vector<18x32xf32>
    %69 = arith.subf %3, %68 : vector<18x32xf32>
    %70 = vector.broadcast %67 : vector<1x32xf32> to vector<18x32xf32>
    %71 = arith.mulf %69, %70 : vector<18x32xf32>
    %c0_34 = arith.constant 0 : index
    %c0_35 = arith.constant 0 : index
    %72 = vector.load %arg3[%c0_34, %c0_35] : memref<1x32xf32, #tpu.memory_space<vmem>>, vector<1x32xf32>
    %73 = vector.broadcast %72 : vector<1x32xf32> to vector<18x32xf32>
    %74 = arith.mulf %71, %73 : vector<18x32xf32>
    %c0_36 = arith.constant 0 : index
    %c0_37 = arith.constant 0 : index
    %75 = vector.load %arg4[%c0_36, %c0_37] : memref<1x32xf32, #tpu.memory_space<vmem>>, vector<1x32xf32>
    %76 = vector.broadcast %75 : vector<1x32xf32> to vector<18x32xf32>
    %77 = arith.addf %74, %76 : vector<18x32xf32>
    %cst_38 = arith.constant 0.000000e+00 : f32
    %78 = vector.broadcast %cst_38 : f32 to vector<18x32xf32>
    %79 = arith.maximumf %77, %78 : vector<18x32xf32>
    %80 = vector.broadcast %35 : vector<1x32xf32> to vector<18x32xf32>
    %81 = arith.subf %6, %80 : vector<18x32xf32>
    %82 = vector.broadcast %67 : vector<1x32xf32> to vector<18x32xf32>
    %83 = arith.mulf %81, %82 : vector<18x32xf32>
    %c0_39 = arith.constant 0 : index
    %c0_40 = arith.constant 0 : index
    %84 = vector.load %arg3[%c0_39, %c0_40] : memref<1x32xf32, #tpu.memory_space<vmem>>, vector<1x32xf32>
    %85 = vector.broadcast %84 : vector<1x32xf32> to vector<18x32xf32>
    %86 = arith.mulf %83, %85 : vector<18x32xf32>
    %c0_41 = arith.constant 0 : index
    %c0_42 = arith.constant 0 : index
    %87 = vector.load %arg4[%c0_41, %c0_42] : memref<1x32xf32, #tpu.memory_space<vmem>>, vector<1x32xf32>
    %88 = vector.broadcast %87 : vector<1x32xf32> to vector<18x32xf32>
    %89 = arith.addf %86, %88 : vector<18x32xf32>
    %cst_43 = arith.constant 0.000000e+00 : f32
    %90 = vector.broadcast %cst_43 : f32 to vector<18x32xf32>
    %91 = arith.maximumf %89, %90 : vector<18x32xf32>
    %92 = arith.maximumf %79, %91 : vector<18x32xf32>
    %93 = vector.broadcast %35 : vector<1x32xf32> to vector<18x32xf32>
    %94 = arith.subf %9, %93 : vector<18x32xf32>
    %95 = vector.broadcast %67 : vector<1x32xf32> to vector<18x32xf32>
    %96 = arith.mulf %94, %95 : vector<18x32xf32>
    %c0_44 = arith.constant 0 : index
    %c0_45 = arith.constant 0 : index
    %97 = vector.load %arg3[%c0_44, %c0_45] : memref<1x32xf32, #tpu.memory_space<vmem>>, vector<1x32xf32>
    %98 = vector.broadcast %97 : vector<1x32xf32> to vector<18x32xf32>
    %99 = arith.mulf %96, %98 : vector<18x32xf32>
    %c0_46 = arith.constant 0 : index
    %c0_47 = arith.constant 0 : index
    %100 = vector.load %arg4[%c0_46, %c0_47] : memref<1x32xf32, #tpu.memory_space<vmem>>, vector<1x32xf32>
    %101 = vector.broadcast %100 : vector<1x32xf32> to vector<18x32xf32>
    %102 = arith.addf %99, %101 : vector<18x32xf32>
    %cst_48 = arith.constant 0.000000e+00 : f32
    %103 = vector.broadcast %cst_48 : f32 to vector<18x32xf32>
    %104 = arith.maximumf %102, %103 : vector<18x32xf32>
    %105 = arith.maximumf %92, %104 : vector<18x32xf32>
    %106 = vector.broadcast %35 : vector<1x32xf32> to vector<18x32xf32>
    %107 = arith.subf %12, %106 : vector<18x32xf32>
    %108 = vector.broadcast %67 : vector<1x32xf32> to vector<18x32xf32>
    %109 = arith.mulf %107, %108 : vector<18x32xf32>
    %c0_49 = arith.constant 0 : index
    %c0_50 = arith.constant 0 : index
    %110 = vector.load %arg3[%c0_49, %c0_50] : memref<1x32xf32, #tpu.memory_space<vmem>>, vector<1x32xf32>
    %111 = vector.broadcast %110 : vector<1x32xf32> to vector<18x32xf32>
    %112 = arith.mulf %109, %111 : vector<18x32xf32>
    %c0_51 = arith.constant 0 : index
    %c0_52 = arith.constant 0 : index
    %113 = vector.load %arg4[%c0_51, %c0_52] : memref<1x32xf32, #tpu.memory_space<vmem>>, vector<1x32xf32>
    %114 = vector.broadcast %113 : vector<1x32xf32> to vector<18x32xf32>
    %115 = arith.addf %112, %114 : vector<18x32xf32>
    %cst_53 = arith.constant 0.000000e+00 : f32
    %116 = vector.broadcast %cst_53 : f32 to vector<18x32xf32>
    %117 = arith.maximumf %115, %116 : vector<18x32xf32>
    %118 = arith.maximumf %105, %117 : vector<18x32xf32>
    %c0_54 = arith.constant 0 : index
    %c0_55 = arith.constant 0 : index
    %119 = vector.load %arg5[%c0_54, %c0_55] : memref<18x32xf32, #tpu.memory_space<vmem>>, vector<18x32xf32>
    tpu.vector_store %arg5[%c0_54, %c0_55], %118 {strides = array<i32>} : memref<18x32xf32, #tpu.memory_space<vmem>>, vector<18x32xf32>,
    return
  }
  func.func @transform_0(%arg0: i32) -> (i32, i32, i32) {
    %c0_i32 = arith.constant 0 : i32
    %c0_i32_0 = arith.constant 0 : i32
    %c0_i32_1 = arith.constant 0 : i32
    %c0_i32_2 = arith.constant 0 : i32
    return %c0_i32, %c0_i32_0, %c0_i32_1 : i32, i32, i32
  }
  func.func @transform_1(%arg0: i32) -> (i32, i32) {
    %c0_i32 = arith.constant 0 : i32
    %c0_i32_0 = arith.constant 0 : i32
    %c0_i32_1 = arith.constant 0 : i32
    return %c0_i32, %c0_i32_0 : i32, i32
  }
  func.func @transform_2(%arg0: i32) -> (i32, i32) {
    %c0_i32 = arith.constant 0 : i32
    %c0_i32_0 = arith.constant 0 : i32
    %c0_i32_1 = arith.constant 0 : i32
    return %c0_i32, %c0_i32_0 : i32, i32
  }
  func.func @transform_3(%arg0: i32) -> (i32, i32) {
    %c0_i32 = arith.constant 0 : i32
    %c0_i32_0 = arith.constant 0 : i32
    %c0_i32_1 = arith.constant 0 : i32
    return %c0_i32, %c0_i32_0 : i32, i32
  }
  func.func @transform_4(%arg0: i32) -> (i32, i32) {
    %c0_i32 = arith.constant 0 : i32
    %c0_i32_0 = arith.constant 0 : i32
    %c0_i32_1 = arith.constant 0 : i32
    return %c0_i32, %c0_i32_0 : i32, i32
  }
}

module attributes {stable_mosaic.version = 11 : i64} {
  func.func @_head_kernel(%arg0: i32, %arg1: memref<2x288xbf16, #tpu.memory_space<vmem>>, %arg2: memref<288x32xbf16, #tpu.memory_space<vmem>>, %arg3: memref<1x32xf32, #tpu.memory_space<vmem>>, %arg4: memref<1x32xf32, #tpu.memory_space<vmem>>, %arg5: memref<1x32xf32, #tpu.memory_space<vmem>>, %arg6: memref<2x2xf32, #tpu.memory_space<vmem>>, %arg7: memref<32x1xf32, #tpu.memory_space<vmem>>, %arg8: memref<1x1xf32, #tpu.memory_space<vmem>>, %arg9: memref<2x1xf32, #tpu.memory_space<vmem>>) attributes {dimension_semantics = [#tpu.dimension_semantics<arbitrary>], iteration_bounds = array<i64: 1>, scalar_prefetch = 0 : i64, scratch_operands = 0 : i64, tpu.core_type = #tpu.core_type<tc>, window_params = [{pipeline_mode = #tpu.pipeline_mode<synchronous>, transform_indices = @transform_0, window_bounds = array<i64: 2, 288>}, {pipeline_mode = #tpu.pipeline_mode<synchronous>, transform_indices = @transform_1, window_bounds = array<i64: 288, 32>}, {pipeline_mode = #tpu.pipeline_mode<synchronous>, transform_indices = @transform_2, window_bounds = array<i64: 1, 32>}, {pipeline_mode = #tpu.pipeline_mode<synchronous>, transform_indices = @transform_3, window_bounds = array<i64: 1, 32>}, {pipeline_mode = #tpu.pipeline_mode<synchronous>, transform_indices = @transform_4, window_bounds = array<i64: 1, 32>}, {pipeline_mode = #tpu.pipeline_mode<synchronous>, transform_indices = @transform_5, window_bounds = array<i64: 2, 2>}, {pipeline_mode = #tpu.pipeline_mode<synchronous>, transform_indices = @transform_6, window_bounds = array<i64: 32, 1>}, {pipeline_mode = #tpu.pipeline_mode<synchronous>, transform_indices = @transform_7, window_bounds = array<i64: 1, 1>}, {pipeline_mode = #tpu.pipeline_mode<synchronous>, transform_indices = @transform_8, window_bounds = array<i64: 2, 1>}]} {
    %c0 = arith.constant 0 : index
    %c0_0 = arith.constant 0 : index
    %0 = vector.load %arg1[%c0, %c0_0] : memref<2x288xbf16, #tpu.memory_space<vmem>>, vector<2x288xbf16>
    %c0_1 = arith.constant 0 : index
    %c0_2 = arith.constant 0 : index
    %1 = vector.load %arg2[%c0_1, %c0_2] : memref<288x32xbf16, #tpu.memory_space<vmem>>, vector<288x32xbf16>
    %cst = arith.constant dense<0.000000e+00> : vector<2x32xf32>
    %2 = tpu.matmul %0, %1, %cst {dimension_numbers = #tpu.dot_dimension_numbers<[1], [0], [0], [1], [0, 0, 1, 1], [], []>} : vector<2x288xbf16>, vector<288x32xbf16>, vector<2x32xf32> -> vector<2x32xf32>
    %c0_3 = arith.constant 0 : index
    %c0_4 = arith.constant 0 : index
    %3 = vector.load %arg3[%c0_3, %c0_4] : memref<1x32xf32, #tpu.memory_space<vmem>>, vector<1x32xf32>
    %4 = vector.broadcast %3 : vector<1x32xf32> to vector<2x32xf32>
    %5 = arith.addf %2, %4 : vector<2x32xf32>
    %cst_5 = arith.constant dense<0.000000e+00> : vector<32xf32>
    %6 = vector.multi_reduction <add>, %5, %cst_5 [0] : vector<2x32xf32> to vector<32xf32>
    %7 = vector.shape_cast %6 : vector<32xf32> to vector<1x32xf32>
    %cst_6 = arith.constant 2.000000e+00 : f32
    %8 = vector.broadcast %cst_6 : f32 to vector<1x32xf32>
    %9 = arith.divf %7, %8 : vector<1x32xf32>
    %10 = arith.mulf %5, %5 : vector<2x32xf32>
    %cst_7 = arith.constant dense<0.000000e+00> : vector<32xf32>
    %11 = vector.multi_reduction <add>, %10, %cst_7 [0] : vector<2x32xf32> to vector<32xf32>
    %12 = vector.shape_cast %11 : vector<32xf32> to vector<1x32xf32>
    %cst_8 = arith.constant 2.000000e+00 : f32
    %13 = vector.broadcast %cst_8 : f32 to vector<1x32xf32>
    %14 = arith.divf %12, %13 : vector<1x32xf32>
    %15 = arith.mulf %9, %9 : vector<1x32xf32>
    %16 = arith.subf %14, %15 : vector<1x32xf32>
    %17 = vector.broadcast %9 : vector<1x32xf32> to vector<2x32xf32>
    %18 = arith.subf %5, %17 : vector<2x32xf32>
    %cst_9 = arith.constant 9.99999974E-6 : f32
    %19 = vector.broadcast %cst_9 : f32 to vector<1x32xf32>
    %20 = arith.addf %16, %19 : vector<1x32xf32>
    %21 = math.rsqrt %20 : vector<1x32xf32>
    %22 = vector.broadcast %21 : vector<1x32xf32> to vector<2x32xf32>
    %23 = arith.mulf %18, %22 : vector<2x32xf32>
    %c0_10 = arith.constant 0 : index
    %c0_11 = arith.constant 0 : index
    %24 = vector.load %arg4[%c0_10, %c0_11] : memref<1x32xf32, #tpu.memory_space<vmem>>, vector<1x32xf32>
    %25 = vector.broadcast %24 : vector<1x32xf32> to vector<2x32xf32>
    %26 = arith.mulf %23, %25 : vector<2x32xf32>
    %c0_12 = arith.constant 0 : index
    %c0_13 = arith.constant 0 : index
    %27 = vector.load %arg5[%c0_12, %c0_13] : memref<1x32xf32, #tpu.memory_space<vmem>>, vector<1x32xf32>
    %28 = vector.broadcast %27 : vector<1x32xf32> to vector<2x32xf32>
    %29 = arith.addf %26, %28 : vector<2x32xf32>
    %cst_14 = arith.constant 0.000000e+00 : f32
    %30 = vector.broadcast %cst_14 : f32 to vector<2x32xf32>
    %31 = arith.maximumf %29, %30 : vector<2x32xf32>
    %cst_15 = arith.constant 0.000000e+00 : f32
    %32 = vector.broadcast %cst_15 : f32 to vector<2x32xf32>
    %33 = arith.maximumf %31, %32 : vector<2x32xf32>
    %c0_16 = arith.constant 0 : index
    %c0_17 = arith.constant 0 : index
    %34 = vector.load %arg7[%c0_16, %c0_17] : memref<32x1xf32, #tpu.memory_space<vmem>>, vector<32x1xf32>
    %cst_18 = arith.constant dense<0.000000e+00> : vector<2x1xf32>
    %35 = tpu.matmul %33, %34, %cst_18 {dimension_numbers = #tpu.dot_dimension_numbers<[1], [0], [0], [1], [0, 0, 1, 1], [], []>} : vector<2x32xf32>, vector<32x1xf32>, vector<2x1xf32> -> vector<2x1xf32>
    %c0_19 = arith.constant 0 : index
    %c0_20 = arith.constant 0 : index
    %36 = vector.load %arg8[%c0_19, %c0_20] : memref<1x1xf32, #tpu.memory_space<vmem>>, vector<1x1xf32>
    %37 = vector.broadcast %36 : vector<1x1xf32> to vector<2x1xf32>
    %38 = arith.addf %35, %37 : vector<2x1xf32>
    %c0_21 = arith.constant 0 : index
    %c0_22 = arith.constant 0 : index
    %39 = vector.load %arg9[%c0_21, %c0_22] : memref<2x1xf32, #tpu.memory_space<vmem>>, vector<2x1xf32>
    tpu.vector_store %arg9[%c0_21, %c0_22], %38 {strides = array<i32>} : memref<2x1xf32, #tpu.memory_space<vmem>>, vector<2x1xf32>,
    return
  }
  func.func @transform_0(%arg0: i32) -> (i32, i32) {
    %c0_i32 = arith.constant 0 : i32
    %c0_i32_0 = arith.constant 0 : i32
    %c0_i32_1 = arith.constant 0 : i32
    return %c0_i32, %c0_i32_0 : i32, i32
  }
  func.func @transform_1(%arg0: i32) -> (i32, i32) {
    %c0_i32 = arith.constant 0 : i32
    %c0_i32_0 = arith.constant 0 : i32
    %c0_i32_1 = arith.constant 0 : i32
    return %c0_i32, %c0_i32_0 : i32, i32
  }
  func.func @transform_2(%arg0: i32) -> (i32, i32) {
    %c0_i32 = arith.constant 0 : i32
    %c0_i32_0 = arith.constant 0 : i32
    %c0_i32_1 = arith.constant 0 : i32
    return %c0_i32, %c0_i32_0 : i32, i32
  }
  func.func @transform_3(%arg0: i32) -> (i32, i32) {
    %c0_i32 = arith.constant 0 : i32
    %c0_i32_0 = arith.constant 0 : i32
    %c0_i32_1 = arith.constant 0 : i32
    return %c0_i32, %c0_i32_0 : i32, i32
  }
  func.func @transform_4(%arg0: i32) -> (i32, i32) {
    %c0_i32 = arith.constant 0 : i32
    %c0_i32_0 = arith.constant 0 : i32
    %c0_i32_1 = arith.constant 0 : i32
    return %c0_i32, %c0_i32_0 : i32, i32
  }
  func.func @transform_5(%arg0: i32) -> (i32, i32) {
    %c0_i32 = arith.constant 0 : i32
    %c0_i32_0 = arith.constant 0 : i32
    %c0_i32_1 = arith.constant 0 : i32
    return %c0_i32, %c0_i32_0 : i32, i32
  }
  func.func @transform_6(%arg0: i32) -> (i32, i32) {
    %c0_i32 = arith.constant 0 : i32
    %c0_i32_0 = arith.constant 0 : i32
    %c0_i32_1 = arith.constant 0 : i32
    return %c0_i32, %c0_i32_0 : i32, i32
  }
  func.func @transform_7(%arg0: i32) -> (i32, i32) {
    %c0_i32 = arith.constant 0 : i32
    %c0_i32_0 = arith.constant 0 : i32
    %c0_i32_1 = arith.constant 0 : i32
    return %c0_i32, %c0_i32_0 : i32, i32
  }
  func.func @transform_8(%arg0: i32) -> (i32, i32) {
    %c0_i32 = arith.constant 0 : i32
    %c0_i32_0 = arith.constant 0 : i32
    %c0_i32_1 = arith.constant 0 : i32
    return %c0_i32, %c0_i32_0 : i32, i32
  }
}

</mosaic_0001>

<bundles_post_ra>
// kernel: pretrain_net_pallas.7
= control target key start
LH: loop header
LB: loop body
LE: loop exit
PB: predicated region body
PF: predicated region fallthrough
CT: control target
= control target key end

     0   :  { %s5953_s12 = smov 0   ;;  %s5955_s13 = smov 0   ;;  %s7262_s0 = inlined_call_operand.vmem [shape: bf16[4,1152,27], index: 0, kind: input, shape index: {}]   ;;  %s7263_s1 = inlined_call_operand.vmem [shape: bf16[27,4], index: 1, kind: input, shape index: {}]   ;;  %s7264_s2 = inlined_call_operand.vmem [shape: f32[1,4], index: 2, kind: input, shape index: {}]   ;;  %s7265_s3 = inlined_call_operand.vmem [shape: f32[1152,4], index: 3, kind: output, shape index: {}]  }
   0x1   :  { %s5957_s14 = smov 0  }
   0x2 LB: > { %s4760_s15 = sadd.s32 4294967295, %s5930_s14   ;;  %s5970_s16 = sadd.s32 1, %s5930_s14   ;;  %s5930_s14 = sphi %s5957_s14, %s7324_s14   ;;  %s5926_s13 = sphi %s5955_s13, %s7323_s13   ;;  %s5922_s12 = sphi %s5953_s12, %s7322_s12  }
   0x3   : > { %s17_s17 = ssub.s32 %s5930_s14, %s5970_s16  ;;  %s20_s18 = sadd.s32 1, %s5926_s13 }
   0x4   : > { %p18_p0 = scmp.eq.s32.totalorder %s17_s17, 0  ;;  %p27_p1 = scmp.ne.s32.totalorder %s5926_s13, %s5922_s12 }
   0x5   : > { %p28_p2 = scmp.eq.s32.totalorder %s5930_s14, 0  ;;  %p4763_p4 = scmp.ge.s32.totalorder %s5930_s14, 2 }
   0x6   : > { %s5979_s19 = scalar_select %p18_p0, %s5926_s13, %s20_s18  }
   0x7   : > { %p29_p3 = por %p28_p2, %p27_p1  ;;  %127 = sbr.rel (%p4763_p4) target bundleno = 91 (0x5b), region = 24 }
   0xe   : > { %130 = sbr.rel (!%p29_p3) target bundleno = 91 (0x5b), region = 28  ;;  %s132_s20 = sand.u32 (%p29_p3), 1, %s5926_s13  }
   0xf   : > { %s5276_s21 = smul.u32 (%p29_p3), 288, %s5930_s14 }
  0x10   : > { %s5733_s22 = smul.u32 (%p29_p3), 1152, %s132_s20 }
  0x11   : > { %s5987_s25 = scalar_lea.vmem (%p29_p3), %s7262_s0, %s5276_s21 }
  0x12   : > { %v153_v0 = vld [vmem:[%s5987_s25] sm:$0xff] (%p29_p3)   ;;  %v157_v1 = vld [vmem:[%s5987_s25 + $0x8] sm:$0xff] (%p29_p3)   ;;  %v161_v2 = vld [vmem:[%s5987_s25 + $0x10] sm:$0xff] (%p29_p3)   ;;  %s5992_s26 = scalar_lea.vmem (%p29_p3), [#allocation2], %s5733_s22 }
  0x13   : > { %154 = vst [vmem:[%s5992_s26] sm:$0xff] (%p29_p3), %v153_v0   ;;  %158 = vst [vmem:[%s5992_s26 + $0x8] sm:$0xff] (%p29_p3), %v157_v1   ;;  %v165_v3 = vld [vmem:[%s5987_s25 + $0x18] sm:$0xff] (%p29_p3)   ;;  %v169_v4 = vld [vmem:[%s5987_s25 + $0x20] sm:$0xff] (%p29_p3)  }
  0x14   : > { %162 = vst [vmem:[%s5992_s26 + $0x10] sm:$0xff] (%p29_p3), %v161_v2   ;;  %v173_v5 = vld [vmem:[%s5987_s25 + $0x28] sm:$0xff] (%p29_p3)   ;;  %166 = vst [vmem:[%s5992_s26 + $0x18] sm:$0xff] (%p29_p3), %v165_v3   ;;  %v177_v6 = vld [vmem:[%s5987_s25 + $0x30] sm:$0xff] (%p29_p3)  }
  0x15   : > { %170 = vst [vmem:[%s5992_s26 + $0x20] sm:$0xff] %v169_v4   ;;  %174 = vst [vmem:[%s5992_s26 + $0x28] sm:$0xff] %v173_v5   ;;  %v181_v7 = vld [vmem:[%s5987_s25 + $0x38] sm:$0xff]   ;;  %v185_v8 = vld [vmem:[%s5987_s25 + $0x40] sm:$0xff]  }
  0x16   : > { %178 = vst [vmem:[%s5992_s26 + $0x30] sm:$0xff] %v177_v6   ;;  %182 = vst [vmem:[%s5992_s26 + $0x38] sm:$0xff] %v181_v7   ;;  %v189_v9 = vld [vmem:[%s5987_s25 + $0x48] sm:$0xff]   ;;  %v193_v10 = vld [vmem:[%s5987_s25 + $0x50] sm:$0xff]  }
  0x17   : > { %186 = vst [vmem:[%s5992_s26 + $0x40] sm:$0xff] %v185_v8   ;;  %v197_v11 = vld [vmem:[%s5987_s25 + $0x58] sm:$0xff]   ;;  %190 = vst [vmem:[%s5992_s26 + $0x48] sm:$0xff] %v189_v9   ;;  %v201_v12 = vld [vmem:[%s5987_s25 + $0x60] sm:$0xff]  }
  0x18   : > { %194 = vst [vmem:[%s5992_s26 + $0x50] sm:$0xff] %v193_v10   ;;  %198 = vst [vmem:[%s5992_s26 + $0x58] sm:$0xff] %v197_v11   ;;  %v205_v13 = vld [vmem:[%s5987_s25 + $0x68] sm:$0xff]   ;;  %v209_v14 = vld [vmem:[%s5987_s25 + $0x70] sm:$0xff]  }
  0x19   : > { %202 = vst [vmem:[%s5992_s26 + $0x60] sm:$0xff] %v201_v12   ;;  %206 = vst [vmem:[%s5992_s26 + $0x68] sm:$0xff] %v205_v13   ;;  %v213_v15 = vld [vmem:[%s5987_s25 + $0x78] sm:$0xff]   ;;  %v217_v16 = vld [vmem:[%s5987_s25 + $0x80] sm:$0xff]  }
  0x1a   : > { %210 = vst [vmem:[%s5992_s26 + $0x70] sm:$0xff] %v209_v14   ;;  %v221_v17 = vld [vmem:[%s5987_s25 + $0x88] sm:$0xff]   ;;  %214 = vst [vmem:[%s5992_s26 + $0x78] sm:$0xff] %v213_v15   ;;  %v225_v18 = vld [vmem:[%s5987_s25 + $0x90] sm:$0xff]  }
  0x1b   : > { %218 = vst [vmem:[%s5992_s26 + $0x80] sm:$0xff] %v217_v16   ;;  %222 = vst [vmem:[%s5992_s26 + $0x88] sm:$0xff] %v221_v17   ;;  %v229_v19 = vld [vmem:[%s5987_s25 + $0x98] sm:$0xff]   ;;  %v233_v20 = vld [vmem:[%s5987_s25 + $0xa0] sm:$0xff]  }
  0x1c   : > { %226 = vst [vmem:[%s5992_s26 + $0x90] sm:$0xff] %v225_v18   ;;  %230 = vst [vmem:[%s5992_s26 + $0x98] sm:$0xff] %v229_v19   ;;  %v237_v21 = vld [vmem:[%s5987_s25 + $0xa8] sm:$0xff]   ;;  %v241_v22 = vld [vmem:[%s5987_s25 + $0xb0] sm:$0xff]  }
  0x1d   : > { %234 = vst [vmem:[%s5992_s26 + $0xa0] sm:$0xff] %v233_v20   ;;  %v245_v23 = vld [vmem:[%s5987_s25 + $0xb8] sm:$0xff]   ;;  %238 = vst [vmem:[%s5992_s26 + $0xa8] sm:$0xff] %v237_v21   ;;  %v249_v24 = vld [vmem:[%s5987_s25 + $0xc0] sm:$0xff]  }
  0x1e   : > { %242 = vst [vmem:[%s5992_s26 + $0xb0] sm:$0xff] %v241_v22   ;;  %246 = vst [vmem:[%s5992_s26 + $0xb8] sm:$0xff] %v245_v23   ;;  %v253_v25 = vld [vmem:[%s5987_s25 + $0xc8] sm:$0xff]   ;;  %v257_v26 = vld [vmem:[%s5987_s25 + $0xd0] sm:$0xff]  }
  0x1f   : > { %250 = vst [vmem:[%s5992_s26 + $0xc0] sm:$0xff] %v249_v24   ;;  %254 = vst [vmem:[%s5992_s26 + $0xc8] sm:$0xff] %v253_v25   ;;  %v261_v27 = vld [vmem:[%s5987_s25 + $0xd8] sm:$0xff]   ;;  %v265_v28 = vld [vmem:[%s5987_s25 + $0xe0] sm:$0xff]  }
  0x20   : > { %258 = vst [vmem:[%s5992_s26 + $0xd0] sm:$0xff] %v257_v26   ;;  %v269_v29 = vld [vmem:[%s5987_s25 + $0xe8] sm:$0xff]   ;;  %262 = vst [vmem:[%s5992_s26 + $0xd8] sm:$0xff] %v261_v27   ;;  %v273_v30 = vld [vmem:[%s5987_s25 + $0xf0] sm:$0xff]  }
  0x21   : > { %266 = vst [vmem:[%s5992_s26 + $0xe0] sm:$0xff] %v265_v28   ;;  %270 = vst [vmem:[%s5992_s26 + $0xe8] sm:$0xff] %v269_v29   ;;  %v277_v31 = vld [vmem:[%s5987_s25 + $0xf8] sm:$0xff]   ;;  %v281_v32 = vld [vmem:[%s5987_s25 + $0x100] sm:$0xff]  }
  0x22   : > { %274 = vst [vmem:[%s5992_s26 + $0xf0] sm:$0xff] %v273_v30   ;;  %278 = vst [vmem:[%s5992_s26 + $0xf8] sm:$0xff] %v277_v31   ;;  %v285_v33 = vld [vmem:[%s5987_s25 + $0x108] sm:$0xff]   ;;  %v289_v34 = vld [vmem:[%s5987_s25 + $0x110] sm:$0xff]  }
  0x23   : > { %282 = vst [vmem:[%s5992_s26 + $0x100] sm:$0xff] %v281_v32   ;;  %v293_v35 = vld [vmem:[%s5987_s25 + $0x118] sm:$0xff]   ;;  %286 = vst [vmem:[%s5992_s26 + $0x108] sm:$0xff] %v285_v33   ;;  %v297_v36 = vld [vmem:[%s5987_s25 + $0x240] sm:$0xff]  }
  0x24   : > { %290 = vst [vmem:[%s5992_s26 + $0x110] sm:$0xff] %v289_v34   ;;  %294 = vst [vmem:[%s5992_s26 + $0x118] sm:$0xff] %v293_v35   ;;  %v301_v37 = vld [vmem:[%s5987_s25 + $0x248] sm:$0xff]   ;;  %v305_v38 = vld [vmem:[%s5987_s25 + $0x250] sm:$0xff]  }
  0x25   : > { %298 = vst [vmem:[%s5992_s26 + $0x120] sm:$0xff] %v297_v36   ;;  %302 = vst [vmem:[%s5992_s26 + $0x128] sm:$0xff] %v301_v37   ;;  %v309_v39 = vld [vmem:[%s5987_s25 + $0x258] sm:$0xff]   ;;  %v313_v40 = vld [vmem:[%s5987_s25 + $0x260] sm:$0xff]  }
  0x26   : > { %306 = vst [vmem:[%s5992_s26 + $0x130] sm:$0xff] %v305_v38   ;;  %v317_v41 = vld [vmem:[%s5987_s25 + $0x268] sm:$0xff]   ;;  %310 = vst [vmem:[%s5992_s26 + $0x138] sm:$0xff] %v309_v39   ;;  %v321_v42 = vld [vmem:[%s5987_s25 + $0x270] sm:$0xff]  }
  0x27   : > { %314 = vst [vmem:[%s5992_s26 + $0x140] sm:$0xff] %v313_v40   ;;  %318 = vst [vmem:[%s5992_s26 + $0x148] sm:$0xff] %v317_v41   ;;  %v325_v43 = vld [vmem:[%s5987_s25 + $0x278] sm:$0xff]   ;;  %v329_v44 = vld [vmem:[%s5987_s25 + $0x280] sm:$0xff]  }
  0x28   : > { %322 = vst [vmem:[%s5992_s26 + $0x150] sm:$0xff] %v321_v42   ;;  %326 = vst [vmem:[%s5992_s26 + $0x158] sm:$0xff] %v325_v43   ;;  %v333_v45 = vld [vmem:[%s5987_s25 + $0x288] sm:$0xff]   ;;  %v337_v46 = vld [vmem:[%s5987_s25 + $0x290] sm:$0xff]  }
  0x29   : > { %330 = vst [vmem:[%s5992_s26 + $0x160] sm:$0xff] %v329_v44   ;;  %v341_v47 = vld [vmem:[%s5987_s25 + $0x298] sm:$0xff]   ;;  %334 = vst [vmem:[%s5992_s26 + $0x168] sm:$0xff] %v333_v45   ;;  %v345_v48 = vld [vmem:[%s5987_s25 + $0x2a0] sm:$0xff]  }
  0x2a   : > { %338 = vst [vmem:[%s5992_s26 + $0x170] sm:$0xff] %v337_v46   ;;  %342 = vst [vmem:[%s5992_s26 + $0x178] sm:$0xff] %v341_v47   ;;  %v349_v49 = vld [vmem:[%s5987_s25 + $0x2a8] sm:$0xff]   ;;  %v353_v50 = vld [vmem:[%s5987_s25 + $0x2b0] sm:$0xff]  }
  0x2b   : > { %346 = vst [vmem:[%s5992_s26 + $0x180] sm:$0xff] %v345_v48   ;;  %350 = vst [vmem:[%s5992_s26 + $0x188] sm:$0xff] %v349_v49   ;;  %v357_v51 = vld [vmem:[%s5987_s25 + $0x2b8] sm:$0xff]   ;;  %v361_v52 = vld [vmem:[%s5987_s25 + $0x2c0] sm:$0xff]  }
  0x2c   : > { %354 = vst [vmem:[%s5992_s26 + $0x190] sm:$0xff] %v353_v50   ;;  %v365_v53 = vld [vmem:[%s5987_s25 + $0x2c8] sm:$0xff]   ;;  %358 = vst [vmem:[%s5992_s26 + $0x198] sm:$0xff] %v357_v51   ;;  %v369_v54 = vld [vmem:[%s5987_s25 + $0x2d0] sm:$0xff]  }
  0x2d   : > { %362 = vst [vmem:[%s5992_s26 + $0x1a0] sm:$0xff] %v361_v52   ;;  %366 = vst [vmem:[%s5992_s26 + $0x1a8] sm:$0xff] %v365_v53   ;;  %v373_v55 = vld [vmem:[%s5987_s25 + $0x2d8] sm:$0xff]   ;;  %v377_v56 = vld [vmem:[%s5987_s25 + $0x2e0] sm:$0xff]  }
  0x2e   : > { %370 = vst [vmem:[%s5992_s26 + $0x1b0] sm:$0xff] %v369_v54   ;;  %374 = vst [vmem:[%s5992_s26 + $0x1b8] sm:$0xff] %v373_v55   ;;  %v381_v57 = vld [vmem:[%s5987_s25 + $0x2e8] sm:$0xff]   ;;  %v385_v58 = vld [vmem:[%s5987_s25 + $0x2f0] sm:$0xff]  }
  0x2f   : > { %378 = vst [vmem:[%s5992_s26 + $0x1c0] sm:$0xff] %v377_v56   ;;  %v389_v59 = vld [vmem:[%s5987_s25 + $0x2f8] sm:$0xff]   ;;  %382 = vst [vmem:[%s5992_s26 + $0x1c8] sm:$0xff] %v381_v57   ;;  %v393_v60 = vld [vmem:[%s5987_s25 + $0x300] sm:$0xff]  }
  0x30   : > { %386 = vst [vmem:[%s5992_s26 + $0x1d0] sm:$0xff] %v385_v58   ;;  %390 = vst [vmem:[%s5992_s26 + $0x1d8] sm:$0xff] %v389_v59   ;;  %v397_v61 = vld [vmem:[%s5987_s25 + $0x308] sm:$0xff]   ;;  %v401_v62 = vld [vmem:[%s5987_s25 + $0x310] sm:$0xff]  }
  0x31   : > { %394 = vst [vmem:[%s5992_s26 + $0x1e0] sm:$0xff] %v393_v60   ;;  %398 = vst [vmem:[%s5992_s26 + $0x1e8] sm:$0xff] %v397_v61   ;;  %v405_v63 = vld [vmem:[%s5987_s25 + $0x318] sm:$0xff]   ;;  %v409_v0 = vld [vmem:[%s5987_s25 + $0x320] sm:$0xff]  }
  0x32   : > { %402 = vst [vmem:[%s5992_s26 + $0x1f0] sm:$0xff] %v401_v62   ;;  %v413_v1 = vld [vmem:[%s5987_s25 + $0x328] sm:$0xff]   ;;  %406 = vst [vmem:[%s5992_s26 + $0x1f8] sm:$0xff] %v405_v63   ;;  %v417_v2 = vld [vmem:[%s5987_s25 + $0x330] sm:$0xff]  }
  0x33   : > { %410 = vst [vmem:[%s5992_s26 + $0x200] sm:$0xff] %v409_v0   ;;  %414 = vst [vmem:[%s5992_s26 + $0x208] sm:$0xff] %v413_v1   ;;  %v421_v3 = vld [vmem:[%s5987_s25 + $0x338] sm:$0xff]   ;;  %v425_v4 = vld [vmem:[%s5987_s25 + $0x340] sm:$0xff]  }
  0x34   : > { %418 = vst [vmem:[%s5992_s26 + $0x210] sm:$0xff] %v417_v2   ;;  %422 = vst [vmem:[%s5992_s26 + $0x218] sm:$0xff] %v421_v3   ;;  %v429_v5 = vld [vmem:[%s5987_s25 + $0x348] sm:$0xff]   ;;  %v433_v6 = vld [vmem:[%s5987_s25 + $0x350] sm:$0xff]  }
  0x35   : > { %426 = vst [vmem:[%s5992_s26 + $0x220] sm:$0xff] %v425_v4   ;;  %v437_v7 = vld [vmem:[%s5987_s25 + $0x358] sm:$0xff]   ;;  %430 = vst [vmem:[%s5992_s26 + $0x228] sm:$0xff] %v429_v5   ;;  %v441_v8 = vld [vmem:[%s5987_s25 + $0x480] sm:$0xff]  }
  0x36   : > { %434 = vst [vmem:[%s5992_s26 + $0x230] sm:$0xff] %v433_v6   ;;  %438 = vst [vmem:[%s5992_s26 + $0x238] sm:$0xff] %v437_v7   ;;  %v445_v9 = vld [vmem:[%s5987_s25 + $0x488] sm:$0xff]   ;;  %v449_v10 = vld [vmem:[%s5987_s25 + $0x490] sm:$0xff]  }
  0x37   : > { %442 = vst [vmem:[%s5992_s26 + $0x240] sm:$0xff] %v441_v8   ;;  %446 = vst [vmem:[%s5992_s26 + $0x248] sm:$0xff] %v445_v9   ;;  %v453_v11 = vld [vmem:[%s5987_s25 + $0x498] sm:$0xff]   ;;  %v457_v12 = vld [vmem:[%s5987_s25 + $0x4a0] sm:$0xff]  }
  0x38   : > { %450 = vst [vmem:[%s5992_s26 + $0x250] sm:$0xff] %v449_v10   ;;  %v461_v13 = vld [vmem:[%s5987_s25 + $0x4a8] sm:$0xff]   ;;  %454 = vst [vmem:[%s5992_s26 + $0x258] sm:$0xff] %v453_v11   ;;  %v465_v14 = vld [vmem:[%s5987_s25 + $0x4b0] sm:$0xff]  }
  0x39   : > { %458 = vst [vmem:[%s5992_s26 + $0x260] sm:$0xff] %v457_v12   ;;  %462 = vst [vmem:[%s5992_s26 + $0x268] sm:$0xff] %v461_v13   ;;  %v469_v15 = vld [vmem:[%s5987_s25 + $0x4b8] sm:$0xff]   ;;  %v473_v16 = vld [vmem:[%s5987_s25 + $0x4c0] sm:$0xff]  }
  0x3a   : > { %466 = vst [vmem:[%s5992_s26 + $0x270] sm:$0xff] %v465_v14   ;;  %470 = vst [vmem:[%s5992_s26 + $0x278] sm:$0xff] %v469_v15   ;;  %v477_v17 = vld [vmem:[%s5987_s25 + $0x4c8] sm:$0xff]   ;;  %v481_v18 = vld [vmem:[%s5987_s25 + $0x4d0] sm:$0xff]  }
  0x3b   : > { %474 = vst [vmem:[%s5992_s26 + $0x280] sm:$0xff] %v473_v16   ;;  %v485_v19 = vld [vmem:[%s5987_s25 + $0x4d8] sm:$0xff]   ;;  %478 = vst [vmem:[%s5992_s26 + $0x288] sm:$0xff] %v477_v17   ;;  %v489_v20 = vld [vmem:[%s5987_s25 + $0x4e0] sm:$0xff]  }
  0x3c   : > { %482 = vst [vmem:[%s5992_s26 + $0x290] sm:$0xff] %v481_v18   ;;  %486 = vst [vmem:[%s5992_s26 + $0x298] sm:$0xff] %v485_v19   ;;  %v493_v21 = vld [vmem:[%s5987_s25 + $0x4e8] sm:$0xff]   ;;  %v497_v22 = vld [vmem:[%s5987_s25 + $0x4f0] sm:$0xff]  }
  0x3d   : > { %490 = vst [vmem:[%s5992_s26 + $0x2a0] sm:$0xff] %v489_v20   ;;  %494 = vst [vmem:[%s5992_s26 + $0x2a8] sm:$0xff] %v493_v21   ;;  %v501_v23 = vld [vmem:[%s5987_s25 + $0x4f8] sm:$0xff]   ;;  %v505_v24 = vld [vmem:[%s5987_s25 + $0x500] sm:$0xff]  }
  0x3e   : > { %498 = vst [vmem:[%s5992_s26 + $0x2b0] sm:$0xff] %v497_v22   ;;  %v509_v25 = vld [vmem:[%s5987_s25 + $0x508] sm:$0xff]   ;;  %502 = vst [vmem:[%s5992_s26 + $0x2b8] sm:$0xff] %v501_v23   ;;  %v513_v26 = vld [vmem:[%s5987_s25 + $0x510] sm:$0xff]  }
  0x3f   : > { %506 = vst [vmem:[%s5992_s26 + $0x2c0] sm:$0xff] %v505_v24   ;;  %510 = vst [vmem:[%s5992_s26 + $0x2c8] sm:$0xff] %v509_v25   ;;  %v517_v27 = vld [vmem:[%s5987_s25 + $0x518] sm:$0xff]   ;;  %v521_v28 = vld [vmem:[%s5987_s25 + $0x520] sm:$0xff]  }
  0x40   : > { %514 = vst [vmem:[%s5992_s26 + $0x2d0] sm:$0xff] %v513_v26   ;;  %518 = vst [vmem:[%s5992_s26 + $0x2d8] sm:$0xff] %v517_v27   ;;  %v525_v29 = vld [vmem:[%s5987_s25 + $0x528] sm:$0xff]   ;;  %v529_v30 = vld [vmem:[%s5987_s25 + $0x530] sm:$0xff]  }
  0x41   : > { %522 = vst [vmem:[%s5992_s26 + $0x2e0] sm:$0xff] %v521_v28   ;;  %v533_v31 = vld [vmem:[%s5987_s25 + $0x538] sm:$0xff]   ;;  %526 = vst [vmem:[%s5992_s26 + $0x2e8] sm:$0xff] %v525_v29   ;;  %v537_v32 = vld [vmem:[%s5987_s25 + $0x540] sm:$0xff]  }
  0x42   : > { %530 = vst [vmem:[%s5992_s26 + $0x2f0] sm:$0xff] %v529_v30   ;;  %534 = vst [vmem:[%s5992_s26 + $0x2f8] sm:$0xff] %v533_v31   ;;  %v541_v33 = vld [vmem:[%s5987_s25 + $0x548] sm:$0xff]   ;;  %v545_v34 = vld [vmem:[%s5987_s25 + $0x550] sm:$0xff]  }
  0x43   : > { %538 = vst [vmem:[%s5992_s26 + $0x300] sm:$0xff] %v537_v32   ;;  %542 = vst [vmem:[%s5992_s26 + $0x308] sm:$0xff] %v541_v33   ;;  %v549_v35 = vld [vmem:[%s5987_s25 + $0x558] sm:$0xff]   ;;  %v553_v36 = vld [vmem:[%s5987_s25 + $0x560] sm:$0xff]  }
  0x44   : > { %546 = vst [vmem:[%s5992_s26 + $0x310] sm:$0xff] %v545_v34   ;;  %v557_v37 = vld [vmem:[%s5987_s25 + $0x568] sm:$0xff]   ;;  %550 = vst [vmem:[%s5992_s26 + $0x318] sm:$0xff] %v549_v35   ;;  %v561_v38 = vld [vmem:[%s5987_s25 + $0x570] sm:$0xff]  }
  0x45   : > { %554 = vst [vmem:[%s5992_s26 + $0x320] sm:$0xff] %v553_v36   ;;  %558 = vst [vmem:[%s5992_s26 + $0x328] sm:$0xff] %v557_v37   ;;  %v565_v39 = vld [vmem:[%s5987_s25 + $0x578] sm:$0xff]   ;;  %v569_v40 = vld [vmem:[%s5987_s25 + $0x580] sm:$0xff]  }
  0x46   : > { %562 = vst [vmem:[%s5992_s26 + $0x330] sm:$0xff] %v561_v38   ;;  %566 = vst [vmem:[%s5992_s26 + $0x338] sm:$0xff] %v565_v39   ;;  %v573_v41 = vld [vmem:[%s5987_s25 + $0x588] sm:$0xff]   ;;  %v577_v42 = vld [vmem:[%s5987_s25 + $0x590] sm:$0xff]  }
  0x47   : > { %570 = vst [vmem:[%s5992_s26 + $0x340] sm:$0xff] %v569_v40   ;;  %v581_v43 = vld [vmem:[%s5987_s25 + $0x598] sm:$0xff]   ;;  %574 = vst [vmem:[%s5992_s26 + $0x348] sm:$0xff] %v573_v41   ;;  %v585_v44 = vld [vmem:[%s5987_s25 + $0x6c0] sm:$0xff]  }
  0x48   : > { %578 = vst [vmem:[%s5992_s26 + $0x350] sm:$0xff] %v577_v42   ;;  %582 = vst [vmem:[%s5992_s26 + $0x358] sm:$0xff] %v581_v43   ;;  %v589_v45 = vld [vmem:[%s5987_s25 + $0x6c8] sm:$0xff]   ;;  %v593_v46 = vld [vmem:[%s5987_s25 + $0x6d0] sm:$0xff]  }
  0x49   : > { %586 = vst [vmem:[%s5992_s26 + $0x360] sm:$0xff] %v585_v44   ;;  %590 = vst [vmem:[%s5992_s26 + $0x368] sm:$0xff] %v589_v45   ;;  %v597_v47 = vld [vmem:[%s5987_s25 + $0x6d8] sm:$0xff]   ;;  %v601_v48 = vld [vmem:[%s5987_s25 + $0x6e0] sm:$0xff]  }
  0x4a   : > { %594 = vst [vmem:[%s5992_s26 + $0x370] sm:$0xff] %v593_v46   ;;  %v605_v49 = vld [vmem:[%s5987_s25 + $0x6e8] sm:$0xff]   ;;  %598 = vst [vmem:[%s5992_s26 + $0x378] sm:$0xff] %v597_v47   ;;  %v609_v50 = vld [vmem:[%s5987_s25 + $0x6f0] sm:$0xff]  }
  0x4b   : > { %602 = vst [vmem:[%s5992_s26 + $0x380] sm:$0xff] %v601_v48   ;;  %606 = vst [vmem:[%s5992_s26 + $0x388] sm:$0xff] %v605_v49   ;;  %v613_v51 = vld [vmem:[%s5987_s25 + $0x6f8] sm:$0xff]   ;;  %v617_v52 = vld [vmem:[%s5987_s25 + $0x700] sm:$0xff]  }
  0x4c   : > { %610 = vst [vmem:[%s5992_s26 + $0x390] sm:$0xff] %v609_v50   ;;  %614 = vst [vmem:[%s5992_s26 + $0x398] sm:$0xff] %v613_v51   ;;  %v621_v53 = vld [vmem:[%s5987_s25 + $0x708] sm:$0xff]   ;;  %v625_v54 = vld [vmem:[%s5987_s25 + $0x710] sm:$0xff]  }
  0x4d   : > { %618 = vst [vmem:[%s5992_s26 + $0x3a0] sm:$0xff] %v617_v52   ;;  %v629_v55 = vld [vmem:[%s5987_s25 + $0x718] sm:$0xff]   ;;  %622 = vst [vmem:[%s5992_s26 + $0x3a8] sm:$0xff] %v621_v53   ;;  %v633_v56 = vld [vmem:[%s5987_s25 + $0x720] sm:$0xff]  }
  0x4e   : > { %626 = vst [vmem:[%s5992_s26 + $0x3b0] sm:$0xff] %v625_v54   ;;  %630 = vst [vmem:[%s5992_s26 + $0x3b8] sm:$0xff] %v629_v55   ;;  %v637_v57 = vld [vmem:[%s5987_s25 + $0x728] sm:$0xff]   ;;  %v641_v58 = vld [vmem:[%s5987_s25 + $0x730] sm:$0xff]  }
  0x4f   : > { %634 = vst [vmem:[%s5992_s26 + $0x3c0] sm:$0xff] %v633_v56   ;;  %638 = vst [vmem:[%s5992_s26 + $0x3c8] sm:$0xff] %v637_v57   ;;  %v645_v59 = vld [vmem:[%s5987_s25 + $0x738] sm:$0xff]   ;;  %v649_v60 = vld [vmem:[%s5987_s25 + $0x740] sm:$0xff]  }
  0x50   : > { %642 = vst [vmem:[%s5992_s26 + $0x3d0] sm:$0xff] %v641_v58   ;;  %v653_v61 = vld [vmem:[%s5987_s25 + $0x748] sm:$0xff]   ;;  %646 = vst [vmem:[%s5992_s26 + $0x3d8] sm:$0xff] %v645_v59   ;;  %v657_v62 = vld [vmem:[%s5987_s25 + $0x750] sm:$0xff]  }
  0x51   : > { %650 = vst [vmem:[%s5992_s26 + $0x3e0] sm:$0xff] %v649_v60   ;;  %654 = vst [vmem:[%s5992_s26 + $0x3e8] sm:$0xff] %v653_v61   ;;  %v661_v63 = vld [vmem:[%s5987_s25 + $0x758] sm:$0xff]   ;;  %v665_v0 = vld [vmem:[%s5987_s25 + $0x760] sm:$0xff]  }
  0x52   : > { %658 = vst [vmem:[%s5992_s26 + $0x3f0] sm:$0xff] %v657_v62   ;;  %662 = vst [vmem:[%s5992_s26 + $0x3f8] sm:$0xff] %v661_v63   ;;  %v669_v1 = vld [vmem:[%s5987_s25 + $0x768] sm:$0xff]   ;;  %v673_v2 = vld [vmem:[%s5987_s25 + $0x770] sm:$0xff]  }
  0x53   : > { %666 = vst [vmem:[%s5992_s26 + $0x400] sm:$0xff] %v665_v0   ;;  %v677_v3 = vld [vmem:[%s5987_s25 + $0x778] sm:$0xff]   ;;  %670 = vst [vmem:[%s5992_s26 + $0x408] sm:$0xff] %v669_v1   ;;  %v681_v4 = vld [vmem:[%s5987_s25 + $0x780] sm:$0xff]  }
  0x54   : > { %674 = vst [vmem:[%s5992_s26 + $0x410] sm:$0xff] %v673_v2   ;;  %678 = vst [vmem:[%s5992_s26 + $0x418] sm:$0xff] %v677_v3   ;;  %v685_v5 = vld [vmem:[%s5987_s25 + $0x788] sm:$0xff]   ;;  %v689_v6 = vld [vmem:[%s5987_s25 + $0x790] sm:$0xff]  }
  0x55   : > { %682 = vst [vmem:[%s5992_s26 + $0x420] sm:$0xff] %v681_v4   ;;  %686 = vst [vmem:[%s5992_s26 + $0x428] sm:$0xff] %v685_v5   ;;  %v693_v7 = vld [vmem:[%s5987_s25 + $0x798] sm:$0xff]   ;;  %v697_v8 = vld [vmem:[%s5987_s25 + $0x7a0] sm:$0xff]  }
  0x56   : > { %690 = vst [vmem:[%s5992_s26 + $0x430] sm:$0xff] %v689_v6   ;;  %v701_v9 = vld [vmem:[%s5987_s25 + $0x7a8] sm:$0xff]   ;;  %694 = vst [vmem:[%s5992_s26 + $0x438] sm:$0xff] %v693_v7   ;;  %v705_v10 = vld [vmem:[%s5987_s25 + $0x7b0] sm:$0xff]  }
  0x57   : > { %698 = vst [vmem:[%s5992_s26 + $0x440] sm:$0xff] %v697_v8   ;;  %702 = vst [vmem:[%s5992_s26 + $0x448] sm:$0xff] %v701_v9   ;;  %v709_v11 = vld [vmem:[%s5987_s25 + $0x7b8] sm:$0xff]   ;;  %v713_v12 = vld [vmem:[%s5987_s25 + $0x7c0] sm:$0xff]  }
  0x58   : > { %706 = vst [vmem:[%s5992_s26 + $0x450] sm:$0xff] %v705_v10   ;;  %710 = vst [vmem:[%s5992_s26 + $0x458] sm:$0xff] %v709_v11   ;;  %v717_v13 = vld [vmem:[%s5987_s25 + $0x7c8] sm:$0xff]   ;;  %v721_v14 = vld [vmem:[%s5987_s25 + $0x7d0] sm:$0xff]  }
  0x59   : > { %714 = vst [vmem:[%s5992_s26 + $0x460] sm:$0xff] %v713_v12   ;;  %v725_v15 = vld [vmem:[%s5987_s25 + $0x7d8] sm:$0xff]   ;;  %718 = vst [vmem:[%s5992_s26 + $0x468] sm:$0xff] %v717_v13  }
  0x5a   : > { %722 = vst [vmem:[%s5992_s26 + $0x470] sm:$0xff] %v721_v14   ;;  %726 = vst [vmem:[%s5992_s26 + $0x478] sm:$0xff] %v725_v15  }
  0x5b PF: > { %p4765_p5 = scmp.ge.s32.totalorder %s5930_s14, 1  ;;  %p1326_p6 = scmp.lt.s32.totalorder %s5930_s14, 3 }
  0x5d   : > { %p1327_p7 = pnand %p4765_p5, %p1326_p6 }
  0x5f   : > { %1330 = sbr.rel (%p1327_p7) target bundleno = 616 (0x268), region = 69 }
  0x66   : > { %v5760_v16 = vld [vmem:[%s7263_s1] sm:$0xff]   ;;  %vm1747_vm0 = vcmask 1044480   ;;  %v5761_v17 = vld [vmem:[%s7263_s1 + $0x8] sm:$0x3f]   ;;  %vm1748_vm1 = vcmask 1045504   ;;  %s1333_s4 = sand.u32 1, %s5922_s12  }
  0x67   : > { %5429 = vmatprep.subr.bf16.mxu0 %v5760_v16  ;;  %5505 = vmatprep.subr.bf16.mxu1 %v5760_v16  ;;  %v5932_v18 = vmov 65535   ;;  %s5734_s5 = smul.u32 1152, %s1333_s4  ;;  %vm1638_vm2 = vcmask 220160   ;;  %vm4625_vm3 = vcmask 31744  }
  0x68   : > { %5430 = vmatpush3.bf16.msra.mxu0 %v5760_v16  ;;  %5506 = vmatpush3.bf16.msra.mxu1 %v5760_v16  ;;  %v1749_v19 = vsel %vm1747_vm0, 4294967295, %v5932_v18  ;;  %s6860_s11 = smul.u32 72, %s4760_s15 }
  0x69   : > { %v1750_v20 = vsel %vm1748_vm1, %v1749_v19, 0  ;;  %s6288_s6 = scalar_lea.vmem [#allocation2], %s5734_s5 }
  0x6a   : > { %v1752_v21 = vand.u32 %v5761_v17, %v1750_v20  ;;  %v5762_v22 = vld [vmem:[%s6288_s6] sm:$0xff]   ;;  %v5764_v24 = vld [vmem:[%s6288_s6 + $0x8] sm:$0xff]   ;;  %v5766_v26 = vld [vmem:[%s6288_s6 + $0x10] sm:$0xff]   ;;  %p1358_p8 = scmp.lt.s32.totalorder %s6860_s11, 143 }
  0x6b   : > { %v5763_v23 = vld [vmem:[%s6288_s6 + $0x120] sm:$0xff]   ;;  %5433 = vmatprep.mubr.msk.bf16.mxu0 %vm1638_vm2, %v5762_v22  ;;  %v5765_v25 = vld [vmem:[%s6288_s6 + $0x128] sm:$0xff]   ;;  %v5767_v27 = vld [vmem:[%s6288_s6 + $0x130] sm:$0xff]  }
  0x6c   : > { %5431 = vmatprep.subr.bf16.mxu0 %v1752_v21  ;;  %5507 = vmatprep.subr.bf16.mxu1 %v1752_v21  ;;  %v5768_v28 = vld [vmem:[%s6288_s6 + $0x18] sm:$0xff]   ;;  %v5770_v30 = vld [vmem:[%s6288_s6 + $0x20] sm:$0xff]   ;;  %v5772_v32 = vld [vmem:[%s6288_s6 + $0x28] sm:$0xff]   ;;  %s7326_s11 = smov (!%p1358_p8, %s6860_s11), 143 }
  0x6d   : > { %5432 = vmatpush3.bf16.msra.mxu0 %v1752_v21  ;;  %5508 = vmatpush3.bf16.msra.mxu1 %v1752_v21  ;;  %v5769_v29 = vld [vmem:[%s6288_s6 + $0x138] sm:$0xff]   ;;  %v5771_v31 = vld [vmem:[%s6288_s6 + $0x140] sm:$0xff]   ;;  %v5773_v33 = vld [vmem:[%s6288_s6 + $0x148] sm:$0xff]   ;;  %s4766_s12 = sshll.u32 %s7326_s11, 3 }
  0x6e   : > { %5509 = vmatprep.mubr.msk.bf16.mxu1 %vm1638_vm2, %v5763_v23  ;;  %5581 = vmatprep.subr.bf16.mxu0 %v5760_v16  ;;  %v5774_v34 = vld [vmem:[%s6288_s6 + $0x30] sm:$0xff]   ;;  %v5776_v36 = vld [vmem:[%s6288_s6 + $0x38] sm:$0xff]   ;;  %v5778_v38 = vld [vmem:[%s6288_s6 + $0x40] sm:$0xff]   ;;  %s6894_s17 = scalar_lea.vmem %s7265_s3, %s4766_s12 }
  0x6f   : > { %5657 = vmatprep.subr.bf16.mxu1 %v5760_v16  ;;  %v5775_v35 = vld [vmem:[%s6288_s6 + $0x150] sm:$0xff]   ;;  %v5777_v37 = vld [vmem:[%s6288_s6 + $0x158] sm:$0xff]   ;;  %v5779_v39 = vld [vmem:[%s6288_s6 + $0x160] sm:$0xff]  }
  0x70   : > { %5434 = vmatmul.mubr.msk.bf16.vlgmr.msra.gmra.mrb[0].mxu0 %vm1638_vm2, %v5764_v24  ;;  %5510 = vmatmul.mubr.msk.bf16.vlgmr.msra.gmra.mrb[0].mxu1 %vm1638_vm2, %v5765_v25  ;;  %v5780_v40 = vld [vmem:[%s6288_s6 + $0x48] sm:$0xff]   ;;  %v5782_v42 = vld [vmem:[%s6288_s6 + $0x50] sm:$0xff]   ;;  %v5784_v44 = vld [vmem:[%s6288_s6 + $0x58] sm:$0xff]  }
  0x71   : > { %5582 = vmatpush3.bf16.msra.mxu0 %v5760_v16  ;;  %5658 = vmatpush3.bf16.msra.mxu1 %v5760_v16  ;;  %v5781_v41 = vld [vmem:[%s6288_s6 + $0x168] sm:$0xff]   ;;  %v5783_v43 = vld [vmem:[%s6288_s6 + $0x170] sm:$0xff]   ;;  %v5785_v45 = vld [vmem:[%s6288_s6 + $0x178] sm:$0xff]  }
  0x72   : > { %5437 = vmatprep.mubr.msk.bf16.mxu0 %vm1638_vm2, %v5766_v26  ;;  %5513 = vmatprep.mubr.msk.bf16.mxu1 %vm1638_vm2, %v5767_v27  ;;  %v5786_v46 = vld [vmem:[%s6288_s6 + $0x60] sm:$0xff]   ;;  %v5788_v48 = vld [vmem:[%s6288_s6 + $0x68] sm:$0xff]   ;;  %v5790_v50 = vld [vmem:[%s6288_s6 + $0x70] sm:$0xff]  }
  0x73   : > { %5583 = vmatprep.subr.bf16.mxu0 %v1752_v21  ;;  %5659 = vmatprep.subr.bf16.mxu1 %v1752_v21  ;;  %v5787_v47 = vld [vmem:[%s6288_s6 + $0x180] sm:$0xff]   ;;  %v5789_v49 = vld [vmem:[%s6288_s6 + $0x188] sm:$0xff]   ;;  %v5791_v51 = vld [vmem:[%s6288_s6 + $0x190] sm:$0xff]  }
  0x74   : > { %v5792_v52 = vld [vmem:[%s6288_s6 + $0x78] sm:$0xff]   ;;  %v5794_v54 = vld [vmem:[%s6288_s6 + $0x80] sm:$0xff]   ;;  %v5796_v56 = vld [vmem:[%s6288_s6 + $0x88] sm:$0xff]  }
  0x75   : > { %5584 = vmatpush3.bf16.msra.mxu0 %v1752_v21  ;;  %5660 = vmatpush3.bf16.msra.mxu1 %v1752_v21  ;;  %v5793_v53 = vld [vmem:[%s6288_s6 + $0x198] sm:$0xff]   ;;  %v5795_v55 = vld [vmem:[%s6288_s6 + $0x1a0] sm:$0xff]   ;;  %v5797_v57 = vld [vmem:[%s6288_s6 + $0x1a8] sm:$0xff]  }
  0x76   : > { %v5798_v58 = vld [vmem:[%s6288_s6 + $0x90] sm:$0xff]   ;;  %v5800_v60 = vld [vmem:[%s6288_s6 + $0x98] sm:$0xff]   ;;  %v5802_v62 = vld [vmem:[%s6288_s6 + $0xa0] sm:$0xff]  }
  0x77   : > { %v5799_v59 = vld [vmem:[%s6288_s6 + $0x1b0] sm:$0xff]   ;;  %v5801_v61 = vld [vmem:[%s6288_s6 + $0x1b8] sm:$0xff]   ;;  %v5803_v63 = vld [vmem:[%s6288_s6 + $0x1c0] sm:$0xff]  }
  0x78   : > { %5438 = vmatmul.mubr.msk.bf16.gmra.mrb[4].mxu0 %vm1638_vm2, %v5768_v28  ;;  %5514 = vmatmul.mubr.msk.bf16.gmra.mrb[4].mxu1 %vm1638_vm2, %v5769_v29  ;;  %v5804_v0 = vld [vmem:[%s6288_s6 + $0xa8] sm:$0xff]   ;;  %v5806_v2 = vld [vmem:[%s6288_s6 + $0xb0] sm:$0xff]   ;;  %v5808_v4 = vld [vmem:[%s6288_s6 + $0xb8] sm:$0xff]  }
  0x79   : > { %5441 = vmatprep.mubr.msk.bf16.mxu0 %vm1638_vm2, %v5770_v30  ;;  %5517 = vmatprep.mubr.msk.bf16.mxu1 %vm1638_vm2, %v5771_v31  ;;  %v5805_v1 = vld [vmem:[%s6288_s6 + $0x1c8] sm:$0xff]   ;;  %v5807_v3 = vld [vmem:[%s6288_s6 + $0x1d0] sm:$0xff]   ;;  %v5809_v5 = vld [vmem:[%s6288_s6 + $0x1d8] sm:$0xff]  }
  0x7a   : > { %v5810_v6 = vld [vmem:[%s6288_s6 + $0xc0] sm:$0xff]   ;;  %v5812_v8 = vld [vmem:[%s6288_s6 + $0xc8] sm:$0xff]   ;;  %v5814_v10 = vld [vmem:[%s6288_s6 + $0xd0] sm:$0xff]  }
  0x7b   : > { %v5811_v7 = vld [vmem:[%s6288_s6 + $0x1e0] sm:$0xff]   ;;  %v5813_v9 = vld [vmem:[%s6288_s6 + $0x1e8] sm:$0xff]   ;;  %v5815_v11 = vld [vmem:[%s6288_s6 + $0x1f0] sm:$0xff]  }
  0x7c   : > { %v5816_v12 = vld [vmem:[%s6288_s6 + $0xd8] sm:$0xff]   ;;  %v5818_v14 = vld [vmem:[%s6288_s6 + $0xe0] sm:$0xff]   ;;  %v5820_v16 = vld [vmem:[%s6288_s6 + $0xe8] sm:$0xff]  }
  0x7d   : > { %v5817_v13 = vld [vmem:[%s6288_s6 + $0x1f8] sm:$0xff]   ;;  %v5819_v15 = vld [vmem:[%s6288_s6 + $0x200] sm:$0xff]   ;;  %v5821_v17 = vld [vmem:[%s6288_s6 + $0x208] sm:$0xff]  }
  0x7e   : > { %v5822_v18 = vld [vmem:[%s6288_s6 + $0xf0] sm:$0xff]   ;;  %v5824_v20 = vld [vmem:[%s6288_s6 + $0xf8] sm:$0xff]   ;;  %v5826_v22 = vld [vmem:[%s6288_s6 + $0x100] sm:$0xff]  }
  0x7f   : > { %v5823_v19 = vld [vmem:[%s6288_s6 + $0x210] sm:$0xff]   ;;  %v5825_v21 = vld [vmem:[%s6288_s6 + $0x218] sm:$0xff]   ;;  %v5827_v23 = vld [vmem:[%s6288_s6 + $0x220] sm:$0xff]  }
  0x80   : > { %5442 = vmatmul.mubr.msk.bf16.gmra.mrb[8].mxu0 %vm1638_vm2, %v5772_v32  ;;  %5518 = vmatmul.mubr.msk.bf16.gmra.mrb[8].mxu1 %vm1638_vm2, %v5773_v33  ;;  %v5828_v24 = vld [vmem:[%s6288_s6 + $0x108] sm:$0xff]   ;;  %v5830_v26 = vld [vmem:[%s6288_s6 + $0x110] sm:$0xff]   ;;  %v5832_v28 = vld [vmem:[%s6288_s6 + $0x118] sm:$0xff]  }
  0x81   : > { %5445 = vmatprep.mubr.msk.bf16.mxu0 %vm1638_vm2, %v5774_v34  ;;  %5521 = vmatprep.mubr.msk.bf16.mxu1 %vm1638_vm2, %v5775_v35  ;;  %v5829_v25 = vld [vmem:[%s6288_s6 + $0x228] sm:$0xff]   ;;  %v5831_v27 = vld [vmem:[%s6288_s6 + $0x230] sm:$0xff]   ;;  %v5833_v29 = vld [vmem:[%s6288_s6 + $0x238] sm:$0xff]  }
  0x82   : > { %v5834_v30 = vld [vmem:[%s6288_s6 + $0x240] sm:$0xff]   ;;  %v5836_v32 = vld [vmem:[%s6288_s6 + $0x248] sm:$0xff]   ;;  %v5838_v34 = vld [vmem:[%s6288_s6 + $0x250] sm:$0xff]  }
  0x83   : > { %v5835_v31 = vld [vmem:[%s6288_s6 + $0x360] sm:$0xff]   ;;  %v5837_v33 = vld [vmem:[%s6288_s6 + $0x368] sm:$0xff]   ;;  %v5839_v35 = vld [vmem:[%s6288_s6 + $0x370] sm:$0xff]  }
  0x88   : > { %5446 = vmatmul.mubr.msk.bf16.gmra.mrb[12].mxu0 %vm1638_vm2, %v5776_v36  ;;  %5522 = vmatmul.mubr.msk.bf16.gmra.mrb[12].mxu1 %vm1638_vm2, %v5777_v37  ;;  %v5840_v36 = vld [vmem:[%s6288_s6 + $0x258] sm:$0xff]  }
  0x89   : > { %5449 = vmatprep.mubr.msk.bf16.mxu0 %vm1638_vm2, %v5778_v38  ;;  %5525 = vmatprep.mubr.msk.bf16.mxu1 %vm1638_vm2, %v5779_v39  ;;  %v5841_v37 = vld [vmem:[%s6288_s6 + $0x378] sm:$0xff]   ;;  %v5842_v38 = vld [vmem:[%s6288_s6 + $0x260] sm:$0xff]  }
  0x8a   : > { %v5843_v39 = vld [vmem:[%s6288_s6 + $0x380] sm:$0xff]  }
  0x90   : > { %5450 = vmatmul.mubr.msk.bf16.gmra.mrb[16].mxu0 %vm1638_vm2, %v5780_v40  ;;  %5526 = vmatmul.mubr.msk.bf16.gmra.mrb[16].mxu1 %vm1638_vm2, %v5781_v41  ;;  %v5844_v40 = vld [vmem:[%s6288_s6 + $0x268] sm:$0xff]  }
  0x91   : > { %5453 = vmatprep.mubr.msk.bf16.mxu0 %vm1638_vm2, %v5782_v42  ;;  %5529 = vmatprep.mubr.msk.bf16.mxu1 %vm1638_vm2, %v5783_v43  ;;  %v5845_v41 = vld [vmem:[%s6288_s6 + $0x388] sm:$0xff]   ;;  %v5846_v42 = vld [vmem:[%s6288_s6 + $0x270] sm:$0xff]  }
  0x92   : > { %v5847_v43 = vld [vmem:[%s6288_s6 + $0x390] sm:$0xff]  }
  0x98   : > { %5454 = vmatmul.mubr.msk.bf16.gmra.mrb[20].mxu0 %vm1638_vm2, %v5784_v44  ;;  %5530 = vmatmul.mubr.msk.bf16.gmra.mrb[20].mxu1 %vm1638_vm2, %v5785_v45  ;;  %v5848_v44 = vld [vmem:[%s6288_s6 + $0x278] sm:$0xff]  }
  0x99   : > { %5457 = vmatprep.mubr.msk.bf16.mxu0 %vm1638_vm2, %v5786_v46  ;;  %5533 = vmatprep.mubr.msk.bf16.mxu1 %vm1638_vm2, %v5787_v47  ;;  %v5849_v45 = vld [vmem:[%s6288_s6 + $0x398] sm:$0xff]   ;;  %v5850_v46 = vld [vmem:[%s6288_s6 + $0x280] sm:$0xff]  }
  0x9a   : > { %v5851_v47 = vld [vmem:[%s6288_s6 + $0x3a0] sm:$0xff]  }
  0xa0   : > { %5458 = vmatmul.mubr.msk.bf16.gmra.mrb[24].mxu0 %vm1638_vm2, %v5788_v48  ;;  %5534 = vmatmul.mubr.msk.bf16.gmra.mrb[24].mxu1 %vm1638_vm2, %v5789_v49  ;;  %v5852_v48 = vld [vmem:[%s6288_s6 + $0x288] sm:$0xff]  }
  0xa1   : > { %5461 = vmatprep.mubr.msk.bf16.mxu0 %vm1638_vm2, %v5790_v50  ;;  %5537 = vmatprep.mubr.msk.bf16.mxu1 %vm1638_vm2, %v5791_v51  ;;  %v5853_v49 = vld [vmem:[%s6288_s6 + $0x3a8] sm:$0xff]   ;;  %v5854_v50 = vld [vmem:[%s6288_s6 + $0x290] sm:$0xff]  }
  0xa2   : > { %v5855_v51 = vld [vmem:[%s6288_s6 + $0x3b0] sm:$0xff]  }
  0xa8   : > { %5462 = vmatmul.mubr.msk.bf16.gmra.mrb[28].mxu0 %vm1638_vm2, %v5792_v52  ;;  %5538 = vmatmul.mubr.msk.bf16.gmra.mrb[28].mxu1 %vm1638_vm2, %v5793_v53  ;;  %v5856_v52 = vld [vmem:[%s6288_s6 + $0x298] sm:$0xff]  }
  0xa9   : > { %5465 = vmatprep.mubr.msk.bf16.mxu0 %vm1638_vm2, %v5794_v54  ;;  %5541 = vmatprep.mubr.msk.bf16.mxu1 %vm1638_vm2, %v5795_v55  ;;  %v5857_v53 = vld [vmem:[%s6288_s6 + $0x3b8] sm:$0xff]   ;;  %v5858_v54 = vld [vmem:[%s6288_s6 + $0x2a0] sm:$0xff]  }
  0xaa   : > { %v5859_v55 = vld [vmem:[%s6288_s6 + $0x3c0] sm:$0xff]  }
  0xb0   : > { %5466 = vmatmul.mubr.msk.bf16.gmra.mrb[32].mxu0 %vm1638_vm2, %v5796_v56  ;;  %5542 = vmatmul.mubr.msk.bf16.gmra.mrb[32].mxu1 %vm1638_vm2, %v5797_v57  ;;  %v5860_v56 = vld [vmem:[%s6288_s6 + $0x2a8] sm:$0xff]  }
  0xb1   : > { %5469 = vmatprep.mubr.msk.bf16.mxu0 %vm1638_vm2, %v5798_v58  ;;  %5545 = vmatprep.mubr.msk.bf16.mxu1 %vm1638_vm2, %v5799_v59  ;;  %v5861_v57 = vld [vmem:[%s6288_s6 + $0x3c8] sm:$0xff]   ;;  %v5862_v58 = vld [vmem:[%s6288_s6 + $0x2b0] sm:$0xff]  }
  0xb2   : > { %v5863_v59 = vld [vmem:[%s6288_s6 + $0x3d0] sm:$0xff]  }
  0xb8   : > { %5470 = vmatmul.mubr.msk.bf16.gmra.mrb[36].mxu0 %vm1638_vm2, %v5800_v60  ;;  %5546 = vmatmul.mubr.msk.bf16.gmra.mrb[36].mxu1 %vm1638_vm2, %v5801_v61  ;;  %v5864_v60 = vld [vmem:[%s6288_s6 + $0x2b8] sm:$0xff]  }
  0xb9   : > { %5473 = vmatprep.mubr.msk.bf16.mxu0 %vm1638_vm2, %v5802_v62  ;;  %5549 = vmatprep.mubr.msk.bf16.mxu1 %vm1638_vm2, %v5803_v63  ;;  %v5865_v61 = vld [vmem:[%s6288_s6 + $0x3d8] sm:$0xff]   ;;  %v5866_v62 = vld [vmem:[%s6288_s6 + $0x2c0] sm:$0xff]  }
  0xba   : > { %v5867_v63 = vld [vmem:[%s6288_s6 + $0x3e0] sm:$0xff]  }
  0xc0   : > { %5474 = vmatmul.mubr.msk.bf16.gmra.mrb[40].mxu0 %vm1638_vm2, %v5804_v0  ;;  %5550 = vmatmul.mubr.msk.bf16.gmra.mrb[40].mxu1 %vm1638_vm2, %v5805_v1  ;;  %v5868_v0 = vld [vmem:[%s6288_s6 + $0x2c8] sm:$0xff]  }
  0xc1   : > { %5477 = vmatprep.mubr.msk.bf16.mxu0 %vm1638_vm2, %v5806_v2  ;;  %5553 = vmatprep.mubr.msk.bf16.mxu1 %vm1638_vm2, %v5807_v3  ;;  %v5869_v1 = vld [vmem:[%s6288_s6 + $0x3e8] sm:$0xff]   ;;  %v5870_v2 = vld [vmem:[%s6288_s6 + $0x2d0] sm:$0xff]  }
  0xc2   : > { %v5871_v3 = vld [vmem:[%s6288_s6 + $0x3f0] sm:$0xff]  }
  0xc8   : > { %5478 = vmatmul.mubr.msk.bf16.gmra.mrb[44].mxu0 %vm1638_vm2, %v5808_v4  ;;  %5554 = vmatmul.mubr.msk.bf16.gmra.mrb[44].mxu1 %vm1638_vm2, %v5809_v5  ;;  %v6511_v4 = vld [vmem:[%s7264_s2] ss:$0 sm:$0xff] }
  0xc9   : > { %5481 = vmatprep.mubr.msk.bf16.mxu0 %vm1638_vm2, %v5810_v6  ;;  %5557 = vmatprep.mubr.msk.bf16.mxu1 %vm1638_vm2, %v5811_v7 }
  0xd0   : > { %5482 = vmatmul.mubr.msk.bf16.gmra.mrb[48].mxu0 %vm1638_vm2, %v5812_v8  ;;  %5558 = vmatmul.mubr.msk.bf16.gmra.mrb[48].mxu1 %vm1638_vm2, %v5813_v9 }
  0xd1   : > { %5485 = vmatprep.mubr.msk.bf16.mxu0 %vm1638_vm2, %v5814_v10  ;;  %5561 = vmatprep.mubr.msk.bf16.mxu1 %vm1638_vm2, %v5815_v11  ;;  %v5872_v11 = vld [vmem:[%s6288_s6 + $0x2d8] sm:$0xff]  }
  0xd8   : > { %5486 = vmatmul.mubr.msk.bf16.gmra.mrb[52].mxu0 %vm1638_vm2, %v5816_v12  ;;  %5562 = vmatmul.mubr.msk.bf16.gmra.mrb[52].mxu1 %vm1638_vm2, %v5817_v13  ;;  %v5873_v12 = vld [vmem:[%s6288_s6 + $0x3f8] sm:$0xff]  }
  0xd9   : > { %5489 = vmatprep.mubr.msk.bf16.mxu0 %vm1638_vm2, %v5818_v14  ;;  %5565 = vmatprep.mubr.msk.bf16.mxu1 %vm1638_vm2, %v5819_v15 }
  0xe0   : > { %5490 = vmatmul.mubr.msk.bf16.gmra.mrb[56].mxu0 %vm1638_vm2, %v5820_v16  ;;  %5566 = vmatmul.mubr.msk.bf16.gmra.mrb[56].mxu1 %vm1638_vm2, %v5821_v17  ;;  %v5874_v17 = vld [vmem:[%s6288_s6 + $0x2e0] sm:$0xff]  }
  0xe1   : > { %5493 = vmatprep.mubr.msk.bf16.mxu0 %vm1638_vm2, %v5822_v18  ;;  %5569 = vmatprep.mubr.msk.bf16.mxu1 %vm1638_vm2, %v5823_v19  ;;  %v5875_v18 = vld [vmem:[%s6288_s6 + $0x400] sm:$0xff]  }
  0xe8   : > { %5494 = vmatmul.mubr.msk.bf16.gmra.mrb[60].mxu0 %vm1638_vm2, %v5824_v20  ;;  %5570 = vmatmul.mubr.msk.bf16.gmra.mrb[60].mxu1 %vm1638_vm2, %v5825_v21 }
  0xe9   : > { %5497 = vmatprep.mubr.msk.bf16.mxu0 %vm1638_vm2, %v5826_v22  ;;  %5573 = vmatprep.mubr.msk.bf16.mxu1 %vm1638_vm2, %v5827_v23 }
  0xf0   : > { %5498 = vmatmul.mubr.msk.bf16.gmra.mrb[64].mxu0 %vm1638_vm2, %v5828_v24  ;;  %5574 = vmatmul.mubr.msk.bf16.gmra.mrb[64].mxu1 %vm1638_vm2, %v5829_v25 }
  0xf1   : > { %5501 = vmatprep.mubr.msk.bf16.mxu0 %vm1638_vm2, %v5830_v26  ;;  %5577 = vmatprep.mubr.msk.bf16.mxu1 %vm1638_vm2, %v5831_v27 }
  0xf8   : > { %5502 = vmatmul.mubr.msk.bf16.gmra.mrb[68].mxu0 %vm1638_vm2, %v5832_v28  ;;  %5578 = vmatmul.mubr.msk.bf16.gmra.mrb[68].mxu1 %vm1638_vm2, %v5833_v29 }
  0xf9   : > { %5585 = vmatprep.mubr.msk.bf16.mxu0 %vm1638_vm2, %v5834_v30  ;;  %5661 = vmatprep.mubr.msk.bf16.mxu1 %vm1638_vm2, %v5835_v31 }
 0x100   : > { %5586 = vmatmul.mubr.msk.bf16.vlgmr.msra.gmra.mrb[72].mxu0 %vm1638_vm2, %v5836_v32  ;;  %5662 = vmatmul.mubr.msk.bf16.vlgmr.msra.gmra.mrb[72].mxu1 %vm1638_vm2, %v5837_v33 }
 0x101   : > { %5589 = vmatprep.mubr.msk.bf16.mxu0 %vm1638_vm2, %v5838_v34  ;;  %5665 = vmatprep.mubr.msk.bf16.mxu1 %vm1638_vm2, %v5839_v35 }
 0x108   : > { %5590 = vmatmul.mubr.msk.bf16.gmra.mrb[76].mxu0 %vm1638_vm2, %v5840_v36  ;;  %5666 = vmatmul.mubr.msk.bf16.gmra.mrb[76].mxu1 %vm1638_vm2, %v5841_v37 }
 0x109   : > { %5593 = vmatprep.mubr.msk.bf16.mxu0 %vm1638_vm2, %v5842_v38  ;;  %5669 = vmatprep.mubr.msk.bf16.mxu1 %vm1638_vm2, %v5843_v39 }
 0x110   : > { %5594 = vmatmul.mubr.msk.bf16.gmra.mrb[80].mxu0 %vm1638_vm2, %v5844_v40  ;;  %5670 = vmatmul.mubr.msk.bf16.gmra.mrb[80].mxu1 %vm1638_vm2, %v5845_v41 }
 0x111   : > { %5597 = vmatprep.mubr.msk.bf16.mxu0 %vm1638_vm2, %v5846_v42  ;;  %5673 = vmatprep.mubr.msk.bf16.mxu1 %vm1638_vm2, %v5847_v43  ;;  %v5876_v43 = vld [vmem:[%s6288_s6 + $0x2e8] sm:$0xff]  }
 0x118   : > { %5598 = vmatmul.mubr.msk.bf16.gmra.mrb[84].mxu0 %vm1638_vm2, %v5848_v44  ;;  %5674 = vmatmul.mubr.msk.bf16.gmra.mrb[84].mxu1 %vm1638_vm2, %v5849_v45  ;;  %v5877_v44 = vld [vmem:[%s6288_s6 + $0x408] sm:$0xff]  }
 0x119   : > { %5601 = vmatprep.mubr.msk.bf16.mxu0 %vm1638_vm2, %v5850_v46  ;;  %5677 = vmatprep.mubr.msk.bf16.mxu1 %vm1638_vm2, %v5851_v47 }
 0x120   : > { %5602 = vmatmul.mubr.msk.bf16.gmra.mrb[88].mxu0 %vm1638_vm2, %v5852_v48  ;;  %5678 = vmatmul.mubr.msk.bf16.gmra.mrb[88].mxu1 %vm1638_vm2, %v5853_v49  ;;  %v5878_v49 = vld [vmem:[%s6288_s6 + $0x2f0] sm:$0xff]  }
 0x121   : > { %5605 = vmatprep.mubr.msk.bf16.mxu0 %vm1638_vm2, %v5854_v50  ;;  %5681 = vmatprep.mubr.msk.bf16.mxu1 %vm1638_vm2, %v5855_v51  ;;  %v5879_v50 = vld [vmem:[%s6288_s6 + $0x410] sm:$0xff]  }
 0x128   : > { %5606 = vmatmul.mubr.msk.bf16.gmra.mrb[92].mxu0 %vm1638_vm2, %v5856_v52  ;;  %5682 = vmatmul.mubr.msk.bf16.gmra.mrb[92].mxu1 %vm1638_vm2, %v5857_v53 }
 0x129   : > { %5609 = vmatprep.mubr.msk.bf16.mxu0 %vm1638_vm2, %v5858_v54  ;;  %5685 = vmatprep.mubr.msk.bf16.mxu1 %vm1638_vm2, %v5859_v55 }
 0x130   : > { %5610 = vmatmul.mubr.msk.bf16.gmra.mrb[96].mxu0 %vm1638_vm2, %v5860_v56  ;;  %5686 = vmatmul.mubr.msk.bf16.gmra.mrb[96].mxu1 %vm1638_vm2, %v5861_v57 }
 0x131   : > { %5613 = vmatprep.mubr.msk.bf16.mxu0 %vm1638_vm2, %v5862_v58  ;;  %5689 = vmatprep.mubr.msk.bf16.mxu1 %vm1638_vm2, %v5863_v59 }
 0x138   : > { %5614 = vmatmul.mubr.msk.bf16.gmra.mrb[100].mxu0 %vm1638_vm2, %v5864_v60  ;;  %5690 = vmatmul.mubr.msk.bf16.gmra.mrb[100].mxu1 %vm1638_vm2, %v5865_v61 }
 0x139   : > { %5617 = vmatprep.mubr.msk.bf16.mxu0 %vm1638_vm2, %v5866_v62  ;;  %5693 = vmatprep.mubr.msk.bf16.mxu1 %vm1638_vm2, %v5867_v63 }
 0x140   : > { %5618 = vmatmul.mubr.msk.bf16.gmra.mrb[104].mxu0 %vm1638_vm2, %v5868_v0  ;;  %5694 = vmatmul.mubr.msk.bf16.gmra.mrb[104].mxu1 %vm1638_vm2, %v5869_v1 }
 0x141   : > { %5621 = vmatprep.mubr.msk.bf16.mxu0 %vm1638_vm2, %v5870_v2  ;;  %5697 = vmatprep.mubr.msk.bf16.mxu1 %vm1638_vm2, %v5871_v3 }
 0x143   : > { %v5435_v5 = vpop.f32.mrb[0].mxu0  ;;  %v5511_v6 = vpop.f32.mrb[0].mxu1 }
 0x144   : > { %v1797_v7 = vadd.f32 %v5435_v5, %v6511_v4  ;;  %v2551_v8 = vadd.f32 %v5511_v6, %v6511_v4  ;;  %v1788_v9 = vpop.f32.mrb[1].mxu0  ;;  %v2542_v10 = vpop.f32.mrb[1].mxu1 }
 0x145   : > { %v1789_v13 = vadd.f32 %v6511_v4, %v1788_v9  ;;  %v2543_v14 = vadd.f32 %v6511_v4, %v2542_v10  ;;  %v5436_v15 = vpop.f32.mrb[2].mxu0  ;;  %v5512_v16 = vpop.f32.mrb[2].mxu1 }
 0x146   : > { %v2077_v19 = vmax.f32 %v1797_v7, 0.0  ;;  %v2831_v20 = vmax.f32 %v2551_v8, 0.0  ;;  %v1800_v21 = vadd.f32 %v5436_v15, %v6511_v4  ;;  %v2554_v22 = vadd.f32 %v5512_v16, %v6511_v4  ;;  %v1791_v23 = vpop.f32.mrb[3].mxu0  ;;  %v2545_v24 = vpop.f32.mrb[3].mxu1 }
 0x147   : > { %v2075_v25 = vmax.f32 %v1789_v13, 0.0  ;;  %v2829_v26 = vmax.f32 %v2543_v14, 0.0  ;;  %v1792_v27 = vadd.f32 %v6511_v4, %v1791_v23  ;;  %v2546_v28 = vadd.f32 %v6511_v4, %v2545_v24  ;;  %v5881_v13 = vld [vmem:[%s6288_s6 + $0x418] sm:$0xff]  }
 0x148   : > { %v6527_v29 = vmax.f32 %v2077_v19, %v2831_v20  ;;  %v2078_v30 = vmax.f32 %v1800_v21, 0.0  ;;  %v2832_v31 = vmax.f32 %v2554_v22, 0.0  ;;  %5622 = vmatmul.mubr.msk.bf16.gmra.mrb[108].mxu0 %vm1638_vm2, %v5872_v11  ;;  %5698 = vmatmul.mubr.msk.bf16.gmra.mrb[108].mxu1 %vm1638_vm2, %v5873_v12  ;;  %v5880_v12 = vld [vmem:[%s6288_s6 + $0x2f8] sm:$0xff]   ;;  %v5883_v19 = vld [vmem:[%s6288_s6 + $0x420] sm:$0xff]  }
 0x149   : > { %v6531_v32 = vmax.f32 %v2075_v25, %v2829_v26  ;;  %v2076_v33 = vmax.f32 %v1792_v27, 0.0  ;;  %v2830_v34 = vmax.f32 %v2546_v28, 0.0  ;;  %5625 = vmatprep.mubr.msk.bf16.mxu0 %vm1638_vm2, %v5874_v17  ;;  %5701 = vmatprep.mubr.msk.bf16.mxu1 %vm1638_vm2, %v5875_v18  ;;  %v5882_v18 = vld [vmem:[%s6288_s6 + $0x300] sm:$0xff]  }
 0x14a   : > { %v6535_v35 = vmax.f32 %v2078_v30, %v2832_v31 }
 0x14b   : > { %v6537_v36 = vmax.f32 %v2076_v33, %v2830_v34  ;;  %v5439_v37 = vpop.f32.mrb[4].mxu0  ;;  %v5515_v38 = vpop.f32.mrb[4].mxu1 }
 0x14c   : > { %v1813_v39 = vadd.f32 %v5439_v37, %v6511_v4  ;;  %v2567_v40 = vadd.f32 %v5515_v38, %v6511_v4  ;;  %v1804_v41 = vpop.f32.mrb[5].mxu0  ;;  %v2558_v42 = vpop.f32.mrb[5].mxu1 }
 0x14d   : > { %v1805_v45 = vadd.f32 %v6511_v4, %v1804_v41  ;;  %v2559_v46 = vadd.f32 %v6511_v4, %v2558_v42  ;;  %v5440_v47 = vpop.f32.mrb[6].mxu0  ;;  %v5516_v48 = vpop.f32.mrb[6].mxu1 }
 0x14e   : > { %v2081_v51 = vmax.f32 %v1813_v39, 0.0  ;;  %v2835_v52 = vmax.f32 %v2567_v40, 0.0  ;;  %v1816_v53 = vadd.f32 %v5440_v47, %v6511_v4  ;;  %v2570_v54 = vadd.f32 %v5516_v48, %v6511_v4  ;;  %v1807_v55 = vpop.f32.mrb[7].mxu0  ;;  %v2561_v56 = vpop.f32.mrb[7].mxu1  ;;  %v5884_v48 = vld [vmem:[%s6288_s6 + $0x308] sm:$0xff]  }
 0x14f   : > { %v2079_v57 = vmax.f32 %v1805_v45, 0.0  ;;  %v2833_v58 = vmax.f32 %v2559_v46, 0.0  ;;  %v1808_v59 = vadd.f32 %v6511_v4, %v1807_v55  ;;  %v2562_v60 = vadd.f32 %v6511_v4, %v2561_v56  ;;  %v5887_v55 = vld [vmem:[%s6288_s6 + $0x430] sm:$0xff]  }
 0x150   : > { %v6551_v61 = vmax.f32 %v2081_v51, %v2835_v52  ;;  %v2082_v62 = vmax.f32 %v1816_v53, 0.0  ;;  %v2836_v63 = vmax.f32 %v2570_v54, 0.0  ;;  %5626 = vmatmul.mubr.msk.bf16.gmra.mrb[112].mxu0 %vm1638_vm2, %v5876_v43  ;;  %5702 = vmatmul.mubr.msk.bf16.gmra.mrb[112].mxu1 %vm1638_vm2, %v5877_v44  ;;  %v5886_v54 = vld [vmem:[%s6288_s6 + $0x310] sm:$0xff]  }
 0x151   : > { %v6555_v0 = vmax.f32 %v2079_v57, %v2833_v58  ;;  %v2080_v1 = vmax.f32 %v1808_v59, 0.0  ;;  %v2834_v2 = vmax.f32 %v2562_v60, 0.0  ;;  %5629 = vmatprep.mubr.msk.bf16.mxu0 %vm1638_vm2, %v5878_v49  ;;  %5705 = vmatprep.mubr.msk.bf16.mxu1 %vm1638_vm2, %v5879_v50  ;;  %v5885_v49 = vld [vmem:[%s6288_s6 + $0x428] sm:$0xff]  }
 0x152   : > { %v6559_v3 = vmax.f32 %v2082_v62, %v2836_v63 }
 0x153   : > { %v6561_v5 = vmax.f32 %v2080_v1, %v2834_v2  ;;  %v5443_v6 = vpop.f32.mrb[8].mxu0  ;;  %v5519_v7 = vpop.f32.mrb[8].mxu1 }
 0x154   : > { %v1829_v8 = vadd.f32 %v5443_v6, %v6511_v4  ;;  %v2583_v9 = vadd.f32 %v5519_v7, %v6511_v4  ;;  %v1820_v10 = vpop.f32.mrb[9].mxu0  ;;  %v2574_v11 = vpop.f32.mrb[9].mxu1 }
 0x155   : > { %v1821_v14 = vadd.f32 %v6511_v4, %v1820_v10  ;;  %v2575_v15 = vadd.f32 %v6511_v4, %v2574_v11  ;;  %v5444_v16 = vpop.f32.mrb[10].mxu0  ;;  %v5520_v17 = vpop.f32.mrb[10].mxu1 }
 0x156   : > { %v2085_v20 = vmax.f32 %v1829_v8, 0.0  ;;  %v2839_v21 = vmax.f32 %v2583_v9, 0.0  ;;  %v1832_v22 = vadd.f32 %v5444_v16, %v6511_v4  ;;  %v2586_v23 = vadd.f32 %v5520_v17, %v6511_v4  ;;  %v1823_v24 = vpop.f32.mrb[11].mxu0  ;;  %v2577_v25 = vpop.f32.mrb[11].mxu1 }
 0x157   : > { %v2083_v26 = vmax.f32 %v1821_v14, 0.0  ;;  %v2837_v27 = vmax.f32 %v2575_v15, 0.0  ;;  %v1824_v28 = vadd.f32 %v6511_v4, %v1823_v24  ;;  %v2578_v30 = vadd.f32 %v6511_v4, %v2577_v25 }
 0x158   : > { %v6575_v31 = vmax.f32 %v2085_v20, %v2839_v21  ;;  %v2086_v33 = vmax.f32 %v1832_v22, 0.0  ;;  %v2840_v34 = vmax.f32 %v2586_v23, 0.0  ;;  %5630 = vmatmul.mubr.msk.bf16.gmra.mrb[116].mxu0 %vm1638_vm2, %v5880_v12  ;;  %5706 = vmatmul.mubr.msk.bf16.gmra.mrb[116].mxu1 %vm1638_vm2, %v5881_v13  ;;  %v5888_v21 = vld [vmem:[%s6288_s6 + $0x318] sm:$0xff]  }
 0x159   : > { %v6579_v37 = vmax.f32 %v2083_v26, %v2837_v27  ;;  %v2084_v38 = vmax.f32 %v1824_v28, 0.0  ;;  %v2838_v39 = vmax.f32 %v2578_v30, 0.0  ;;  %5633 = vmatprep.mubr.msk.bf16.mxu0 %vm1638_vm2, %v5882_v18  ;;  %5709 = vmatprep.mubr.msk.bf16.mxu1 %vm1638_vm2, %v5883_v19  ;;  %v5889_v22 = vld [vmem:[%s6288_s6 + $0x438] sm:$0xff]   ;;  %v5890_v27 = vld [vmem:[%s6288_s6 + $0x320] sm:$0xff]  }
 0x15a   : > { %v6583_v40 = vmax.f32 %v2086_v33, %v2840_v34  ;;  %v5891_v28 = vld [vmem:[%s6288_s6 + $0x440] sm:$0xff]  }
 0x15b   : > { %v6585_v41 = vmax.f32 %v2084_v38, %v2838_v39  ;;  %v5447_v42 = vpop.f32.mrb[12].mxu0  ;;  %v5523_v43 = vpop.f32.mrb[12].mxu1 }
 0x15c   : > { %v1845_v44 = vadd.f32 %v5447_v42, %v6511_v4  ;;  %v2599_v45 = vadd.f32 %v5523_v43, %v6511_v4  ;;  %v1836_v46 = vpop.f32.mrb[13].mxu0  ;;  %v2590_v47 = vpop.f32.mrb[13].mxu1 }
 0x15d   : > { %v1837_v50 = vadd.f32 %v6511_v4, %v1836_v46  ;;  %v2591_v51 = vadd.f32 %v6511_v4, %v2590_v47  ;;  %v5448_v52 = vpop.f32.mrb[14].mxu0  ;;  %v5524_v53 = vpop.f32.mrb[14].mxu1 }
 0x15e   : > { %v2089_v56 = vmax.f32 %v1845_v44, 0.0  ;;  %v2843_v57 = vmax.f32 %v2599_v45, 0.0  ;;  %v1848_v58 = vadd.f32 %v5448_v52, %v6511_v4  ;;  %v2602_v59 = vadd.f32 %v5524_v53, %v6511_v4  ;;  %v1839_v60 = vpop.f32.mrb[15].mxu0  ;;  %v2593_v62 = vpop.f32.mrb[15].mxu1 }
 0x15f   : > { %v2087_v63 = vmax.f32 %v1837_v50, 0.0  ;;  %v2841_v1 = vmax.f32 %v2591_v51, 0.0  ;;  %v1840_v2 = vadd.f32 %v6511_v4, %v1839_v60  ;;  %v2594_v6 = vadd.f32 %v6511_v4, %v2593_v62  ;;  %v5892_v62 = vld [vmem:[%s6288_s6 + $0x328] sm:$0xff]  }
 0x160   : > { %v6599_v7 = vmax.f32 %v2089_v56, %v2843_v57  ;;  %v2090_v8 = vmax.f32 %v1848_v58, 0.0  ;;  %v2844_v9 = vmax.f32 %v2602_v59, 0.0  ;;  %5634 = vmatmul.mubr.msk.bf16.gmra.mrb[120].mxu0 %vm1638_vm2, %v5884_v48  ;;  %5710 = vmatmul.mubr.msk.bf16.gmra.mrb[120].mxu1 %vm1638_vm2, %v5885_v49 }
 0x161   : > { %v6603_v10 = vmax.f32 %v2087_v63, %v2841_v1  ;;  %v2088_v11 = vmax.f32 %v1840_v2, 0.0  ;;  %v2842_v12 = vmax.f32 %v2594_v6, 0.0  ;;  %5637 = vmatprep.mubr.msk.bf16.mxu0 %vm1638_vm2, %v5886_v54  ;;  %5713 = vmatprep.mubr.msk.bf16.mxu1 %vm1638_vm2, %v5887_v55  ;;  %v5893_v63 = vld [vmem:[%s6288_s6 + $0x448] sm:$0xff]  }
 0x162   : > { %v6607_v13 = vmax.f32 %v2090_v8, %v2844_v9  ;;  %v5894_v9 = vld [vmem:[%s6288_s6 + $0x330] sm:$0xff]  }
 0x163   : > { %v6609_v14 = vmax.f32 %v2088_v11, %v2842_v12  ;;  %v5451_v15 = vpop.f32.mrb[16].mxu0  ;;  %v5527_v16 = vpop.f32.mrb[16].mxu1  ;;  %v5895_v11 = vld [vmem:[%s6288_s6 + $0x450] sm:$0xff]  }
 0x164   : > { %v1861_v17 = vadd.f32 %v5451_v15, %v6511_v4  ;;  %v2615_v18 = vadd.f32 %v5527_v16, %v6511_v4  ;;  %v1852_v19 = vpop.f32.mrb[17].mxu0  ;;  %v2606_v20 = vpop.f32.mrb[17].mxu1 }
 0x165   : > { %v1853_v23 = vadd.f32 %v6511_v4, %v1852_v19  ;;  %v2607_v24 = vadd.f32 %v6511_v4, %v2606_v20  ;;  %v5452_v25 = vpop.f32.mrb[18].mxu0  ;;  %v5528_v26 = vpop.f32.mrb[18].mxu1 }
 0x166   : > { %v2093_v30 = vmax.f32 %v1861_v17, 0.0  ;;  %v2847_v33 = vmax.f32 %v2615_v18, 0.0  ;;  %v1864_v34 = vadd.f32 %v5452_v25, %v6511_v4  ;;  %v2618_v38 = vadd.f32 %v5528_v26, %v6511_v4  ;;  %v1855_v39 = vpop.f32.mrb[19].mxu0  ;;  %v2609_v42 = vpop.f32.mrb[19].mxu1 }
 0x167   : > { %v2091_v43 = vmax.f32 %v1853_v23, 0.0  ;;  %v2845_v44 = vmax.f32 %v2607_v24, 0.0  ;;  %v1856_v45 = vadd.f32 %v6511_v4, %v1855_v39  ;;  %v2610_v46 = vadd.f32 %v6511_v4, %v2609_v42 }
 0x168   : > { %v6623_v47 = vmax.f32 %v2093_v30, %v2847_v33  ;;  %v2094_v48 = vmax.f32 %v1864_v34, 0.0  ;;  %v2848_v49 = vmax.f32 %v2618_v38, 0.0  ;;  %5638 = vmatmul.mubr.msk.bf16.gmra.mrb[124].mxu0 %vm1638_vm2, %v5888_v21  ;;  %5714 = vmatmul.mubr.msk.bf16.gmra.mrb[124].mxu1 %vm1638_vm2, %v5889_v22 }
 0x169   : > { %v6627_v50 = vmax.f32 %v2091_v43, %v2845_v44  ;;  %v2092_v51 = vmax.f32 %v1856_v45, 0.0  ;;  %v2846_v52 = vmax.f32 %v2610_v46, 0.0  ;;  %5641 = vmatprep.mubr.msk.bf16.mxu0 %vm1638_vm2, %v5890_v27  ;;  %5717 = vmatprep.mubr.msk.bf16.mxu1 %vm1638_vm2, %v5891_v28  ;;  %v5896_v46 = vld [vmem:[%s6288_s6 + $0x338] sm:$0xff]  }
 0x16a   : > { %v6631_v53 = vmax.f32 %v2094_v48, %v2848_v49  ;;  %v5897_v48 = vld [vmem:[%s6288_s6 + $0x458] sm:$0xff]  }
 0x16b   : > { %v6633_v54 = vmax.f32 %v2092_v51, %v2846_v52  ;;  %v5455_v55 = vpop.f32.mrb[20].mxu0  ;;  %v5531_v56 = vpop.f32.mrb[20].mxu1 }
 0x16c   : > { %v1877_v57 = vadd.f32 %v5455_v55, %v6511_v4  ;;  %v2631_v58 = vadd.f32 %v5531_v56, %v6511_v4  ;;  %v1868_v59 = vpop.f32.mrb[21].mxu0  ;;  %v2622_v60 = vpop.f32.mrb[21].mxu1  ;;  %v5898_v56 = vld [vmem:[%s6288_s6 + $0x340] sm:$0xff]  }
 0x16d   : > { %v1869_v1 = vadd.f32 %v6511_v4, %v1868_v59  ;;  %v2623_v2 = vadd.f32 %v6511_v4, %v2622_v60  ;;  %v5456_v6 = vpop.f32.mrb[22].mxu0  ;;  %v5532_v8 = vpop.f32.mrb[22].mxu1 }
 0x16e   : > { %v2097_v12 = vmax.f32 %v1877_v57, 0.0  ;;  %v2851_v15 = vmax.f32 %v2631_v58, 0.0  ;;  %v1880_v16 = vadd.f32 %v5456_v6, %v6511_v4  ;;  %v2634_v17 = vadd.f32 %v5532_v8, %v6511_v4  ;;  %v1871_v18 = vpop.f32.mrb[23].mxu0  ;;  %v2625_v19 = vpop.f32.mrb[23].mxu1  ;;  %v5899_v57 = vld [vmem:[%s6288_s6 + $0x460] sm:$0xff]  }
 0x16f   : > { %v2095_v20 = vmax.f32 %v1869_v1, 0.0  ;;  %v2849_v21 = vmax.f32 %v2623_v2, 0.0  ;;  %v1872_v22 = vadd.f32 %v6511_v4, %v1871_v18  ;;  %v2626_v23 = vadd.f32 %v6511_v4, %v2625_v19 }
 0x170   : > { %v6647_v24 = vmax.f32 %v2097_v12, %v2851_v15  ;;  %v2098_v25 = vmax.f32 %v1880_v16, 0.0  ;;  %v2852_v26 = vmax.f32 %v2634_v17, 0.0  ;;  %5642 = vmatmul.mubr.msk.bf16.gmra.mrb[128].mxu0 %vm1638_vm2, %v5892_v62  ;;  %5718 = vmatmul.mubr.msk.bf16.gmra.mrb[128].mxu1 %vm1638_vm2, %v5893_v63 }
 0x171   : > { %v6651_v27 = vmax.f32 %v2095_v20, %v2849_v21  ;;  %v2096_v28 = vmax.f32 %v1872_v22, 0.0  ;;  %v2850_v30 = vmax.f32 %v2626_v23, 0.0  ;;  %5645 = vmatprep.mubr.msk.bf16.mxu0 %vm1638_vm2, %v5894_v9  ;;  %5721 = vmatprep.mubr.msk.bf16.mxu1 %vm1638_vm2, %v5895_v11 }
 0x172   : > { %v6655_v33 = vmax.f32 %v2098_v25, %v2852_v26 }
 0x173   : > { %v6657_v34 = vmax.f32 %v2096_v28, %v2850_v30  ;;  %v5459_v38 = vpop.f32.mrb[24].mxu0  ;;  %v5535_v39 = vpop.f32.mrb[24].mxu1  ;;  %v5900_v30 = vld [vmem:[%s6288_s6 + $0x348] sm:$0xff]  }
 0x174   : > { %v1893_v42 = vadd.f32 %v5459_v38, %v6511_v4  ;;  %v2647_v43 = vadd.f32 %v5535_v39, %v6511_v4  ;;  %v1884_v44 = vpop.f32.mrb[25].mxu0  ;;  %v2638_v45 = vpop.f32.mrb[25].mxu1  ;;  %v5901_v38 = vld [vmem:[%s6288_s6 + $0x468] sm:$0xff]  }
 0x175   : > { %v1885_v49 = vadd.f32 %v6511_v4, %v1884_v44  ;;  %v2639_v51 = vadd.f32 %v6511_v4, %v2638_v45  ;;  %v5460_v52 = vpop.f32.mrb[26].mxu0  ;;  %v5536_v55 = vpop.f32.mrb[26].mxu1  ;;  %v5902_v45 = vld [vmem:[%s6288_s6 + $0x350] sm:$0xff]  }
 0x176   : > { %v2101_v58 = vmax.f32 %v1893_v42, 0.0  ;;  %v2855_v59 = vmax.f32 %v2647_v43, 0.0  ;;  %v1896_v60 = vadd.f32 %v5460_v52, %v6511_v4  ;;  %v2650_v62 = vadd.f32 %v5536_v55, %v6511_v4  ;;  %v1887_v63 = vpop.f32.mrb[27].mxu0  ;;  %v2641_v1 = vpop.f32.mrb[27].mxu1 }
 0x177   : > { %v2099_v2 = vmax.f32 %v1885_v49, 0.0  ;;  %v2853_v6 = vmax.f32 %v2639_v51, 0.0  ;;  %v1888_v8 = vadd.f32 %v6511_v4, %v1887_v63  ;;  %v2642_v9 = vadd.f32 %v6511_v4, %v2641_v1 }
 0x178   : > { %v6671_v11 = vmax.f32 %v2101_v58, %v2855_v59  ;;  %v2102_v12 = vmax.f32 %v1896_v60, 0.0  ;;  %v2856_v15 = vmax.f32 %v2650_v62, 0.0  ;;  %5646 = vmatmul.mubr.msk.bf16.gmra.mrb[132].mxu0 %vm1638_vm2, %v5896_v46  ;;  %5722 = vmatmul.mubr.msk.bf16.gmra.mrb[132].mxu1 %vm1638_vm2, %v5897_v48  ;;  %v5903_v46 = vld [vmem:[%s6288_s6 + $0x470] sm:$0xff]  }
 0x179   : > { %v6675_v16 = vmax.f32 %v2099_v2, %v2853_v6  ;;  %v2100_v17 = vmax.f32 %v1888_v8, 0.0  ;;  %v2854_v18 = vmax.f32 %v2642_v9, 0.0  ;;  %5649 = vmatprep.mubr.msk.bf16.mxu0 %vm1638_vm2, %v5898_v56  ;;  %5725 = vmatprep.mubr.msk.bf16.mxu1 %vm1638_vm2, %v5899_v57 }
 0x17a   : > { %v6679_v19 = vmax.f32 %v2102_v12, %v2856_v15 }
 0x17b   : > { %v6681_v20 = vmax.f32 %v2100_v17, %v2854_v18  ;;  %v5463_v21 = vpop.f32.mrb[28].mxu0  ;;  %v5539_v22 = vpop.f32.mrb[28].mxu1 }
 0x17c   : > { %v1909_v23 = vadd.f32 %v5463_v21, %v6511_v4  ;;  %v2663_v25 = vadd.f32 %v5539_v22, %v6511_v4  ;;  %v1900_v26 = vpop.f32.mrb[29].mxu0  ;;  %v2654_v28 = vpop.f32.mrb[29].mxu1 }
 0x17d   : > { %v1901_v39 = vadd.f32 %v6511_v4, %v1900_v26  ;;  %v2655_v42 = vadd.f32 %v6511_v4, %v2654_v28  ;;  %v5464_v43 = vpop.f32.mrb[30].mxu0  ;;  %v5540_v44 = vpop.f32.mrb[30].mxu1  ;;  %v5905_v26 = vld [vmem:[%s6288_s6 + $0x478] sm:$0xff]  }
 0x17e   : > { %v2105_v48 = vmax.f32 %v1909_v23, 0.0  ;;  %v2859_v49 = vmax.f32 %v2663_v25, 0.0  ;;  %v1912_v51 = vadd.f32 %v5464_v43, %v6511_v4  ;;  %v2666_v52 = vadd.f32 %v5540_v44, %v6511_v4  ;;  %v1903_v55 = vpop.f32.mrb[31].mxu0  ;;  %v2657_v56 = vpop.f32.mrb[31].mxu1  ;;  %v5904_v25 = vld [vmem:[%s6288_s6 + $0x358] sm:$0xff]  }
 0x17f   : > { %v2103_v57 = vmax.f32 %v1901_v39, 0.0  ;;  %v2857_v58 = vmax.f32 %v2655_v42, 0.0  ;;  %v1904_v59 = vadd.f32 %v6511_v4, %v1903_v55  ;;  %v2658_v60 = vadd.f32 %v6511_v4, %v2657_v56 }
 0x180   : > { %v6695_v62 = vmax.f32 %v2105_v48, %v2859_v49  ;;  %v2106_v63 = vmax.f32 %v1912_v51, 0.0  ;;  %v2860_v1 = vmax.f32 %v2666_v52, 0.0  ;;  %5650 = vmatmul.mubr.msk.bf16.gmra.mrb[136].mxu0 %vm1638_vm2, %v5900_v30  ;;  %5726 = vmatmul.mubr.msk.bf16.gmra.mrb[136].mxu1 %vm1638_vm2, %v5901_v38 }
 0x181   : > { %v6699_v2 = vmax.f32 %v2103_v57, %v2857_v58  ;;  %v2104_v6 = vmax.f32 %v1904_v59, 0.0  ;;  %v2858_v8 = vmax.f32 %v2658_v60, 0.0  ;;  %5653 = vmatprep.mubr.msk.bf16.mxu0 %vm1638_vm2, %v5902_v45  ;;  %5729 = vmatprep.mubr.msk.bf16.mxu1 %vm1638_vm2, %v5903_v46 }
 0x182   : > { %v6703_v9 = vmax.f32 %v2106_v63, %v2860_v1 }
 0x183   : > { %v6705_v12 = vmax.f32 %v2104_v6, %v2858_v8  ;;  %v5467_v15 = vpop.f32.mrb[32].mxu0  ;;  %v5543_v17 = vpop.f32.mrb[32].mxu1 }
 0x184   : > { %v1925_v18 = vadd.f32 %v5467_v15, %v6511_v4  ;;  %v2679_v21 = vadd.f32 %v5543_v17, %v6511_v4  ;;  %v1916_v22 = vpop.f32.mrb[33].mxu0  ;;  %v2670_v23 = vpop.f32.mrb[33].mxu1 }
 0x185   : > { %v1917_v28 = vadd.f32 %v6511_v4, %v1916_v22  ;;  %v2671_v30 = vadd.f32 %v6511_v4, %v2670_v23  ;;  %v5468_v38 = vpop.f32.mrb[34].mxu0  ;;  %v5544_v39 = vpop.f32.mrb[34].mxu1 }
 0x186   : > { %v2109_v42 = vmax.f32 %v1925_v18, 0.0  ;;  %v2863_v43 = vmax.f32 %v2679_v21, 0.0  ;;  %v1928_v44 = vadd.f32 %v5468_v38, %v6511_v4  ;;  %v2682_v45 = vadd.f32 %v5544_v39, %v6511_v4  ;;  %v1919_v46 = vpop.f32.mrb[35].mxu0  ;;  %v2673_v48 = vpop.f32.mrb[35].mxu1 }
 0x187   : > { %v2107_v49 = vmax.f32 %v1917_v28, 0.0  ;;  %v2861_v51 = vmax.f32 %v2671_v30, 0.0  ;;  %v1920_v52 = vadd.f32 %v6511_v4, %v1919_v46  ;;  %v2674_v55 = vadd.f32 %v6511_v4, %v2673_v48 }
 0x188   : > { %v6717_v56 = vmax.f32 %v2109_v42, %v2863_v43  ;;  %v2110_v57 = vmax.f32 %v1928_v44, 0.0  ;;  %v2864_v58 = vmax.f32 %v2682_v45, 0.0  ;;  %5654 = vmatmul.mubr.msk.bf16.gmra.mrb[140].mxu0 %vm1638_vm2, %v5904_v25  ;;  %5730 = vmatmul.mubr.msk.bf16.gmra.mrb[140].mxu1 %vm1638_vm2, %v5905_v26 }
 0x189   : > { %v6721_v59 = vmax.f32 %v2107_v49, %v2861_v51  ;;  %v2108_v60 = vmax.f32 %v1920_v52, 0.0  ;;  %v2862_v63 = vmax.f32 %v2674_v55, 0.0 }
 0x18a   : > { %v6723_v1 = vmax.f32 %v2110_v57, %v2864_v58 }
 0x18b   : > { %v6725_v6 = vmax.f32 %v2108_v60, %v2862_v63  ;;  %v5471_v8 = vpop.f32.mrb[36].mxu0  ;;  %v5547_v15 = vpop.f32.mrb[36].mxu1 }
 0x18c   : > { %v1941_v17 = vadd.f32 %v5471_v8, %v6511_v4  ;;  %v2695_v18 = vadd.f32 %v5547_v15, %v6511_v4  ;;  %v1932_v21 = vpop.f32.mrb[37].mxu0  ;;  %v2686_v22 = vpop.f32.mrb[37].mxu1 }
 0x18d   : > { %v1933_v23 = vadd.f32 %v6511_v4, %v1932_v21  ;;  %v2687_v25 = vadd.f32 %v6511_v4, %v2686_v22  ;;  %v5472_v26 = vpop.f32.mrb[38].mxu0  ;;  %v5548_v28 = vpop.f32.mrb[38].mxu1 }
 0x18e   : > { %v2113_v30 = vmax.f32 %v1941_v17, 0.0  ;;  %v2867_v38 = vmax.f32 %v2695_v18, 0.0  ;;  %v1944_v39 = vadd.f32 %v5472_v26, %v6511_v4  ;;  %v2698_v42 = vadd.f32 %v5548_v28, %v6511_v4  ;;  %v1935_v43 = vpop.f32.mrb[39].mxu0  ;;  %v2689_v44 = vpop.f32.mrb[39].mxu1 }
 0x18f   : > { %v2111_v45 = vmax.f32 %v1933_v23, 0.0  ;;  %v2865_v46 = vmax.f32 %v2687_v25, 0.0  ;;  %v1936_v48 = vadd.f32 %v6511_v4, %v1935_v43  ;;  %v2690_v49 = vadd.f32 %v6511_v4, %v2689_v44 }
 0x190   : > { %v6735_v51 = vmax.f32 %v2113_v30, %v2867_v38  ;;  %v2114_v52 = vmax.f32 %v1944_v39, 0.0  ;;  %v2868_v55 = vmax.f32 %v2698_v42, 0.0 }
 0x191   : > { %v6737_v57 = vmax.f32 %v2111_v45, %v2865_v46  ;;  %v2112_v58 = vmax.f32 %v1936_v48, 0.0  ;;  %v2866_v60 = vmax.f32 %v2690_v49, 0.0 }
 0x192   : > { %v6739_v63 = vmax.f32 %v2114_v52, %v2868_v55 }
 0x193   : > { %v6741_v8 = vmax.f32 %v2112_v58, %v2866_v60  ;;  %v5475_v15 = vpop.f32.mrb[40].mxu0  ;;  %v5551_v17 = vpop.f32.mrb[40].mxu1 }
 0x194   : > { %v1957_v18 = vadd.f32 %v5475_v15, %v6511_v4  ;;  %v2711_v21 = vadd.f32 %v5551_v17, %v6511_v4  ;;  %v1948_v22 = vpop.f32.mrb[41].mxu0  ;;  %v2702_v23 = vpop.f32.mrb[41].mxu1 }
 0x195   : > { %v1949_v25 = vadd.f32 %v6511_v4, %v1948_v22  ;;  %v2703_v26 = vadd.f32 %v6511_v4, %v2702_v23  ;;  %v5476_v28 = vpop.f32.mrb[42].mxu0  ;;  %v5552_v30 = vpop.f32.mrb[42].mxu1 }
 0x196   : > { %v2117_v38 = vmax.f32 %v1957_v18, 0.0  ;;  %v2871_v39 = vmax.f32 %v2711_v21, 0.0  ;;  %v1960_v42 = vadd.f32 %v5476_v28, %v6511_v4  ;;  %v2714_v43 = vadd.f32 %v5552_v30, %v6511_v4  ;;  %v1951_v44 = vpop.f32.mrb[43].mxu0  ;;  %v2705_v45 = vpop.f32.mrb[43].mxu1 }
 0x197   : > { %v2115_v46 = vmax.f32 %v1949_v25, 0.0  ;;  %v2869_v48 = vmax.f32 %v2703_v26, 0.0  ;;  %v1952_v49 = vadd.f32 %v6511_v4, %v1951_v44  ;;  %v2706_v52 = vadd.f32 %v6511_v4, %v2705_v45 }
 0x198   : > { %v6751_v55 = vmax.f32 %v2117_v38, %v2871_v39  ;;  %v2118_v58 = vmax.f32 %v1960_v42, 0.0  ;;  %v2872_v60 = vmax.f32 %v2714_v43, 0.0 }
 0x199   : > { %v6753_v15 = vmax.f32 %v2115_v46, %v2869_v48  ;;  %v2116_v17 = vmax.f32 %v1952_v49, 0.0  ;;  %v2870_v18 = vmax.f32 %v2706_v52, 0.0 }
 0x19a   : > { %v6755_v21 = vmax.f32 %v2118_v58, %v2872_v60 }
 0x19b   : > { %7266 = vst [vmem:[#allocation3_spill] sm:$0xff] %v6753_v15  ;;  %v6757_v22 = vmax.f32 %v2116_v17, %v2870_v18  ;;  %v5479_v23 = vpop.f32.mrb[44].mxu0  ;;  %v5555_v28 = vpop.f32.mrb[44].mxu1 }
 0x19c   : > { %7267 = vst [vmem:[#allocation4_spill] sm:$0xff] %v6755_v21  ;;  %v1973_v25 = vadd.f32 %v5479_v23, %v6511_v4  ;;  %v2727_v26 = vadd.f32 %v5555_v28, %v6511_v4  ;;  %v1964_v30 = vpop.f32.mrb[45].mxu0  ;;  %v2718_v44 = vpop.f32.mrb[45].mxu1 }
 0x19d   : > { %7268 = vst [vmem:[#allocation5_spill] sm:$0xff] %v6757_v22  ;;  %v1965_v38 = vadd.f32 %v6511_v4, %v1964_v30  ;;  %v2719_v39 = vadd.f32 %v6511_v4, %v2718_v44  ;;  %v5480_v42 = vpop.f32.mrb[46].mxu0  ;;  %v5556_v43 = vpop.f32.mrb[46].mxu1 }
 0x19e   : > { %v2121_v45 = vmax.f32 %v1973_v25, 0.0  ;;  %v2875_v46 = vmax.f32 %v2727_v26, 0.0  ;;  %v1976_v48 = vadd.f32 %v5480_v42, %v6511_v4  ;;  %v2730_v49 = vadd.f32 %v5556_v43, %v6511_v4  ;;  %v1967_v52 = vpop.f32.mrb[47].mxu0  ;;  %v2721_v58 = vpop.f32.mrb[47].mxu1 }
 0x19f   : > { %v2119_v60 = vmax.f32 %v1965_v38, 0.0  ;;  %v2873_v17 = vmax.f32 %v2719_v39, 0.0  ;;  %v1968_v18 = vadd.f32 %v6511_v4, %v1967_v52  ;;  %v2722_v23 = vadd.f32 %v6511_v4, %v2721_v58 }
 0x1a0   : > { %v6767_v28 = vmax.f32 %v2121_v45, %v2875_v46  ;;  %v2122_v30 = vmax.f32 %v1976_v48, 0.0  ;;  %v2876_v44 = vmax.f32 %v2730_v49, 0.0 }
 0x1a1   : > { %v6769_v22 = vmax.f32 %v2119_v60, %v2873_v17  ;;  %v2120_v25 = vmax.f32 %v1968_v18, 0.0  ;;  %v2874_v26 = vmax.f32 %v2722_v23, 0.0 }
 0x1a2   : > { %7269 = vst [vmem:[#allocation6_spill] sm:$0xff] %v6767_v28  ;;  %v6771_v21 = vmax.f32 %v2122_v30, %v2876_v44 }
 0x1a3   : > { %7270 = vst [vmem:[#allocation7_spill] sm:$0xff] %v6769_v22  ;;  %v6773_v42 = vmax.f32 %v2120_v25, %v2874_v26  ;;  %v5483_v43 = vpop.f32.mrb[48].mxu0  ;;  %v5559_v15 = vpop.f32.mrb[48].mxu1 }
 0x1a4   : > { %7271 = vst [vmem:[#allocation8_spill] sm:$0xff] %v6771_v21  ;;  %v1989_v38 = vadd.f32 %v5483_v43, %v6511_v4  ;;  %v2743_v39 = vadd.f32 %v5559_v15, %v6511_v4  ;;  %v1980_v52 = vpop.f32.mrb[49].mxu0  ;;  %v2734_v58 = vpop.f32.mrb[49].mxu1 }
 0x1a5   : > { %7272 = vst [vmem:[#allocation9_spill] sm:$0xff] %v6773_v42  ;;  %v1981_v45 = vadd.f32 %v6511_v4, %v1980_v52  ;;  %v2735_v46 = vadd.f32 %v6511_v4, %v2734_v58  ;;  %v5484_v48 = vpop.f32.mrb[50].mxu0  ;;  %v5560_v49 = vpop.f32.mrb[50].mxu1 }
 0x1a6   : > { %v2125_v60 = vmax.f32 %v1989_v38, 0.0  ;;  %v2879_v17 = vmax.f32 %v2743_v39, 0.0  ;;  %v1992_v18 = vadd.f32 %v5484_v48, %v6511_v4  ;;  %v2746_v23 = vadd.f32 %v5560_v49, %v6511_v4  ;;  %v1983_v30 = vpop.f32.mrb[51].mxu0  ;;  %v2737_v44 = vpop.f32.mrb[51].mxu1 }
 0x1a7   : > { %v2123_v25 = vmax.f32 %v1981_v45, 0.0  ;;  %v2877_v26 = vmax.f32 %v2735_v46, 0.0  ;;  %v1984_v15 = vadd.f32 %v6511_v4, %v1983_v30  ;;  %v2738_v43 = vadd.f32 %v6511_v4, %v2737_v44 }
 0x1a8   : > { %v6783_v42 = vmax.f32 %v2125_v60, %v2879_v17  ;;  %v2126_v52 = vmax.f32 %v1992_v18, 0.0  ;;  %v2880_v58 = vmax.f32 %v2746_v23, 0.0 }
 0x1a9   : > { %v6785_v21 = vmax.f32 %v2123_v25, %v2877_v26  ;;  %v2124_v38 = vmax.f32 %v1984_v15, 0.0  ;;  %v2878_v39 = vmax.f32 %v2738_v43, 0.0 }
 0x1aa   : > { %7273 = vst [vmem:[#allocation10_spill] sm:$0xff] %v6783_v42  ;;  %v6787_v22 = vmax.f32 %v2126_v52, %v2880_v58 }
 0x1ab   : > { %7274 = vst [vmem:[#allocation11_spill] sm:$0xff] %v6785_v21  ;;  %v6789_v48 = vmax.f32 %v2124_v38, %v2878_v39  ;;  %v5487_v49 = vpop.f32.mrb[52].mxu0  ;;  %v5563_v28 = vpop.f32.mrb[52].mxu1 }
 0x1ac   : > { %7275 = vst [vmem:[#allocation12_spill] sm:$0xff] %v6787_v22  ;;  %v2005_v45 = vadd.f32 %v5487_v49, %v6511_v4  ;;  %v2759_v46 = vadd.f32 %v5563_v28, %v6511_v4  ;;  %v1996_v30 = vpop.f32.mrb[53].mxu0  ;;  %v2750_v44 = vpop.f32.mrb[53].mxu1 }
 0x1ad   : > { %7276 = vst [vmem:[#allocation13_spill] sm:$0xff] %v6789_v48  ;;  %v1997_v60 = vadd.f32 %v6511_v4, %v1996_v30  ;;  %v2751_v17 = vadd.f32 %v6511_v4, %v2750_v44  ;;  %v5488_v18 = vpop.f32.mrb[54].mxu0  ;;  %v5564_v23 = vpop.f32.mrb[54].mxu1 }
 0x1ae   : > { %v2129_v25 = vmax.f32 %v2005_v45, 0.0  ;;  %v2883_v26 = vmax.f32 %v2759_v46, 0.0  ;;  %v2008_v15 = vadd.f32 %v5488_v18, %v6511_v4  ;;  %v2762_v43 = vadd.f32 %v5564_v23, %v6511_v4  ;;  %v1999_v52 = vpop.f32.mrb[55].mxu0  ;;  %v2753_v58 = vpop.f32.mrb[55].mxu1 }
 0x1af   : > { %v2127_v38 = vmax.f32 %v1997_v60, 0.0  ;;  %v2881_v39 = vmax.f32 %v2751_v17, 0.0  ;;  %v2000_v28 = vadd.f32 %v6511_v4, %v1999_v52  ;;  %v2754_v49 = vadd.f32 %v6511_v4, %v2753_v58 }
 0x1b0   : > { %v6799_v48 = vmax.f32 %v2129_v25, %v2883_v26  ;;  %v2130_v30 = vmax.f32 %v2008_v15, 0.0  ;;  %v2884_v44 = vmax.f32 %v2762_v43, 0.0 }
 0x1b1   : > { %v6801_v22 = vmax.f32 %v2127_v38, %v2881_v39  ;;  %v2128_v45 = vmax.f32 %v2000_v28, 0.0  ;;  %v2882_v46 = vmax.f32 %v2754_v49, 0.0 }
 0x1b2   : > { %7277 = vst [vmem:[#allocation14_spill] sm:$0xff] %v6799_v48  ;;  %v6803_v21 = vmax.f32 %v2130_v30, %v2884_v44 }
 0x1b3   : > { %7278 = vst [vmem:[#allocation15_spill] sm:$0xff] %v6801_v22  ;;  %v6805_v18 = vmax.f32 %v2128_v45, %v2882_v46  ;;  %v5491_v23 = vpop.f32.mrb[56].mxu0  ;;  %v5567_v42 = vpop.f32.mrb[56].mxu1 }
 0x1b4   : > { %7279 = vst [vmem:[#allocation16_spill] sm:$0xff] %v6803_v21  ;;  %v2021_v60 = vadd.f32 %v5491_v23, %v6511_v4  ;;  %v2775_v17 = vadd.f32 %v5567_v42, %v6511_v4  ;;  %v2012_v52 = vpop.f32.mrb[57].mxu0  ;;  %v2766_v58 = vpop.f32.mrb[57].mxu1 }
 0x1b5   : > { %7280 = vst [vmem:[#allocation17_spill] sm:$0xff] %v6805_v18  ;;  %v2013_v25 = vadd.f32 %v6511_v4, %v2012_v52  ;;  %v2767_v26 = vadd.f32 %v6511_v4, %v2766_v58  ;;  %v5492_v15 = vpop.f32.mrb[58].mxu0  ;;  %v5568_v43 = vpop.f32.mrb[58].mxu1 }
 0x1b6   : > { %v2133_v38 = vmax.f32 %v2021_v60, 0.0  ;;  %v2887_v39 = vmax.f32 %v2775_v17, 0.0  ;;  %v2024_v28 = vadd.f32 %v5492_v15, %v6511_v4  ;;  %v2778_v49 = vadd.f32 %v5568_v43, %v6511_v4  ;;  %v2015_v30 = vpop.f32.mrb[59].mxu0  ;;  %v2769_v44 = vpop.f32.mrb[59].mxu1 }
 0x1b7   : > { %v2131_v45 = vmax.f32 %v2013_v25, 0.0  ;;  %v2885_v46 = vmax.f32 %v2767_v26, 0.0  ;;  %v2016_v42 = vadd.f32 %v6511_v4, %v2015_v30  ;;  %v2770_v23 = vadd.f32 %v6511_v4, %v2769_v44 }
 0x1b8   : > { %v6815_v18 = vmax.f32 %v2133_v38, %v2887_v39  ;;  %v2134_v52 = vmax.f32 %v2024_v28, 0.0  ;;  %v2888_v58 = vmax.f32 %v2778_v49, 0.0 }
 0x1b9   : > { %v6817_v21 = vmax.f32 %v2131_v45, %v2885_v46  ;;  %v2132_v60 = vmax.f32 %v2016_v42, 0.0  ;;  %v2886_v17 = vmax.f32 %v2770_v23, 0.0 }
 0x1ba   : > { %7281 = vst [vmem:[#allocation18_spill] sm:$0xff] %v6815_v18  ;;  %v6819_v22 = vmax.f32 %v2134_v52, %v2888_v58 }
 0x1bb   : > { %7282 = vst [vmem:[#allocation19_spill] sm:$0xff] %v6817_v21  ;;  %v6821_v15 = vmax.f32 %v2132_v60, %v2886_v17  ;;  %v5495_v43 = vpop.f32.mrb[60].mxu0  ;;  %v5571_v48 = vpop.f32.mrb[60].mxu1 }
 0x1bc   : > { %7283 = vst [vmem:[#allocation20_spill] sm:$0xff] %v6819_v22  ;;  %v2037_v25 = vadd.f32 %v5495_v43, %v6511_v4  ;;  %v2791_v26 = vadd.f32 %v5571_v48, %v6511_v4  ;;  %v2028_v30 = vpop.f32.mrb[61].mxu0  ;;  %v2782_v44 = vpop.f32.mrb[61].mxu1 }
 0x1bd   : > { %7284 = vst [vmem:[#allocation21_spill] sm:$0xff] %v6821_v15  ;;  %v2029_v38 = vadd.f32 %v6511_v4, %v2028_v30  ;;  %v2783_v39 = vadd.f32 %v6511_v4, %v2782_v44  ;;  %v5496_v28 = vpop.f32.mrb[62].mxu0  ;;  %v5572_v49 = vpop.f32.mrb[62].mxu1 }
 0x1be   : > { %v2137_v45 = vmax.f32 %v2037_v25, 0.0  ;;  %v2891_v46 = vmax.f32 %v2791_v26, 0.0  ;;  %v2040_v42 = vadd.f32 %v5496_v28, %v6511_v4  ;;  %v2794_v23 = vadd.f32 %v5572_v49, %v6511_v4  ;;  %v2031_v52 = vpop.f32.mrb[63].mxu0  ;;  %v2785_v58 = vpop.f32.mrb[63].mxu1 }
 0x1bf   : > { %v2135_v60 = vmax.f32 %v2029_v38, 0.0  ;;  %v2889_v17 = vmax.f32 %v2783_v39, 0.0  ;;  %v2032_v48 = vadd.f32 %v6511_v4, %v2031_v52  ;;  %v2786_v43 = vadd.f32 %v6511_v4, %v2785_v58  ;;  %v6842_v38 = vld [vmem:[%s7264_s2] ss:$0 sm:$0xff] }
 0x1c0   : > { %v6831_v15 = vmax.f32 %v2137_v45, %v2891_v46  ;;  %v2138_v30 = vmax.f32 %v2040_v42, 0.0  ;;  %v2892_v44 = vmax.f32 %v2794_v23, 0.0 }
 0x1c1   : > { %v6833_v22 = vmax.f32 %v2135_v60, %v2889_v17  ;;  %v2136_v25 = vmax.f32 %v2032_v48, 0.0  ;;  %v2890_v26 = vmax.f32 %v2786_v43, 0.0 }
 0x1c2   : > { %v6835_v21 = vmax.f32 %v2138_v30, %v2892_v44 }
 0x1c3   : > { %7285 = vst [vmem:[#allocation22_spill] sm:$0xff] %v6833_v22  ;;  %v6837_v28 = vmax.f32 %v2136_v25, %v2890_v26  ;;  %v5499_v49 = vpop.f32.mrb[64].mxu0  ;;  %v5575_v18 = vpop.f32.mrb[64].mxu1 }
 0x1c4   : > { %7286 = vst [vmem:[#allocation23_spill] sm:$0xff] %v6835_v21  ;;  %v2053_v4 = vadd.f32 %v6842_v38, %v5499_v49  ;;  %v2807_v39 = vadd.f32 %v6842_v38, %v5575_v18  ;;  %v2044_v45 = vpop.f32.mrb[65].mxu0  ;;  %v2798_v46 = vpop.f32.mrb[65].mxu1 }
 0x1c5   : > { %7287 = vst [vmem:[#allocation24_spill] sm:$0xff] %v6837_v28  ;;  %v2045_v42 = vadd.f32 %v6842_v38, %v2044_v45  ;;  %v2799_v23 = vadd.f32 %v6842_v38, %v2798_v46  ;;  %v5500_v52 = vpop.f32.mrb[66].mxu0  ;;  %v5576_v58 = vpop.f32.mrb[66].mxu1 }
 0x1c6   : > { %v2141_v60 = vmax.f32 %v2053_v4, 0.0  ;;  %v2895_v17 = vmax.f32 %v2807_v39, 0.0  ;;  %v2056_v48 = vadd.f32 %v6842_v38, %v5500_v52  ;;  %v2810_v43 = vadd.f32 %v6842_v38, %v5576_v58  ;;  %v2047_v30 = vpop.f32.mrb[67].mxu0  ;;  %v2801_v44 = vpop.f32.mrb[67].mxu1 }
 0x1c7   : > { %v2139_v25 = vmax.f32 %v2045_v42, 0.0  ;;  %v2893_v26 = vmax.f32 %v2799_v23, 0.0  ;;  %v2048_v18 = vadd.f32 %v6842_v38, %v2047_v30  ;;  %v2802_v49 = vadd.f32 %v6842_v38, %v2801_v44 }
 0x1c8   : > { %v6852_v45 = vmax.f32 %v2141_v60, %v2895_v17  ;;  %v2142_v46 = vmax.f32 %v2056_v48, 0.0  ;;  %v2896_v28 = vmax.f32 %v2810_v43, 0.0 }
 0x1c9   : > { %v6854_v21 = vmax.f32 %v2139_v25, %v2893_v26  ;;  %v2140_v4 = vmax.f32 %v2048_v18, 0.0  ;;  %v2894_v39 = vmax.f32 %v2802_v49, 0.0 }
 0x1ca   : > { %7288 = vst [vmem:[#allocation25_spill] sm:$0xff] %v6852_v45  ;;  %v6856_v22 = vmax.f32 %v2142_v46, %v2896_v28 }
 0x1cb   : > { %7289 = vst [vmem:[#allocation26_spill] sm:$0xff] %v6854_v21  ;;  %v6862_v52 = vmax.f32 %v2140_v4, %v2894_v39  ;;  %v5503_v42 = vpop.f32.mrb[68].mxu0  ;;  %v5579_v23 = vpop.f32.mrb[68].mxu1 }
 0x1cc   : > { %7290 = vst [vmem:[#allocation27_spill] sm:$0xff] %v6856_v22  ;;  %v2069_v58 = vadd.f32 %v6842_v38, %v5503_v42  ;;  %v2823_v60 = vadd.f32 %v6842_v38, %v5579_v23  ;;  %v2060_v17 = vpop.f32.mrb[69].mxu0  ;;  %v2814_v48 = vpop.f32.mrb[69].mxu1 }
 0x1cd   : > { %7291 = vst [vmem:[#allocation28_spill] sm:$0xff] %v6862_v52  ;;  %v2061_v43 = vadd.f32 %v6842_v38, %v2060_v17  ;;  %v2815_v30 = vadd.f32 %v6842_v38, %v2814_v48  ;;  %v5504_v28 = vpop.f32.mrb[70].mxu0  ;;  %v5580_v44 = vpop.f32.mrb[70].mxu1 }
 0x1ce   : > { %v2145_v25 = vmax.f32 %v2069_v58, 0.0  ;;  %v2899_v26 = vmax.f32 %v2823_v60, 0.0  ;;  %v2072_v18 = vadd.f32 %v6842_v38, %v5504_v28  ;;  %v2826_v49 = vadd.f32 %v6842_v38, %v5580_v44  ;;  %v2063_v46 = vpop.f32.mrb[71].mxu0  ;;  %v2817_v4 = vpop.f32.mrb[71].mxu1 }
 0x1cf   : > { %v2143_v39 = vmax.f32 %v2061_v43, 0.0  ;;  %v2897_v42 = vmax.f32 %v2815_v30, 0.0  ;;  %v2064_v23 = vadd.f32 %v6842_v38, %v2063_v46  ;;  %v2818_v17 = vadd.f32 %v6842_v38, %v2817_v4 }
 0x1d0   : > { %v6873_v52 = vmax.f32 %v2145_v25, %v2899_v26  ;;  %v2146_v48 = vmax.f32 %v2072_v18, 0.0  ;;  %v2900_v22 = vmax.f32 %v2826_v49, 0.0 }
 0x1d1   : > { %v6875_v58 = vmax.f32 %v2143_v39, %v2897_v42  ;;  %v2144_v60 = vmax.f32 %v2064_v23, 0.0  ;;  %v2898_v28 = vmax.f32 %v2818_v17, 0.0 }
 0x1d2   : > { %v6877_v21 = vmax.f32 %v2146_v48, %v2900_v22 }
 0x1d3   : > { %v6880_v44 = vmax.f32 %v2144_v60, %v2898_v28  ;;  %v5587_v45 = vpop.f32.mrb[72].mxu0  ;;  %v5663_v43 = vpop.f32.mrb[72].mxu1 }
 0x1d4   : > { %7292 = vst [vmem:[#allocation29_spill] sm:$0xff] %v6877_v21  ;;  %v3377_v30 = vadd.f32 %v6842_v38, %v5587_v45  ;;  %v4203_v46 = vadd.f32 %v6842_v38, %v5663_v43  ;;  %v3368_v4 = vpop.f32.mrb[73].mxu0  ;;  %v4194_v25 = vpop.f32.mrb[73].mxu1 }
 0x1d5   : > { %7293 = vst [vmem:[#allocation30_spill] sm:$0xff] %v6880_v44  ;;  %v3369_v26 = vadd.f32 %v6842_v38, %v3368_v4  ;;  %v4195_v18 = vadd.f32 %v6842_v38, %v4194_v25  ;;  %v5588_v49 = vpop.f32.mrb[74].mxu0  ;;  %v5664_v39 = vpop.f32.mrb[74].mxu1 }
 0x1d6   : > { %v3657_v42 = vmax.f32 %v3377_v30, 0.0  ;;  %v4483_v22 = vmax.f32 %v4203_v46, 0.0  ;;  %v3380_v23 = vadd.f32 %v6842_v38, %v5588_v49  ;;  %v4206_v17 = vadd.f32 %v6842_v38, %v5664_v39  ;;  %v3371_v48 = vpop.f32.mrb[75].mxu0  ;;  %v4197_v60 = vpop.f32.mrb[75].mxu1 }
 0x1d7   : > { %v3655_v45 = vmax.f32 %v3369_v26, 0.0  ;;  %v4481_v28 = vmax.f32 %v4195_v18, 0.0  ;;  %v3372_v43 = vadd.f32 %v6842_v38, %v3371_v48  ;;  %v4198_v44 = vadd.f32 %v6842_v38, %v4197_v60 }
 0x1d8   : > { %v3729_v4 = vmax.f32 %v6527_v29, %v3657_v42  ;;  %v3658_v25 = vmax.f32 %v3380_v23, 0.0  ;;  %v4484_v49 = vmax.f32 %v4206_v17, 0.0 }
 0x1d9   : > { %v3727_v30 = vmax.f32 %v6531_v32, %v3655_v45  ;;  %v3656_v46 = vmax.f32 %v3372_v43, 0.0  ;;  %v4482_v29 = vmax.f32 %v4198_v44, 0.0 }
 0x1da   : > { %v4555_v26 = vmax.f32 %v3729_v4, %v4483_v22  ;;  %v3730_v18 = vmax.f32 %v6535_v35, %v3658_v25 }
 0x1db   : > { %v4553_v39 = vmax.f32 %v3727_v30, %v4481_v28  ;;  %v3728_v48 = vmax.f32 %v6537_v36, %v3656_v46  ;;  %v5591_v42 = vpop.f32.mrb[76].mxu0  ;;  %v5667_v23 = vpop.f32.mrb[76].mxu1 }
 0x1dc   : > { %4628 = vst.msk [vmem:[%s6894_s17 + $0x10] sm:$0xff] %vm4625_vm3, %v4555_v26  ;;  %v4556_v60 = vmax.f32 %v3730_v18, %v4484_v49  ;;  %v3393_v21 = vadd.f32 %v6842_v38, %v5591_v42  ;;  %v4219_v32 = vadd.f32 %v6842_v38, %v5667_v23  ;;  %v3384_v45 = vpop.f32.mrb[77].mxu0  ;;  %v4210_v22 = vpop.f32.mrb[77].mxu1 }
 0x1dd   : > { %4626 = vst.msk [vmem:[%s6894_s17] sm:$0xff] %vm4625_vm3, %v4553_v39  ;;  %v4554_v35 = vmax.f32 %v3728_v48, %v4482_v29  ;;  %v3385_v17 = vadd.f32 %v6842_v38, %v3384_v45  ;;  %v4211_v36 = vadd.f32 %v6842_v38, %v4210_v22  ;;  %v5592_v44 = vpop.f32.mrb[78].mxu0  ;;  %v5668_v28 = vpop.f32.mrb[78].mxu1 }
 0x1de   : > { %4629 = vst.msk [vmem:[%s6894_s17 + $0x18] sm:$0xff] %vm4625_vm3, %v4556_v60  ;;  %v3661_v43 = vmax.f32 %v3393_v21, 0.0  ;;  %v4487_v4 = vmax.f32 %v4219_v32, 0.0  ;;  %v3396_v25 = vadd.f32 %v6842_v38, %v5592_v44  ;;  %v4222_v30 = vadd.f32 %v6842_v38, %v5668_v28  ;;  %v3387_v46 = vpop.f32.mrb[79].mxu0  ;;  %v4213_v26 = vpop.f32.mrb[79].mxu1 }
 0x1df   : > { %4627 = vst.msk [vmem:[%s6894_s17 + $0x8] sm:$0xff] %vm4625_vm3, %v4554_v35  ;;  %v3659_v18 = vmax.f32 %v3385_v17, 0.0  ;;  %v4485_v49 = vmax.f32 %v4211_v36, 0.0  ;;  %v3388_v39 = vadd.f32 %v6842_v38, %v3387_v46  ;;  %v4214_v48 = vadd.f32 %v6842_v38, %v4213_v26 }
 0x1e0   : > { %v3733_v29 = vmax.f32 %v6551_v61, %v3661_v43  ;;  %v3662_v42 = vmax.f32 %v3396_v25, 0.0  ;;  %v4488_v45 = vmax.f32 %v4222_v30, 0.0 }
 0x1e1   : > { %v3731_v21 = vmax.f32 %v6555_v0, %v3659_v18  ;;  %v3660_v23 = vmax.f32 %v3388_v39, 0.0  ;;  %v4486_v17 = vmax.f32 %v4214_v48, 0.0 }
 0x1e2   : > { %v4559_v60 = vmax.f32 %v3733_v29, %v4487_v4  ;;  %v3734_v32 = vmax.f32 %v6559_v3, %v3662_v42 }
 0x1e3   : > { %v4557_v22 = vmax.f32 %v3731_v21, %v4485_v49  ;;  %v3732_v35 = vmax.f32 %v6561_v5, %v3660_v23  ;;  %v5595_v36 = vpop.f32.mrb[80].mxu0  ;;  %v5671_v44 = vpop.f32.mrb[80].mxu1 }
 0x1e4   : > { %4632 = vst.msk [vmem:[%s6894_s17 + $0x30] sm:$0xff] %vm4625_vm3, %v4559_v60  ;;  %v4560_v28 = vmax.f32 %v3734_v32, %v4488_v45  ;;  %v3409_v61 = vadd.f32 %v6842_v38, %v5595_v36  ;;  %v4235_v0 = vadd.f32 %v6842_v38, %v5671_v44  ;;  %v3400_v43 = vpop.f32.mrb[81].mxu0  ;;  %v4226_v4 = vpop.f32.mrb[81].mxu1 }
 0x1e5   : > { %4630 = vst.msk [vmem:[%s6894_s17 + $0x20] sm:$0xff] %vm4625_vm3, %v4557_v22  ;;  %v4558_v3 = vmax.f32 %v3732_v35, %v4486_v17  ;;  %v3401_v25 = vadd.f32 %v6842_v38, %v3400_v43  ;;  %v4227_v5 = vadd.f32 %v6842_v38, %v4226_v4  ;;  %v5596_v30 = vpop.f32.mrb[82].mxu0  ;;  %v5672_v46 = vpop.f32.mrb[82].mxu1 }
 0x1e6   : > { %4633 = vst.msk [vmem:[%s6894_s17 + $0x38] sm:$0xff] %vm4625_vm3, %v4560_v28  ;;  %v3665_v26 = vmax.f32 %v3409_v61, 0.0  ;;  %v4491_v18 = vmax.f32 %v4235_v0, 0.0  ;;  %v3412_v49 = vadd.f32 %v6842_v38, %v5596_v30  ;;  %v4238_v39 = vadd.f32 %v6842_v38, %v5672_v46  ;;  %v3403_v48 = vpop.f32.mrb[83].mxu0  ;;  %v4229_v29 = vpop.f32.mrb[83].mxu1 }
 0x1e7   : > { %4631 = vst.msk [vmem:[%s6894_s17 + $0x28] sm:$0xff] %vm4625_vm3, %v4558_v3  ;;  %v3663_v42 = vmax.f32 %v3401_v25, 0.0  ;;  %v4489_v21 = vmax.f32 %v4227_v5, 0.0  ;;  %v3404_v23 = vadd.f32 %v6842_v38, %v3403_v48  ;;  %v4230_v60 = vadd.f32 %v6842_v38, %v4229_v29 }
 0x1e8   : > { %v3737_v32 = vmax.f32 %v6575_v31, %v3665_v26  ;;  %v3666_v45 = vmax.f32 %v3412_v49, 0.0  ;;  %v4492_v44 = vmax.f32 %v4238_v39, 0.0 }
 0x1e9   : > { %v3735_v22 = vmax.f32 %v6579_v37, %v3663_v42  ;;  %v3664_v35 = vmax.f32 %v3404_v23, 0.0  ;;  %v4490_v0 = vmax.f32 %v4230_v60, 0.0 }
 0x1ea   : > { %v4563_v17 = vmax.f32 %v3737_v32, %v4491_v18  ;;  %v3738_v36 = vmax.f32 %v6583_v40, %v3666_v45 }
 0x1eb   : > { %v4561_v28 = vmax.f32 %v3735_v22, %v4489_v21  ;;  %v3736_v61 = vmax.f32 %v6585_v41, %v3664_v35  ;;  %v5599_v43 = vpop.f32.mrb[84].mxu0  ;;  %v5675_v4 = vpop.f32.mrb[84].mxu1 }
 0x1ec   : > { %4636 = vst.msk [vmem:[%s6894_s17 + $0x50] sm:$0xff] %vm4625_vm3, %v4563_v17  ;;  %v4564_v3 = vmax.f32 %v3738_v36, %v4492_v44  ;;  %v3425_v31 = vadd.f32 %v6842_v38, %v5599_v43  ;;  %v4251_v37 = vadd.f32 %v6842_v38, %v5675_v4  ;;  %v3416_v25 = vpop.f32.mrb[85].mxu0  ;;  %v4242_v5 = vpop.f32.mrb[85].mxu1 }
 0x1ed   : > { %4634 = vst.msk [vmem:[%s6894_s17 + $0x40] sm:$0xff] %vm4625_vm3, %v4561_v28  ;;  %v4562_v40 = vmax.f32 %v3736_v61, %v4490_v0  ;;  %v3417_v30 = vadd.f32 %v6842_v38, %v3416_v25  ;;  %v4243_v41 = vadd.f32 %v6842_v38, %v4242_v5  ;;  %v5600_v46 = vpop.f32.mrb[86].mxu0  ;;  %v5676_v26 = vpop.f32.mrb[86].mxu1 }
 0x1ee   : > { %4637 = vst.msk [vmem:[%s6894_s17 + $0x58] sm:$0xff] %vm4625_vm3, %v4564_v3  ;;  %v3669_v18 = vmax.f32 %v3425_v31, 0.0  ;;  %v4495_v49 = vmax.f32 %v4251_v37, 0.0  ;;  %v3428_v39 = vadd.f32 %v6842_v38, %v5600_v46  ;;  %v4254_v48 = vadd.f32 %v6842_v38, %v5676_v26  ;;  %v3419_v29 = vpop.f32.mrb[87].mxu0  ;;  %v4245_v42 = vpop.f32.mrb[87].mxu1 }
 0x1ef   : > { %4635 = vst.msk [vmem:[%s6894_s17 + $0x48] sm:$0xff] %vm4625_vm3, %v4562_v40  ;;  %v3667_v21 = vmax.f32 %v3417_v30, 0.0  ;;  %v4493_v23 = vmax.f32 %v4243_v41, 0.0  ;;  %v3420_v60 = vadd.f32 %v6842_v38, %v3419_v29  ;;  %v4246_v32 = vadd.f32 %v6842_v38, %v4245_v42 }
 0x1f0   : > { %v3741_v45 = vmax.f32 %v6599_v7, %v3669_v18  ;;  %v3670_v22 = vmax.f32 %v3428_v39, 0.0  ;;  %v4496_v28 = vmax.f32 %v4254_v48, 0.0 }
 0x1f1   : > { %v3739_v35 = vmax.f32 %v6603_v10, %v3667_v21  ;;  %v3668_v17 = vmax.f32 %v3420_v60, 0.0  ;;  %v4494_v43 = vmax.f32 %v4246_v32, 0.0 }
 0x1f2   : > { %v4567_v36 = vmax.f32 %v3741_v45, %v4495_v49  ;;  %v3742_v44 = vmax.f32 %v6607_v13, %v3670_v22 }
 0x1f3   : > { %v4565_v61 = vmax.f32 %v3739_v35, %v4493_v23  ;;  %v3740_v0 = vmax.f32 %v6609_v14, %v3668_v17  ;;  %v5603_v4 = vpop.f32.mrb[88].mxu0  ;;  %v5679_v3 = vpop.f32.mrb[88].mxu1 }
 0x1f4   : > { %4640 = vst.msk [vmem:[%s6894_s17 + $0x70] sm:$0xff] %vm4625_vm3, %v4567_v36  ;;  %v4568_v31 = vmax.f32 %v3742_v44, %v4496_v28  ;;  %v3441_v7 = vadd.f32 %v6842_v38, %v5603_v4  ;;  %v4267_v10 = vadd.f32 %v6842_v38, %v5679_v3  ;;  %v3432_v37 = vpop.f32.mrb[89].mxu0  ;;  %v4258_v25 = vpop.f32.mrb[89].mxu1 }
 0x1f5   : > { %4638 = vst.msk [vmem:[%s6894_s17 + $0x60] sm:$0xff] %vm4625_vm3, %v4565_v61  ;;  %v4566_v13 = vmax.f32 %v3740_v0, %v4494_v43  ;;  %v3433_v5 = vadd.f32 %v6842_v38, %v3432_v37  ;;  %v4259_v14 = vadd.f32 %v6842_v38, %v4258_v25  ;;  %v5604_v40 = vpop.f32.mrb[90].mxu0  ;;  %v5680_v30 = vpop.f32.mrb[90].mxu1 }
 0x1f6   : > { %4641 = vst.msk [vmem:[%s6894_s17 + $0x78] sm:$0xff] %vm4625_vm3, %v4568_v31  ;;  %v3673_v41 = vmax.f32 %v3441_v7, 0.0  ;;  %v4499_v46 = vmax.f32 %v4267_v10, 0.0  ;;  %v3444_v26 = vadd.f32 %v6842_v38, %v5604_v40  ;;  %v4270_v18 = vadd.f32 %v6842_v38, %v5680_v30  ;;  %v3435_v49 = vpop.f32.mrb[91].mxu0  ;;  %v4261_v39 = vpop.f32.mrb[91].mxu1 }
 0x1f7   : > { %4639 = vst.msk [vmem:[%s6894_s17 + $0x68] sm:$0xff] %vm4625_vm3, %v4566_v13  ;;  %v3671_v48 = vmax.f32 %v3433_v5, 0.0  ;;  %v4497_v29 = vmax.f32 %v4259_v14, 0.0  ;;  %v3436_v42 = vadd.f32 %v6842_v38, %v3435_v49  ;;  %v4262_v21 = vadd.f32 %v6842_v38, %v4261_v39 }
 0x1f8   : > { %v3745_v23 = vmax.f32 %v6623_v47, %v3673_v41  ;;  %v3674_v60 = vmax.f32 %v3444_v26, 0.0  ;;  %v4500_v17 = vmax.f32 %v4270_v18, 0.0 }
 0x1f9   : > { %v3743_v32 = vmax.f32 %v6627_v50, %v3671_v48  ;;  %v3672_v45 = vmax.f32 %v3436_v42, 0.0  ;;  %v4498_v28 = vmax.f32 %v4262_v21, 0.0 }
 0x1fa   : > { %v4571_v22 = vmax.f32 %v3745_v23, %v4499_v46  ;;  %v3746_v35 = vmax.f32 %v6631_v53, %v3674_v60 }
 0x1fb   : > { %v4569_v36 = vmax.f32 %v3743_v32, %v4497_v29  ;;  %v3744_v44 = vmax.f32 %v6633_v54, %v3672_v45  ;;  %v5607_v61 = vpop.f32.mrb[92].mxu0  ;;  %v5683_v0 = vpop.f32.mrb[92].mxu1 }
 0x1fc   : > { %4644 = vst.msk [vmem:[%s6894_s17 + $0x90] sm:$0xff] %vm4625_vm3, %v4571_v22  ;;  %v4572_v43 = vmax.f32 %v3746_v35, %v4500_v17  ;;  %v3457_v47 = vadd.f32 %v6842_v38, %v5607_v61  ;;  %v4283_v50 = vadd.f32 %v6842_v38, %v5683_v0  ;;  %v3448_v4 = vpop.f32.mrb[93].mxu0  ;;  %v4274_v3 = vpop.f32.mrb[93].mxu1 }
 0x1fd   : > { %4642 = vst.msk [vmem:[%s6894_s17 + $0x80] sm:$0xff] %vm4625_vm3, %v4569_v36  ;;  %v4570_v53 = vmax.f32 %v3744_v44, %v4498_v28  ;;  %v3449_v31 = vadd.f32 %v6842_v38, %v3448_v4  ;;  %v4275_v54 = vadd.f32 %v6842_v38, %v4274_v3  ;;  %v5608_v7 = vpop.f32.mrb[94].mxu0  ;;  %v5684_v10 = vpop.f32.mrb[94].mxu1 }
 0x1fe   : > { %4645 = vst.msk [vmem:[%s6894_s17 + $0x98] sm:$0xff] %vm4625_vm3, %v4572_v43  ;;  %v3677_v37 = vmax.f32 %v3457_v47, 0.0  ;;  %v4503_v25 = vmax.f32 %v4283_v50, 0.0  ;;  %v3460_v13 = vadd.f32 %v6842_v38, %v5608_v7  ;;  %v4286_v5 = vadd.f32 %v6842_v38, %v5684_v10  ;;  %v3451_v14 = vpop.f32.mrb[95].mxu0  ;;  %v4277_v40 = vpop.f32.mrb[95].mxu1 }
 0x1ff   : > { %4643 = vst.msk [vmem:[%s6894_s17 + $0x88] sm:$0xff] %vm4625_vm3, %v4570_v53  ;;  %v3675_v30 = vmax.f32 %v3449_v31, 0.0  ;;  %v4501_v41 = vmax.f32 %v4275_v54, 0.0  ;;  %v3452_v46 = vadd.f32 %v6842_v38, %v3451_v14  ;;  %v4278_v26 = vadd.f32 %v6842_v38, %v4277_v40 }
 0x200   : > { %v3749_v18 = vmax.f32 %v6647_v24, %v3677_v37  ;;  %v3678_v49 = vmax.f32 %v3460_v13, 0.0  ;;  %v4504_v21 = vmax.f32 %v4286_v5, 0.0 }
 0x201   : > { %v3747_v39 = vmax.f32 %v6651_v27, %v3675_v30  ;;  %v3676_v48 = vmax.f32 %v3452_v46, 0.0  ;;  %v4502_v32 = vmax.f32 %v4278_v26, 0.0 }
 0x202   : > { %v4575_v29 = vmax.f32 %v3749_v18, %v4503_v25  ;;  %v3750_v42 = vmax.f32 %v6655_v33, %v3678_v49 }
 0x203   : > { %v4573_v23 = vmax.f32 %v3747_v39, %v4501_v41  ;;  %v3748_v60 = vmax.f32 %v6657_v34, %v3676_v48  ;;  %v5611_v45 = vpop.f32.mrb[96].mxu0  ;;  %v5687_v22 = vpop.f32.mrb[96].mxu1 }
 0x204   : > { %4648 = vst.msk [vmem:[%s6894_s17 + $0xb0] sm:$0xff] %vm4625_vm3, %v4575_v29  ;;  %v4576_v35 = vmax.f32 %v3750_v42, %v4504_v21  ;;  %v3473_v24 = vadd.f32 %v6842_v38, %v5611_v45  ;;  %v4299_v27 = vadd.f32 %v6842_v38, %v5687_v22  ;;  %v3464_v17 = vpop.f32.mrb[97].mxu0  ;;  %v4290_v36 = vpop.f32.mrb[97].mxu1 }
 0x205   : > { %4646 = vst.msk [vmem:[%s6894_s17 + $0xa0] sm:$0xff] %vm4625_vm3, %v4573_v23  ;;  %v4574_v33 = vmax.f32 %v3748_v60, %v4502_v32  ;;  %v3465_v44 = vadd.f32 %v6842_v38, %v3464_v17  ;;  %v4291_v34 = vadd.f32 %v6842_v38, %v4290_v36  ;;  %v5612_v28 = vpop.f32.mrb[98].mxu0  ;;  %v5688_v61 = vpop.f32.mrb[98].mxu1 }
 0x206   : > { %4649 = vst.msk [vmem:[%s6894_s17 + $0xb8] sm:$0xff] %vm4625_vm3, %v4576_v35  ;;  %v3681_v0 = vmax.f32 %v3473_v24, 0.0  ;;  %v4507_v43 = vmax.f32 %v4299_v27, 0.0  ;;  %v3476_v47 = vadd.f32 %v6842_v38, %v5612_v28  ;;  %v4302_v50 = vadd.f32 %v6842_v38, %v5688_v61  ;;  %v3467_v4 = vpop.f32.mrb[99].mxu0  ;;  %v4293_v3 = vpop.f32.mrb[99].mxu1 }
 0x207   : > { %4647 = vst.msk [vmem:[%s6894_s17 + $0xa8] sm:$0xff] %vm4625_vm3, %v4574_v33  ;;  %v3679_v53 = vmax.f32 %v3465_v44, 0.0  ;;  %v4505_v31 = vmax.f32 %v4291_v34, 0.0  ;;  %v3468_v54 = vadd.f32 %v6842_v38, %v3467_v4  ;;  %v4294_v7 = vadd.f32 %v6842_v38, %v4293_v3 }
 0x208   : > { %v3753_v10 = vmax.f32 %v6671_v11, %v3681_v0  ;;  %v3682_v37 = vmax.f32 %v3476_v47, 0.0  ;;  %v4508_v40 = vmax.f32 %v4302_v50, 0.0 }
 0x209   : > { %v3751_v25 = vmax.f32 %v6675_v16, %v3679_v53  ;;  %v3680_v13 = vmax.f32 %v3468_v54, 0.0  ;;  %v4506_v46 = vmax.f32 %v4294_v7, 0.0 }
 0x20a   : > { %v4579_v5 = vmax.f32 %v3753_v10, %v4507_v43  ;;  %v3754_v14 = vmax.f32 %v6679_v19, %v3682_v37 }
 0x20b   : > { %v4577_v30 = vmax.f32 %v3751_v25, %v4505_v31  ;;  %v3752_v41 = vmax.f32 %v6681_v20, %v3680_v13  ;;  %v5615_v26 = vpop.f32.mrb[100].mxu0  ;;  %v5691_v18 = vpop.f32.mrb[100].mxu1 }
 0x20c   : > { %4652 = vst.msk [vmem:[%s6894_s17 + $0xd0] sm:$0xff] %vm4625_vm3, %v4579_v5  ;;  %v4580_v49 = vmax.f32 %v3754_v14, %v4508_v40  ;;  %v3489_v11 = vadd.f32 %v6842_v38, %v5615_v26  ;;  %v4315_v16 = vadd.f32 %v6842_v38, %v5691_v18  ;;  %v3480_v39 = vpop.f32.mrb[101].mxu0  ;;  %v4306_v48 = vpop.f32.mrb[101].mxu1 }
 0x20d   : > { %4650 = vst.msk [vmem:[%s6894_s17 + $0xc0] sm:$0xff] %vm4625_vm3, %v4577_v30  ;;  %v4578_v19 = vmax.f32 %v3752_v41, %v4506_v46  ;;  %v3481_v29 = vadd.f32 %v6842_v38, %v3480_v39  ;;  %v4307_v20 = vadd.f32 %v6842_v38, %v4306_v48  ;;  %v5616_v42 = vpop.f32.mrb[102].mxu0  ;;  %v5692_v21 = vpop.f32.mrb[102].mxu1 }
 0x20e   : > { %4653 = vst.msk [vmem:[%s6894_s17 + $0xd8] sm:$0xff] %vm4625_vm3, %v4580_v49  ;;  %v3685_v23 = vmax.f32 %v3489_v11, 0.0  ;;  %v4511_v60 = vmax.f32 %v4315_v16, 0.0  ;;  %v3492_v32 = vadd.f32 %v6842_v38, %v5616_v42  ;;  %v4318_v45 = vadd.f32 %v6842_v38, %v5692_v21  ;;  %v3483_v22 = vpop.f32.mrb[103].mxu0  ;;  %v4309_v35 = vpop.f32.mrb[103].mxu1 }
 0x20f   : > { %4651 = vst.msk [vmem:[%s6894_s17 + $0xc8] sm:$0xff] %vm4625_vm3, %v4578_v19  ;;  %v3683_v24 = vmax.f32 %v3481_v29, 0.0  ;;  %v4509_v27 = vmax.f32 %v4307_v20, 0.0  ;;  %v3484_v17 = vadd.f32 %v6842_v38, %v3483_v22  ;;  %v4310_v36 = vadd.f32 %v6842_v38, %v4309_v35 }
 0x210   : > { %v3757_v33 = vmax.f32 %v6695_v62, %v3685_v23  ;;  %v3686_v44 = vmax.f32 %v3492_v32, 0.0  ;;  %v4512_v43 = vmax.f32 %v4318_v45, 0.0 }
 0x211   : > { %v3755_v34 = vmax.f32 %v6699_v2, %v3683_v24  ;;  %v3684_v28 = vmax.f32 %v3484_v17, 0.0  ;;  %v4510_v4 = vmax.f32 %v4310_v36, 0.0 }
 0x212   : > { %v4583_v61 = vmax.f32 %v3757_v33, %v4511_v60  ;;  %v3758_v0 = vmax.f32 %v6703_v9, %v3686_v44 }
 0x213   : > { %v4581_v47 = vmax.f32 %v3755_v34, %v4509_v27  ;;  %v3756_v50 = vmax.f32 %v6705_v12, %v3684_v28  ;;  %v5619_v3 = vpop.f32.mrb[104].mxu0  ;;  %v5695_v53 = vpop.f32.mrb[104].mxu1 }
 0x214   : > { %4656 = vst.msk [vmem:[%s6894_s17 + $0xf0] sm:$0xff] %vm4625_vm3, %v4583_v61  ;;  %v4584_v31 = vmax.f32 %v3758_v0, %v4512_v43  ;;  %v3505_v62 = vadd.f32 %v6842_v38, %v5619_v3  ;;  %v4331_v2 = vadd.f32 %v6842_v38, %v5695_v53  ;;  %v3496_v54 = vpop.f32.mrb[105].mxu0  ;;  %v4322_v7 = vpop.f32.mrb[105].mxu1 }
 0x215   : > { %4654 = vst.msk [vmem:[%s6894_s17 + $0xe0] sm:$0xff] %vm4625_vm3, %v4581_v47  ;;  %v4582_v9 = vmax.f32 %v3756_v50, %v4510_v4  ;;  %v3497_v10 = vadd.f32 %v6842_v38, %v3496_v54  ;;  %v4323_v12 = vadd.f32 %v6842_v38, %v4322_v7  ;;  %v5620_v37 = vpop.f32.mrb[106].mxu0  ;;  %v5696_v25 = vpop.f32.mrb[106].mxu1 }
 0x216   : > { %4657 = vst.msk [vmem:[%s6894_s17 + $0xf8] sm:$0xff] %vm4625_vm3, %v4584_v31  ;;  %v3689_v13 = vmax.f32 %v3505_v62, 0.0  ;;  %v4515_v5 = vmax.f32 %v4331_v2, 0.0  ;;  %v3508_v14 = vadd.f32 %v6842_v38, %v5620_v37  ;;  %v4334_v40 = vadd.f32 %v6842_v38, %v5696_v25  ;;  %v3499_v30 = vpop.f32.mrb[107].mxu0  ;;  %v4325_v41 = vpop.f32.mrb[107].mxu1 }
 0x217   : > { %4655 = vst.msk [vmem:[%s6894_s17 + $0xe8] sm:$0xff] %vm4625_vm3, %v4582_v9  ;;  %v3687_v46 = vmax.f32 %v3497_v10, 0.0  ;;  %v4513_v26 = vmax.f32 %v4323_v12, 0.0  ;;  %v3500_v18 = vadd.f32 %v6842_v38, %v3499_v30  ;;  %v4326_v49 = vadd.f32 %v6842_v38, %v4325_v41 }
 0x218   : > { %v3761_v11 = vmax.f32 %v6717_v56, %v3689_v13  ;;  %v3690_v16 = vmax.f32 %v3508_v14, 0.0  ;;  %v4516_v20 = vmax.f32 %v4334_v40, 0.0 }
 0x219   : > { %v3759_v39 = vmax.f32 %v6721_v59, %v3687_v46  ;;  %v3688_v48 = vmax.f32 %v3500_v18, 0.0  ;;  %v4514_v23 = vmax.f32 %v4326_v49, 0.0 }
 0x21a   : > { %v4587_v19 = vmax.f32 %v3761_v11, %v4515_v5  ;;  %v3762_v29 = vmax.f32 %v6723_v1, %v3690_v16 }
 0x21b   : > { %v4585_v42 = vmax.f32 %v3759_v39, %v4513_v26  ;;  %v3760_v21 = vmax.f32 %v6725_v6, %v3688_v48  ;;  %v5623_v60 = vpop.f32.mrb[108].mxu0  ;;  %v5699_v32 = vpop.f32.mrb[108].mxu1 }
 0x21c   : > { %4660 = vst.msk [vmem:[%s6894_s17 + $0x110] sm:$0xff] %vm4625_vm3, %v4587_v19  ;;  %v4588_v45 = vmax.f32 %v3762_v29, %v4516_v20  ;;  %v3521_v56 = vadd.f32 %v6842_v38, %v5623_v60  ;;  %v4347_v59 = vadd.f32 %v6842_v38, %v5699_v32  ;;  %v3512_v22 = vpop.f32.mrb[109].mxu0  ;;  %v4338_v35 = vpop.f32.mrb[109].mxu1  ;;  %v7295_v32 = vld [vmem:[#allocation4_spill] sm:$0xff] }
 0x21d   : > { %4658 = vst.msk [vmem:[%s6894_s17 + $0x100] sm:$0xff] %vm4625_vm3, %v4585_v42  ;;  %v4586_v1 = vmax.f32 %v3760_v21, %v4514_v23  ;;  %v3513_v24 = vadd.f32 %v6842_v38, %v3512_v22  ;;  %v4339_v6 = vadd.f32 %v6842_v38, %v4338_v35  ;;  %v5624_v27 = vpop.f32.mrb[110].mxu0  ;;  %v5700_v17 = vpop.f32.mrb[110].mxu1  ;;  %v7294_v42 = vld [vmem:[#allocation3_spill] sm:$0xff]  ;;  %v7296_v22 = vld [vmem:[#allocation5_spill] sm:$0xff] }
 0x21e   : > { %4661 = vst.msk [vmem:[%s6894_s17 + $0x118] sm:$0xff] %vm4625_vm3, %v4588_v45  ;;  %v3693_v36 = vmax.f32 %v3521_v56, 0.0  ;;  %v4519_v33 = vmax.f32 %v4347_v59, 0.0  ;;  %v3524_v44 = vadd.f32 %v6842_v38, %v5624_v27  ;;  %v4350_v34 = vadd.f32 %v6842_v38, %v5700_v17  ;;  %v3515_v28 = vpop.f32.mrb[111].mxu0  ;;  %v4341_v61 = vpop.f32.mrb[111].mxu1 }
 0x21f   : > { %4659 = vst.msk [vmem:[%s6894_s17 + $0x108] sm:$0xff] %vm4625_vm3, %v4586_v1  ;;  %v3691_v0 = vmax.f32 %v3513_v24, 0.0  ;;  %v4517_v43 = vmax.f32 %v4339_v6, 0.0  ;;  %v3516_v47 = vadd.f32 %v6842_v38, %v3515_v28  ;;  %v4342_v50 = vadd.f32 %v6842_v38, %v4341_v61 }
 0x220   : > { %v3765_v4 = vmax.f32 %v6735_v51, %v3693_v36  ;;  %v3694_v3 = vmax.f32 %v3524_v44, 0.0  ;;  %v4520_v54 = vmax.f32 %v4350_v34, 0.0 }
 0x221   : > { %v3763_v53 = vmax.f32 %v6737_v57, %v3691_v0  ;;  %v3692_v31 = vmax.f32 %v3516_v47, 0.0  ;;  %v4518_v10 = vmax.f32 %v4342_v50, 0.0 }
 0x222   : > { %v4591_v62 = vmax.f32 %v3765_v4, %v4519_v33  ;;  %v3766_v2 = vmax.f32 %v6739_v63, %v3694_v3 }
 0x223   : > { %v4589_v7 = vmax.f32 %v3763_v53, %v4517_v43  ;;  %v3764_v9 = vmax.f32 %v6741_v8, %v3692_v31  ;;  %v5627_v12 = vpop.f32.mrb[112].mxu0  ;;  %v5703_v37 = vpop.f32.mrb[112].mxu1 }
 0x224   : > { %4664 = vst.msk [vmem:[%s6894_s17 + $0x130] sm:$0xff] %vm4625_vm3, %v4591_v62  ;;  %v4592_v25 = vmax.f32 %v3766_v2, %v4520_v54  ;;  %v3537_v51 = vadd.f32 %v6842_v38, %v5627_v12  ;;  %v4363_v57 = vadd.f32 %v6842_v38, %v5703_v37  ;;  %v3528_v13 = vpop.f32.mrb[113].mxu0  ;;  %v4354_v5 = vpop.f32.mrb[113].mxu1  ;;  %v7298_v12 = vld [vmem:[#allocation7_spill] sm:$0xff] }
 0x225   : > { %4662 = vst.msk [vmem:[%s6894_s17 + $0x120] sm:$0xff] %vm4625_vm3, %v4589_v7  ;;  %v4590_v63 = vmax.f32 %v3764_v9, %v4518_v10  ;;  %v3529_v14 = vadd.f32 %v6842_v38, %v3528_v13  ;;  %v4355_v8 = vadd.f32 %v6842_v38, %v4354_v5  ;;  %v5628_v40 = vpop.f32.mrb[114].mxu0  ;;  %v5704_v30 = vpop.f32.mrb[114].mxu1  ;;  %v7297_v7 = vld [vmem:[#allocation6_spill] sm:$0xff] }
 0x226   : > { %4665 = vst.msk [vmem:[%s6894_s17 + $0x138] sm:$0xff] %vm4625_vm3, %v4592_v25  ;;  %v3697_v41 = vmax.f32 %v3537_v51, 0.0  ;;  %v4523_v46 = vmax.f32 %v4363_v57, 0.0  ;;  %v3540_v26 = vadd.f32 %v6842_v38, %v5628_v40  ;;  %v4366_v18 = vadd.f32 %v6842_v38, %v5704_v30  ;;  %v3531_v49 = vpop.f32.mrb[115].mxu0  ;;  %v4357_v11 = vpop.f32.mrb[115].mxu1  ;;  %v7299_v57 = vld [vmem:[#allocation8_spill] sm:$0xff] }
 0x227   : > { %4663 = vst.msk [vmem:[%s6894_s17 + $0x128] sm:$0xff] %vm4625_vm3, %v4590_v63  ;;  %v3695_v16 = vmax.f32 %v3529_v14, 0.0  ;;  %v4521_v39 = vmax.f32 %v4355_v8, 0.0  ;;  %v3532_v48 = vadd.f32 %v6842_v38, %v3531_v49  ;;  %v4358_v19 = vadd.f32 %v6842_v38, %v4357_v11  ;;  %v7300_v14 = vld [vmem:[#allocation9_spill] sm:$0xff] }
 0x228   : > { %v3769_v29 = vmax.f32 %v6751_v55, %v3697_v41  ;;  %v3698_v20 = vmax.f32 %v3540_v26, 0.0  ;;  %v4524_v56 = vmax.f32 %v4366_v18, 0.0 }
 0x229   : > { %v3767_v21 = vmax.f32 %v7294_v42, %v3695_v16  ;;  %v3696_v23 = vmax.f32 %v3532_v48, 0.0  ;;  %v4522_v1 = vmax.f32 %v4358_v19, 0.0 }
 0x22a   : > { %v4595_v60 = vmax.f32 %v3769_v29, %v4523_v46  ;;  %v3770_v45 = vmax.f32 %v7295_v32, %v3698_v20 }
 0x22b   : > { %v4593_v59 = vmax.f32 %v3767_v21, %v4521_v39  ;;  %v3768_v35 = vmax.f32 %v7296_v22, %v3696_v23  ;;  %v5631_v24 = vpop.f32.mrb[116].mxu0  ;;  %v5707_v6 = vpop.f32.mrb[116].mxu1 }
 0x22c   : > { %4668 = vst.msk [vmem:[%s6894_s17 + $0x150] sm:$0xff] %vm4625_vm3, %v4595_v60  ;;  %v4596_v27 = vmax.f32 %v3770_v45, %v4524_v56  ;;  %v3553_v55 = vadd.f32 %v6842_v38, %v5631_v24  ;;  %v4379_v17 = vadd.f32 %v6842_v38, %v5707_v6  ;;  %v3544_v36 = vpop.f32.mrb[117].mxu0  ;;  %v4370_v33 = vpop.f32.mrb[117].mxu1  ;;  %v7302_v6 = vld [vmem:[#allocation11_spill] sm:$0xff] }
 0x22d   : > { %4666 = vst.msk [vmem:[%s6894_s17 + $0x140] sm:$0xff] %vm4625_vm3, %v4593_v59  ;;  %v4594_v44 = vmax.f32 %v3768_v35, %v4522_v1  ;;  %v3545_v34 = vadd.f32 %v6842_v38, %v3544_v36  ;;  %v4371_v28 = vadd.f32 %v6842_v38, %v4370_v33  ;;  %v5632_v61 = vpop.f32.mrb[118].mxu0  ;;  %v5708_v0 = vpop.f32.mrb[118].mxu1  ;;  %v7301_v35 = vld [vmem:[#allocation10_spill] sm:$0xff]  ;;  %v7303_v36 = vld [vmem:[#allocation12_spill] sm:$0xff] }
 0x22e   : > { %4669 = vst.msk [vmem:[%s6894_s17 + $0x158] sm:$0xff] %vm4625_vm3, %v4596_v27  ;;  %v3701_v43 = vmax.f32 %v3553_v55, 0.0  ;;  %v4527_v47 = vmax.f32 %v4379_v17, 0.0  ;;  %v3556_v50 = vadd.f32 %v6842_v38, %v5632_v61  ;;  %v4382_v4 = vadd.f32 %v6842_v38, %v5708_v0  ;;  %v3547_v3 = vpop.f32.mrb[119].mxu0  ;;  %v4373_v53 = vpop.f32.mrb[119].mxu1 }
 0x22f   : > { %4667 = vst.msk [vmem:[%s6894_s17 + $0x148] sm:$0xff] %vm4625_vm3, %v4594_v44  ;;  %v3699_v31 = vmax.f32 %v3545_v34, 0.0  ;;  %v4525_v62 = vmax.f32 %v4371_v28, 0.0  ;;  %v3548_v2 = vadd.f32 %v6842_v38, %v3547_v3  ;;  %v4374_v54 = vadd.f32 %v6842_v38, %v4373_v53  ;;  %v7304_v28 = vld [vmem:[#allocation13_spill] sm:$0xff] }
 0x230   : > { %v3773_v9 = vmax.f32 %v7297_v7, %v3701_v43  ;;  %v3702_v10 = vmax.f32 %v3556_v50, 0.0  ;;  %v4528_v5 = vmax.f32 %v4382_v4, 0.0  ;;  %v7144_v50 = vld [vmem:[%s7264_s2] ss:$0 sm:$0xff] }
 0x231   : > { %v3771_v37 = vmax.f32 %v7298_v12, %v3699_v31  ;;  %v3700_v25 = vmax.f32 %v3548_v2, 0.0  ;;  %v4526_v40 = vmax.f32 %v4374_v54, 0.0 }
 0x232   : > { %v4599_v51 = vmax.f32 %v3773_v9, %v4527_v47  ;;  %v3774_v13 = vmax.f32 %v7299_v57, %v3702_v10 }
 0x233   : > { %v4597_v63 = vmax.f32 %v3771_v37, %v4525_v62  ;;  %v3772_v8 = vmax.f32 %v7300_v14, %v3700_v25  ;;  %v5635_v30 = vpop.f32.mrb[120].mxu0  ;;  %v5711_v41 = vpop.f32.mrb[120].mxu1 }
 0x234   : > { %4672 = vst.msk [vmem:[%s6894_s17 + $0x170] sm:$0xff] %vm4625_vm3, %v4599_v51  ;;  %v4600_v46 = vmax.f32 %v3774_v13, %v4528_v5  ;;  %v3569_v26 = vadd.f32 %v6842_v38, %v5635_v30  ;;  %v4395_v18 = vadd.f32 %v6842_v38, %v5711_v41  ;;  %v3560_v49 = vpop.f32.mrb[121].mxu0  ;;  %v4386_v11 = vpop.f32.mrb[121].mxu1  ;;  %v7306_v41 = vld [vmem:[#allocation15_spill] sm:$0xff] }
 0x235   : > { %4670 = vst.msk [vmem:[%s6894_s17 + $0x160] sm:$0xff] %vm4625_vm3, %v4597_v63  ;;  %v4598_v16 = vmax.f32 %v3772_v8, %v4526_v40  ;;  %v3561_v39 = vadd.f32 %v6842_v38, %v3560_v49  ;;  %v4387_v48 = vadd.f32 %v6842_v38, %v4386_v11  ;;  %v5636_v19 = vpop.f32.mrb[122].mxu0  ;;  %v5712_v29 = vpop.f32.mrb[122].mxu1  ;;  %v7305_v8 = vld [vmem:[#allocation14_spill] sm:$0xff]  ;;  %v7307_v49 = vld [vmem:[#allocation16_spill] sm:$0xff] }
 0x236   : > { %4673 = vst.msk [vmem:[%s6894_s17 + $0x178] sm:$0xff] %vm4625_vm3, %v4600_v46  ;;  %v3705_v20 = vmax.f32 %v3569_v26, 0.0  ;;  %v4531_v42 = vmax.f32 %v4395_v18, 0.0  ;;  %v3572_v21 = vadd.f32 %v6842_v38, %v5636_v19  ;;  %v4398_v23 = vadd.f32 %v6842_v38, %v5712_v29  ;;  %v3563_v60 = vpop.f32.mrb[123].mxu0  ;;  %v4389_v32 = vpop.f32.mrb[123].mxu1 }
 0x237   : > { %4671 = vst.msk [vmem:[%s6894_s17 + $0x168] sm:$0xff] %vm4625_vm3, %v4598_v16  ;;  %v3703_v45 = vmax.f32 %v3561_v39, 0.0  ;;  %v4529_v56 = vmax.f32 %v4387_v48, 0.0  ;;  %v3564_v59 = vadd.f32 %v6842_v38, %v3563_v60  ;;  %v4390_v22 = vadd.f32 %v6842_v38, %v4389_v32  ;;  %v7308_v48 = vld [vmem:[#allocation17_spill] sm:$0xff] }
 0x238   : > { %v3777_v1 = vmax.f32 %v7301_v35, %v3705_v20  ;;  %v3706_v24 = vmax.f32 %v3572_v21, 0.0  ;;  %v4532_v44 = vmax.f32 %v4398_v23, 0.0 }
 0x239   : > { %v3775_v27 = vmax.f32 %v7302_v6, %v3703_v45  ;;  %v3704_v55 = vmax.f32 %v3564_v59, 0.0  ;;  %v4530_v0 = vmax.f32 %v4390_v22, 0.0 }
 0x23a   : > { %v4603_v17 = vmax.f32 %v3777_v1, %v4531_v42  ;;  %v3778_v33 = vmax.f32 %v7303_v36, %v3706_v24 }
 0x23b   : > { %v4601_v34 = vmax.f32 %v3775_v27, %v4529_v56  ;;  %v3776_v61 = vmax.f32 %v7304_v28, %v3704_v55  ;;  %v5639_v43 = vpop.f32.mrb[124].mxu0  ;;  %v5715_v47 = vpop.f32.mrb[124].mxu1 }
 0x23c   : > { %4676 = vst.msk [vmem:[%s6894_s17 + $0x190] sm:$0xff] %vm4625_vm3, %v4603_v17  ;;  %v4604_v38 = vmax.f32 %v3778_v33, %v4532_v44  ;;  %v3585_v4 = vadd.f32 %v7144_v50, %v5639_v43  ;;  %v4411_v3 = vadd.f32 %v7144_v50, %v5715_v47  ;;  %v3576_v53 = vpop.f32.mrb[125].mxu0  ;;  %v4402_v31 = vpop.f32.mrb[125].mxu1  ;;  %v7310_v47 = vld [vmem:[#allocation19_spill] sm:$0xff] }
 0x23d   : > { %4674 = vst.msk [vmem:[%s6894_s17 + $0x180] sm:$0xff] %vm4625_vm3, %v4601_v34  ;;  %v4602_v62 = vmax.f32 %v3776_v61, %v4530_v0  ;;  %v3577_v2 = vadd.f32 %v7144_v50, %v3576_v53  ;;  %v4403_v54 = vadd.f32 %v7144_v50, %v4402_v31  ;;  %v5640_v7 = vpop.f32.mrb[126].mxu0  ;;  %v5716_v9 = vpop.f32.mrb[126].mxu1  ;;  %v7309_v61 = vld [vmem:[#allocation18_spill] sm:$0xff]  ;;  %v7311_v53 = vld [vmem:[#allocation20_spill] sm:$0xff] }
 0x23e   : > { %4677 = vst.msk [vmem:[%s6894_s17 + $0x198] sm:$0xff] %vm4625_vm3, %v4604_v38  ;;  %v3709_v10 = vmax.f32 %v3585_v4, 0.0  ;;  %v4535_v12 = vmax.f32 %v4411_v3, 0.0  ;;  %v3588_v37 = vadd.f32 %v7144_v50, %v5640_v7  ;;  %v4414_v25 = vadd.f32 %v7144_v50, %v5716_v9  ;;  %v3579_v51 = vpop.f32.mrb[127].mxu0  ;;  %v4405_v57 = vpop.f32.mrb[127].mxu1 }
 0x23f   : > { %4675 = vst.msk [vmem:[%s6894_s17 + $0x188] sm:$0xff] %vm4625_vm3, %v4602_v62  ;;  %v3707_v13 = vmax.f32 %v3577_v2, 0.0  ;;  %v4533_v5 = vmax.f32 %v4403_v54, 0.0  ;;  %v3580_v63 = vadd.f32 %v7144_v50, %v3579_v51  ;;  %v4406_v14 = vadd.f32 %v7144_v50, %v4405_v57  ;;  %v7312_v54 = vld [vmem:[#allocation21_spill] sm:$0xff] }
 0x240   : > { %v3781_v40 = vmax.f32 %v7305_v8, %v3709_v10  ;;  %v3710_v30 = vmax.f32 %v3588_v37, 0.0  ;;  %v4536_v16 = vmax.f32 %v4414_v25, 0.0 }
 0x241   : > { %v3779_v46 = vmax.f32 %v7306_v41, %v3707_v13  ;;  %v3708_v26 = vmax.f32 %v3580_v63, 0.0  ;;  %v4534_v29 = vmax.f32 %v4406_v14, 0.0 }
 0x242   : > { %v4607_v18 = vmax.f32 %v3781_v40, %v4535_v12  ;;  %v3782_v11 = vmax.f32 %v7307_v49, %v3710_v30 }
 0x243   : > { %v4605_v39 = vmax.f32 %v3779_v46, %v4533_v5  ;;  %v3780_v19 = vmax.f32 %v7308_v48, %v3708_v26  ;;  %v5643_v20 = vpop.f32.mrb[128].mxu0  ;;  %v5719_v42 = vpop.f32.mrb[128].mxu1 }
 0x244   : > { %4680 = vst.msk [vmem:[%s6894_s17 + $0x1b0] sm:$0xff] %vm4625_vm3, %v4607_v18  ;;  %v4608_v21 = vmax.f32 %v3782_v11, %v4536_v16  ;;  %v3601_v23 = vadd.f32 %v7144_v50, %v5643_v20  ;;  %v4427_v60 = vadd.f32 %v7144_v50, %v5719_v42  ;;  %v3592_v32 = vpop.f32.mrb[129].mxu0  ;;  %v4418_v45 = vpop.f32.mrb[129].mxu1  ;;  %v7313_v20 = vld [vmem:[#allocation22_spill] sm:$0xff] }
 0x245   : > { %4678 = vst.msk [vmem:[%s6894_s17 + $0x1a0] sm:$0xff] %vm4625_vm3, %v4605_v39  ;;  %v4606_v56 = vmax.f32 %v3780_v19, %v4534_v29  ;;  %v3593_v59 = vadd.f32 %v7144_v50, %v3592_v32  ;;  %v4419_v22 = vadd.f32 %v7144_v50, %v4418_v45  ;;  %v5644_v35 = vpop.f32.mrb[130].mxu0  ;;  %v5720_v1 = vpop.f32.mrb[130].mxu1 }
 0x246   : > { %4681 = vst.msk [vmem:[%s6894_s17 + $0x1b8] sm:$0xff] %vm4625_vm3, %v4608_v21  ;;  %v3713_v24 = vmax.f32 %v3601_v23, 0.0  ;;  %v4539_v6 = vmax.f32 %v4427_v60, 0.0  ;;  %v3604_v27 = vadd.f32 %v7144_v50, %v5644_v35  ;;  %v4430_v55 = vadd.f32 %v7144_v50, %v5720_v1  ;;  %v3595_v17 = vpop.f32.mrb[131].mxu0  ;;  %v4421_v36 = vpop.f32.mrb[131].mxu1  ;;  %v7314_v60 = vld [vmem:[#allocation23_spill] sm:$0xff] }
 0x247   : > { %4679 = vst.msk [vmem:[%s6894_s17 + $0x1a8] sm:$0xff] %vm4625_vm3, %v4606_v56  ;;  %v3711_v33 = vmax.f32 %v3593_v59, 0.0  ;;  %v4537_v44 = vmax.f32 %v4419_v22, 0.0  ;;  %v3596_v34 = vadd.f32 %v7144_v50, %v3595_v17  ;;  %v4422_v28 = vadd.f32 %v7144_v50, %v4421_v36  ;;  %v7315_v59 = vld [vmem:[#allocation24_spill] sm:$0xff] }
 0x248   : > { %v3785_v0 = vmax.f32 %v7309_v61, %v3713_v24  ;;  %v3714_v43 = vmax.f32 %v3604_v27, 0.0  ;;  %v4540_v62 = vmax.f32 %v4430_v55, 0.0 }
 0x249   : > { %v3783_v38 = vmax.f32 %v7310_v47, %v3711_v33  ;;  %v3712_v4 = vmax.f32 %v3596_v34, 0.0  ;;  %v4538_v9 = vmax.f32 %v4422_v28, 0.0 }
 0x24a   : > { %v4611_v3 = vmax.f32 %v3785_v0, %v4539_v6  ;;  %v3786_v31 = vmax.f32 %v7311_v53, %v3714_v43 }
 0x24b   : > { %v4609_v2 = vmax.f32 %v3783_v38, %v4537_v44  ;;  %v3784_v7 = vmax.f32 %v7312_v54, %v3712_v4  ;;  %v5647_v10 = vpop.f32.mrb[132].mxu0  ;;  %v5723_v12 = vpop.f32.mrb[132].mxu1 }
 0x24c   : > { %4684 = vst.msk [vmem:[%s6894_s17 + $0x1d0] sm:$0xff] %vm4625_vm3, %v4611_v3  ;;  %v4612_v37 = vmax.f32 %v3786_v31, %v4540_v62  ;;  %v3617_v25 = vadd.f32 %v7144_v50, %v5647_v10  ;;  %v4443_v51 = vadd.f32 %v7144_v50, %v5723_v12  ;;  %v3608_v57 = vpop.f32.mrb[133].mxu0  ;;  %v4434_v13 = vpop.f32.mrb[133].mxu1 }
 0x24d   : > { %4682 = vst.msk [vmem:[%s6894_s17 + $0x1c0] sm:$0xff] %vm4625_vm3, %v4609_v2  ;;  %v4610_v5 = vmax.f32 %v3784_v7, %v4538_v9  ;;  %v3609_v63 = vadd.f32 %v7144_v50, %v3608_v57  ;;  %v4435_v14 = vadd.f32 %v7144_v50, %v4434_v13  ;;  %v5648_v8 = vpop.f32.mrb[134].mxu0  ;;  %v5724_v40 = vpop.f32.mrb[134].mxu1  ;;  %v7316_v2 = vld [vmem:[#allocation25_spill] sm:$0xff]  ;;  %v7317_v9 = vld [vmem:[#allocation26_spill] sm:$0xff] }
 0x24e   : > { %4685 = vst.msk [vmem:[%s6894_s17 + $0x1d8] sm:$0xff] %vm4625_vm3, %v4612_v37  ;;  %v3717_v30 = vmax.f32 %v3617_v25, 0.0  ;;  %v4543_v41 = vmax.f32 %v4443_v51, 0.0  ;;  %v3620_v46 = vadd.f32 %v7144_v50, %v5648_v8  ;;  %v4446_v26 = vadd.f32 %v7144_v50, %v5724_v40  ;;  %v3611_v18 = vpop.f32.mrb[135].mxu0  ;;  %v4437_v49 = vpop.f32.mrb[135].mxu1  ;;  %v7318_v25 = vld [vmem:[#allocation27_spill] sm:$0xff] }
 0x24f   : > { %4683 = vst.msk [vmem:[%s6894_s17 + $0x1c8] sm:$0xff] %vm4625_vm3, %v4610_v5  ;;  %v3715_v11 = vmax.f32 %v3609_v63, 0.0  ;;  %v4541_v16 = vmax.f32 %v4435_v14, 0.0  ;;  %v3612_v39 = vadd.f32 %v7144_v50, %v3611_v18  ;;  %v4438_v48 = vadd.f32 %v7144_v50, %v4437_v49  ;;  %v7319_v5 = vld [vmem:[#allocation28_spill] sm:$0xff] }
 0x250   : > { %v3789_v19 = vmax.f32 %v6831_v15, %v3717_v30  ;;  %v3718_v29 = vmax.f32 %v3620_v46, 0.0  ;;  %v4544_v45 = vmax.f32 %v4446_v26, 0.0 }
 0x251   : > { %v3787_v42 = vmax.f32 %v7313_v20, %v3715_v11  ;;  %v3716_v21 = vmax.f32 %v3612_v39, 0.0  ;;  %v4542_v35 = vmax.f32 %v4438_v48, 0.0 }
 0x252   : > { %v4615_v23 = vmax.f32 %v3789_v19, %v4543_v41  ;;  %v3790_v32 = vmax.f32 %v7314_v60, %v3718_v29 }
 0x253   : > { %v4613_v56 = vmax.f32 %v3787_v42, %v4541_v16  ;;  %v3788_v22 = vmax.f32 %v7315_v59, %v3716_v21  ;;  %v5651_v1 = vpop.f32.mrb[136].mxu0  ;;  %v5727_v24 = vpop.f32.mrb[136].mxu1 }
 0x254   : > { %4688 = vst.msk [vmem:[%s6894_s17 + $0x1f0] sm:$0xff] %vm4625_vm3, %v4615_v23  ;;  %v4616_v6 = vmax.f32 %v3790_v32, %v4544_v45  ;;  %v3633_v15 = vadd.f32 %v7144_v50, %v5651_v1  ;;  %v4459_v27 = vadd.f32 %v7144_v50, %v5727_v24  ;;  %v3624_v55 = vpop.f32.mrb[137].mxu0  ;;  %v4450_v17 = vpop.f32.mrb[137].mxu1 }
 0x255   : > { %4686 = vst.msk [vmem:[%s6894_s17 + $0x1e0] sm:$0xff] %vm4625_vm3, %v4613_v56  ;;  %v4614_v36 = vmax.f32 %v3788_v22, %v4542_v35  ;;  %v3625_v33 = vadd.f32 %v7144_v50, %v3624_v55  ;;  %v4451_v44 = vadd.f32 %v7144_v50, %v4450_v17  ;;  %v5652_v34 = vpop.f32.mrb[138].mxu0  ;;  %v5728_v28 = vpop.f32.mrb[138].mxu1  ;;  %v7321_v17 = vld [vmem:[#allocation30_spill] sm:$0xff] }
 0x256   : > { %4689 = vst.msk [vmem:[%s6894_s17 + $0x1f8] sm:$0xff] %vm4625_vm3, %v4616_v6  ;;  %v3721_v61 = vmax.f32 %v3633_v15, 0.0  ;;  %v4547_v0 = vmax.f32 %v4459_v27, 0.0  ;;  %v3636_v43 = vadd.f32 %v7144_v50, %v5652_v34  ;;  %v4462_v47 = vadd.f32 %v7144_v50, %v5728_v28  ;;  %v3627_v38 = vpop.f32.mrb[139].mxu0  ;;  %v4453_v4 = vpop.f32.mrb[139].mxu1  ;;  %v7320_v6 = vld [vmem:[#allocation29_spill] sm:$0xff] }
 0x257   : > { %4687 = vst.msk [vmem:[%s6894_s17 + $0x1e8] sm:$0xff] %vm4625_vm3, %v4614_v36  ;;  %v3719_v3 = vmax.f32 %v3625_v33, 0.0  ;;  %v4545_v53 = vmax.f32 %v4451_v44, 0.0  ;;  %v3628_v31 = vadd.f32 %v7144_v50, %v3627_v38  ;;  %v4454_v62 = vadd.f32 %v7144_v50, %v4453_v4 }
 0x258   : > { %v3793_v54 = vmax.f32 %v7316_v2, %v3721_v61  ;;  %v3722_v7 = vmax.f32 %v3636_v43, 0.0  ;;  %v4548_v57 = vmax.f32 %v4462_v47, 0.0 }
 0x259   : > { %v3791_v10 = vmax.f32 %v7317_v9, %v3719_v3  ;;  %v3720_v12 = vmax.f32 %v3628_v31, 0.0  ;;  %v4546_v14 = vmax.f32 %v4454_v62, 0.0 }
 0x25a   : > { %v4619_v37 = vmax.f32 %v3793_v54, %v4547_v0  ;;  %v3794_v51 = vmax.f32 %v7318_v25, %v3722_v7 }
 0x25b   : > { %v4617_v13 = vmax.f32 %v3791_v10, %v4545_v53  ;;  %v3792_v63 = vmax.f32 %v7319_v5, %v3720_v12  ;;  %v5655_v8 = vpop.f32.mrb[140].mxu0  ;;  %v5731_v40 = vpop.f32.mrb[140].mxu1 }
 0x25c   : > { %4692 = vst.msk [vmem:[%s6894_s17 + $0x210] sm:$0xff] %vm4625_vm3, %v4619_v37  ;;  %v4620_v30 = vmax.f32 %v3794_v51, %v4548_v57  ;;  %v3649_v41 = vadd.f32 %v7144_v50, %v5655_v8  ;;  %v4475_v46 = vadd.f32 %v7144_v50, %v5731_v40  ;;  %v3640_v26 = vpop.f32.mrb[141].mxu0  ;;  %v4466_v18 = vpop.f32.mrb[141].mxu1 }
 0x25d   : > { %4690 = vst.msk [vmem:[%s6894_s17 + $0x200] sm:$0xff] %vm4625_vm3, %v4617_v13  ;;  %v4618_v49 = vmax.f32 %v3792_v63, %v4546_v14  ;;  %v3641_v11 = vadd.f32 %v7144_v50, %v3640_v26  ;;  %v4467_v16 = vadd.f32 %v7144_v50, %v4466_v18  ;;  %v5656_v39 = vpop.f32.mrb[142].mxu0  ;;  %v5732_v48 = vpop.f32.mrb[142].mxu1 }
 0x25e   : > { %4693 = vst.msk [vmem:[%s6894_s17 + $0x218] sm:$0xff] %vm4625_vm3, %v4620_v30  ;;  %v3725_v19 = vmax.f32 %v3649_v41, 0.0  ;;  %v4551_v29 = vmax.f32 %v4475_v46, 0.0  ;;  %v3652_v20 = vadd.f32 %v7144_v50, %v5656_v39  ;;  %v4478_v42 = vadd.f32 %v7144_v50, %v5732_v48  ;;  %v3643_v21 = vpop.f32.mrb[143].mxu0  ;;  %v4469_v23 = vpop.f32.mrb[143].mxu1 }
 0x25f   : > { %4691 = vst.msk [vmem:[%s6894_s17 + $0x208] sm:$0xff] %vm4625_vm3, %v4618_v49  ;;  %v3723_v60 = vmax.f32 %v3641_v11, 0.0  ;;  %v4549_v32 = vmax.f32 %v4467_v16, 0.0  ;;  %v3644_v45 = vadd.f32 %v7144_v50, %v3643_v21  ;;  %v4470_v56 = vadd.f32 %v7144_v50, %v4469_v23 }
 0x260   : > { %v3797_v59 = vmax.f32 %v6873_v52, %v3725_v19  ;;  %v3726_v22 = vmax.f32 %v3652_v20, 0.0  ;;  %v4552_v27 = vmax.f32 %v4478_v42, 0.0 }
 0x261   : > { %v3795_v35 = vmax.f32 %v6875_v58, %v3723_v60  ;;  %v3724_v1 = vmax.f32 %v3644_v45, 0.0  ;;  %v4550_v33 = vmax.f32 %v4470_v56, 0.0 }
 0x262   : > { %v4623_v24 = vmax.f32 %v3797_v59, %v4551_v29  ;;  %v3798_v15 = vmax.f32 %v7320_v6, %v3726_v22 }
 0x263   : > { %v4621_v55 = vmax.f32 %v3795_v35, %v4549_v32  ;;  %v3796_v36 = vmax.f32 %v7321_v17, %v3724_v1 }
 0x264   : > { %4696 = vst.msk [vmem:[%s6894_s17 + $0x230] sm:$0xff] %vm4625_vm3, %v4623_v24  ;;  %v4624_v44 = vmax.f32 %v3798_v15, %v4552_v27 }
 0x265   : > { %4694 = vst.msk [vmem:[%s6894_s17 + $0x220] sm:$0xff] %vm4625_vm3, %v4621_v55  ;;  %v4622_v50 = vmax.f32 %v3796_v36, %v4550_v33 }
 0x266   : > { %4697 = vst.msk [vmem:[%s6894_s17 + $0x238] sm:$0xff] %vm4625_vm3, %v4624_v44 }
 0x267   : > { %4695 = vst.msk [vmem:[%s6894_s17 + $0x228] sm:$0xff] %vm4625_vm3, %v4622_v50 }
 0x268 PF: > { %p10_p9 = scmp.ge.s32.totalorder %s5970_s16, 4   ;;  %s7322_s12 = smov %s5926_s13 }
 0x269   : > { %s7323_s13 = smov %s5979_s19  ;;  %s7324_s14 = smov %s5970_s16 }
 0x26a   :  { %12 = sbr.rel (!%p10_p9) target bundleno = 2 (0x2), region = 111 }

// kernel: pretrain_net_pallas.8
= control target key start
LH: loop header
LB: loop body
LE: loop exit
PB: predicated region body
PF: predicated region fallthrough
CT: control target
= control target key end

     0   :  { %s1991_s12 = smov 0   ;;  %s1993_s13 = smov 0   ;;  %s2455_s0 = inlined_call_operand.vmem [shape: bf16[4,288,36], index: 0, kind: input, shape index: {}]   ;;  %s2456_s1 = inlined_call_operand.vmem [shape: bf16[36,8], index: 1, kind: input, shape index: {}]   ;;  %s2457_s2 = inlined_call_operand.vmem [shape: f32[1,8], index: 2, kind: input, shape index: {}]   ;;  %s2458_s3 = inlined_call_operand.vmem [shape: f32[288,8], index: 3, kind: output, shape index: {}]  }
   0x1   :  { %s1995_s14 = smov 0  }
   0x2 LB: > { %s1522_s15 = sadd.s32 4294967295, %s1967_s14   ;;  %s2008_s16 = sadd.s32 1, %s1967_s14   ;;  %s1967_s14 = sphi %s1995_s14, %s2461_s14   ;;  %s1963_s13 = sphi %s1993_s13, %s2460_s13   ;;  %s1959_s12 = sphi %s1991_s12, %s2459_s12  }
   0x3   : > { %s17_s17 = ssub.s32 %s1967_s14, %s2008_s16  ;;  %s20_s18 = sadd.s32 1, %s1963_s13 }
   0x4   : > { %p18_p0 = scmp.eq.s32.totalorder %s17_s17, 0  ;;  %p27_p1 = scmp.ne.s32.totalorder %s1963_s13, %s1959_s12 }
   0x5   : > { %p28_p2 = scmp.eq.s32.totalorder %s1967_s14, 0  ;;  %p1525_p4 = scmp.ge.s32.totalorder %s1967_s14, 2 }
   0x6   : > { %s2017_s19 = scalar_select %p18_p0, %s1963_s13, %s20_s18  }
   0x7   : > { %p29_p3 = por %p28_p2, %p27_p1  ;;  %127 = sbr.rel (%p1525_p4) target bundleno = 37 (0x25), region = 24 }
   0xe   : > { %130 = sbr.rel (!%p29_p3) target bundleno = 37 (0x25), region = 28  ;;  %s132_s20 = sand.u32 (%p29_p3), 1, %s1963_s13  }
   0xf   : > { %s1661_s21 = smul.u32 (%p29_p3), 72, %s1967_s14 }
  0x10   : > { %s1878_s22 = smul.u32 (%p29_p3), 288, %s132_s20 }
  0x11   : > { %s2025_s25 = scalar_lea.vmem (%p29_p3), %s2455_s0, %s1661_s21 }
  0x12   : > { %v153_v0 = vld [vmem:[%s2025_s25] sm:$0xff] (%p29_p3)   ;;  %v157_v1 = vld [vmem:[%s2025_s25 + $0x8] sm:$0xff] (%p29_p3)   ;;  %v161_v2 = vld [vmem:[%s2025_s25 + $0x10] sm:$0xff] (%p29_p3)   ;;  %s2030_s26 = scalar_lea.vmem (%p29_p3), [#allocation2], %s1878_s22 }
  0x13   : > { %154 = vst [vmem:[%s2030_s26] sm:$0xff] (%p29_p3), %v153_v0   ;;  %158 = vst [vmem:[%s2030_s26 + $0x8] sm:$0xff] (%p29_p3), %v157_v1   ;;  %v165_v3 = vld [vmem:[%s2025_s25 + $0x18] sm:$0xff] (%p29_p3)   ;;  %v169_v4 = vld [vmem:[%s2025_s25 + $0x20] sm:$0xff] (%p29_p3)  }
  0x14   : > { %162 = vst [vmem:[%s2030_s26 + $0x10] sm:$0xff] (%p29_p3), %v161_v2   ;;  %v173_v5 = vld [vmem:[%s2025_s25 + $0x28] sm:$0xff] (%p29_p3)   ;;  %166 = vst [vmem:[%s2030_s26 + $0x18] sm:$0xff] (%p29_p3), %v165_v3   ;;  %v177_v6 = vld [vmem:[%s2025_s25 + $0x30] sm:$0xff] (%p29_p3)  }
  0x15   : > { %170 = vst [vmem:[%s2030_s26 + $0x20] sm:$0xff] %v169_v4   ;;  %174 = vst [vmem:[%s2030_s26 + $0x28] sm:$0xff] %v173_v5   ;;  %v181_v7 = vld [vmem:[%s2025_s25 + $0x38] sm:$0xff]   ;;  %v185_v8 = vld [vmem:[%s2025_s25 + $0x40] sm:$0xff]  }
  0x16   : > { %178 = vst [vmem:[%s2030_s26 + $0x30] sm:$0xff] %v177_v6   ;;  %182 = vst [vmem:[%s2030_s26 + $0x38] sm:$0xff] %v181_v7   ;;  %v189_v9 = vld [vmem:[%s2025_s25 + $0x90] sm:$0xff]   ;;  %v193_v10 = vld [vmem:[%s2025_s25 + $0x98] sm:$0xff]  }
  0x17   : > { %186 = vst [vmem:[%s2030_s26 + $0x40] sm:$0xff] %v185_v8   ;;  %v197_v11 = vld [vmem:[%s2025_s25 + $0xa0] sm:$0xff]   ;;  %190 = vst [vmem:[%s2030_s26 + $0x48] sm:$0xff] %v189_v9   ;;  %v201_v12 = vld [vmem:[%s2025_s25 + $0xa8] sm:$0xff]  }
  0x18   : > { %194 = vst [vmem:[%s2030_s26 + $0x50] sm:$0xff] %v193_v10   ;;  %198 = vst [vmem:[%s2030_s26 + $0x58] sm:$0xff] %v197_v11   ;;  %v205_v13 = vld [vmem:[%s2025_s25 + $0xb0] sm:$0xff]   ;;  %v209_v14 = vld [vmem:[%s2025_s25 + $0xb8] sm:$0xff]  }
  0x19   : > { %202 = vst [vmem:[%s2030_s26 + $0x60] sm:$0xff] %v201_v12   ;;  %206 = vst [vmem:[%s2030_s26 + $0x68] sm:$0xff] %v205_v13   ;;  %v213_v15 = vld [vmem:[%s2025_s25 + $0xc0] sm:$0xff]   ;;  %v217_v16 = vld [vmem:[%s2025_s25 + $0xc8] sm:$0xff]  }
  0x1a   : > { %210 = vst [vmem:[%s2030_s26 + $0x70] sm:$0xff] %v209_v14   ;;  %v221_v17 = vld [vmem:[%s2025_s25 + $0xd0] sm:$0xff]   ;;  %214 = vst [vmem:[%s2030_s26 + $0x78] sm:$0xff] %v213_v15   ;;  %v225_v18 = vld [vmem:[%s2025_s25 + $0x120] sm:$0xff]  }
  0x1b   : > { %218 = vst [vmem:[%s2030_s26 + $0x80] sm:$0xff] %v217_v16   ;;  %222 = vst [vmem:[%s2030_s26 + $0x88] sm:$0xff] %v221_v17   ;;  %v229_v19 = vld [vmem:[%s2025_s25 + $0x128] sm:$0xff]   ;;  %v233_v20 = vld [vmem:[%s2025_s25 + $0x130] sm:$0xff]  }
  0x1c   : > { %226 = vst [vmem:[%s2030_s26 + $0x90] sm:$0xff] %v225_v18   ;;  %230 = vst [vmem:[%s2030_s26 + $0x98] sm:$0xff] %v229_v19   ;;  %v237_v21 = vld [vmem:[%s2025_s25 + $0x138] sm:$0xff]   ;;  %v241_v22 = vld [vmem:[%s2025_s25 + $0x140] sm:$0xff]  }
  0x1d   : > { %234 = vst [vmem:[%s2030_s26 + $0xa0] sm:$0xff] %v233_v20   ;;  %v245_v23 = vld [vmem:[%s2025_s25 + $0x148] sm:$0xff]   ;;  %238 = vst [vmem:[%s2030_s26 + $0xa8] sm:$0xff] %v237_v21   ;;  %v249_v24 = vld [vmem:[%s2025_s25 + $0x150] sm:$0xff]  }
  0x1e   : > { %242 = vst [vmem:[%s2030_s26 + $0xb0] sm:$0xff] %v241_v22   ;;  %246 = vst [vmem:[%s2030_s26 + $0xb8] sm:$0xff] %v245_v23   ;;  %v253_v25 = vld [vmem:[%s2025_s25 + $0x158] sm:$0xff]   ;;  %v257_v26 = vld [vmem:[%s2025_s25 + $0x160] sm:$0xff]  }
  0x1f   : > { %250 = vst [vmem:[%s2030_s26 + $0xc0] sm:$0xff] %v249_v24   ;;  %254 = vst [vmem:[%s2030_s26 + $0xc8] sm:$0xff] %v253_v25   ;;  %v261_v27 = vld [vmem:[%s2025_s25 + $0x1b0] sm:$0xff]   ;;  %v265_v28 = vld [vmem:[%s2025_s25 + $0x1b8] sm:$0xff]  }
  0x20   : > { %258 = vst [vmem:[%s2030_s26 + $0xd0] sm:$0xff] %v257_v26   ;;  %v269_v29 = vld [vmem:[%s2025_s25 + $0x1c0] sm:$0xff]   ;;  %262 = vst [vmem:[%s2030_s26 + $0xd8] sm:$0xff] %v261_v27   ;;  %v273_v30 = vld [vmem:[%s2025_s25 + $0x1c8] sm:$0xff]  }
  0x21   : > { %266 = vst [vmem:[%s2030_s26 + $0xe0] sm:$0xff] %v265_v28   ;;  %270 = vst [vmem:[%s2030_s26 + $0xe8] sm:$0xff] %v269_v29   ;;  %v277_v31 = vld [vmem:[%s2025_s25 + $0x1d0] sm:$0xff]   ;;  %v281_v32 = vld [vmem:[%s2025_s25 + $0x1d8] sm:$0xff]  }
  0x22   : > { %274 = vst [vmem:[%s2030_s26 + $0xf0] sm:$0xff] %v273_v30   ;;  %278 = vst [vmem:[%s2030_s26 + $0xf8] sm:$0xff] %v277_v31   ;;  %v285_v33 = vld [vmem:[%s2025_s25 + $0x1e0] sm:$0xff]   ;;  %v289_v34 = vld [vmem:[%s2025_s25 + $0x1e8] sm:$0xff]  }
  0x23   : > { %282 = vst [vmem:[%s2030_s26 + $0x100] sm:$0xff] %v281_v32   ;;  %v293_v35 = vld [vmem:[%s2025_s25 + $0x1f0] sm:$0xff]   ;;  %286 = vst [vmem:[%s2030_s26 + $0x108] sm:$0xff] %v285_v33  }
  0x24   : > { %290 = vst [vmem:[%s2030_s26 + $0x110] sm:$0xff] %v289_v34   ;;  %294 = vst [vmem:[%s2030_s26 + $0x118] sm:$0xff] %v293_v35  }
  0x25 PF: > { %p1527_p5 = scmp.ge.s32.totalorder %s1967_s14, 1  ;;  %p462_p6 = scmp.lt.s32.totalorder %s1967_s14, 3 }
  0x27   : > { %p463_p7 = pnand %p1527_p5, %p462_p6 }
  0x28   : > { %v1906_v36 = vld [vmem:[%s2456_s1] sm:$0xff] (!%p463_p7)   ;;  %v1969_v37 = vmov (!%p463_p7), 0.0   ;;  %v1907_v38 = vld [vmem:[%s2456_s1 + $0x8] sm:$0xff] (!%p463_p7)   ;;  %v1908_v39 = vld [vmem:[%s2456_s1 + $0x10] ss:$0 sps:$4 sm:$0x33] (!%p463_p7)  }
  0x29   : > { %466 = sbr.rel (%p463_p7) target bundleno = 412 (0x19c), region = 69  ;;  %1710 = vmatprep.subr.bf16.mxu0 (!%p463_p7), %v1969_v37  ;;  %1752 = vmatprep.subr.bf16.mxu1 (!%p463_p7), %v1969_v37  ;;  %s469_s6 = sand.u32 (!%p463_p7), 1, %s1959_s12   ;;  %vm618_vm0 = vcmask (!%p463_p7), 1041408   ;;  %vm1970_vm1 = vmmov (!%p463_p7), 0   ;;  %vm590_vm2 = vcmask (!%p463_p7), 293888   ;;  %vm1441_vm3 = vcmask (!%p463_p7), 64512  }
  0x2a   : > { %1711 = vmatpush3.bf16.msra.mxu0 (!%p463_p7), %v1906_v36  ;;  %1753 = vmatpush3.bf16.msra.mxu1 (!%p463_p7), %v1906_v36  ;;  %s1879_s7 = smul.u32 (!%p463_p7), 288, %s469_s6  ;;  %v620_v40 = vsel (!%p463_p7), %vm618_vm0, %v1908_v39, 0  ;;  %v2274_v13 = vld [vmem:[%s2457_s2] ss:$0 sm:$0xff] (!%p463_p7) }
  0x2b   : > { %1712 = vmatprep.subr.bf16.mxu0 (!%p463_p7), %v1969_v37  ;;  %1754 = vmatprep.subr.bf16.mxu1 (!%p463_p7), %v1969_v37  ;;  %s493_s11 = smul.u32 (!%p463_p7), 18, %s1522_s15 }
  0x2c   : > { %1716 = vmatprep.mubr.msk.bf16.mxu0 (!%p463_p7), %vm1970_vm1, %v1969_v37  ;;  %1758 = vmatprep.mubr.msk.bf16.mxu1 (!%p463_p7), %vm1970_vm1, %v1969_v37  ;;  %s2123_s8 = scalar_lea.vmem (!%p463_p7), [#allocation2], %s1879_s7 }
  0x2d   : > { %v1909_v41 = vld [vmem:[%s2123_s8] sm:$0xff] (!%p463_p7)   ;;  %v1910_v42 = vld [vmem:[%s2123_s8 + $0x48] sm:$0xff] (!%p463_p7)   ;;  %v1912_v44 = vld [vmem:[%s2123_s8 + $0x50] sm:$0xff] (!%p463_p7)   ;;  %p494_p8 = scmp.lt.s32.totalorder (!%p463_p7), %s493_s11, 35 }
  0x2e   : > { %1713 = vmatpush3.bf16.msra.mxu0 (!%p463_p7), %v1907_v38  ;;  %1755 = vmatpush3.bf16.msra.mxu1 (!%p463_p7), %v1907_v38  ;;  %v1911_v43 = vld [vmem:[%s2123_s8 + $0x8] sm:$0xff] (!%p463_p7)   ;;  %v1913_v45 = vld [vmem:[%s2123_s8 + $0x10] sm:$0xff] (!%p463_p7)   ;;  %v1914_v46 = vld [vmem:[%s2123_s8 + $0x58] sm:$0xff] (!%p463_p7)  }
  0x2f   : > { %1714 = vmatprep.subr.bf16.mxu0 (!%p463_p7), %v1969_v37  ;;  %1756 = vmatprep.subr.bf16.mxu1 (!%p463_p7), %v1969_v37  ;;  %v1915_v47 = vld [vmem:[%s2123_s8 + $0x18] sm:$0xff] (!%p463_p7)   ;;  %v1916_v48 = vld [vmem:[%s2123_s8 + $0x60] sm:$0xff] (!%p463_p7)   ;;  %v1918_v50 = vld [vmem:[%s2123_s8 + $0x68] sm:$0xff] (!%p463_p7)  }
  0x30   : > { %v1917_v49 = vld [vmem:[%s2123_s8 + $0x20] sm:$0xff]   ;;  %v1919_v51 = vld [vmem:[%s2123_s8 + $0x28] sm:$0xff]   ;;  %v1920_v52 = vld [vmem:[%s2123_s8 + $0x70] sm:$0xff]   ;;  %s2463_s11 = smov (!%p494_p8, %s493_s11), 35 }
  0x31   : > { %v1921_v53 = vld [vmem:[%s2123_s8 + $0x30] sm:$0xff]   ;;  %v1922_v54 = vld [vmem:[%s2123_s8 + $0x78] sm:$0xff]   ;;  %v1924_v56 = vld [vmem:[%s2123_s8 + $0x80] sm:$0xff]   ;;  %s1528_s12 = sshll.u32 %s2463_s11, 3 }
  0x32   : > { %1715 = vmatpush3.bf16.msra.mxu0 %v620_v40  ;;  %1757 = vmatpush3.bf16.msra.mxu1 %v620_v40  ;;  %v1923_v55 = vld [vmem:[%s2123_s8 + $0x38] sm:$0xff]   ;;  %v1925_v57 = vld [vmem:[%s2123_s8 + $0x40] sm:$0xff]   ;;  %v1926_v58 = vld [vmem:[%s2123_s8 + $0x88] sm:$0xff]   ;;  %s2358_s17 = scalar_lea.vmem %s2458_s3, %s1528_s12 }
  0x33   : > { %1794 = vmatprep.subr.bf16.mxu0 %v1969_v37  ;;  %1836 = vmatprep.subr.bf16.mxu1 %v1969_v37  ;;  %v1927_v59 = vld [vmem:[%s2123_s8 + $0x90] sm:$0xff]   ;;  %v1928_v60 = vld [vmem:[%s2123_s8 + $0xd8] sm:$0xff]   ;;  %v1930_v62 = vld [vmem:[%s2123_s8 + $0xe0] sm:$0xff]  }
  0x34   : > { %v1929_v61 = vld [vmem:[%s2123_s8 + $0x98] sm:$0xff]   ;;  %v1931_v63 = vld [vmem:[%s2123_s8 + $0xa0] sm:$0xff]   ;;  %v1932_v0 = vld [vmem:[%s2123_s8 + $0xe8] sm:$0xff]  }
  0x35   : > { %1717 = vmatmul.mubr.msk.bf16.vlgmr.msra.gmra.mrb[0].mxu0 %vm590_vm2, %v1909_v41  ;;  %1759 = vmatmul.mubr.msk.bf16.vlgmr.msra.gmra.mrb[0].mxu1 %vm590_vm2, %v1910_v42  ;;  %v1933_v1 = vld [vmem:[%s2123_s8 + $0xa8] sm:$0xff]   ;;  %v1934_v2 = vld [vmem:[%s2123_s8 + $0xf0] sm:$0xff]   ;;  %v1936_v4 = vld [vmem:[%s2123_s8 + $0xf8] sm:$0xff]  }
  0x36   : > { %1795 = vmatpush3.bf16.msra.mxu0 %v1906_v36  ;;  %1837 = vmatpush3.bf16.msra.mxu1 %v1906_v36  ;;  %v1935_v3 = vld [vmem:[%s2123_s8 + $0xb0] sm:$0xff]   ;;  %v1937_v5 = vld [vmem:[%s2123_s8 + $0xb8] sm:$0xff]   ;;  %v1938_v6 = vld [vmem:[%s2123_s8 + $0x100] sm:$0xff]  }
  0x37   : > { %1720 = vmatprep.mubr.msk.bf16.mxu0 %vm1970_vm1, %v1969_v37  ;;  %1762 = vmatprep.mubr.msk.bf16.mxu1 %vm1970_vm1, %v1969_v37  ;;  %v1939_v7 = vld [vmem:[%s2123_s8 + $0xc0] sm:$0xff]   ;;  %v1940_v8 = vld [vmem:[%s2123_s8 + $0x108] sm:$0xff]   ;;  %v1942_v10 = vld [vmem:[%s2123_s8 + $0x110] sm:$0xff]  }
  0x38   : > { %1796 = vmatprep.subr.bf16.mxu0 %v1969_v37  ;;  %1838 = vmatprep.subr.bf16.mxu1 %v1969_v37  ;;  %v1941_v9 = vld [vmem:[%s2123_s8 + $0xc8] sm:$0xff]   ;;  %v1943_v11 = vld [vmem:[%s2123_s8 + $0xd0] sm:$0xff]   ;;  %v1944_v12 = vld [vmem:[%s2123_s8 + $0x118] sm:$0xff]  }
  0x3a   : > { %1797 = vmatpush3.bf16.msra.mxu0 %v1907_v38  ;;  %1839 = vmatpush3.bf16.msra.mxu1 %v1907_v38 }
  0x3b   : > { %1798 = vmatprep.subr.bf16.mxu0 %v1969_v37  ;;  %1840 = vmatprep.subr.bf16.mxu1 %v1969_v37 }
  0x3d   : > { %1721 = vmatmul.mubr.msk.bf16.gmra.mrb[4].mxu0 %vm590_vm2, %v1911_v43  ;;  %1763 = vmatmul.mubr.msk.bf16.gmra.mrb[4].mxu1 %vm590_vm2, %v1912_v44 }
  0x3e   : > { %1724 = vmatprep.mubr.msk.bf16.mxu0 %vm1970_vm1, %v1969_v37  ;;  %1766 = vmatprep.mubr.msk.bf16.mxu1 %vm1970_vm1, %v1969_v37 }
  0x3f   : > { %1799 = vmatpush3.bf16.msra.mxu0 %v620_v40  ;;  %1841 = vmatpush3.bf16.msra.mxu1 %v620_v40 }
  0x45   : > { %1725 = vmatmul.mubr.msk.bf16.gmra.mrb[8].mxu0 %vm590_vm2, %v1913_v45  ;;  %1767 = vmatmul.mubr.msk.bf16.gmra.mrb[8].mxu1 %vm590_vm2, %v1914_v46 }
  0x46   : > { %1728 = vmatprep.mubr.msk.bf16.mxu0 %vm1970_vm1, %v1969_v37  ;;  %1770 = vmatprep.mubr.msk.bf16.mxu1 %vm1970_vm1, %v1969_v37 }
  0x4d   : > { %1729 = vmatmul.mubr.msk.bf16.gmra.mrb[12].mxu0 %vm590_vm2, %v1915_v47  ;;  %1771 = vmatmul.mubr.msk.bf16.gmra.mrb[12].mxu1 %vm590_vm2, %v1916_v48 }
  0x4e   : > { %1732 = vmatprep.mubr.msk.bf16.mxu0 %vm1970_vm1, %v1969_v37  ;;  %1774 = vmatprep.mubr.msk.bf16.mxu1 %vm1970_vm1, %v1969_v37 }
  0x55   : > { %1733 = vmatmul.mubr.msk.bf16.gmra.mrb[16].mxu0 %vm590_vm2, %v1917_v49  ;;  %1775 = vmatmul.mubr.msk.bf16.gmra.mrb[16].mxu1 %vm590_vm2, %v1918_v50 }
  0x56   : > { %1736 = vmatprep.mubr.msk.bf16.mxu0 %vm1970_vm1, %v1969_v37  ;;  %1778 = vmatprep.mubr.msk.bf16.mxu1 %vm1970_vm1, %v1969_v37 }
  0x5d   : > { %1737 = vmatmul.mubr.msk.bf16.gmra.mrb[20].mxu0 %vm590_vm2, %v1919_v51  ;;  %1779 = vmatmul.mubr.msk.bf16.gmra.mrb[20].mxu1 %vm590_vm2, %v1920_v52 }
  0x5e   : > { %1740 = vmatprep.mubr.msk.bf16.mxu0 %vm1970_vm1, %v1969_v37  ;;  %1782 = vmatprep.mubr.msk.bf16.mxu1 %vm1970_vm1, %v1969_v37 }
  0x65   : > { %1741 = vmatmul.mubr.msk.bf16.gmra.mrb[24].mxu0 %vm590_vm2, %v1921_v53  ;;  %1783 = vmatmul.mubr.msk.bf16.gmra.mrb[24].mxu1 %vm590_vm2, %v1922_v54 }
  0x66   : > { %1744 = vmatprep.mubr.msk.bf16.mxu0 %vm1970_vm1, %v1969_v37  ;;  %1786 = vmatprep.mubr.msk.bf16.mxu1 %vm1970_vm1, %v1969_v37 }
  0x6d   : > { %1745 = vmatmul.mubr.msk.bf16.gmra.mrb[28].mxu0 %vm590_vm2, %v1923_v55  ;;  %1787 = vmatmul.mubr.msk.bf16.gmra.mrb[28].mxu1 %vm590_vm2, %v1924_v56 }
  0x6e   : > { %1748 = vmatprep.mubr.msk.bf16.mxu0 %vm1970_vm1, %v1969_v37  ;;  %1790 = vmatprep.mubr.msk.bf16.mxu1 %vm1970_vm1, %v1969_v37 }
  0x75   : > { %1749 = vmatmul.mubr.msk.bf16.gmra.mrb[32].mxu0 %vm590_vm2, %v1925_v57  ;;  %1791 = vmatmul.mubr.msk.bf16.gmra.mrb[32].mxu1 %vm590_vm2, %v1926_v58 }
  0x76   : > { %1800 = vmatprep.mubr.msk.bf16.mxu0 %vm1970_vm1, %v1969_v37  ;;  %1842 = vmatprep.mubr.msk.bf16.mxu1 %vm1970_vm1, %v1969_v37 }
  0x7d   : > { %1801 = vmatmul.mubr.msk.bf16.vlgmr.msra.gmra.mrb[36].mxu0 %vm590_vm2, %v1927_v59  ;;  %1843 = vmatmul.mubr.msk.bf16.vlgmr.msra.gmra.mrb[36].mxu1 %vm590_vm2, %v1928_v60 }
  0x7e   : > { %1804 = vmatprep.mubr.msk.bf16.mxu0 %vm1970_vm1, %v1969_v37  ;;  %1846 = vmatprep.mubr.msk.bf16.mxu1 %vm1970_vm1, %v1969_v37 }
  0x85   : > { %1805 = vmatmul.mubr.msk.bf16.gmra.mrb[40].mxu0 %vm590_vm2, %v1929_v61  ;;  %1847 = vmatmul.mubr.msk.bf16.gmra.mrb[40].mxu1 %vm590_vm2, %v1930_v62 }
  0x86   : > { %1808 = vmatprep.mubr.msk.bf16.mxu0 %vm1970_vm1, %v1969_v37  ;;  %1850 = vmatprep.mubr.msk.bf16.mxu1 %vm1970_vm1, %v1969_v37 }
  0x8d   : > { %1809 = vmatmul.mubr.msk.bf16.gmra.mrb[44].mxu0 %vm590_vm2, %v1931_v63  ;;  %1851 = vmatmul.mubr.msk.bf16.gmra.mrb[44].mxu1 %vm590_vm2, %v1932_v0 }
  0x8e   : > { %1812 = vmatprep.mubr.msk.bf16.mxu0 %vm1970_vm1, %v1969_v37  ;;  %1854 = vmatprep.mubr.msk.bf16.mxu1 %vm1970_vm1, %v1969_v37 }
  0x95   : > { %1813 = vmatmul.mubr.msk.bf16.gmra.mrb[48].mxu0 %vm590_vm2, %v1933_v1  ;;  %1855 = vmatmul.mubr.msk.bf16.gmra.mrb[48].mxu1 %vm590_vm2, %v1934_v2 }
  0x96   : > { %1816 = vmatprep.mubr.msk.bf16.mxu0 %vm1970_vm1, %v1969_v37  ;;  %1858 = vmatprep.mubr.msk.bf16.mxu1 %vm1970_vm1, %v1969_v37 }
  0x9d   : > { %1817 = vmatmul.mubr.msk.bf16.gmra.mrb[52].mxu0 %vm590_vm2, %v1935_v3  ;;  %1859 = vmatmul.mubr.msk.bf16.gmra.mrb[52].mxu1 %vm590_vm2, %v1936_v4 }
  0x9e   : > { %1820 = vmatprep.mubr.msk.bf16.mxu0 %vm1970_vm1, %v1969_v37  ;;  %1862 = vmatprep.mubr.msk.bf16.mxu1 %vm1970_vm1, %v1969_v37 }
  0xa5   : > { %1821 = vmatmul.mubr.msk.bf16.gmra.mrb[56].mxu0 %vm590_vm2, %v1937_v5  ;;  %1863 = vmatmul.mubr.msk.bf16.gmra.mrb[56].mxu1 %vm590_vm2, %v1938_v6 }
  0xa6   : > { %1824 = vmatprep.mubr.msk.bf16.mxu0 %vm1970_vm1, %v1969_v37  ;;  %1866 = vmatprep.mubr.msk.bf16.mxu1 %vm1970_vm1, %v1969_v37 }
  0xad   : > { %1825 = vmatmul.mubr.msk.bf16.gmra.mrb[60].mxu0 %vm590_vm2, %v1939_v7  ;;  %1867 = vmatmul.mubr.msk.bf16.gmra.mrb[60].mxu1 %vm590_vm2, %v1940_v8 }
  0xae   : > { %1828 = vmatprep.mubr.msk.bf16.mxu0 %vm1970_vm1, %v1969_v37  ;;  %1870 = vmatprep.mubr.msk.bf16.mxu1 %vm1970_vm1, %v1969_v37 }
  0xb5   : > { %1829 = vmatmul.mubr.msk.bf16.gmra.mrb[64].mxu0 %vm590_vm2, %v1941_v9  ;;  %1871 = vmatmul.mubr.msk.bf16.gmra.mrb[64].mxu1 %vm590_vm2, %v1942_v10 }
  0xb6   : > { %1832 = vmatprep.mubr.msk.bf16.mxu0 %vm1970_vm1, %v1969_v37  ;;  %1874 = vmatprep.mubr.msk.bf16.mxu1 %vm1970_vm1, %v1969_v37 }
  0xbd   : > { %1833 = vmatmul.mubr.msk.bf16.gmra.mrb[68].mxu0 %vm590_vm2, %v1943_v11  ;;  %1875 = vmatmul.mubr.msk.bf16.gmra.mrb[68].mxu1 %vm590_vm2, %v1944_v12 }
 0x108   : > { %v656_v14 = vpop.f32.mrb[0].mxu0  ;;  %v870_v15 = vpop.f32.mrb[0].mxu1 }
 0x109   : > { %v657_v16 = vadd.f32 %v2274_v13, %v656_v14  ;;  %v871_v17 = vadd.f32 %v2274_v13, %v870_v15  ;;  %v1718_v18 = vpop.f32.mrb[1].mxu0  ;;  %v1760_v19 = vpop.f32.mrb[1].mxu1 }
 0x10a   : > { %v659_v20 = vpop.f32.mrb[2].mxu0  ;;  %v873_v21 = vpop.f32.mrb[2].mxu1 }
 0x10b   : > { %v727_v22 = vmax.f32 %v657_v16, 0.0  ;;  %v941_v23 = vmax.f32 %v871_v17, 0.0  ;;  %v660_v24 = vadd.f32 %v2274_v13, %v659_v20  ;;  %v874_v25 = vadd.f32 %v2274_v13, %v873_v21  ;;  %v1719_v26 = vpop.f32.mrb[3].mxu0  ;;  %v1761_v27 = vpop.f32.mrb[3].mxu1 }
 0x10d   : > { %v2280_v28 = vmax.f32 %v727_v22, %v941_v23  ;;  %v728_v29 = vmax.f32 %v660_v24, 0.0  ;;  %v942_v30 = vmax.f32 %v874_v25, 0.0 }
 0x10f   : > { %v2282_v31 = vmax.f32 %v728_v29, %v942_v30 }
 0x110   : > { %v664_v32 = vpop.f32.mrb[4].mxu0  ;;  %v878_v33 = vpop.f32.mrb[4].mxu1 }
 0x111   : > { %v665_v34 = vadd.f32 %v2274_v13, %v664_v32  ;;  %v879_v35 = vadd.f32 %v2274_v13, %v878_v33  ;;  %v1722_v36 = vpop.f32.mrb[5].mxu0  ;;  %v1764_v37 = vpop.f32.mrb[5].mxu1 }
 0x112   : > { %v667_v38 = vpop.f32.mrb[6].mxu0  ;;  %v881_v39 = vpop.f32.mrb[6].mxu1 }
 0x113   : > { %v729_v40 = vmax.f32 %v665_v34, 0.0  ;;  %v943_v41 = vmax.f32 %v879_v35, 0.0  ;;  %v668_v42 = vadd.f32 %v2274_v13, %v667_v38  ;;  %v882_v43 = vadd.f32 %v2274_v13, %v881_v39  ;;  %v1723_v44 = vpop.f32.mrb[7].mxu0  ;;  %v1765_v45 = vpop.f32.mrb[7].mxu1 }
 0x115   : > { %v2288_v46 = vmax.f32 %v729_v40, %v943_v41  ;;  %v730_v47 = vmax.f32 %v668_v42, 0.0  ;;  %v944_v48 = vmax.f32 %v882_v43, 0.0 }
 0x117   : > { %v2290_v49 = vmax.f32 %v730_v47, %v944_v48 }
 0x118   : > { %v672_v50 = vpop.f32.mrb[8].mxu0  ;;  %v886_v51 = vpop.f32.mrb[8].mxu1 }
 0x119   : > { %v673_v52 = vadd.f32 %v2274_v13, %v672_v50  ;;  %v887_v53 = vadd.f32 %v2274_v13, %v886_v51  ;;  %v1726_v54 = vpop.f32.mrb[9].mxu0  ;;  %v1768_v55 = vpop.f32.mrb[9].mxu1 }
 0x11a   : > { %v675_v56 = vpop.f32.mrb[10].mxu0  ;;  %v889_v57 = vpop.f32.mrb[10].mxu1 }
 0x11b   : > { %v731_v58 = vmax.f32 %v673_v52, 0.0  ;;  %v945_v59 = vmax.f32 %v887_v53, 0.0  ;;  %v676_v60 = vadd.f32 %v2274_v13, %v675_v56  ;;  %v890_v61 = vadd.f32 %v2274_v13, %v889_v57  ;;  %v1727_v62 = vpop.f32.mrb[11].mxu0  ;;  %v1769_v63 = vpop.f32.mrb[11].mxu1 }
 0x11d   : > { %v2296_v0 = vmax.f32 %v731_v58, %v945_v59  ;;  %v732_v1 = vmax.f32 %v676_v60, 0.0  ;;  %v946_v2 = vmax.f32 %v890_v61, 0.0 }
 0x11f   : > { %v2298_v3 = vmax.f32 %v732_v1, %v946_v2 }
 0x120   : > { %v680_v4 = vpop.f32.mrb[12].mxu0  ;;  %v894_v5 = vpop.f32.mrb[12].mxu1 }
 0x121   : > { %v681_v6 = vadd.f32 %v2274_v13, %v680_v4  ;;  %v895_v7 = vadd.f32 %v2274_v13, %v894_v5  ;;  %v1730_v8 = vpop.f32.mrb[13].mxu0  ;;  %v1772_v9 = vpop.f32.mrb[13].mxu1 }
 0x122   : > { %v683_v10 = vpop.f32.mrb[14].mxu0  ;;  %v897_v11 = vpop.f32.mrb[14].mxu1 }
 0x123   : > { %v733_v12 = vmax.f32 %v681_v6, 0.0  ;;  %v947_v14 = vmax.f32 %v895_v7, 0.0  ;;  %v684_v15 = vadd.f32 %v2274_v13, %v683_v10  ;;  %v898_v16 = vadd.f32 %v2274_v13, %v897_v11  ;;  %v1731_v17 = vpop.f32.mrb[15].mxu0  ;;  %v1773_v18 = vpop.f32.mrb[15].mxu1 }
 0x125   : > { %v2304_v19 = vmax.f32 %v733_v12, %v947_v14  ;;  %v734_v20 = vmax.f32 %v684_v15, 0.0  ;;  %v948_v21 = vmax.f32 %v898_v16, 0.0 }
 0x127   : > { %v2306_v22 = vmax.f32 %v734_v20, %v948_v21 }
 0x128   : > { %v688_v23 = vpop.f32.mrb[16].mxu0  ;;  %v902_v24 = vpop.f32.mrb[16].mxu1 }
 0x129   : > { %v689_v25 = vadd.f32 %v2274_v13, %v688_v23  ;;  %v903_v26 = vadd.f32 %v2274_v13, %v902_v24  ;;  %v1734_v27 = vpop.f32.mrb[17].mxu0  ;;  %v1776_v29 = vpop.f32.mrb[17].mxu1 }
 0x12a   : > { %v691_v30 = vpop.f32.mrb[18].mxu0  ;;  %v905_v32 = vpop.f32.mrb[18].mxu1 }
 0x12b   : > { %v735_v33 = vmax.f32 %v689_v25, 0.0  ;;  %v949_v34 = vmax.f32 %v903_v26, 0.0  ;;  %v692_v35 = vadd.f32 %v2274_v13, %v691_v30  ;;  %v906_v36 = vadd.f32 %v2274_v13, %v905_v32  ;;  %v1735_v37 = vpop.f32.mrb[19].mxu0  ;;  %v1777_v38 = vpop.f32.mrb[19].mxu1 }
 0x12d   : > { %v2312_v39 = vmax.f32 %v735_v33, %v949_v34  ;;  %v736_v40 = vmax.f32 %v692_v35, 0.0  ;;  %v950_v41 = vmax.f32 %v906_v36, 0.0 }
 0x12f   : > { %v2314_v42 = vmax.f32 %v736_v40, %v950_v41 }
 0x130   : > { %v696_v43 = vpop.f32.mrb[20].mxu0  ;;  %v910_v44 = vpop.f32.mrb[20].mxu1 }
 0x131   : > { %v697_v45 = vadd.f32 %v2274_v13, %v696_v43  ;;  %v911_v47 = vadd.f32 %v2274_v13, %v910_v44  ;;  %v1738_v48 = vpop.f32.mrb[21].mxu0  ;;  %v1780_v50 = vpop.f32.mrb[21].mxu1 }
 0x132   : > { %v699_v51 = vpop.f32.mrb[22].mxu0  ;;  %v913_v52 = vpop.f32.mrb[22].mxu1 }
 0x133   : > { %v737_v53 = vmax.f32 %v697_v45, 0.0  ;;  %v951_v54 = vmax.f32 %v911_v47, 0.0  ;;  %v700_v55 = vadd.f32 %v2274_v13, %v699_v51  ;;  %v914_v56 = vadd.f32 %v2274_v13, %v913_v52  ;;  %v1739_v57 = vpop.f32.mrb[23].mxu0  ;;  %v1781_v58 = vpop.f32.mrb[23].mxu1 }
 0x135   : > { %v2320_v59 = vmax.f32 %v737_v53, %v951_v54  ;;  %v738_v60 = vmax.f32 %v700_v55, 0.0  ;;  %v952_v61 = vmax.f32 %v914_v56, 0.0 }
 0x137   : > { %v2322_v62 = vmax.f32 %v738_v60, %v952_v61 }
 0x138   : > { %v704_v63 = vpop.f32.mrb[24].mxu0  ;;  %v918_v1 = vpop.f32.mrb[24].mxu1 }
 0x139   : > { %v705_v2 = vadd.f32 %v2274_v13, %v704_v63  ;;  %v919_v4 = vadd.f32 %v2274_v13, %v918_v1  ;;  %v1742_v5 = vpop.f32.mrb[25].mxu0  ;;  %v1784_v6 = vpop.f32.mrb[25].mxu1 }
 0x13a   : > { %v707_v7 = vpop.f32.mrb[26].mxu0  ;;  %v921_v8 = vpop.f32.mrb[26].mxu1 }
 0x13b   : > { %v739_v9 = vmax.f32 %v705_v2, 0.0  ;;  %v953_v10 = vmax.f32 %v919_v4, 0.0  ;;  %v708_v11 = vadd.f32 %v2274_v13, %v707_v7  ;;  %v922_v12 = vadd.f32 %v2274_v13, %v921_v8  ;;  %v1743_v14 = vpop.f32.mrb[27].mxu0  ;;  %v1785_v15 = vpop.f32.mrb[27].mxu1 }
 0x13d   : > { %v2328_v16 = vmax.f32 %v739_v9, %v953_v10  ;;  %v740_v17 = vmax.f32 %v708_v11, 0.0  ;;  %v954_v18 = vmax.f32 %v922_v12, 0.0 }
 0x13f   : > { %v2330_v20 = vmax.f32 %v740_v17, %v954_v18 }
 0x140   : > { %v712_v21 = vpop.f32.mrb[28].mxu0  ;;  %v926_v23 = vpop.f32.mrb[28].mxu1 }
 0x141   : > { %v713_v24 = vadd.f32 %v2274_v13, %v712_v21  ;;  %v927_v25 = vadd.f32 %v2274_v13, %v926_v23  ;;  %v1746_v26 = vpop.f32.mrb[29].mxu0  ;;  %v1788_v27 = vpop.f32.mrb[29].mxu1 }
 0x142   : > { %v715_v29 = vpop.f32.mrb[30].mxu0  ;;  %v929_v30 = vpop.f32.mrb[30].mxu1 }
 0x143   : > { %v741_v32 = vmax.f32 %v713_v24, 0.0  ;;  %v955_v33 = vmax.f32 %v927_v25, 0.0  ;;  %v716_v34 = vadd.f32 %v2274_v13, %v715_v29  ;;  %v930_v35 = vadd.f32 %v2274_v13, %v929_v30  ;;  %v1747_v36 = vpop.f32.mrb[31].mxu0  ;;  %v1789_v37 = vpop.f32.mrb[31].mxu1 }
 0x145   : > { %v2336_v38 = vmax.f32 %v741_v32, %v955_v33  ;;  %v742_v40 = vmax.f32 %v716_v34, 0.0  ;;  %v956_v41 = vmax.f32 %v930_v35, 0.0 }
 0x147   : > { %v2338_v43 = vmax.f32 %v742_v40, %v956_v41 }
 0x148   : > { %v720_v44 = vpop.f32.mrb[32].mxu0  ;;  %v934_v45 = vpop.f32.mrb[32].mxu1 }
 0x149   : > { %v721_v47 = vadd.f32 %v2274_v13, %v720_v44  ;;  %v935_v48 = vadd.f32 %v2274_v13, %v934_v45  ;;  %v1750_v50 = vpop.f32.mrb[33].mxu0  ;;  %v1792_v51 = vpop.f32.mrb[33].mxu1 }
 0x14a   : > { %v723_v52 = vpop.f32.mrb[34].mxu0  ;;  %v937_v53 = vpop.f32.mrb[34].mxu1 }
 0x14b   : > { %v743_v54 = vmax.f32 %v721_v47, 0.0  ;;  %v957_v55 = vmax.f32 %v935_v48, 0.0  ;;  %v724_v56 = vadd.f32 %v2274_v13, %v723_v52  ;;  %v938_v57 = vadd.f32 %v2274_v13, %v937_v53  ;;  %v1751_v58 = vpop.f32.mrb[35].mxu0  ;;  %v1793_v60 = vpop.f32.mrb[35].mxu1 }
 0x14d   : > { %v2346_v61 = vmax.f32 %v743_v54, %v957_v55  ;;  %v744_v63 = vmax.f32 %v724_v56, 0.0  ;;  %v958_v1 = vmax.f32 %v938_v57, 0.0 }
 0x14f   : > { %v2348_v2 = vmax.f32 %v744_v63, %v958_v1 }
 0x150   : > { %v1102_v4 = vpop.f32.mrb[36].mxu0  ;;  %v1334_v5 = vpop.f32.mrb[36].mxu1 }
 0x151   : > { %v1103_v6 = vadd.f32 %v2274_v13, %v1102_v4  ;;  %v1335_v7 = vadd.f32 %v2274_v13, %v1334_v5  ;;  %v1802_v8 = vpop.f32.mrb[37].mxu0  ;;  %v1844_v9 = vpop.f32.mrb[37].mxu1 }
 0x152   : > { %v1105_v10 = vpop.f32.mrb[38].mxu0  ;;  %v1337_v11 = vpop.f32.mrb[38].mxu1 }
 0x153   : > { %v1173_v12 = vmax.f32 %v1103_v6, 0.0  ;;  %v1405_v14 = vmax.f32 %v1335_v7, 0.0  ;;  %v1106_v15 = vadd.f32 %v2274_v13, %v1105_v10  ;;  %v1338_v17 = vadd.f32 %v2274_v13, %v1337_v11  ;;  %v1803_v18 = vpop.f32.mrb[39].mxu0  ;;  %v1845_v21 = vpop.f32.mrb[39].mxu1 }
 0x155   : > { %v1191_v23 = vmax.f32 %v2280_v28, %v1173_v12  ;;  %v1174_v24 = vmax.f32 %v1106_v15, 0.0  ;;  %v1406_v27 = vmax.f32 %v1338_v17, 0.0 }
 0x157   : > { %v1423_v25 = vmax.f32 %v1191_v23, %v1405_v14  ;;  %v1192_v26 = vmax.f32 %v2282_v31, %v1174_v24 }
 0x158   : > { %v1110_v29 = vpop.f32.mrb[40].mxu0  ;;  %v1342_v30 = vpop.f32.mrb[40].mxu1 }
 0x159   : > { %1442 = vst.msk [vmem:[%s2358_s17] sm:$0xff] %vm1441_vm3, %v1423_v25  ;;  %v1424_v32 = vmax.f32 %v1192_v26, %v1406_v27  ;;  %v1111_v28 = vadd.f32 %v2274_v13, %v1110_v29  ;;  %v1343_v33 = vadd.f32 %v2274_v13, %v1342_v30  ;;  %v1806_v34 = vpop.f32.mrb[41].mxu0  ;;  %v1848_v35 = vpop.f32.mrb[41].mxu1 }
 0x15a   : > { %v1113_v36 = vpop.f32.mrb[42].mxu0  ;;  %v1345_v37 = vpop.f32.mrb[42].mxu1 }
 0x15b   : > { %1443 = vst.msk [vmem:[%s2358_s17 + $0x8] sm:$0xff] %vm1441_vm3, %v1424_v32  ;;  %v1175_v40 = vmax.f32 %v1111_v28, 0.0  ;;  %v1407_v41 = vmax.f32 %v1343_v33, 0.0  ;;  %v1114_v31 = vadd.f32 %v2274_v13, %v1113_v36  ;;  %v1346_v44 = vadd.f32 %v2274_v13, %v1345_v37  ;;  %v1807_v45 = vpop.f32.mrb[43].mxu0  ;;  %v1849_v47 = vpop.f32.mrb[43].mxu1 }
 0x15d   : > { %v1193_v48 = vmax.f32 %v2288_v46, %v1175_v40  ;;  %v1176_v50 = vmax.f32 %v1114_v31, 0.0  ;;  %v1408_v53 = vmax.f32 %v1346_v44, 0.0 }
 0x15f   : > { %v1425_v51 = vmax.f32 %v1193_v48, %v1407_v41  ;;  %v1194_v52 = vmax.f32 %v2290_v49, %v1176_v50 }
 0x160   : > { %v1118_v54 = vpop.f32.mrb[44].mxu0  ;;  %v1350_v55 = vpop.f32.mrb[44].mxu1 }
 0x161   : > { %1444 = vst.msk [vmem:[%s2358_s17 + $0x10] sm:$0xff] %vm1441_vm3, %v1425_v51  ;;  %v1426_v56 = vmax.f32 %v1194_v52, %v1408_v53  ;;  %v1119_v57 = vadd.f32 %v2274_v13, %v1118_v54  ;;  %v1351_v58 = vadd.f32 %v2274_v13, %v1350_v55  ;;  %v1810_v60 = vpop.f32.mrb[45].mxu0  ;;  %v1852_v63 = vpop.f32.mrb[45].mxu1 }
 0x162   : > { %v1121_v1 = vpop.f32.mrb[46].mxu0  ;;  %v1353_v4 = vpop.f32.mrb[46].mxu1 }
 0x163   : > { %1445 = vst.msk [vmem:[%s2358_s17 + $0x18] sm:$0xff] %vm1441_vm3, %v1426_v56  ;;  %v1177_v46 = vmax.f32 %v1119_v57, 0.0  ;;  %v1409_v5 = vmax.f32 %v1351_v58, 0.0  ;;  %v1122_v49 = vadd.f32 %v2274_v13, %v1121_v1  ;;  %v1354_v6 = vadd.f32 %v2274_v13, %v1353_v4  ;;  %v1811_v7 = vpop.f32.mrb[47].mxu0  ;;  %v1853_v8 = vpop.f32.mrb[47].mxu1 }
 0x165   : > { %v1195_v9 = vmax.f32 %v2296_v0, %v1177_v46  ;;  %v1178_v10 = vmax.f32 %v1122_v49, 0.0  ;;  %v1410_v14 = vmax.f32 %v1354_v6, 0.0 }
 0x167   : > { %v1427_v11 = vmax.f32 %v1195_v9, %v1409_v5  ;;  %v1196_v12 = vmax.f32 %v2298_v3, %v1178_v10 }
 0x168   : > { %v1126_v15 = vpop.f32.mrb[48].mxu0  ;;  %v1358_v17 = vpop.f32.mrb[48].mxu1 }
 0x169   : > { %1446 = vst.msk [vmem:[%s2358_s17 + $0x20] sm:$0xff] %vm1441_vm3, %v1427_v11  ;;  %v1428_v18 = vmax.f32 %v1196_v12, %v1410_v14  ;;  %v1127_v21 = vadd.f32 %v2274_v13, %v1126_v15  ;;  %v1359_v23 = vadd.f32 %v2274_v13, %v1358_v17  ;;  %v1814_v24 = vpop.f32.mrb[49].mxu0  ;;  %v1856_v25 = vpop.f32.mrb[49].mxu1 }
 0x16a   : > { %v1129_v26 = vpop.f32.mrb[50].mxu0  ;;  %v1361_v27 = vpop.f32.mrb[50].mxu1 }
 0x16b   : > { %1447 = vst.msk [vmem:[%s2358_s17 + $0x28] sm:$0xff] %vm1441_vm3, %v1428_v18  ;;  %v1179_v0 = vmax.f32 %v1127_v21, 0.0  ;;  %v1411_v29 = vmax.f32 %v1359_v23, 0.0  ;;  %v1130_v3 = vadd.f32 %v2274_v13, %v1129_v26  ;;  %v1362_v30 = vadd.f32 %v2274_v13, %v1361_v27  ;;  %v1815_v32 = vpop.f32.mrb[51].mxu0  ;;  %v1857_v28 = vpop.f32.mrb[51].mxu1 }
 0x16d   : > { %v1197_v33 = vmax.f32 %v2304_v19, %v1179_v0  ;;  %v1180_v34 = vmax.f32 %v1130_v3, 0.0  ;;  %v1412_v37 = vmax.f32 %v1362_v30, 0.0 }
 0x16f   : > { %v1429_v35 = vmax.f32 %v1197_v33, %v1411_v29  ;;  %v1198_v36 = vmax.f32 %v2306_v22, %v1180_v34 }
 0x170   : > { %v1134_v40 = vpop.f32.mrb[52].mxu0  ;;  %v1366_v41 = vpop.f32.mrb[52].mxu1 }
 0x171   : > { %1448 = vst.msk [vmem:[%s2358_s17 + $0x30] sm:$0xff] %vm1441_vm3, %v1429_v35  ;;  %v1430_v31 = vmax.f32 %v1198_v36, %v1412_v37  ;;  %v1135_v44 = vadd.f32 %v2274_v13, %v1134_v40  ;;  %v1367_v45 = vadd.f32 %v2274_v13, %v1366_v41  ;;  %v1818_v47 = vpop.f32.mrb[53].mxu0  ;;  %v1860_v48 = vpop.f32.mrb[53].mxu1 }
 0x172   : > { %v1137_v50 = vpop.f32.mrb[54].mxu0  ;;  %v1369_v51 = vpop.f32.mrb[54].mxu1 }
 0x173   : > { %1449 = vst.msk [vmem:[%s2358_s17 + $0x38] sm:$0xff] %vm1441_vm3, %v1430_v31  ;;  %v1181_v19 = vmax.f32 %v1135_v44, 0.0  ;;  %v1413_v52 = vmax.f32 %v1367_v45, 0.0  ;;  %v1138_v22 = vadd.f32 %v2274_v13, %v1137_v50  ;;  %v1370_v53 = vadd.f32 %v2274_v13, %v1369_v51  ;;  %v1819_v54 = vpop.f32.mrb[55].mxu0  ;;  %v1861_v55 = vpop.f32.mrb[55].mxu1 }
 0x175   : > { %v1199_v56 = vmax.f32 %v2312_v39, %v1181_v19  ;;  %v1182_v57 = vmax.f32 %v1138_v22, 0.0  ;;  %v1414_v63 = vmax.f32 %v1370_v53, 0.0 }
 0x177   : > { %v1431_v58 = vmax.f32 %v1199_v56, %v1413_v52  ;;  %v1200_v60 = vmax.f32 %v2314_v42, %v1182_v57 }
 0x178   : > { %v1142_v1 = vpop.f32.mrb[56].mxu0  ;;  %v1374_v4 = vpop.f32.mrb[56].mxu1 }
 0x179   : > { %1450 = vst.msk [vmem:[%s2358_s17 + $0x40] sm:$0xff] %vm1441_vm3, %v1431_v58  ;;  %v1432_v46 = vmax.f32 %v1200_v60, %v1414_v63  ;;  %v1143_v5 = vadd.f32 %v2274_v13, %v1142_v1  ;;  %v1375_v49 = vadd.f32 %v2274_v13, %v1374_v4  ;;  %v1822_v6 = vpop.f32.mrb[57].mxu0  ;;  %v1864_v7 = vpop.f32.mrb[57].mxu1 }
 0x17a   : > { %v1145_v8 = vpop.f32.mrb[58].mxu0  ;;  %v1377_v9 = vpop.f32.mrb[58].mxu1 }
 0x17b   : > { %1451 = vst.msk [vmem:[%s2358_s17 + $0x48] sm:$0xff] %vm1441_vm3, %v1432_v46  ;;  %v1183_v39 = vmax.f32 %v1143_v5, 0.0  ;;  %v1415_v10 = vmax.f32 %v1375_v49, 0.0  ;;  %v1146_v42 = vadd.f32 %v2274_v13, %v1145_v8  ;;  %v1378_v11 = vadd.f32 %v2274_v13, %v1377_v9  ;;  %v1823_v12 = vpop.f32.mrb[59].mxu0  ;;  %v1865_v14 = vpop.f32.mrb[59].mxu1 }
 0x17d   : > { %v1201_v15 = vmax.f32 %v2320_v59, %v1183_v39  ;;  %v1184_v17 = vmax.f32 %v1146_v42, 0.0  ;;  %v1416_v23 = vmax.f32 %v1378_v11, 0.0 }
 0x17f   : > { %v1433_v18 = vmax.f32 %v1201_v15, %v1415_v10  ;;  %v1202_v21 = vmax.f32 %v2322_v62, %v1184_v17 }
 0x180   : > { %v1150_v24 = vpop.f32.mrb[60].mxu0  ;;  %v1382_v25 = vpop.f32.mrb[60].mxu1 }
 0x181   : > { %1452 = vst.msk [vmem:[%s2358_s17 + $0x50] sm:$0xff] %vm1441_vm3, %v1433_v18  ;;  %v1434_v26 = vmax.f32 %v1202_v21, %v1416_v23  ;;  %v1151_v27 = vadd.f32 %v2274_v13, %v1150_v24  ;;  %v1383_v0 = vadd.f32 %v2274_v13, %v1382_v25  ;;  %v1826_v29 = vpop.f32.mrb[61].mxu0  ;;  %v1868_v3 = vpop.f32.mrb[61].mxu1 }
 0x182   : > { %v1153_v30 = vpop.f32.mrb[62].mxu0  ;;  %v1385_v32 = vpop.f32.mrb[62].mxu1 }
 0x183   : > { %1453 = vst.msk [vmem:[%s2358_s17 + $0x58] sm:$0xff] %vm1441_vm3, %v1434_v26  ;;  %v1185_v59 = vmax.f32 %v1151_v27, 0.0  ;;  %v1417_v28 = vmax.f32 %v1383_v0, 0.0  ;;  %v1154_v62 = vadd.f32 %v2274_v13, %v1153_v30  ;;  %v1386_v33 = vadd.f32 %v2274_v13, %v1385_v32  ;;  %v1827_v34 = vpop.f32.mrb[63].mxu0  ;;  %v1869_v35 = vpop.f32.mrb[63].mxu1 }
 0x185   : > { %v1203_v36 = vmax.f32 %v2328_v16, %v1185_v59  ;;  %v1186_v37 = vmax.f32 %v1154_v62, 0.0  ;;  %v1418_v31 = vmax.f32 %v1386_v33, 0.0 }
 0x187   : > { %v1435_v40 = vmax.f32 %v1203_v36, %v1417_v28  ;;  %v1204_v41 = vmax.f32 %v2330_v20, %v1186_v37 }
 0x188   : > { %v1158_v44 = vpop.f32.mrb[64].mxu0  ;;  %v1390_v45 = vpop.f32.mrb[64].mxu1 }
 0x189   : > { %1454 = vst.msk [vmem:[%s2358_s17 + $0x60] sm:$0xff] %vm1441_vm3, %v1435_v40  ;;  %v1436_v47 = vmax.f32 %v1204_v41, %v1418_v31  ;;  %v1159_v48 = vadd.f32 %v2274_v13, %v1158_v44  ;;  %v1391_v50 = vadd.f32 %v2274_v13, %v1390_v45  ;;  %v1830_v51 = vpop.f32.mrb[65].mxu0  ;;  %v1872_v19 = vpop.f32.mrb[65].mxu1 }
 0x18a   : > { %v1161_v52 = vpop.f32.mrb[66].mxu0  ;;  %v1393_v22 = vpop.f32.mrb[66].mxu1 }
 0x18b   : > { %1455 = vst.msk [vmem:[%s2358_s17 + $0x68] sm:$0xff] %vm1441_vm3, %v1436_v47  ;;  %v1187_v16 = vmax.f32 %v1159_v48, 0.0  ;;  %v1419_v53 = vmax.f32 %v1391_v50, 0.0  ;;  %v1162_v20 = vadd.f32 %v2274_v13, %v1161_v52  ;;  %v1394_v54 = vadd.f32 %v2274_v13, %v1393_v22  ;;  %v1831_v55 = vpop.f32.mrb[67].mxu0  ;;  %v1873_v56 = vpop.f32.mrb[67].mxu1 }
 0x18d   : > { %v1205_v57 = vmax.f32 %v2336_v38, %v1187_v16  ;;  %v1188_v58 = vmax.f32 %v1162_v20, 0.0  ;;  %v1420_v1 = vmax.f32 %v1394_v54, 0.0 }
 0x18f   : > { %v1437_v60 = vmax.f32 %v1205_v57, %v1419_v53  ;;  %v1206_v63 = vmax.f32 %v2338_v43, %v1188_v58 }
 0x190   : > { %v1166_v4 = vpop.f32.mrb[68].mxu0  ;;  %v1398_v46 = vpop.f32.mrb[68].mxu1 }
 0x191   : > { %1456 = vst.msk [vmem:[%s2358_s17 + $0x70] sm:$0xff] %vm1441_vm3, %v1437_v60  ;;  %v1438_v5 = vmax.f32 %v1206_v63, %v1420_v1  ;;  %v1167_v49 = vadd.f32 %v2274_v13, %v1166_v4  ;;  %v1399_v6 = vadd.f32 %v2274_v13, %v1398_v46  ;;  %v1834_v7 = vpop.f32.mrb[69].mxu0  ;;  %v1876_v8 = vpop.f32.mrb[69].mxu1 }
 0x192   : > { %v1169_v9 = vpop.f32.mrb[70].mxu0  ;;  %v1401_v38 = vpop.f32.mrb[70].mxu1 }
 0x193   : > { %1457 = vst.msk [vmem:[%s2358_s17 + $0x78] sm:$0xff] %vm1441_vm3, %v1438_v5  ;;  %v1189_v39 = vmax.f32 %v1167_v49, 0.0  ;;  %v1421_v43 = vmax.f32 %v1399_v6, 0.0  ;;  %v1170_v10 = vadd.f32 %v2274_v13, %v1169_v9  ;;  %v1402_v42 = vadd.f32 %v2274_v13, %v1401_v38  ;;  %v1835_v11 = vpop.f32.mrb[71].mxu0  ;;  %v1877_v12 = vpop.f32.mrb[71].mxu1 }
 0x195   : > { %v1207_v14 = vmax.f32 %v2346_v61, %v1189_v39  ;;  %v1190_v15 = vmax.f32 %v1170_v10, 0.0  ;;  %v1422_v21 = vmax.f32 %v1402_v42, 0.0 }
 0x197   : > { %v1439_v17 = vmax.f32 %v1207_v14, %v1421_v43  ;;  %v1208_v18 = vmax.f32 %v2348_v2, %v1190_v15 }
 0x199   : > { %1458 = vst.msk [vmem:[%s2358_s17 + $0x80] sm:$0xff] %vm1441_vm3, %v1439_v17  ;;  %v1440_v23 = vmax.f32 %v1208_v18, %v1422_v21 }
 0x19b   : > { %1459 = vst.msk [vmem:[%s2358_s17 + $0x88] sm:$0xff] %vm1441_vm3, %v1440_v23 }
 0x19c PF: > { %p10_p9 = scmp.ge.s32.totalorder %s2008_s16, 4   ;;  %s2459_s12 = smov %s1963_s13 }
 0x19d   : > { %s2460_s13 = smov %s2017_s19  ;;  %s2461_s14 = smov %s2008_s16 }
 0x19e   :  { %12 = sbr.rel (!%p10_p9) target bundleno = 2 (0x2), region = 111 }

// kernel: pretrain_net_pallas.9
= control target key start
LH: loop header
LB: loop body
LE: loop exit
PB: predicated region body
PF: predicated region fallthrough
CT: control target
= control target key end

     0   :  { %s668_s12 = smov 0   ;;  %s794_s0 = inlined_call_operand.vmem [shape: bf16[1,288,72], index: 0, kind: input, shape index: {}]   ;;  %s795_s1 = inlined_call_operand.vmem [shape: bf16[72,16], index: 1, kind: input, shape index: {}]   ;;  %s796_s2 = inlined_call_operand.vmem [shape: f32[1,16], index: 2, kind: input, shape index: {}]   ;;  %s797_s3 = inlined_call_operand.vmem [shape: f32[288,16], index: 3, kind: output, shape index: {}]  }
   0x1 LB: > { %s511_s13 = sadd.s32 4294967295, %s644_s12   ;;  %p515_p0 = scmp.ge.s32.totalorder %s644_s12, 1  ;;  %s644_s12 = sphi %s668_s12, %s13_s12  }
   0x2   : > { %p138_p1 = scmp.lt.s32.totalorder %s644_s12, 3 }
   0x4   : > { %p139_p2 = pnand %p515_p0, %p138_p1 }
   0x5   : > { %v624_v0 = vld [vmem:[%s795_s1] sm:$0xff] (!%p139_p2)   ;;  %v646_v1 = vmov (!%p139_p2), 0.0   ;;  %v625_v2 = vld [vmem:[%s795_s1 + $0x8] sm:$0xff] (!%p139_p2)   ;;  %s162_s18 = smul.u32 (!%p139_p2), 18, %s511_s13  ;;  %vm647_vm0 = vmmov (!%p139_p2), 0   ;;  %v626_v3 = vld [vmem:[%s795_s1 + $0x10] sm:$0xff] (!%p139_p2)  }
   0x6   : > { %142 = sbr.rel (%p139_p2) target bundleno = 277 (0x115), region = 32  ;;  %558 = vmatprep.subr.bf16.mxu0 (!%p139_p2), %v646_v1  ;;  %604 = vmatprep.subr.bf16.mxu1 (!%p139_p2), %v646_v1  ;;  %v627_v4 = vld [vmem:[%s795_s1 + $0x18] sm:$0xff] (!%p139_p2)   ;;  %v628_v5 = vld [vmem:[%s795_s1 + $0x20] ss:$0 sps:$4 sm:$0xff] (!%p139_p2)   ;;  %vm309_vm1 = vcmask (!%p139_p2), 1043456   ;;  %vm281_vm2 = vcmask (!%p139_p2), 588800  }
   0x7   : > { %559 = vmatpush3.bf16.msra.mxu0 (!%p139_p2), %v624_v0  ;;  %609 = vmatpush3.bf16.msra.mxu1 (!%p139_p2), %v624_v0  ;;  %p163_p3 = scmp.lt.s32.totalorder (!%p139_p2), %s162_s18, 35  ;;  %v311_v6 = vsel (!%p139_p2), %vm309_vm1, %v628_v5, 0  ;;  %v729_v16 = vld [vmem:[%s796_s2] ss:$0 sm:$0xff] (!%p139_p2)  ;;  %vm436_vm3 = vcmask (!%p139_p2), 130048  }
   0x8   : > { %560 = vmatprep.subr.bf16.mxu0 (!%p139_p2), %v646_v1  ;;  %605 = vmatprep.subr.bf16.mxu1 (!%p139_p2), %v646_v1 }
   0x9   : > { %568 = vmatprep.mubr.msk.bf16.mxu0 (!%p139_p2), %vm647_vm0, %v646_v1  ;;  %588 = vmatprep.mubr.msk.bf16.mxu1 (!%p139_p2), %vm647_vm0, %v646_v1 }
   0xb   : > { %561 = vmatpush3.bf16.msra.mxu0 (!%p139_p2), %v625_v2  ;;  %610 = vmatpush3.bf16.msra.mxu1 (!%p139_p2), %v625_v2 }
   0xc   : > { %562 = vmatprep.subr.bf16.mxu0 (!%p139_p2), %v646_v1  ;;  %606 = vmatprep.subr.bf16.mxu1 (!%p139_p2), %v646_v1 }
   0xd   : > { %s799_s18 = smov (!%p163_p3, %s162_s18), 35 }
   0xe   : > { %s516_s21 = sshll.u32 %s799_s18, 2  ;;  %s517_s4 = sshll.u32 %s799_s18, 3 }
   0xf   : > { %563 = vmatpush3.bf16.msra.mxu0 %v626_v3  ;;  %611 = vmatpush3.bf16.msra.mxu1 %v626_v3  ;;  %s696_s26 = scalar_lea.vmem %s794_s0, %s516_s21  ;;  %s737_s7 = scalar_lea.vmem %s797_s3, %s517_s4 }
  0x10   : > { %564 = vmatprep.subr.bf16.mxu0 %v646_v1  ;;  %607 = vmatprep.subr.bf16.mxu1 %v646_v1  ;;  %v629_v7 = vld [vmem:[%s696_s26] sm:$0xff]   ;;  %v630_v8 = vld [vmem:[%s696_s26 + $0x28] sm:$0xff]   ;;  %v632_v10 = vld [vmem:[%s696_s26 + $0x30] sm:$0xff]  }
  0x11   : > { %v631_v9 = vld [vmem:[%s696_s26 + $0x8] sm:$0xff]   ;;  %v633_v11 = vld [vmem:[%s696_s26 + $0x10] sm:$0xff]   ;;  %v634_v12 = vld [vmem:[%s696_s26 + $0x38] sm:$0xff]  }
  0x12   : > { %v635_v13 = vld [vmem:[%s696_s26 + $0x18] sm:$0xff]   ;;  %v636_v14 = vld [vmem:[%s696_s26 + $0x40] sm:$0xff]  }
  0x13   : > { %565 = vmatpush3.bf16.msra.mxu0 %v627_v4  ;;  %612 = vmatpush3.bf16.msra.mxu1 %v627_v4  ;;  %v637_v15 = vld [vmem:[%s696_s26 + $0x20] sm:$0xff]  }
  0x14   : > { %566 = vmatprep.subr.bf16.mxu0 %v646_v1  ;;  %608 = vmatprep.subr.bf16.mxu1 %v646_v1 }
  0x17   : > { %567 = vmatpush3.bf16.msra.mxu0 %v311_v6  ;;  %613 = vmatpush3.bf16.msra.mxu1 %v311_v6 }
  0x1a   : > { %569 = vmatmul.mubr.msk.bf16.vlgmr.msra.gmra.mrb[0].mxu0 %vm281_vm2, %v629_v7  ;;  %589 = vmatmul.mubr.msk.bf16.vlgmr.msra.gmra.mrb[0].mxu1 %vm281_vm2, %v630_v8 }
  0x1b   : > { %572 = vmatprep.mubr.msk.bf16.mxu0 %vm647_vm0, %v646_v1  ;;  %592 = vmatprep.mubr.msk.bf16.mxu1 %vm647_vm0, %v646_v1 }
  0x22   : > { %573 = vmatmul.mubr.msk.bf16.gmra.mrb[4].mxu0 %vm281_vm2, %v631_v9  ;;  %593 = vmatmul.mubr.msk.bf16.gmra.mrb[4].mxu1 %vm281_vm2, %v632_v10 }
  0x23   : > { %576 = vmatprep.mubr.msk.bf16.mxu0 %vm647_vm0, %v646_v1  ;;  %596 = vmatprep.mubr.msk.bf16.mxu1 %vm647_vm0, %v646_v1 }
  0x2a   : > { %577 = vmatmul.mubr.msk.bf16.gmra.mrb[8].mxu0 %vm281_vm2, %v633_v11  ;;  %597 = vmatmul.mubr.msk.bf16.gmra.mrb[8].mxu1 %vm281_vm2, %v634_v12 }
  0x2b   : > { %580 = vmatprep.mubr.msk.bf16.mxu0 %vm647_vm0, %v646_v1  ;;  %600 = vmatprep.mubr.msk.bf16.mxu1 %vm647_vm0, %v646_v1 }
  0x32   : > { %581 = vmatmul.mubr.msk.bf16.gmra.mrb[12].mxu0 %vm281_vm2, %v635_v13  ;;  %601 = vmatmul.mubr.msk.bf16.gmra.mrb[12].mxu1 %vm281_vm2, %v636_v14 }
  0x33   : > { %584 = vmatprep.mubr.msk.bf16.mxu0 %vm647_vm0, %v646_v1 }
  0x3a   : > { %585 = vmatmul.mubr.msk.bf16.gmra.mrb[16].mxu0 %vm281_vm2, %v637_v15 }
  0xed   : > { %v347_v17 = vpop.f32.mrb[0].mxu0  ;;  %v387_v18 = vpop.f32.mrb[0].mxu1 }
  0xee   : > { %v348_v19 = vadd.f32 %v729_v16, %v347_v17  ;;  %v570_v20 = vpop.f32.mrb[1].mxu0  ;;  %v388_v21 = vadd.f32 %v729_v16, %v387_v18  ;;  %v590_v22 = vpop.f32.mrb[1].mxu1 }
  0xef   : > { %v350_v23 = vpop.f32.mrb[2].mxu0  ;;  %v390_v24 = vpop.f32.mrb[2].mxu1 }
  0xf0   : > { %v418_v25 = vmax.f32 %v348_v19, 0.0  ;;  %v351_v26 = vadd.f32 %v729_v16, %v350_v23  ;;  %v571_v27 = vpop.f32.mrb[3].mxu0  ;;  %v428_v28 = vmax.f32 %v388_v21, 0.0  ;;  %v391_v29 = vadd.f32 %v729_v16, %v390_v24  ;;  %v591_v30 = vpop.f32.mrb[3].mxu1 }
  0xf2   : > { %437 = vst.msk [vmem:[%s737_s7] sm:$0xff] %vm436_vm3, %v418_v25  ;;  %v419_v31 = vmax.f32 %v351_v26, 0.0  ;;  %447 = vst.msk [vmem:[%s737_s7 + $0x50] sm:$0xff] %vm436_vm3, %v428_v28  ;;  %v429_v32 = vmax.f32 %v391_v29, 0.0 }
  0xf4   : > { %438 = vst.msk [vmem:[%s737_s7 + $0x8] sm:$0xff] %vm436_vm3, %v419_v31  ;;  %448 = vst.msk [vmem:[%s737_s7 + $0x58] sm:$0xff] %vm436_vm3, %v429_v32 }
  0xf5   : > { %v355_v33 = vpop.f32.mrb[4].mxu0  ;;  %v395_v34 = vpop.f32.mrb[4].mxu1 }
  0xf6   : > { %v356_v35 = vadd.f32 %v729_v16, %v355_v33  ;;  %v574_v36 = vpop.f32.mrb[5].mxu0  ;;  %v396_v37 = vadd.f32 %v729_v16, %v395_v34  ;;  %v594_v38 = vpop.f32.mrb[5].mxu1 }
  0xf7   : > { %v358_v39 = vpop.f32.mrb[6].mxu0  ;;  %v398_v40 = vpop.f32.mrb[6].mxu1 }
  0xf8   : > { %v420_v41 = vmax.f32 %v356_v35, 0.0  ;;  %v359_v42 = vadd.f32 %v729_v16, %v358_v39  ;;  %v575_v43 = vpop.f32.mrb[7].mxu0  ;;  %v430_v44 = vmax.f32 %v396_v37, 0.0  ;;  %v399_v45 = vadd.f32 %v729_v16, %v398_v40  ;;  %v595_v46 = vpop.f32.mrb[7].mxu1 }
  0xfa   : > { %439 = vst.msk [vmem:[%s737_s7 + $0x10] sm:$0xff] %vm436_vm3, %v420_v41  ;;  %v421_v47 = vmax.f32 %v359_v42, 0.0  ;;  %449 = vst.msk [vmem:[%s737_s7 + $0x60] sm:$0xff] %vm436_vm3, %v430_v44  ;;  %v431_v48 = vmax.f32 %v399_v45, 0.0 }
  0xfc   : > { %440 = vst.msk [vmem:[%s737_s7 + $0x18] sm:$0xff] %vm436_vm3, %v421_v47  ;;  %450 = vst.msk [vmem:[%s737_s7 + $0x68] sm:$0xff] %vm436_vm3, %v431_v48 }
  0xfd   : > { %v363_v49 = vpop.f32.mrb[8].mxu0  ;;  %v403_v50 = vpop.f32.mrb[8].mxu1 }
  0xfe   : > { %v364_v51 = vadd.f32 %v729_v16, %v363_v49  ;;  %v578_v52 = vpop.f32.mrb[9].mxu0  ;;  %v404_v53 = vadd.f32 %v729_v16, %v403_v50  ;;  %v598_v54 = vpop.f32.mrb[9].mxu1 }
  0xff   : > { %v366_v55 = vpop.f32.mrb[10].mxu0  ;;  %v406_v56 = vpop.f32.mrb[10].mxu1 }
 0x100   : > { %v422_v57 = vmax.f32 %v364_v51, 0.0  ;;  %v367_v58 = vadd.f32 %v729_v16, %v366_v55  ;;  %v579_v59 = vpop.f32.mrb[11].mxu0  ;;  %v432_v60 = vmax.f32 %v404_v53, 0.0  ;;  %v407_v61 = vadd.f32 %v729_v16, %v406_v56  ;;  %v599_v62 = vpop.f32.mrb[11].mxu1 }
 0x102   : > { %441 = vst.msk [vmem:[%s737_s7 + $0x20] sm:$0xff] %vm436_vm3, %v422_v57  ;;  %v423_v63 = vmax.f32 %v367_v58, 0.0  ;;  %451 = vst.msk [vmem:[%s737_s7 + $0x70] sm:$0xff] %vm436_vm3, %v432_v60  ;;  %v433_v0 = vmax.f32 %v407_v61, 0.0 }
 0x104   : > { %442 = vst.msk [vmem:[%s737_s7 + $0x28] sm:$0xff] %vm436_vm3, %v423_v63  ;;  %452 = vst.msk [vmem:[%s737_s7 + $0x78] sm:$0xff] %vm436_vm3, %v433_v0 }
 0x105   : > { %v371_v1 = vpop.f32.mrb[12].mxu0  ;;  %v411_v2 = vpop.f32.mrb[12].mxu1 }
 0x106   : > { %v372_v3 = vadd.f32 %v729_v16, %v371_v1  ;;  %v582_v4 = vpop.f32.mrb[13].mxu0  ;;  %v412_v5 = vadd.f32 %v729_v16, %v411_v2  ;;  %v602_v6 = vpop.f32.mrb[13].mxu1 }
 0x107   : > { %v374_v7 = vpop.f32.mrb[14].mxu0  ;;  %v414_v8 = vpop.f32.mrb[14].mxu1 }
 0x108   : > { %v424_v9 = vmax.f32 %v372_v3, 0.0  ;;  %v375_v10 = vadd.f32 %v729_v16, %v374_v7  ;;  %v583_v11 = vpop.f32.mrb[15].mxu0  ;;  %v434_v12 = vmax.f32 %v412_v5, 0.0  ;;  %v415_v13 = vadd.f32 %v729_v16, %v414_v8  ;;  %v603_v14 = vpop.f32.mrb[15].mxu1 }
 0x10a   : > { %443 = vst.msk [vmem:[%s737_s7 + $0x30] sm:$0xff] %vm436_vm3, %v424_v9  ;;  %v425_v15 = vmax.f32 %v375_v10, 0.0  ;;  %453 = vst.msk [vmem:[%s737_s7 + $0x80] sm:$0xff] %vm436_vm3, %v434_v12  ;;  %v435_v17 = vmax.f32 %v415_v13, 0.0 }
 0x10c   : > { %444 = vst.msk [vmem:[%s737_s7 + $0x38] sm:$0xff] %vm436_vm3, %v425_v15  ;;  %454 = vst.msk [vmem:[%s737_s7 + $0x88] sm:$0xff] %vm436_vm3, %v435_v17 }
 0x10d   : > { %v379_v18 = vpop.f32.mrb[16].mxu0 }
 0x10e   : > { %v380_v19 = vadd.f32 %v729_v16, %v379_v18  ;;  %v586_v20 = vpop.f32.mrb[17].mxu0 }
 0x10f   : > { %v382_v21 = vpop.f32.mrb[18].mxu0 }
 0x110   : > { %v426_v22 = vmax.f32 %v380_v19, 0.0  ;;  %v383_v23 = vadd.f32 %v729_v16, %v382_v21  ;;  %v587_v24 = vpop.f32.mrb[19].mxu0 }
 0x112   : > { %445 = vst.msk [vmem:[%s737_s7 + $0x40] sm:$0xff] %vm436_vm3, %v426_v22  ;;  %v427_v25 = vmax.f32 %v383_v23, 0.0 }
 0x114   : > { %446 = vst.msk [vmem:[%s737_s7 + $0x48] sm:$0xff] %vm436_vm3, %v427_v25 }
 0x115 PF: > { %s13_s12 = sadd.s32 1, %s644_s12  }
 0x116   : > { %p10_p4 = scmp.ge.s32.totalorder %s13_s12, 4  }
 0x118   :  { %12 = sbr.rel (!%p10_p4) target bundleno = 1 (0x1), region = 62 }

// kernel: pretrain_net_pallas.10
= control target key start
LH: loop header
LB: loop body
LE: loop exit
PB: predicated region body
PF: predicated region fallthrough
CT: control target
= control target key end

     0   :  { %v853_v0 = vmov 0   ;;  %vm145_vm0 = vcmask 130048   ;;  %s1265_s1 = inlined_call_operand.vmem [shape: bf16[144,16], index: 1, kind: input, shape index: {}]   ;;  %s1266_s0 = inlined_call_operand.vmem [shape: bf16[4,72,144], index: 0, kind: input, shape index: {}]   ;;  %s1267_s2 = inlined_call_operand.vmem [shape: f32[1,16], index: 2, kind: input, shape index: {}]   ;;  %s1268_s3 = inlined_call_operand.vmem [shape: f32[72,16], index: 3, kind: output, shape index: {}]  }
   0x1   :  { %161 = vmatprep.subr.bf16.mxu0 %v853_v0  ;;  %300 = vmatprep.subr.bf16.mxu1 %v853_v0  ;;  %v788_v1 = vld [vmem:[%s1265_s1] sm:$0xff]   ;;  %v789_v2 = vld [vmem:[%s1265_s1 + $0x8] sm:$0xff]   ;;  %v887_v3 = vld [vmem:[%s1265_s1 + $0x10] sm:$0xff]  }
   0x2   :  { %162 = vmatpush1.bf16.msra.mxu0 %v788_v1  ;;  %301 = vmatpush1.bf16.msra.mxu1 %v788_v1  ;;  %v894_v4 = vld [vmem:[%s1265_s1 + $0x18] sm:$0xff]   ;;  %v799_v5 = vld [vmem:[%s1266_s0 + $0x4] ss:$8 sps:$4 sm:$0xff]   ;;  %v931_v9 = vld [vmem:[%s1265_s1 + $0x30] sm:$0xff]  }
   0x3   :  { %163 = vmatprep.subr.bf16.mxu0 %v853_v0  ;;  %302 = vmatprep.subr.bf16.mxu1 %v853_v0  ;;  %v802_v6 = vld [vmem:[%s1266_s0 + $0x4c] ss:$8 sps:$4 sm:$0xff]   ;;  %v913_v7 = vld [vmem:[%s1265_s1 + $0x20] sm:$0xff]   ;;  %v940_v10 = vld [vmem:[%s1265_s1 + $0x38] sm:$0xff]  }
   0x4   :  { %710 = vmatprep.mubr.msk.bf16.mxu0 %vm145_vm0, %v799_v5  ;;  %734 = vmatprep.mubr.msk.bf16.mxu1 %vm145_vm0, %v802_v6  ;;  %v922_v8 = vld [vmem:[%s1265_s1 + $0x28] sm:$0xff]   ;;  %v949_v11 = vld [vmem:[%s1265_s1 + $0x40] sm:$0xff]   ;;  %v803_v14 = vld [vmem:[%s1266_s0 + $0x14] ss:$8 sps:$4 sm:$0xff]  }
   0x5   :  { %v797_v12 = vld [vmem:[%s1266_s0] ss:$8 sps:$4 sm:$0xff]   ;;  %v805_v15 = vld [vmem:[%s1266_s0 + $0x5c] ss:$8 sps:$4 sm:$0xff]   ;;  %v807_v16 = vld [vmem:[%s1266_s0 + $0x10] ss:$8 sps:$4 sm:$0xff]  }
   0x6   :  { %164 = vmatpush1.bf16.msra.mxu0 %v789_v2  ;;  %303 = vmatpush1.bf16.msra.mxu1 %v789_v2  ;;  %v800_v13 = vld [vmem:[%s1266_s0 + $0x48] ss:$8 sps:$4 sm:$0xff]   ;;  %v808_v17 = vld [vmem:[%s1266_s0 + $0x58] ss:$8 sps:$4 sm:$0xff]   ;;  %v809_v18 = vld [vmem:[%s1266_s0 + $0x24] ss:$8 sps:$4 sm:$0xff]  }
   0x7   :  { %165 = vmatprep.subr.bf16.mxu0 %v853_v0  ;;  %304 = vmatprep.subr.bf16.mxu1 %v853_v0  ;;  %v811_v19 = vld [vmem:[%s1266_s0 + $0x6c] ss:$8 sps:$4 sm:$0xff]   ;;  %v813_v20 = vld [vmem:[%s1266_s0 + $0x20] ss:$8 sps:$4 sm:$0xff]   ;;  %v817_v23 = vld [vmem:[%s1266_s0 + $0x7c] ss:$8 sps:$4 sm:$0xff]  }
   0x8   :  { %v814_v21 = vld [vmem:[%s1266_s0 + $0x68] ss:$8 sps:$4 sm:$0xff]   ;;  %v815_v22 = vld [vmem:[%s1266_s0 + $0x34] ss:$8 sps:$4 sm:$0xff]   ;;  %v41_v24 = vld [vmem:[%s1266_s0 + $0x40] sm:$0xff] }
   0x9   :  { %v723_v25 = vld [vmem:[%s1266_s0 + $0x88] sm:$0xff]  ;;  %v819_v26 = vld [vmem:[%s1266_s0 + $0x30] ss:$8 sps:$4 sm:$0xff]   ;;  %v700_v28 = vcombine.high %v41_v24, %v41_v24  ;;  %v699_v30 = vcombine.low %v41_v24, %v41_v24  ;;  %v827_v32 = vld [vmem:[%s1266_s0 + $0x94] ss:$8 sps:$4 sm:$0xff]  }
   0xa   :  { %166 = vmatpush1.bf16.msra.mxu0 %v887_v3  ;;  %305 = vmatpush1.bf16.msra.mxu1 %v887_v3  ;;  %v820_v27 = vld [vmem:[%s1266_s0 + $0x78] ss:$8 sps:$4 sm:$0xff]   ;;  %v733_v29 = vcombine.high %v723_v25, %v723_v25  ;;  %v732_v31 = vcombine.low %v723_v25, %v723_v25  ;;  %v830_v33 = vld [vmem:[%s1266_s0 + $0xdc] ss:$8 sps:$4 sm:$0xff]   ;;  %v833_v37 = vld [vmem:[%s1266_s0 + $0xec] ss:$8 sps:$4 sm:$0xff]  }
   0xb   :  { %167 = vmatprep.subr.bf16.mxu0 %v853_v0  ;;  %306 = vmatprep.subr.bf16.mxu1 %v853_v0  ;;  %v825_v34 = vld [vmem:[%s1266_s0 + $0x90] ss:$8 sps:$4 sm:$0xff]   ;;  %v831_v36 = vld [vmem:[%s1266_s0 + $0xa4] ss:$8 sps:$4 sm:$0xff]   ;;  %v835_v38 = vld [vmem:[%s1266_s0 + $0xa0] ss:$8 sps:$4 sm:$0xff]  }
   0xc   :  { %v828_v35 = vld [vmem:[%s1266_s0 + $0xd8] ss:$8 sps:$4 sm:$0xff]   ;;  %v836_v39 = vld [vmem:[%s1266_s0 + $0xe8] ss:$8 sps:$4 sm:$0xff]   ;;  %v837_v40 = vld [vmem:[%s1266_s0 + $0xb4] ss:$8 sps:$4 sm:$0xff]  }
   0xd   :  { %v839_v41 = vld [vmem:[%s1266_s0 + $0xfc] ss:$8 sps:$4 sm:$0xff]   ;;  %v841_v42 = vld [vmem:[%s1266_s0 + $0xb0] ss:$8 sps:$4 sm:$0xff]   ;;  %v845_v45 = vld [vmem:[%s1266_s0 + $0x10c] ss:$8 sps:$4 sm:$0xff]  }
   0xe   :  { %168 = vmatpush1.bf16.msra.mxu0 %v894_v4  ;;  %307 = vmatpush1.bf16.msra.mxu1 %v894_v4  ;;  %v842_v43 = vld [vmem:[%s1266_s0 + $0xf8] ss:$8 sps:$4 sm:$0xff]   ;;  %v843_v44 = vld [vmem:[%s1266_s0 + $0xc4] ss:$8 sps:$4 sm:$0xff]   ;;  %v747_v46 = vld [vmem:[%s1266_s0 + $0xd0] sm:$0xff] }
   0xf   :  { %169 = vmatprep.subr.bf16.mxu0 %v853_v0  ;;  %308 = vmatprep.subr.bf16.mxu1 %v853_v0  ;;  %v771_v47 = vld [vmem:[%s1266_s0 + $0x118] sm:$0xff]  ;;  %v847_v48 = vld [vmem:[%s1266_s0 + $0xc0] ss:$8 sps:$4 sm:$0xff]   ;;  %v757_v50 = vcombine.high %v747_v46, %v747_v46  ;;  %v756_v52 = vcombine.low %v747_v46, %v747_v46 }
  0x10   :  { %v848_v49 = vld [vmem:[%s1266_s0 + $0x108] ss:$8 sps:$4 sm:$0xff]   ;;  %v781_v51 = vcombine.high %v771_v47, %v771_v47  ;;  %v780_v53 = vcombine.low %v771_v47, %v771_v47  ;;  %v1110_v54 = vld [vmem:[%s1267_s2] ss:$0 sm:$0xff] }
  0x12   :  { %170 = vmatpush1.bf16.msra.mxu0 %v913_v7  ;;  %309 = vmatpush1.bf16.msra.mxu1 %v913_v7 }
  0x13   :  { %171 = vmatprep.subr.bf16.mxu0 %v853_v0  ;;  %310 = vmatprep.subr.bf16.mxu1 %v853_v0 }
  0x16   :  { %172 = vmatpush1.bf16.msra.mxu0 %v922_v8  ;;  %311 = vmatpush1.bf16.msra.mxu1 %v922_v8 }
  0x17   :  { %173 = vmatprep.subr.bf16.mxu0 %v853_v0  ;;  %312 = vmatprep.subr.bf16.mxu1 %v853_v0 }
  0x1a   :  { %174 = vmatpush1.bf16.msra.mxu0 %v931_v9  ;;  %313 = vmatpush1.bf16.msra.mxu1 %v931_v9 }
  0x1b   :  { %175 = vmatprep.subr.bf16.mxu0 %v853_v0  ;;  %314 = vmatprep.subr.bf16.mxu1 %v853_v0 }
  0x1e   :  { %176 = vmatpush1.bf16.msra.mxu0 %v940_v10  ;;  %315 = vmatpush1.bf16.msra.mxu1 %v940_v10 }
  0x1f   :  { %177 = vmatprep.subr.bf16.mxu0 %v853_v0  ;;  %316 = vmatprep.subr.bf16.mxu1 %v853_v0 }
  0x22   :  { %178 = vmatpush1.bf16.msra.mxu0 %v949_v11  ;;  %317 = vmatpush1.bf16.msra.mxu1 %v949_v11 }
  0x23   :  { %448 = vmatprep.subr.bf16.mxu0 %v853_v0  ;;  %596 = vmatprep.subr.bf16.mxu1 %v853_v0 }
  0x25   :  { %194 = vmatmul.mubr.bf16.vlgmr.msra.gmra.mrb[0].mxu0 %v797_v12  ;;  %333 = vmatmul.mubr.bf16.vlgmr.msra.gmra.mrb[0].mxu1 %v800_v13 }
  0x26   :  { %449 = vmatpush1.bf16.msra.mxu0 %v788_v1  ;;  %597 = vmatpush1.bf16.msra.mxu1 %v788_v1 }
  0x27   :  { %450 = vmatprep.subr.bf16.mxu0 %v853_v0  ;;  %711 = vmatprep.mubr.msk.bf16.mxu0 %vm145_vm0, %v803_v14 }
  0x28   :  { %735 = vmatprep.mubr.msk.bf16.mxu1 %vm145_vm0, %v805_v15  ;;  %598 = vmatprep.subr.bf16.mxu1 %v853_v0 }
  0x2a   :  { %451 = vmatpush1.bf16.msra.mxu0 %v789_v2  ;;  %599 = vmatpush1.bf16.msra.mxu1 %v789_v2 }
  0x2b   :  { %452 = vmatprep.subr.bf16.mxu0 %v853_v0  ;;  %600 = vmatprep.subr.bf16.mxu1 %v853_v0 }
  0x2d   :  { %202 = vmatmul.mubr.bf16.gmra.mrb[4].mxu0 %v807_v16  ;;  %341 = vmatmul.mubr.bf16.gmra.mrb[4].mxu1 %v808_v17 }
  0x2e   :  { %453 = vmatpush1.bf16.msra.mxu0 %v887_v3  ;;  %601 = vmatpush1.bf16.msra.mxu1 %v887_v3 }
  0x2f   :  { %454 = vmatprep.subr.bf16.mxu0 %v853_v0  ;;  %712 = vmatprep.mubr.msk.bf16.mxu0 %vm145_vm0, %v809_v18 }
  0x30   :  { %736 = vmatprep.mubr.msk.bf16.mxu1 %vm145_vm0, %v811_v19  ;;  %602 = vmatprep.subr.bf16.mxu1 %v853_v0 }
  0x32   :  { %455 = vmatpush1.bf16.msra.mxu0 %v894_v4  ;;  %603 = vmatpush1.bf16.msra.mxu1 %v894_v4 }
  0x33   :  { %456 = vmatprep.subr.bf16.mxu0 %v853_v0  ;;  %604 = vmatprep.subr.bf16.mxu1 %v853_v0 }
  0x35   :  { %210 = vmatmul.mubr.bf16.gmra.mrb[8].mxu0 %v813_v20  ;;  %349 = vmatmul.mubr.bf16.gmra.mrb[8].mxu1 %v814_v21 }
  0x36   :  { %457 = vmatpush1.bf16.msra.mxu0 %v913_v7  ;;  %605 = vmatpush1.bf16.msra.mxu1 %v913_v7 }
  0x37   :  { %713 = vmatprep.mubr.msk.bf16.mxu0 %vm145_vm0, %v815_v22  ;;  %737 = vmatprep.mubr.msk.bf16.mxu1 %vm145_vm0, %v817_v23 }
  0x38   :  { %458 = vmatprep.subr.bf16.mxu0 %v853_v0  ;;  %606 = vmatprep.subr.bf16.mxu1 %v853_v0 }
  0x3a   :  { %459 = vmatpush1.bf16.msra.mxu0 %v922_v8  ;;  %607 = vmatpush1.bf16.msra.mxu1 %v922_v8 }
  0x3b   :  { %460 = vmatprep.subr.bf16.mxu0 %v853_v0  ;;  %608 = vmatprep.subr.bf16.mxu1 %v853_v0 }
  0x3d   :  { %218 = vmatmul.mubr.bf16.gmra.mrb[12].mxu0 %v819_v26  ;;  %357 = vmatmul.mubr.bf16.gmra.mrb[12].mxu1 %v820_v27 }
  0x3e   :  { %461 = vmatpush1.bf16.msra.mxu0 %v931_v9  ;;  %609 = vmatpush1.bf16.msra.mxu1 %v931_v9 }
  0x3f   :  { %714 = vmatprep.mubr.msk.bf16.mxu0 %vm145_vm0, %v700_v28  ;;  %738 = vmatprep.mubr.msk.bf16.mxu1 %vm145_vm0, %v733_v29 }
  0x40   :  { %462 = vmatprep.subr.bf16.mxu0 %v853_v0  ;;  %610 = vmatprep.subr.bf16.mxu1 %v853_v0 }
  0x42   :  { %463 = vmatpush1.bf16.msra.mxu0 %v940_v10  ;;  %611 = vmatpush1.bf16.msra.mxu1 %v940_v10 }
  0x43   :  { %464 = vmatprep.subr.bf16.mxu0 %v853_v0  ;;  %612 = vmatprep.subr.bf16.mxu1 %v853_v0 }
  0x45   :  { %226 = vmatmul.mubr.bf16.gmra.mrb[16].mxu0 %v699_v30  ;;  %365 = vmatmul.mubr.bf16.gmra.mrb[16].mxu1 %v732_v31 }
  0x46   :  { %465 = vmatpush1.bf16.msra.mxu0 %v949_v11  ;;  %613 = vmatpush1.bf16.msra.mxu1 %v949_v11 }
  0x47   :  { %758 = vmatprep.mubr.msk.bf16.mxu0 %vm145_vm0, %v827_v32  ;;  %782 = vmatprep.mubr.msk.bf16.mxu1 %vm145_vm0, %v830_v33 }
  0x4d   :  { %481 = vmatmul.mubr.bf16.vlgmr.msra.gmra.mrb[20].mxu0 %v825_v34  ;;  %629 = vmatmul.mubr.bf16.vlgmr.msra.gmra.mrb[20].mxu1 %v828_v35 }
  0x4e   :  { %759 = vmatprep.mubr.msk.bf16.mxu0 %vm145_vm0, %v831_v36  ;;  %783 = vmatprep.mubr.msk.bf16.mxu1 %vm145_vm0, %v833_v37 }
  0x55   :  { %489 = vmatmul.mubr.bf16.gmra.mrb[24].mxu0 %v835_v38  ;;  %637 = vmatmul.mubr.bf16.gmra.mrb[24].mxu1 %v836_v39 }
  0x56   :  { %760 = vmatprep.mubr.msk.bf16.mxu0 %vm145_vm0, %v837_v40  ;;  %784 = vmatprep.mubr.msk.bf16.mxu1 %vm145_vm0, %v839_v41 }
  0x5d   :  { %497 = vmatmul.mubr.bf16.gmra.mrb[28].mxu0 %v841_v42  ;;  %645 = vmatmul.mubr.bf16.gmra.mrb[28].mxu1 %v842_v43 }
  0x5e   :  { %761 = vmatprep.mubr.msk.bf16.mxu0 %vm145_vm0, %v843_v44  ;;  %785 = vmatprep.mubr.msk.bf16.mxu1 %vm145_vm0, %v845_v45 }
  0x65   :  { %505 = vmatmul.mubr.bf16.gmra.mrb[32].mxu0 %v847_v48  ;;  %653 = vmatmul.mubr.bf16.gmra.mrb[32].mxu1 %v848_v49 }
  0x66   :  { %762 = vmatprep.mubr.msk.bf16.mxu0 %vm145_vm0, %v757_v50  ;;  %786 = vmatprep.mubr.msk.bf16.mxu1 %vm145_vm0, %v781_v51 }
  0x6d   :  { %513 = vmatmul.mubr.bf16.gmra.mrb[36].mxu0 %v756_v52  ;;  %661 = vmatmul.mubr.bf16.gmra.mrb[36].mxu1 %v780_v53 }
  0xf8   :  { %v195_v55 = vpop.f32.mrb[0].mxu0  ;;  %v334_v56 = vpop.f32.mrb[0].mxu1 }
  0xf9   :  { %v1113_v57 = vadd.f32 %v1110_v54, %v195_v55  ;;  %v1116_v58 = vadd.f32 %v1110_v54, %v334_v56  ;;  %v197_v59 = vpop.f32.mrb[1].mxu0  ;;  %v336_v60 = vpop.f32.mrb[1].mxu1 }
  0xfa   :  { %v198_v61 = vpop.f32.mrb[2].mxu0  ;;  %v337_v62 = vpop.f32.mrb[2].mxu1 }
  0xfb   :  { %v372_v63 = vmax.f32 %v1113_v57, %v1116_v58  ;;  %v1121_v0 = vadd.f32 %v1110_v54, %v198_v61  ;;  %v1124_v1 = vadd.f32 %v1110_v54, %v337_v62  ;;  %v200_v2 = vpop.f32.mrb[3].mxu0  ;;  %v339_v3 = vpop.f32.mrb[3].mxu1 }
  0xfd   :  { %v373_v4 = vmax.f32 %v1121_v0, %v1124_v1 }
 0x100   :  { %v203_v5 = vpop.f32.mrb[4].mxu0  ;;  %v342_v6 = vpop.f32.mrb[4].mxu1 }
 0x101   :  { %v1129_v7 = vadd.f32 %v1110_v54, %v203_v5  ;;  %v1132_v8 = vadd.f32 %v1110_v54, %v342_v6  ;;  %v205_v9 = vpop.f32.mrb[5].mxu0  ;;  %v344_v10 = vpop.f32.mrb[5].mxu1 }
 0x102   :  { %v206_v11 = vpop.f32.mrb[6].mxu0  ;;  %v345_v12 = vpop.f32.mrb[6].mxu1 }
 0x103   :  { %v374_v13 = vmax.f32 %v1129_v7, %v1132_v8  ;;  %v1137_v14 = vadd.f32 %v1110_v54, %v206_v11  ;;  %v1140_v15 = vadd.f32 %v1110_v54, %v345_v12  ;;  %v208_v16 = vpop.f32.mrb[7].mxu0  ;;  %v347_v17 = vpop.f32.mrb[7].mxu1 }
 0x105   :  { %v375_v18 = vmax.f32 %v1137_v14, %v1140_v15 }
 0x108   :  { %v211_v19 = vpop.f32.mrb[8].mxu0  ;;  %v350_v20 = vpop.f32.mrb[8].mxu1 }
 0x109   :  { %v1145_v21 = vadd.f32 %v1110_v54, %v211_v19  ;;  %v1148_v22 = vadd.f32 %v1110_v54, %v350_v20  ;;  %v213_v23 = vpop.f32.mrb[9].mxu0  ;;  %v352_v24 = vpop.f32.mrb[9].mxu1 }
 0x10a   :  { %v214_v25 = vpop.f32.mrb[10].mxu0  ;;  %v353_v26 = vpop.f32.mrb[10].mxu1 }
 0x10b   :  { %v376_v27 = vmax.f32 %v1145_v21, %v1148_v22  ;;  %v1153_v28 = vadd.f32 %v1110_v54, %v214_v25  ;;  %v1156_v29 = vadd.f32 %v1110_v54, %v353_v26  ;;  %v216_v30 = vpop.f32.mrb[11].mxu0  ;;  %v355_v31 = vpop.f32.mrb[11].mxu1 }
 0x10d   :  { %v377_v32 = vmax.f32 %v1153_v28, %v1156_v29 }
 0x110   :  { %v219_v33 = vpop.f32.mrb[12].mxu0  ;;  %v358_v34 = vpop.f32.mrb[12].mxu1 }
 0x111   :  { %v1161_v35 = vadd.f32 %v1110_v54, %v219_v33  ;;  %v1164_v36 = vadd.f32 %v1110_v54, %v358_v34  ;;  %v221_v37 = vpop.f32.mrb[13].mxu0  ;;  %v360_v38 = vpop.f32.mrb[13].mxu1 }
 0x112   :  { %v222_v39 = vpop.f32.mrb[14].mxu0  ;;  %v361_v40 = vpop.f32.mrb[14].mxu1 }
 0x113   :  { %v378_v41 = vmax.f32 %v1161_v35, %v1164_v36  ;;  %v1169_v42 = vadd.f32 %v1110_v54, %v222_v39  ;;  %v1172_v43 = vadd.f32 %v1110_v54, %v361_v40  ;;  %v224_v44 = vpop.f32.mrb[15].mxu0  ;;  %v363_v45 = vpop.f32.mrb[15].mxu1 }
 0x115   :  { %v379_v46 = vmax.f32 %v1169_v42, %v1172_v43 }
 0x118   :  { %v227_v47 = vpop.f32.mrb[16].mxu0  ;;  %v366_v48 = vpop.f32.mrb[16].mxu1 }
 0x119   :  { %v1177_v49 = vadd.f32 %v1110_v54, %v227_v47  ;;  %v1180_v50 = vadd.f32 %v1110_v54, %v366_v48  ;;  %v229_v51 = vpop.f32.mrb[17].mxu0  ;;  %v368_v52 = vpop.f32.mrb[17].mxu1 }
 0x11a   :  { %v230_v53 = vpop.f32.mrb[18].mxu0  ;;  %v369_v55 = vpop.f32.mrb[18].mxu1 }
 0x11b   :  { %v380_v56 = vmax.f32 %v1177_v49, %v1180_v50  ;;  %v231_v59 = vpop.f32.mrb[19].mxu0  ;;  %v370_v60 = vpop.f32.mrb[19].mxu1 }
 0x120   :  { %v482_v61 = vpop.f32.mrb[20].mxu0  ;;  %v630_v62 = vpop.f32.mrb[20].mxu1 }
 0x121   :  { %v483_v2 = vadd.f32 %v1110_v54, %v482_v61  ;;  %v631_v3 = vadd.f32 %v1110_v54, %v630_v62  ;;  %v484_v5 = vpop.f32.mrb[21].mxu0  ;;  %v632_v6 = vpop.f32.mrb[21].mxu1 }
 0x122   :  { %v485_v9 = vpop.f32.mrb[22].mxu0  ;;  %v633_v10 = vpop.f32.mrb[22].mxu1 }
 0x123   :  { %v520_v11 = vmax.f32 %v372_v63, %v483_v2  ;;  %v486_v12 = vadd.f32 %v1110_v54, %v485_v9  ;;  %v487_v16 = vpop.f32.mrb[23].mxu0  ;;  %v635_v17 = vpop.f32.mrb[23].mxu1  ;;  %v634_v23 = vadd.f32 %v1110_v54, %v633_v10 }
 0x125   :  { %v668_v19 = vmax.f32 %v520_v11, %v631_v3  ;;  %v521_v20 = vmax.f32 %v373_v4, %v486_v12 }
 0x127   :  { %677 = vst.msk [vmem:[%s1268_s3] sm:$0xff] %vm145_vm0, %v668_v19  ;;  %v669_v24 = vmax.f32 %v521_v20, %v634_v23 }
 0x128   :  { %v490_v25 = vpop.f32.mrb[24].mxu0  ;;  %v638_v57 = vpop.f32.mrb[24].mxu1 }
 0x129   :  { %678 = vst.msk [vmem:[%s1268_s3 + $0x8] sm:$0xff] %vm145_vm0, %v669_v24  ;;  %v491_v58 = vadd.f32 %v1110_v54, %v490_v25  ;;  %v639_v63 = vadd.f32 %v1110_v54, %v638_v57  ;;  %v492_v0 = vpop.f32.mrb[25].mxu0  ;;  %v640_v1 = vpop.f32.mrb[25].mxu1 }
 0x12a   :  { %v493_v4 = vpop.f32.mrb[26].mxu0  ;;  %v641_v26 = vpop.f32.mrb[26].mxu1 }
 0x12b   :  { %v522_v30 = vmax.f32 %v374_v13, %v491_v58  ;;  %v494_v31 = vadd.f32 %v1110_v54, %v493_v4  ;;  %v495_v33 = vpop.f32.mrb[27].mxu0  ;;  %v643_v34 = vpop.f32.mrb[27].mxu1  ;;  %v642_v39 = vadd.f32 %v1110_v54, %v641_v26 }
 0x12d   :  { %v670_v37 = vmax.f32 %v522_v30, %v639_v63  ;;  %v523_v38 = vmax.f32 %v375_v18, %v494_v31 }
 0x12f   :  { %679 = vst.msk [vmem:[%s1268_s3 + $0x10] sm:$0xff] %vm145_vm0, %v670_v37  ;;  %v671_v40 = vmax.f32 %v523_v38, %v642_v39 }
 0x130   :  { %v498_v44 = vpop.f32.mrb[28].mxu0  ;;  %v646_v7 = vpop.f32.mrb[28].mxu1 }
 0x131   :  { %680 = vst.msk [vmem:[%s1268_s3 + $0x18] sm:$0xff] %vm145_vm0, %v671_v40  ;;  %v499_v8 = vadd.f32 %v1110_v54, %v498_v44  ;;  %v647_v13 = vadd.f32 %v1110_v54, %v646_v7  ;;  %v500_v14 = vpop.f32.mrb[29].mxu0  ;;  %v648_v15 = vpop.f32.mrb[29].mxu1 }
 0x132   :  { %v501_v18 = vpop.f32.mrb[30].mxu0  ;;  %v649_v45 = vpop.f32.mrb[30].mxu1 }
 0x133   :  { %v524_v47 = vmax.f32 %v376_v27, %v499_v8  ;;  %v502_v48 = vadd.f32 %v1110_v54, %v501_v18  ;;  %v503_v51 = vpop.f32.mrb[31].mxu0  ;;  %v651_v52 = vpop.f32.mrb[31].mxu1  ;;  %v650_v59 = vadd.f32 %v1110_v54, %v649_v45 }
 0x135   :  { %v672_v53 = vmax.f32 %v524_v47, %v647_v13  ;;  %v525_v55 = vmax.f32 %v377_v32, %v502_v48 }
 0x137   :  { %681 = vst.msk [vmem:[%s1268_s3 + $0x20] sm:$0xff] %vm145_vm0, %v672_v53  ;;  %v673_v60 = vmax.f32 %v525_v55, %v650_v59 }
 0x138   :  { %v506_v61 = vpop.f32.mrb[32].mxu0  ;;  %v654_v21 = vpop.f32.mrb[32].mxu1 }
 0x139   :  { %682 = vst.msk [vmem:[%s1268_s3 + $0x28] sm:$0xff] %vm145_vm0, %v673_v60  ;;  %v507_v22 = vadd.f32 %v1110_v54, %v506_v61  ;;  %v655_v27 = vadd.f32 %v1110_v54, %v654_v21  ;;  %v508_v28 = vpop.f32.mrb[33].mxu0  ;;  %v656_v29 = vpop.f32.mrb[33].mxu1 }
 0x13a   :  { %v509_v32 = vpop.f32.mrb[34].mxu0  ;;  %v657_v62 = vpop.f32.mrb[34].mxu1 }
 0x13b   :  { %v526_v2 = vmax.f32 %v378_v41, %v507_v22  ;;  %v510_v3 = vadd.f32 %v1110_v54, %v509_v32  ;;  %v511_v5 = vpop.f32.mrb[35].mxu0  ;;  %v659_v6 = vpop.f32.mrb[35].mxu1  ;;  %v658_v11 = vadd.f32 %v1110_v54, %v657_v62 }
 0x13d   :  { %v674_v9 = vmax.f32 %v526_v2, %v655_v27  ;;  %v527_v10 = vmax.f32 %v379_v46, %v510_v3 }
 0x13f   :  { %683 = vst.msk [vmem:[%s1268_s3 + $0x30] sm:$0xff] %vm145_vm0, %v674_v9  ;;  %v675_v12 = vmax.f32 %v527_v10, %v658_v11 }
 0x140   :  { %v514_v16 = vpop.f32.mrb[36].mxu0  ;;  %v662_v35 = vpop.f32.mrb[36].mxu1 }
 0x141   :  { %684 = vst.msk [vmem:[%s1268_s3 + $0x38] sm:$0xff] %vm145_vm0, %v675_v12  ;;  %v515_v36 = vadd.f32 %v1110_v54, %v514_v16  ;;  %v663_v41 = vadd.f32 %v1110_v54, %v662_v35  ;;  %v516_v42 = vpop.f32.mrb[37].mxu0  ;;  %v664_v43 = vpop.f32.mrb[37].mxu1 }
 0x142   :  { %v517_v46 = vpop.f32.mrb[38].mxu0  ;;  %v665_v17 = vpop.f32.mrb[38].mxu1 }
 0x143   :  { %v528_v19 = vmax.f32 %v380_v56, %v515_v36  ;;  %v518_v20 = vpop.f32.mrb[39].mxu0  ;;  %v666_v23 = vpop.f32.mrb[39].mxu1 }
 0x145   :  { %v676_v24 = vmax.f32 %v528_v19, %v663_v41 }
 0x147   :  { %685 = vst.msk [vmem:[%s1268_s3 + $0x40] sm:$0xff] %vm145_vm0, %v676_v24 }

// kernel: pretrain_net_pallas.11
= control target key start
LH: loop header
LB: loop body
LE: loop exit
PB: predicated region body
PF: predicated region fallthrough
CT: control target
= control target key end

     0   :  { %v436_v0 = vmov 0   ;;  %vm141_vm0 = vcmask 130048   ;;  %vm229_vm1 = vcmask 261120   ;;  %s629_s1 = inlined_call_operand.vmem [shape: bf16[144,32], index: 1, kind: input, shape index: {}]   ;;  %s630_s0 = inlined_call_operand.vmem [shape: bf16[1,72,144], index: 0, kind: input, shape index: {}]   ;;  %s631_s2 = inlined_call_operand.vmem [shape: f32[1,32], index: 2, kind: input, shape index: {}]   ;;  %s632_s3 = inlined_call_operand.vmem [shape: f32[1,32], index: 3, kind: input, shape index: {}]   ;;  %s633_s4 = inlined_call_operand.vmem [shape: f32[72,32], index: 4, kind: output, shape index: {}]  }
   0x1   :  { %157 = vmatprep.subr.bf16.mxu0 %v436_v0  ;;  %v411_v1 = vld [vmem:[%s629_s1] sm:$0xff]   ;;  %392 = vmatprep.subr.bf16.mxu1 %v436_v0  ;;  %v412_v2 = vld [vmem:[%s629_s1 + $0x8] sm:$0xff]   ;;  %v413_v3 = vld [vmem:[%s629_s1 + $0x10] sm:$0xff]  }
   0x2   :  { %158 = vmatpush1.bf16.msra.mxu0 %v411_v1  ;;  %401 = vmatpush1.bf16.msra.mxu1 %v411_v1  ;;  %v414_v4 = vld [vmem:[%s629_s1 + $0x18] sm:$0xff]   ;;  %v422_v5 = vld [vmem:[%s630_s0 + $0x4] ss:$8 sps:$4 sm:$0xff]   ;;  %v417_v9 = vld [vmem:[%s629_s1 + $0x30] sm:$0xff]  }
   0x3   :  { %159 = vmatprep.subr.bf16.mxu0 %v436_v0  ;;  %393 = vmatprep.subr.bf16.mxu1 %v436_v0  ;;  %v428_v6 = vld [vmem:[%s630_s0 + $0x34] ss:$8 sps:$4 sm:$0xff]   ;;  %v415_v7 = vld [vmem:[%s629_s1 + $0x20] sm:$0xff]   ;;  %v416_v8 = vld [vmem:[%s629_s1 + $0x28] sm:$0xff]  }
   0x4   :  { %385 = vmatprep.mubr.msk.bf16.mxu0 %vm141_vm0, %v422_v5  ;;  %388 = vmatprep.mubr.msk.bf16.mxu1 %vm141_vm0, %v428_v6  ;;  %v418_v10 = vld [vmem:[%s629_s1 + $0x38] sm:$0xff]   ;;  %v419_v11 = vld [vmem:[%s629_s1 + $0x40] sm:$0xff]  }
   0x5   :  { %v44_v12 = vld [vmem:[%s630_s0 + $0x40] sm:$0xff]  ;;  %v426_v14 = vld [vmem:[%s630_s0 + $0x30] ss:$8 sps:$4 sm:$0xff]   ;;  %v423_v15 = vld [vmem:[%s630_s0 + $0x14] ss:$8 sps:$4 sm:$0xff]  }
   0x6   :  { %160 = vmatpush1.bf16.msra.mxu0 %v412_v2  ;;  %402 = vmatpush1.bf16.msra.mxu1 %v412_v2  ;;  %v420_v13 = vld [vmem:[%s630_s0] ss:$8 sps:$4 sm:$0xff]   ;;  %v375_v16 = vcombine.high %v44_v12, %v44_v12  ;;  %v425_v17 = vld [vmem:[%s630_s0 + $0x10] ss:$8 sps:$4 sm:$0xff]   ;;  %v374_v18 = vcombine.low %v44_v12, %v44_v12  ;;  %v429_v19 = vld [vmem:[%s630_s0 + $0x24] ss:$8 sps:$4 sm:$0xff]  }
   0x7   :  { %161 = vmatprep.subr.bf16.mxu0 %v436_v0  ;;  %394 = vmatprep.subr.bf16.mxu1 %v436_v0  ;;  %v431_v20 = vld [vmem:[%s630_s0 + $0x20] ss:$8 sps:$4 sm:$0xff]  }
   0xa   :  { %162 = vmatpush1.bf16.msra.mxu0 %v413_v3  ;;  %403 = vmatpush1.bf16.msra.mxu1 %v413_v3 }
   0xb   :  { %163 = vmatprep.subr.bf16.mxu0 %v436_v0  ;;  %395 = vmatprep.subr.bf16.mxu1 %v436_v0 }
   0xe   :  { %164 = vmatpush1.bf16.msra.mxu0 %v414_v4  ;;  %404 = vmatpush1.bf16.msra.mxu1 %v414_v4 }
   0xf   :  { %165 = vmatprep.subr.bf16.mxu0 %v436_v0  ;;  %396 = vmatprep.subr.bf16.mxu1 %v436_v0 }
  0x12   :  { %166 = vmatpush1.bf16.msra.mxu0 %v415_v7  ;;  %405 = vmatpush1.bf16.msra.mxu1 %v415_v7 }
  0x13   :  { %167 = vmatprep.subr.bf16.mxu0 %v436_v0  ;;  %397 = vmatprep.subr.bf16.mxu1 %v436_v0 }
  0x16   :  { %168 = vmatpush1.bf16.msra.mxu0 %v416_v8  ;;  %406 = vmatpush1.bf16.msra.mxu1 %v416_v8 }
  0x17   :  { %169 = vmatprep.subr.bf16.mxu0 %v436_v0  ;;  %398 = vmatprep.subr.bf16.mxu1 %v436_v0 }
  0x1a   :  { %170 = vmatpush1.bf16.msra.mxu0 %v417_v9  ;;  %407 = vmatpush1.bf16.msra.mxu1 %v417_v9 }
  0x1b   :  { %171 = vmatprep.subr.bf16.mxu0 %v436_v0  ;;  %399 = vmatprep.subr.bf16.mxu1 %v436_v0 }
  0x1e   :  { %172 = vmatpush1.bf16.msra.mxu0 %v418_v10  ;;  %408 = vmatpush1.bf16.msra.mxu1 %v418_v10 }
  0x1f   :  { %173 = vmatprep.subr.bf16.mxu0 %v436_v0  ;;  %400 = vmatprep.subr.bf16.mxu1 %v436_v0 }
  0x22   :  { %174 = vmatpush1.bf16.msra.mxu0 %v419_v11  ;;  %409 = vmatpush1.bf16.msra.mxu1 %v419_v11 }
  0x25   :  { %190 = vmatmul.mubr.bf16.vlgmr.msra.gmra.mrb[0].mxu0 %v420_v13  ;;  %214 = vmatmul.mubr.bf16.vlgmr.msra.gmra.mrb[0].mxu1 %v426_v14 }
  0x26   :  { %386 = vmatprep.mubr.msk.bf16.mxu0 %vm141_vm0, %v423_v15  ;;  %389 = vmatprep.mubr.msk.bf16.mxu1 %vm141_vm0, %v375_v16 }
  0x2d   :  { %198 = vmatmul.mubr.bf16.gmra.mrb[4].mxu0 %v425_v17  ;;  %222 = vmatmul.mubr.bf16.gmra.mrb[4].mxu1 %v374_v18 }
  0x2e   :  { %387 = vmatprep.mubr.msk.bf16.mxu0 %vm141_vm0, %v429_v19 }
  0x35   :  { %206 = vmatmul.mubr.bf16.gmra.mrb[8].mxu0 %v431_v20 }
  0xf8   :  { %v521_v21 = vpop.f32.mrb[0].mxu0  ;;  %v523_v22 = vpop.f32.mrb[0].mxu1 }
  0xf9   :  { %v256_v23 = vmul.f32 %v521_v21, %v521_v21  ;;  %v193_v24 = vpop.f32.mrb[1].mxu0  ;;  %v217_v25 = vpop.f32.mrb[1].mxu1  ;;  %v230_v28 = vsel %vm229_vm1, %v521_v21, 0.0  ;;  %v262_v61 = vmul.f32 %v523_v22, %v523_v22  ;;  %v241_v4 = vsel %vm229_vm1, %v523_v22, 0.0 }
  0xfa   :  { %v527_v26 = vpop.f32.mrb[2].mxu0  ;;  %v529_v27 = vpop.f32.mrb[2].mxu1 }
  0xfb   :  { %v231_v29 = vsel %vm229_vm1, %v527_v26, 0.0  ;;  %v257_v30 = vmul.f32 %v527_v26, %v527_v26  ;;  %v196_v31 = vpop.f32.mrb[3].mxu0  ;;  %v220_v32 = vpop.f32.mrb[3].mxu1  ;;  %v265_v34 = vsel %vm229_vm1, %v256_v23, 0.0  ;;  %v263_v5 = vmul.f32 %v529_v27, %v529_v27 }
  0xfc   :  { %v232_v33 = vadd.f32 %v231_v29, %v230_v28  ;;  %v276_v10 = vsel %vm229_vm1, %v262_v61, 0.0  ;;  %v243_v11 = vsel %vm229_vm1, %v529_v27, 0.0 }
  0xfd   :  { %v266_v35 = vsel %vm229_vm1, %v257_v30, 0.0  ;;  %v278_v15 = vsel %vm229_vm1, %v263_v5, 0.0 }
  0xfe   :  { %v267_v36 = vadd.f32 %v266_v35, %v265_v34 }
 0x100   :  { %v539_v37 = vpop.f32.mrb[4].mxu0  ;;  %v541_v38 = vpop.f32.mrb[4].mxu1 }
 0x101   :  { %v233_v39 = vsel %vm229_vm1, %v539_v37, 0.0  ;;  %v258_v40 = vmul.f32 %v539_v37, %v539_v37  ;;  %v201_v41 = vpop.f32.mrb[5].mxu0  ;;  %v225_v42 = vpop.f32.mrb[5].mxu1  ;;  %v264_v7 = vmul.f32 %v541_v38, %v541_v38  ;;  %v245_v12 = vsel %vm229_vm1, %v541_v38, 0.0 }
 0x102   :  { %v234_v43 = vadd.f32 %v233_v39, %v232_v33  ;;  %v547_v44 = vpop.f32.mrb[6].mxu0  ;;  %v226_v45 = vpop.f32.mrb[6].mxu1 }
 0x103   :  { %v268_v46 = vsel %vm229_vm1, %v258_v40, 0.0  ;;  %v235_v47 = vsel %vm229_vm1, %v547_v44, 0.0  ;;  %v259_v48 = vmul.f32 %v547_v44, %v547_v44  ;;  %v204_v49 = vpop.f32.mrb[7].mxu0  ;;  %v227_v50 = vpop.f32.mrb[7].mxu1  ;;  %v280_v16 = vsel %vm229_vm1, %v264_v7, 0.0 }
 0x104   :  { %v269_v51 = vadd.f32 %v268_v46, %v267_v36  ;;  %v236_v52 = vadd.f32 %v235_v47, %v234_v43 }
 0x105   :  { %v270_v53 = vsel %vm229_vm1, %v259_v48, 0.0 }
 0x106   :  { %v271_v54 = vadd.f32 %v270_v53, %v269_v51 }
 0x108   :  { %v555_v55 = vpop.f32.mrb[8].mxu0 }
 0x109   :  { %v237_v56 = vsel %vm229_vm1, %v555_v55, 0.0  ;;  %v260_v57 = vmul.f32 %v555_v55, %v555_v55  ;;  %v209_v58 = vpop.f32.mrb[9].mxu0 }
 0x10a   :  { %v238_v59 = vadd.f32 %v237_v56, %v236_v52  ;;  %v210_v60 = vpop.f32.mrb[10].mxu0 }
 0x10b   :  { %v272_v62 = vsel %vm229_vm1, %v260_v57, 0.0  ;;  %v239_v63 = vsel %vm229_vm1, %v210_v60, 0.0  ;;  %v261_v0 = vmul.f32 %v210_v60, %v210_v60  ;;  %v212_v1 = vpop.f32.mrb[11].mxu0 }
 0x10c   :  { %v273_v2 = vadd.f32 %v272_v62, %v271_v54  ;;  %v240_v3 = vadd.f32 %v239_v63, %v238_v59 }
 0x10d   :  { %v274_v6 = vsel %vm229_vm1, %v261_v0, 0.0 }
 0x10e   :  { %v242_v8 = vadd.f32 %v241_v4, %v240_v3  ;;  %v275_v9 = vadd.f32 %v274_v6, %v273_v2 }
 0x110   :  { %v277_v13 = vadd.f32 %v276_v10, %v275_v9  ;;  %v244_v14 = vadd.f32 %v243_v11, %v242_v8 }
 0x112   :  { %v246_v17 = vadd.f32 %v245_v12, %v244_v14  ;;  %v279_v18 = vadd.f32 %v278_v15, %v277_v13 }
 0x114   :  { %v247_v19 = vrot.slane %v246_v17, 4  ;;  %v281_v20 = vadd.f32 %v280_v16, %v279_v18 }
 0x116   :  { %v248_v23 = vadd.f32 %v247_v19, %v246_v17  ;;  %v282_v24 = vrot.slane %v281_v20, 4 }
 0x118   :  { %v249_v25 = vrot.slane %v248_v23, 2  ;;  %v283_v28 = vadd.f32 %v282_v24, %v281_v20 }
 0x11a   :  { %v250_v29 = vadd.f32 %v249_v25, %v248_v23  ;;  %v284_v30 = vrot.slane %v283_v28, 2 }
 0x11c   :  { %v251_v31 = vrot.slane %v250_v29, 1  ;;  %v285_v32 = vadd.f32 %v284_v30, %v283_v28 }
 0x11e   :  { %v252_v33 = vadd.f32 %v251_v31, %v250_v29  ;;  %v286_v34 = vrot.slane %v285_v32, 1 }
 0x120   :  { %v254_v35 = vmul.f32 0.013888889, %v252_v33  ;;  %v287_v36 = vadd.f32 %v286_v34, %v285_v32 }
 0x122   :  { %v288_v39 = vmul.f32 0.013888889, %v287_v36  ;;  %v290_v40 = vmul.f32 %v254_v35, %v254_v35  ;;  %v294_v41 = vsub.f32 %v521_v21, %v254_v35  ;;  %v295_v42 = vsub.f32 %v527_v26, %v254_v35  ;;  %v390_v21 = vld [vmem:[%s631_s2] ss:$0 sm:$0xff] }
 0x123   :  { %v296_v43 = vsub.f32 %v539_v37, %v254_v35  ;;  %v297_v45 = vsub.f32 %v547_v44, %v254_v35  ;;  %v298_v46 = vsub.f32 %v555_v55, %v254_v35  ;;  %v299_v47 = vsub.f32 %v210_v60, %v254_v35 }
 0x124   :  { %v291_v48 = vsub.f32 %v288_v39, %v290_v40  ;;  %v300_v49 = vsub.f32 %v523_v22, %v254_v35  ;;  %v301_v50 = vsub.f32 %v529_v27, %v254_v35  ;;  %v302_v51 = vsub.f32 %v541_v38, %v254_v35  ;;  %v391_v22 = vld [vmem:[%s632_s3] ss:$0 sm:$0xff] }
 0x126   :  { %v292_v52 = vadd.f32 1e-05, %v291_v48 }
 0x128   :  { %434 = vrsqrt.f32 %v292_v52 }
 0x132   :  { %v435_v53 = vpop.eup %434 }
 0x133   :  { %v303_v26 = vmul.f32 %v435_v53, %v294_v41  ;;  %v304_v37 = vmul.f32 %v435_v53, %v295_v42  ;;  %v305_v44 = vmul.f32 %v435_v53, %v296_v43  ;;  %v306_v54 = vmul.f32 %v435_v53, %v297_v45 }
 0x134   :  { %v307_v55 = vmul.f32 %v435_v53, %v298_v46  ;;  %v308_v56 = vmul.f32 %v435_v53, %v299_v47  ;;  %v309_v57 = vmul.f32 %v435_v53, %v300_v49  ;;  %v310_v58 = vmul.f32 %v435_v53, %v301_v50 }
 0x135   :  { %v311_v27 = vmul.f32 %v435_v53, %v302_v51  ;;  %v319_v38 = vmul.f32 %v390_v21, %v303_v26  ;;  %v320_v59 = vmul.f32 %v390_v21, %v304_v37  ;;  %v321_v60 = vmul.f32 %v390_v21, %v305_v44 }
 0x136   :  { %v322_v61 = vmul.f32 %v390_v21, %v306_v54  ;;  %v323_v62 = vmul.f32 %v390_v21, %v307_v55  ;;  %v324_v63 = vmul.f32 %v390_v21, %v308_v56  ;;  %v325_v0 = vmul.f32 %v390_v21, %v309_v57 }
 0x137   :  { %v326_v1 = vmul.f32 %v390_v21, %v310_v58  ;;  %v327_v2 = vmul.f32 %v390_v21, %v311_v27  ;;  %v335_v3 = vadd.f32 %v391_v22, %v319_v38  ;;  %v336_v4 = vadd.f32 %v391_v22, %v320_v59 }
 0x138   :  { %v337_v5 = vadd.f32 %v391_v22, %v321_v60  ;;  %v338_v6 = vadd.f32 %v391_v22, %v322_v61  ;;  %v339_v7 = vadd.f32 %v391_v22, %v323_v62  ;;  %v340_v8 = vadd.f32 %v391_v22, %v324_v63 }
 0x139   :  { %v341_v9 = vadd.f32 %v391_v22, %v325_v0  ;;  %v342_v10 = vadd.f32 %v391_v22, %v326_v1  ;;  %v343_v11 = vadd.f32 %v391_v22, %v327_v2  ;;  %v344_v12 = vmax.f32 %v335_v3, 0.0 }
 0x13a   :  { %v345_v13 = vmax.f32 %v336_v4, 0.0  ;;  %v346_v14 = vmax.f32 %v337_v5, 0.0  ;;  %v347_v15 = vmax.f32 %v338_v6, 0.0  ;;  %v348_v16 = vmax.f32 %v339_v7, 0.0 }
 0x13b   :  { %v349_v17 = vmax.f32 %v340_v8, 0.0  ;;  %v350_v18 = vmax.f32 %v341_v9, 0.0  ;;  %v351_v19 = vmax.f32 %v342_v10, 0.0  ;;  %v352_v20 = vmax.f32 %v343_v11, 0.0  ;;  %353 = vst.msk [vmem:[%s633_s4] sm:$0xff] %vm229_vm1, %v344_v12 }
 0x13c   :  { %354 = vst.msk [vmem:[%s633_s4 + $0x8] sm:$0xff] %vm229_vm1, %v345_v13  ;;  %355 = vst.msk [vmem:[%s633_s4 + $0x10] sm:$0xff] %vm229_vm1, %v346_v14 }
 0x13d   :  { %356 = vst.msk [vmem:[%s633_s4 + $0x18] sm:$0xff] %vm229_vm1, %v347_v15  ;;  %357 = vst.msk [vmem:[%s633_s4 + $0x20] sm:$0xff] %vm229_vm1, %v348_v16 }
 0x13e   :  { %358 = vst.msk [vmem:[%s633_s4 + $0x28] sm:$0xff] %vm229_vm1, %v349_v17  ;;  %359 = vst.msk [vmem:[%s633_s4 + $0x30] sm:$0xff] %vm229_vm1, %v350_v18 }
 0x13f   :  { %360 = vst.msk [vmem:[%s633_s4 + $0x38] sm:$0xff] %vm229_vm1, %v351_v19  ;;  %361 = vst.msk [vmem:[%s633_s4 + $0x40] sm:$0xff] %vm229_vm1, %v352_v20 }

// kernel: pretrain_net_pallas.12
= control target key start
LH: loop header
LB: loop body
LE: loop exit
PB: predicated region body
PF: predicated region fallthrough
CT: control target
= control target key end

     0   :  { %vm193_vm0 = vcmask 261120   ;;  %vm701_vm1 = vcmask 254976   ;;  %s1590_s1 = inlined_call_operand.vmem [shape: bf16[288,32], index: 1, kind: input, shape index: {}]   ;;  %s1591_s0 = inlined_call_operand.vmem [shape: bf16[4,18,288], index: 0, kind: input, shape index: {}]   ;;  %s1592_s2 = inlined_call_operand.vmem [shape: f32[1,32], index: 2, kind: input, shape index: {}]   ;;  %s1593_s3 = inlined_call_operand.vmem [shape: f32[1,32], index: 3, kind: input, shape index: {}]   ;;  %s1594_s4 = inlined_call_operand.vmem [shape: f32[18,32], index: 4, kind: output, shape index: {}]  }
   0x1   :  { %v1219_v0 = vld [vmem:[%s1590_s1 + $0x40] sm:$0xff]   ;;  %v1236_v3 = vld [vmem:[%s1590_s1 + $0x48] sm:$0xff]   ;;  %v1255_v6 = vld [vmem:[%s1590_s1 + $0x50] sm:$0xff]  }
   0x2   :  { %v1224_v1 = vld [vmem:[%s1590_s1 + $0x80] sm:$0xff]   ;;  %983 = vmatprep.subr.bf16.mxu0 %v1219_v0  ;;  %v1243_v4 = vld [vmem:[%s1590_s1 + $0x88] sm:$0xff]   ;;  %v1265_v8 = vld [vmem:[%s1590_s1 + $0x10] sm:$0xff]  }
   0x3   :  { %v1230_v2 = vld [vmem:[%s1590_s1] sm:$0xff]   ;;  %1111 = vmatprep.subr.bf16.mxu1 %v1224_v1  ;;  %v1249_v5 = vld [vmem:[%s1590_s1 + $0x8] sm:$0xff]   ;;  %v1275_v10 = vld [vmem:[%s1590_s1 + $0x58] sm:$0xff]  }
   0x4   :  { %984 = vmatpush3.bf16.msra.mxu0 %v1230_v2  ;;  %1112 = vmatpush3.bf16.msra.mxu1 %v1224_v1  ;;  %v1150_v7 = vld [vmem:[%s1591_s0 + $0x8] ss:$12 sps:$4 sm:$0xff]   ;;  %v1152_v9 = vld [vmem:[%s1591_s0 + $0x20] ss:$0 sps:$4 sm:$0x11]   ;;  %v1284_v11 = vld [vmem:[%s1590_s1 + $0x18] sm:$0xff]  }
   0x5   :  { %985 = vmatprep.subr.bf16.mxu0 %v1236_v3  ;;  %1113 = vmatprep.subr.bf16.mxu1 %v1243_v4  ;;  %v1291_v12 = vld [vmem:[%s1590_s1 + $0x60] sm:$0xff]   ;;  %v1305_v14 = vld [vmem:[%s1590_s1 + $0x68] sm:$0xff]   ;;  %v1322_v17 = vld [vmem:[%s1590_s1 + $0x70] sm:$0xff]  }
   0x6   :  { %1115 = vmatprep.mubr.msk.bf16.mxu1 %vm193_vm0, %v1150_v7  ;;  %v1298_v13 = vld [vmem:[%s1590_s1 + $0x20] sm:$0xff]   ;;  %v1312_v15 = vld [vmem:[%s1590_s1 + $0x28] sm:$0xff]   ;;  %v1332_v19 = vld [vmem:[%s1590_s1 + $0x30] sm:$0xff]  }
   0x7   :  { %v1165_v16 = vld [vmem:[%s1591_s0 + $0x4] ss:$12 sps:$4 sm:$0xff]   ;;  %v1169_v18 = vld [vmem:[%s1591_s0 + $0x28] ss:$12 sps:$4 sm:$0xff]   ;;  %v1339_v20 = vld [vmem:[%s1590_s1 + $0x78] sm:$0xff]  }
   0x8   :  { %986 = vmatpush3.bf16.msra.mxu0 %v1249_v5  ;;  %1114 = vmatpush3.bf16.msra.mxu1 %v1243_v4  ;;  %v1346_v21 = vld [vmem:[%s1590_s1 + $0x38] sm:$0xff]   ;;  %v1163_v23 = vld [vmem:[%s1591_s0] ss:$12 sps:$4 sm:$0xff]   ;;  %v1167_v26 = vld [vmem:[%s1591_s0 + $0x24] ss:$12 sps:$4 sm:$0xff]  }
   0x9   :  { %987 = vmatprep.subr.bf16.mxu0 %v1255_v6  ;;  %1015 = vmatprep.subr.bf16.mxu1 %v1219_v0  ;;  %v58_v22 = vld [vmem:[%s1591_s0 + $0x18] sm:$0x11]  ;;  %v1174_v31 = vld [vmem:[%s1591_s0 + $0x44] ss:$0 sps:$4 sm:$0x11]  }
   0xa   :  { %232 = vmatprep.mubr.bf16.mxu0 %v1165_v16  ;;  %v917_v24 = vcombine.high %v58_v22, %v58_v22  ;;  %v943_v25 = vld [vmem:[%s1591_s0 + $0x3c] sm:$0x11]  ;;  %v916_v27 = vcombine.low %v58_v22, %v58_v22  ;;  %v1172_v29 = vld [vmem:[%s1591_s0 + $0x2c] ss:$12 sps:$4 sm:$0xff]   ;;  %v1177_v37 = vld [vmem:[%s1591_s0 + $0x48] ss:$12 sps:$4 sm:$0xff]  }
   0xb   :  { %1116 = vmatmul.mubr.msk.bf16.vlgmr.msra.gmra.mrb[0].mxu1 %vm193_vm0, %v1152_v9  ;;  %v949_v28 = vcombine.high %v943_v25, %v943_v25  ;;  %v948_v30 = vcombine.low %v943_v25, %v943_v25  ;;  %v1175_v32 = vld [vmem:[%s1591_s0 + $0x50] ss:$12 sps:$4 sm:$0xff]   ;;  %v1179_v33 = vld [vmem:[%s1591_s0 + $0x4c] ss:$12 sps:$4 sm:$0xff]   ;;  %v957_v36 = vld [vmem:[%s1591_s0 + $0x60] sm:$0x11] }
   0xc   :  { %988 = vmatpush3.bf16.msra.mxu0 %v1265_v8  ;;  %1016 = vmatpush3.bf16.msra.mxu1 %v1230_v2  ;;  %v1176_v34 = vld [vmem:[%s1591_s0 + $0x68] ss:$0 sps:$4 sm:$0x11]   ;;  %v1184_v35 = vld [vmem:[%s1591_s0 + $0x70] ss:$12 sps:$4 sm:$0xff]   ;;  %v963_v38 = vcombine.high %v957_v36, %v957_v36  ;;  %v962_v39 = vcombine.low %v957_v36, %v957_v36 }
   0xd   :  { %989 = vmatprep.subr.bf16.mxu0 %v1275_v10  ;;  %1017 = vmatprep.subr.bf16.mxu1 %v1236_v3  ;;  %v1185_v40 = vld [vmem:[%s1591_s0 + $0x74] ss:$12 sps:$4 sm:$0xff]   ;;  %v971_v41 = vld [vmem:[%s1591_s0 + $0x84] sm:$0x11]  ;;  %v1182_v42 = vld [vmem:[%s1591_s0 + $0x6c] ss:$12 sps:$4 sm:$0xff]  }
   0xe   :  { %366 = vmatprep.mubr.bf16.mxu1 %v1169_v18  ;;  %v1186_v43 = vld [vmem:[%s1591_s0 + $0x8c] ss:$0 sps:$4 sm:$0x11]   ;;  %v977_v44 = vcombine.high %v971_v41, %v971_v41  ;;  %v976_v45 = vcombine.low %v971_v41, %v971_v41 }
  0x10   :  { %990 = vmatpush3.bf16.msra.mxu0 %v1284_v11  ;;  %1018 = vmatpush3.bf16.msra.mxu1 %v1249_v5 }
  0x11   :  { %991 = vmatprep.subr.bf16.mxu0 %v1291_v12  ;;  %1019 = vmatprep.subr.bf16.mxu1 %v1255_v6 }
  0x14   :  { %992 = vmatpush3.bf16.msra.mxu0 %v1298_v13  ;;  %1020 = vmatpush3.bf16.msra.mxu1 %v1265_v8 }
  0x15   :  { %993 = vmatprep.subr.bf16.mxu0 %v1305_v14  ;;  %1021 = vmatprep.subr.bf16.mxu1 %v1275_v10 }
  0x18   :  { %994 = vmatpush3.bf16.msra.mxu0 %v1312_v15  ;;  %1022 = vmatpush3.bf16.msra.mxu1 %v1284_v11 }
  0x19   :  { %995 = vmatprep.subr.bf16.mxu0 %v1322_v17  ;;  %1023 = vmatprep.subr.bf16.mxu1 %v1291_v12 }
  0x1c   :  { %996 = vmatpush3.bf16.msra.mxu0 %v1332_v19  ;;  %1024 = vmatpush3.bf16.msra.mxu1 %v1298_v13 }
  0x1d   :  { %997 = vmatprep.subr.bf16.mxu0 %v1339_v20  ;;  %1025 = vmatprep.subr.bf16.mxu1 %v1305_v14 }
  0x20   :  { %998 = vmatpush3.bf16.msra.mxu0 %v1346_v21  ;;  %1026 = vmatpush3.bf16.msra.mxu1 %v1312_v15 }
  0x21   :  { %1027 = vmatprep.subr.bf16.mxu1 %v1322_v17  ;;  %1119 = vmatprep.subr.bf16.mxu0 %v1224_v1 }
  0x23   :  { %233 = vmatmul.mubr.bf16.vlgmr.msra.gmra.mrb[0].mxu0 %v1163_v23 }
  0x24   :  { %1028 = vmatpush3.bf16.msra.mxu1 %v1332_v19  ;;  %1120 = vmatpush3.bf16.msra.mxu0 %v1224_v1 }
  0x25   :  { %1029 = vmatprep.subr.bf16.mxu1 %v1339_v20  ;;  %240 = vmatprep.mubr.bf16.mxu0 %v917_v24 }
  0x26   :  { %1121 = vmatprep.subr.bf16.mxu0 %v1243_v4 }
  0x28   :  { %1030 = vmatpush3.bf16.msra.mxu1 %v1346_v21  ;;  %1122 = vmatpush3.bf16.msra.mxu0 %v1243_v4 }
  0x29   :  { %1047 = vmatprep.subr.bf16.mxu1 %v1219_v0  ;;  %1127 = vmatprep.subr.bf16.mxu0 %v1224_v1 }
  0x2b   :  { %241 = vmatmul.mubr.bf16.gmra.mrb[4].mxu0 %v916_v27  ;;  %367 = vmatmul.mubr.bf16.vlgmr.msra.gmra.mrb[4].mxu1 %v1167_v26 }
  0x2c   :  { %1048 = vmatpush3.bf16.msra.mxu1 %v1230_v2  ;;  %374 = vmatprep.mubr.bf16.mxu1 %v949_v28 }
  0x2d   :  { %1049 = vmatprep.subr.bf16.mxu1 %v1236_v3  ;;  %1123 = vmatprep.mubr.msk.bf16.mxu0 %vm193_vm0, %v1172_v29 }
  0x30   :  { %1050 = vmatpush3.bf16.msra.mxu1 %v1249_v5 }
  0x31   :  { %1051 = vmatprep.subr.bf16.mxu1 %v1255_v6 }
  0x33   :  { %375 = vmatmul.mubr.bf16.gmra.mrb[8].mxu1 %v948_v30  ;;  %1124 = vmatmul.mubr.msk.bf16.vlgmr.msra.gmra.mrb[8].mxu0 %vm193_vm0, %v1174_v31 }
  0x34   :  { %1128 = vmatpush3.bf16.msra.mxu0 %v1224_v1  ;;  %1052 = vmatpush3.bf16.msra.mxu1 %v1265_v8 }
  0x35   :  { %1129 = vmatprep.subr.bf16.mxu0 %v1243_v4  ;;  %1053 = vmatprep.subr.bf16.mxu1 %v1275_v10 }
  0x36   :  { %1131 = vmatprep.mubr.msk.bf16.mxu0 %vm193_vm0, %v1175_v32  ;;  %500 = vmatprep.mubr.bf16.mxu1 %v1179_v33 }
  0x38   :  { %1130 = vmatpush3.bf16.msra.mxu0 %v1243_v4  ;;  %1054 = vmatpush3.bf16.msra.mxu1 %v1284_v11 }
  0x39   :  { %1079 = vmatprep.subr.bf16.mxu0 %v1219_v0  ;;  %1055 = vmatprep.subr.bf16.mxu1 %v1291_v12 }
  0x3b   :  { %1132 = vmatmul.mubr.msk.bf16.vlgmr.msra.gmra.mrb[12].mxu0 %vm193_vm0, %v1176_v34 }
  0x3c   :  { %1080 = vmatpush3.bf16.msra.mxu0 %v1230_v2  ;;  %1056 = vmatpush3.bf16.msra.mxu1 %v1298_v13 }
  0x3d   :  { %1081 = vmatprep.subr.bf16.mxu0 %v1236_v3  ;;  %1057 = vmatprep.subr.bf16.mxu1 %v1305_v14 }
  0x3e   :  { %634 = vmatprep.mubr.bf16.mxu0 %v1184_v35 }
  0x40   :  { %1082 = vmatpush3.bf16.msra.mxu0 %v1249_v5  ;;  %1058 = vmatpush3.bf16.msra.mxu1 %v1312_v15 }
  0x41   :  { %1083 = vmatprep.subr.bf16.mxu0 %v1255_v6  ;;  %1059 = vmatprep.subr.bf16.mxu1 %v1322_v17 }
  0x44   :  { %1084 = vmatpush3.bf16.msra.mxu0 %v1265_v8  ;;  %1060 = vmatpush3.bf16.msra.mxu1 %v1332_v19 }
  0x45   :  { %1085 = vmatprep.subr.bf16.mxu0 %v1275_v10  ;;  %1061 = vmatprep.subr.bf16.mxu1 %v1339_v20 }
  0x48   :  { %1086 = vmatpush3.bf16.msra.mxu0 %v1284_v11  ;;  %1062 = vmatpush3.bf16.msra.mxu1 %v1346_v21 }
  0x49   :  { %1087 = vmatprep.subr.bf16.mxu0 %v1291_v12  ;;  %1135 = vmatprep.subr.bf16.mxu1 %v1224_v1 }
  0x4b   :  { %501 = vmatmul.mubr.bf16.vlgmr.msra.gmra.mrb[12].mxu1 %v1177_v37 }
  0x4c   :  { %1088 = vmatpush3.bf16.msra.mxu0 %v1298_v13  ;;  %1136 = vmatpush3.bf16.msra.mxu1 %v1224_v1 }
  0x4d   :  { %1089 = vmatprep.subr.bf16.mxu0 %v1305_v14  ;;  %508 = vmatprep.mubr.bf16.mxu1 %v963_v38 }
  0x4e   :  { %1137 = vmatprep.subr.bf16.mxu1 %v1243_v4 }
  0x50   :  { %1090 = vmatpush3.bf16.msra.mxu0 %v1312_v15  ;;  %1138 = vmatpush3.bf16.msra.mxu1 %v1243_v4 }
  0x51   :  { %1091 = vmatprep.subr.bf16.mxu0 %v1322_v17 }
  0x53   :  { %509 = vmatmul.mubr.bf16.gmra.mrb[16].mxu1 %v962_v39 }
  0x54   :  { %1092 = vmatpush3.bf16.msra.mxu0 %v1332_v19  ;;  %1139 = vmatprep.mubr.msk.bf16.mxu1 %vm193_vm0, %v1185_v40 }
  0x55   :  { %1093 = vmatprep.subr.bf16.mxu0 %v1339_v20 }
  0x58   :  { %1094 = vmatpush3.bf16.msra.mxu0 %v1346_v21 }
  0x5b   :  { %635 = vmatmul.mubr.bf16.vlgmr.msra.gmra.mrb[16].mxu0 %v1182_v42  ;;  %1140 = vmatmul.mubr.msk.bf16.vlgmr.msra.gmra.mrb[20].mxu1 %vm193_vm0, %v1186_v43 }
  0x5c   :  { %642 = vmatprep.mubr.bf16.mxu0 %v977_v44 }
  0x63   :  { %643 = vmatmul.mubr.bf16.gmra.mrb[20].mxu0 %v976_v45 }
  0xde   :  { %v1117_v46 = vpop.f32.mrb[0].mxu1 }
  0xdf   :  { %v282_v47 = vpop.f32.mrb[1].mxu1 }
  0xe0   :  { %v1118_v48 = vpop.f32.mrb[2].mxu1 }
  0xe1   :  { %v285_v49 = vpop.f32.mrb[3].mxu1 }
  0xf6   :  { %v999_v50 = vpop.f32.mrb[0].mxu0 }
  0xf7   :  { %v1000_v51 = vpop.f32.mrb[1].mxu0 }
  0xf8   :  { %v1001_v52 = vadd.f32 %v1000_v51, %v999_v50  ;;  %v1002_v53 = vpop.f32.mrb[2].mxu0 }
  0xf9   :  { %v1003_v54 = vpop.f32.mrb[3].mxu0 }
  0xfa   :  { %v1454_v55 = vadd.f32 %v1001_v52, %v282_v47  ;;  %v1004_v56 = vadd.f32 %v1003_v54, %v1002_v53 }
  0xfc   :  { %v754_v57 = vmul.f32 %v1454_v55, %v1454_v55  ;;  %v1458_v58 = vadd.f32 %v1004_v56, %v285_v49  ;;  %v698_v59 = vsel %vm193_vm0, %v1454_v55, 0.0 }
  0xfe   :  { %v699_v60 = vsel %vm193_vm0, %v1458_v58, 0.0  ;;  %v755_v61 = vmul.f32 %v1458_v58, %v1458_v58  ;;  %v1005_v62 = vpop.f32.mrb[4].mxu0  ;;  %v1031_v63 = vpop.f32.mrb[4].mxu1  ;;  %v757_v3 = vsel %vm193_vm0, %v754_v57, 0.0 }
  0xff   :  { %v700_v0 = vadd.f32 %v699_v60, %v698_v59  ;;  %v1006_v1 = vpop.f32.mrb[5].mxu0  ;;  %v1032_v2 = vpop.f32.mrb[5].mxu1 }
 0x100   :  { %v758_v4 = vsel %vm193_vm0, %v755_v61, 0.0  ;;  %v1007_v5 = vadd.f32 %v1006_v1, %v1005_v62  ;;  %v1008_v6 = vpop.f32.mrb[6].mxu0  ;;  %v1033_v7 = vadd.f32 %v1032_v2, %v1031_v63  ;;  %v1034_v8 = vpop.f32.mrb[6].mxu1 }
 0x101   :  { %v759_v9 = vadd.f32 %v758_v4, %v757_v3  ;;  %v1009_v10 = vpop.f32.mrb[7].mxu0  ;;  %v1035_v11 = vpop.f32.mrb[7].mxu1 }
 0x102   :  { %v1468_v12 = vadd.f32 %v1117_v46, %v1007_v5  ;;  %v1036_v13 = vadd.f32 %v1035_v11, %v1034_v8 }
 0x104   :  { %v702_v14 = vsel %vm701_vm1, %v1468_v12, 0.0  ;;  %v756_v15 = vmul.f32 %v1468_v12, %v1468_v12 }
 0x105   :  { %v703_v16 = vadd.f32 %v702_v14, %v700_v0 }
 0x106   :  { %v760_v17 = vsel %vm701_vm1, %v756_v15, 0.0  ;;  %v1037_v18 = vpop.f32.mrb[8].mxu1  ;;  %v1125_v19 = vpop.f32.mrb[8].mxu0 }
 0x107   :  { %v704_v20 = vrot.slane %v703_v16, 4  ;;  %v761_v21 = vadd.f32 %v760_v17, %v759_v9  ;;  %v1038_v22 = vpop.f32.mrb[9].mxu1  ;;  %v416_v23 = vpop.f32.mrb[9].mxu0 }
 0x108   :  { %v1039_v24 = vadd.f32 %v1038_v22, %v1037_v18  ;;  %v1475_v25 = vadd.f32 %v1033_v7, %v416_v23  ;;  %v1126_v26 = vpop.f32.mrb[10].mxu0  ;;  %v1040_v27 = vpop.f32.mrb[10].mxu1 }
 0x109   :  { %v705_v28 = vadd.f32 %v704_v20, %v703_v16  ;;  %v762_v29 = vrot.slane %v761_v21, 4  ;;  %v419_v30 = vpop.f32.mrb[11].mxu0  ;;  %v1041_v31 = vpop.f32.mrb[11].mxu1 }
 0x10a   :  { %v1477_v32 = vadd.f32 %v1125_v19, %v1039_v24  ;;  %v1479_v33 = vadd.f32 %v1036_v13, %v419_v30  ;;  %v770_v34 = vmul.f32 %v1475_v25, %v1475_v25  ;;  %v713_v36 = vsel %vm193_vm0, %v1475_v25, 0.0 }
 0x10b   :  { %v763_v35 = vadd.f32 %v762_v29, %v761_v21  ;;  %v706_v38 = vrot.slane %v705_v28, 2 }
 0x10c   :  { %v714_v37 = vsel %vm193_vm0, %v1479_v33, 0.0  ;;  %v772_v39 = vmul.f32 %v1477_v32, %v1477_v32  ;;  %v771_v41 = vmul.f32 %v1479_v33, %v1479_v33  ;;  %v716_v42 = vsel %vm701_vm1, %v1477_v32, 0.0 }
 0x10d   :  { %v715_v40 = vadd.f32 %v714_v37, %v713_v36  ;;  %v773_v44 = vsel %vm193_vm0, %v770_v34, 0.0  ;;  %v764_v48 = vrot.slane %v763_v35, 2  ;;  %v707_v51 = vadd.f32 %v706_v38, %v705_v28 }
 0x10e   :  { %v1133_v43 = vpop.f32.mrb[12].mxu0  ;;  %v774_v46 = vsel %vm193_vm0, %v771_v41, 0.0  ;;  %v776_v52 = vsel %vm701_vm1, %v772_v39, 0.0 }
 0x10f   :  { %v717_v45 = vadd.f32 %v716_v42, %v715_v40  ;;  %v550_v47 = vpop.f32.mrb[13].mxu0  ;;  %v775_v49 = vadd.f32 %v774_v46, %v773_v44  ;;  %v765_v59 = vadd.f32 %v764_v48, %v763_v35  ;;  %v708_v61 = vrot.slane %v707_v51, 1 }
 0x110   :  { %v1134_v50 = vpop.f32.mrb[14].mxu0 }
 0x111   :  { %v718_v53 = vrot.slane %v717_v45, 4  ;;  %v553_v54 = vpop.f32.mrb[15].mxu0  ;;  %v777_v56 = vadd.f32 %v776_v52, %v775_v49  ;;  %v766_v1 = vrot.slane %v765_v59, 1  ;;  %v709_v3 = vadd.f32 %v708_v61, %v707_v51 }
 0x113   :  { %v719_v57 = vadd.f32 %v718_v53, %v717_v45  ;;  %v778_v60 = vrot.slane %v777_v56, 4  ;;  %v767_v7 = vadd.f32 %v766_v1, %v765_v59  ;;  %v711_v9 = vmul.f32 0.055555556, %v709_v3 }
 0x115   :  { %v720_v62 = vrot.slane %v719_v57, 2  ;;  %v779_v63 = vadd.f32 %v778_v60, %v777_v56  ;;  %v768_v16 = vmul.f32 0.055555556, %v767_v7 }
 0x117   :  { %v721_v0 = vadd.f32 %v720_v62, %v719_v57  ;;  %v780_v2 = vrot.slane %v779_v63, 2 }
 0x119   :  { %v722_v4 = vrot.slane %v721_v0, 1  ;;  %v781_v5 = vadd.f32 %v780_v2, %v779_v63 }
 0x11b   :  { %v723_v6 = vadd.f32 %v722_v4, %v721_v0  ;;  %v782_v8 = vrot.slane %v781_v5, 1 }
 0x11d   :  { %v724_v10 = vmul.f32 0.055555556, %v723_v6  ;;  %v783_v11 = vadd.f32 %v782_v8, %v781_v5 }
 0x11e   :  { %v1063_v13 = vpop.f32.mrb[12].mxu1 }
 0x11f   :  { %v1496_v14 = vadd.f32 %v724_v10, %v711_v9  ;;  %v1064_v15 = vpop.f32.mrb[13].mxu1  ;;  %v784_v17 = vmul.f32 0.055555556, %v783_v11 }
 0x120   :  { %v1065_v18 = vadd.f32 %v1064_v15, %v1063_v13  ;;  %v1066_v19 = vpop.f32.mrb[14].mxu1 }
 0x121   :  { %v1067_v20 = vpop.f32.mrb[15].mxu1  ;;  %v1498_v21 = vadd.f32 %v784_v17, %v768_v16 }
 0x122   :  { %v1500_v22 = vadd.f32 %v1065_v18, %v550_v47  ;;  %v1068_v23 = vadd.f32 %v1067_v20, %v1066_v19 }
 0x124   :  { %v786_v24 = vmul.f32 %v1500_v22, %v1500_v22  ;;  %v1504_v26 = vadd.f32 %v1068_v23, %v553_v54  ;;  %v726_v27 = vsel %vm193_vm0, %v1500_v22, 0.0 }
 0x126   :  { %v727_v28 = vsel %vm193_vm0, %v1504_v26, 0.0  ;;  %v787_v29 = vmul.f32 %v1504_v26, %v1504_v26  ;;  %v1069_v30 = vpop.f32.mrb[16].mxu1  ;;  %v789_v35 = vsel %vm193_vm0, %v786_v24, 0.0 }
 0x127   :  { %v728_v31 = vadd.f32 %v727_v28, %v726_v27  ;;  %v1070_v34 = vpop.f32.mrb[17].mxu1 }
 0x128   :  { %v790_v36 = vsel %vm193_vm0, %v787_v29, 0.0  ;;  %v1071_v37 = vadd.f32 %v1070_v34, %v1069_v30  ;;  %v1072_v38 = vpop.f32.mrb[18].mxu1 }
 0x129   :  { %v791_v39 = vadd.f32 %v790_v36, %v789_v35  ;;  %v1073_v40 = vpop.f32.mrb[19].mxu1 }
 0x12a   :  { %v1514_v41 = vadd.f32 %v1133_v43, %v1071_v37 }
 0x12c   :  { %v729_v42 = vsel %vm701_vm1, %v1514_v41, 0.0  ;;  %v788_v44 = vmul.f32 %v1514_v41, %v1514_v41 }
 0x12d   :  { %v730_v45 = vadd.f32 %v729_v42, %v728_v31 }
 0x12e   :  { %v792_v46 = vsel %vm701_vm1, %v788_v44, 0.0  ;;  %v1095_v47 = vpop.f32.mrb[16].mxu0  ;;  %v1141_v48 = vpop.f32.mrb[20].mxu1 }
 0x12f   :  { %v731_v49 = vrot.slane %v730_v45, 4  ;;  %v793_v50 = vadd.f32 %v792_v46, %v791_v39  ;;  %v1096_v51 = vpop.f32.mrb[17].mxu0  ;;  %v684_v52 = vpop.f32.mrb[21].mxu1 }
 0x130   :  { %v1097_v53 = vadd.f32 %v1096_v51, %v1095_v47  ;;  %v1098_v54 = vpop.f32.mrb[18].mxu0  ;;  %v1142_v56 = vpop.f32.mrb[22].mxu1 }
 0x131   :  { %v732_v43 = vadd.f32 %v731_v49, %v730_v45  ;;  %v794_v57 = vrot.slane %v793_v50, 4  ;;  %v1099_v59 = vpop.f32.mrb[19].mxu0  ;;  %v687_v60 = vpop.f32.mrb[23].mxu1 }
 0x132   :  { %v1100_v61 = vadd.f32 %v1099_v59, %v1098_v54  ;;  %v1521_v62 = vadd.f32 %v1097_v53, %v684_v52 }
 0x133   :  { %v733_v63 = vrot.slane %v732_v43, 2  ;;  %v795_v0 = vadd.f32 %v794_v57, %v793_v50 }
 0x134   :  { %v802_v1 = vmul.f32 %v1521_v62, %v1521_v62  ;;  %v1525_v2 = vadd.f32 %v1100_v61, %v687_v60  ;;  %v739_v5 = vsel %vm193_vm0, %v1521_v62, 0.0 }
 0x135   :  { %v734_v3 = vadd.f32 %v733_v63, %v732_v43  ;;  %v796_v4 = vrot.slane %v795_v0, 2 }
 0x136   :  { %v740_v6 = vsel %vm193_vm0, %v1525_v2, 0.0  ;;  %v803_v7 = vmul.f32 %v1525_v2, %v1525_v2  ;;  %v1101_v8 = vpop.f32.mrb[20].mxu0  ;;  %v805_v15 = vsel %vm193_vm0, %v802_v1, 0.0 }
 0x137   :  { %v735_v9 = vrot.slane %v734_v3, 1  ;;  %v797_v10 = vadd.f32 %v796_v4, %v795_v0  ;;  %v741_v11 = vadd.f32 %v740_v6, %v739_v5  ;;  %v1102_v13 = vpop.f32.mrb[21].mxu0 }
 0x138   :  { %v806_v16 = vsel %vm193_vm0, %v803_v7, 0.0  ;;  %v1103_v17 = vadd.f32 %v1102_v13, %v1101_v8  ;;  %v1104_v18 = vpop.f32.mrb[22].mxu0 }
 0x139   :  { %v736_v19 = vadd.f32 %v735_v9, %v734_v3  ;;  %v798_v20 = vrot.slane %v797_v10, 1  ;;  %v807_v23 = vadd.f32 %v806_v16, %v805_v15  ;;  %v1105_v24 = vpop.f32.mrb[23].mxu0 }
 0x13a   :  { %v1535_v27 = vadd.f32 %v1141_v48, %v1103_v17 }
 0x13b   :  { %v737_v28 = vmul.f32 0.055555556, %v736_v19  ;;  %v799_v29 = vadd.f32 %v798_v20, %v797_v10 }
 0x13c   :  { %v742_v30 = vsel %vm701_vm1, %v1535_v27, 0.0  ;;  %v804_v31 = vmul.f32 %v1535_v27, %v1535_v27 }
 0x13d   :  { %v738_v34 = vadd.f32 %v737_v28, %v1496_v14  ;;  %v800_v35 = vmul.f32 0.055555556, %v799_v29  ;;  %v743_v36 = vadd.f32 %v742_v30, %v741_v11 }
 0x13e   :  { %v808_v37 = vsel %vm701_vm1, %v804_v31, 0.0 }
 0x13f   :  { %v801_v38 = vadd.f32 %v800_v35, %v1498_v21  ;;  %v744_v39 = vrot.slane %v743_v36, 4  ;;  %v809_v40 = vadd.f32 %v808_v37, %v807_v23 }
 0x141   :  { %v745_v42 = vadd.f32 %v744_v39, %v743_v36  ;;  %v810_v44 = vrot.slane %v809_v40, 4 }
 0x143   :  { %v746_v45 = vrot.slane %v745_v42, 2  ;;  %v811_v46 = vadd.f32 %v810_v44, %v809_v40 }
 0x145   :  { %v747_v47 = vadd.f32 %v746_v45, %v745_v42  ;;  %v812_v48 = vrot.slane %v811_v46, 2 }
 0x147   :  { %v748_v49 = vrot.slane %v747_v47, 1  ;;  %v813_v50 = vadd.f32 %v812_v48, %v811_v46 }
 0x149   :  { %v749_v51 = vadd.f32 %v748_v49, %v747_v47  ;;  %v814_v52 = vrot.slane %v813_v50, 1 }
 0x14b   :  { %v750_v53 = vmul.f32 0.055555556, %v749_v51  ;;  %v815_v14 = vadd.f32 %v814_v52, %v813_v50 }
 0x14d   :  { %v751_v54 = vadd.f32 %v750_v53, %v738_v34  ;;  %v816_v56 = vmul.f32 0.055555556, %v815_v14 }
 0x14f   :  { %v1544_v43 = vmul.f32 0.25, %v751_v54  ;;  %v817_v57 = vadd.f32 %v816_v56, %v801_v38 }
 0x151   :  { %v818_v21 = vmul.f32 0.25, %v817_v57  ;;  %v819_v59 = vmul.f32 %v1544_v43, %v1544_v43  ;;  %v823_v60 = vsub.f32 %v1454_v55, %v1544_v43  ;;  %v824_v61 = vsub.f32 %v1458_v58, %v1544_v43 }
 0x152   :  { %v825_v63 = vsub.f32 %v1468_v12, %v1544_v43  ;;  %v852_v0 = vsub.f32 %v1475_v25, %v1544_v43  ;;  %v853_v1 = vsub.f32 %v1479_v33, %v1544_v43  ;;  %v854_v3 = vsub.f32 %v1477_v32, %v1544_v43 }
 0x153   :  { %v820_v4 = vsub.f32 %v818_v21, %v819_v59  ;;  %v870_v5 = vsub.f32 %v1500_v22, %v1544_v43  ;;  %v871_v55 = vsub.f32 %v1504_v26, %v1544_v43  ;;  %v872_v58 = vsub.f32 %v1514_v41, %v1544_v43  ;;  %v981_v22 = vld [vmem:[%s1592_s2] ss:$0 sm:$0xff] }
 0x154   :  { %v888_v12 = vsub.f32 %v1521_v62, %v1544_v43  ;;  %v889_v25 = vsub.f32 %v1525_v2, %v1544_v43  ;;  %v890_v33 = vsub.f32 %v1535_v27, %v1544_v43  ;;  %v982_v62 = vld [vmem:[%s1593_s3] ss:$0 sm:$0xff] }
 0x155   :  { %v821_v32 = vadd.f32 1e-05, %v820_v4 }
 0x157   :  { %1189 = vrsqrt.f32 %v821_v32 }
 0x161   :  { %v1190_v6 = vpop.eup %1189 }
 0x162   :  { %v826_v26 = vmul.f32 %v1190_v6, %v823_v60  ;;  %v827_v7 = vmul.f32 %v1190_v6, %v824_v61  ;;  %v828_v8 = vmul.f32 %v1190_v6, %v825_v63  ;;  %v855_v41 = vmul.f32 %v1190_v6, %v852_v0 }
 0x163   :  { %v856_v9 = vmul.f32 %v1190_v6, %v853_v1  ;;  %v857_v2 = vmul.f32 %v1190_v6, %v854_v3  ;;  %v873_v10 = vmul.f32 %v1190_v6, %v870_v5  ;;  %v874_v11 = vmul.f32 %v1190_v6, %v871_v55 }
 0x164   :  { %v836_v13 = vmul.f32 %v981_v22, %v826_v26  ;;  %v837_v15 = vmul.f32 %v981_v22, %v827_v7  ;;  %v838_v16 = vmul.f32 %v981_v22, %v828_v8  ;;  %v858_v17 = vmul.f32 %v981_v22, %v855_v41 }
 0x165   :  { %v859_v18 = vmul.f32 %v981_v22, %v856_v9  ;;  %v860_v19 = vmul.f32 %v981_v22, %v857_v2  ;;  %v875_v20 = vmul.f32 %v1190_v6, %v872_v58  ;;  %v876_v23 = vmul.f32 %v981_v22, %v873_v10 }
 0x166   :  { %v846_v24 = vadd.f32 %v982_v62, %v836_v13  ;;  %v847_v27 = vadd.f32 %v982_v62, %v837_v15  ;;  %v848_v28 = vadd.f32 %v982_v62, %v838_v16  ;;  %v861_v29 = vadd.f32 %v982_v62, %v858_v17 }
 0x167   :  { %v862_v30 = vadd.f32 %v982_v62, %v859_v18  ;;  %v863_v31 = vadd.f32 %v982_v62, %v860_v19  ;;  %v877_v34 = vmul.f32 %v981_v22, %v874_v11  ;;  %v878_v35 = vmul.f32 %v981_v22, %v875_v20 }
 0x168   :  { %v849_v36 = vmax.f32 %v846_v24, 0.0  ;;  %v850_v37 = vmax.f32 %v847_v27, 0.0  ;;  %v851_v38 = vmax.f32 %v848_v28, 0.0  ;;  %v864_v39 = vmax.f32 %v861_v29, 0.0 }
 0x169   :  { %v865_v40 = vmax.f32 %v862_v30, 0.0  ;;  %v866_v42 = vmax.f32 %v863_v31, 0.0  ;;  %v879_v44 = vadd.f32 %v982_v62, %v876_v23  ;;  %v880_v45 = vadd.f32 %v982_v62, %v877_v34 }
 0x16a   :  { %v867_v46 = vmax.f32 %v849_v36, %v864_v39  ;;  %v881_v47 = vadd.f32 %v982_v62, %v878_v35  ;;  %v891_v48 = vmul.f32 %v1190_v6, %v888_v12  ;;  %v892_v49 = vmul.f32 %v1190_v6, %v889_v25 }
 0x16b   :  { %v868_v50 = vmax.f32 %v850_v37, %v865_v40  ;;  %v869_v51 = vmax.f32 %v851_v38, %v866_v42  ;;  %v882_v52 = vmax.f32 %v879_v44, 0.0  ;;  %v883_v53 = vmax.f32 %v880_v45, 0.0 }
 0x16c   :  { %v884_v14 = vmax.f32 %v881_v47, 0.0  ;;  %v893_v54 = vmul.f32 %v1190_v6, %v890_v33  ;;  %v894_v56 = vmul.f32 %v981_v22, %v891_v48  ;;  %v895_v43 = vmul.f32 %v981_v22, %v892_v49 }
 0x16d   :  { %v885_v57 = vmax.f32 %v867_v46, %v882_v52  ;;  %v886_v21 = vmax.f32 %v868_v50, %v883_v53 }
 0x16e   :  { %v887_v59 = vmax.f32 %v869_v51, %v884_v14  ;;  %v896_v60 = vmul.f32 %v981_v22, %v893_v54  ;;  %v897_v61 = vadd.f32 %v982_v62, %v894_v56  ;;  %v898_v63 = vadd.f32 %v982_v62, %v895_v43 }
 0x170   :  { %v899_v0 = vadd.f32 %v982_v62, %v896_v60  ;;  %v900_v1 = vmax.f32 %v897_v61, 0.0  ;;  %v901_v3 = vmax.f32 %v898_v63, 0.0 }
 0x172   :  { %v902_v4 = vmax.f32 %v899_v0, 0.0  ;;  %v903_v5 = vmax.f32 %v885_v57, %v900_v1  ;;  %v904_v55 = vmax.f32 %v886_v21, %v901_v3 }
 0x174   :  { %v905_v58 = vmax.f32 %v887_v59, %v902_v4  ;;  %906 = vst.msk [vmem:[%s1594_s4] sm:$0xff] %vm193_vm0, %v903_v5  ;;  %907 = vst.msk [vmem:[%s1594_s4 + $0x8] sm:$0xff] %vm193_vm0, %v904_v55 }
 0x176   :  { %908 = vst.msk [vmem:[%s1594_s4 + $0x10] sm:$0x3] %vm701_vm1, %v905_v58 }

// kernel: pretrain_net_pallas.13
= control target key start
LH: loop header
LB: loop body
LE: loop exit
PB: predicated region body
PF: predicated region fallthrough
CT: control target
= control target key end

     0   :  { %v531_v1 = vmov 0.0   ;;  %vm532_vm0 = vmmov 0   ;;  %v533_v6 = vmov 1966171168   ;;  %v88_v8 = vlaneseq  ;;  %s668_s1 = inlined_call_operand.vmem [shape: bf16[288,32], index: 1, kind: input, shape index: {}]   ;;  %s669_s5 = inlined_call_operand.vmem [shape: f32[2,2], index: 5, kind: input, shape index: {}]   ;;  %s670_s0 = inlined_call_operand.vmem [shape: bf16[2,288], index: 0, kind: input, shape index: {}]   ;;  %s671_s6 = inlined_call_operand.vmem [shape: f32[32,1], index: 6, kind: input, shape index: {}]   ;;  %s672_s7 = inlined_call_operand.<no memory space> [shape: f32[1,1], index: 7, kind: input, shape index: {}]   ;;  %s673_s2 = inlined_call_operand.vmem [shape: f32[1,32], index: 2, kind: input, shape index: {}]   ;;  %s674_s3 = inlined_call_operand.vmem [shape: f32[1,32], index: 3, kind: input, shape index: {}]   ;;  %s675_s4 = inlined_call_operand.vmem [shape: f32[1,32], index: 4, kind: input, shape index: {}]   ;;  %s676_s8 = inlined_call_operand.vmem [shape: f32[2,1], index: 8, kind: output, shape index: {}]  }
   0x1   :  { %v511_v0 = vld [vmem:[%s668_s1 + $0x40] sm:$0xff]   ;;  %482 = vmatprep.subr.bf16.mxu1 %v531_v1  ;;  %486 = vmatprep.mubr.msk.bf16.mxu1 %vm532_vm0, %v531_v1  ;;  %v513_v3 = vld [vmem:[%s668_s1 + $0x48] sm:$0xff]   ;;  %v515_v5 = vld [vmem:[%s668_s1 + $0x50] sm:$0xff]   ;;  %v86_v7 = vunpack.c.l.s4 %v533_v6  ;;  %vm210_vm1 = vcmask 261120   ;;  %v534_v33 = vmov 0.0|0.0   ;;  %v13_v37 = vstv %s672_s7 }
   0x2   :  { %v512_v2 = vld [vmem:[%s668_s1] sm:$0xff]   ;;  %452 = vmatprep.subr.bf16.mxu0 %v511_v0  ;;  %v514_v4 = vld [vmem:[%s668_s1 + $0x8] sm:$0xff]   ;;  %v516_v9 = vld [vmem:[%s668_s1 + $0x10] sm:$0xff]   ;;  %v89_v12 = vshrl.u32 %v88_v8, 7  ;;  %14 = vst [vmem:[#allocation2] sm:$0x1] %v13_v37 }
   0x3   :  { %453 = vmatpush3.bf16.msra.mxu0 %v512_v2  ;;  %v517_v10 = vld [vmem:[%s668_s1 + $0x58] sm:$0xff]   ;;  %v87_v11 = vunpack.c.0.s8 %v86_v7  ;;  %v519_v14 = vld [vmem:[%s668_s1 + $0x60] sm:$0xff]   ;;  %v521_v18 = vld [vmem:[%s668_s1 + $0x68] sm:$0xff]   ;;  %vm294_vm2 = vcmask 254976   ;;  %vm421_vm3 = vcmask 1024  }
   0x4   :  { %454 = vmatprep.subr.bf16.mxu0 %v513_v3  ;;  %v518_v13 = vld [vmem:[%s668_s1 + $0x18] sm:$0xff]   ;;  %v525_v15 = vld [vmem:[%s668_s1 + $0x80] sm:$0xff]   ;;  %v528_v21 = vld [vmem:[%s668_s1 + $0x88] sm:$0xff]  }
   0x5   :  { %v90_v16 = vsub.s32 %v87_v11, %v89_v12  ;;  %v520_v17 = vld [vmem:[%s668_s1 + $0x20] sm:$0xff]   ;;  %483 = vmatpush3.bf16.msra.mxu1 %v525_v15  ;;  %v522_v23 = vld [vmem:[%s668_s1 + $0x28] sm:$0xff]   ;;  %v523_v24 = vld [vmem:[%s668_s1 + $0x70] sm:$0xff]  }
   0x6   :  { %484 = vmatprep.subr.bf16.mxu1 %v531_v1  ;;  %v428_v19 = vld.sshfl [vmem:[%s670_s0] sm:$0x13 pattern:$0x75316420]  ;;  %v524_v27 = vld [vmem:[%s668_s1 + $0x30] sm:$0xff]   ;;  %v526_v28 = vld [vmem:[%s668_s1 + $0x78] sm:$0xff]  }
   0x7   :  { %455 = vmatpush3.bf16.msra.mxu0 %v514_v4  ;;  %v84_v20 = vcombine.high %v428_v19, %v428_v19  ;;  %v91_v22 = vrot.slane %v428_v19, %v90_v16  ;;  %v527_v29 = vld [vmem:[%s668_s1 + $0x38] sm:$0xff]   ;;  %v337_v30 = vld [vmem:[%s671_s6] sm:$0xff]  ;;  %v338_v31 = vld [vmem:[%s671_s6 + $0x8] sm:$0xff] }
   0x8   :  { %456 = vmatprep.subr.bf16.mxu0 %v515_v5  ;;  %v502_v32 = vpack.c.bf16 %v338_v31, %v337_v30  ;;  %v339_v34 = vld [vmem:[%s671_s6 + $0x10] sm:$0xff]  ;;  %v340_v35 = vld [vmem:[%s671_s6 + $0x18] sm:$0xff]  ;;  %v427_v44 = vld [vmem:[%s673_s2] ss:$0 sm:$0xff] }
   0x9   :  { %v98_v25 = vrot.slane %v84_v20, %v90_v16  ;;  %485 = vmatpush3.bf16.msra.mxu1 %v528_v21  ;;  %v99_v26 = vcombine.high %v91_v22, %v91_v22  ;;  %v505_v36 = vpack.c.bf16 %v340_v35, %v339_v34  ;;  %v448_v8 = vld [vmem:[%s674_s3] ss:$0 sm:$0xff] }
   0xa   :  { %501 = vmatprep.subr.bf16.mxu1 %v534_v33  ;;  %v450_v15 = vld [vmem:[#allocation2] ss:$0 sm:$0xff] }
   0xb   :  { %457 = vmatpush3.bf16.msra.mxu0 %v516_v9  ;;  %246 = vmatprep.mubr.bf16.mxu0 %v98_v25 }
   0xc   :  { %458 = vmatprep.subr.bf16.mxu0 %v517_v10  ;;  %487 = vmatmul.mubr.msk.bf16.vlgmr.msra.gmra.mrb[0].mxu1 %vm210_vm1, %v99_v26  ;;  %v449_v10 = vld [vmem:[%s675_s4] ss:$0 sm:$0xff] }
   0xd   :  { %498 = vmatprep.mubr.msk.f32.mxu1 %vm532_vm0, %v531_v1  ;;  %503 = vmatpush3.bf16.msra.mxu1 %v502_v32 }
   0xe   :  { %504 = vmatprep.subr.bf16.mxu1 %v534_v33 }
   0xf   :  { %459 = vmatpush3.bf16.msra.mxu0 %v518_v13 }
  0x10   :  { %460 = vmatprep.subr.bf16.mxu0 %v519_v14 }
  0x11   :  { %506 = vmatpush3.bf16.msra.mxu1 %v505_v36 }
  0x13   :  { %461 = vmatpush3.bf16.msra.mxu0 %v520_v17 }
  0x14   :  { %462 = vmatprep.subr.bf16.mxu0 %v521_v18 }
  0x17   :  { %463 = vmatpush3.bf16.msra.mxu0 %v522_v23 }
  0x18   :  { %464 = vmatprep.subr.bf16.mxu0 %v523_v24 }
  0x1b   :  { %465 = vmatpush3.bf16.msra.mxu0 %v524_v27 }
  0x1c   :  { %466 = vmatprep.subr.bf16.mxu0 %v526_v28 }
  0x1f   :  { %467 = vmatpush3.bf16.msra.mxu0 %v527_v29 }
  0x22   :  { %247 = vmatmul.mubr.bf16.vlgmr.msra.gmra.mrb[0].mxu0 %v91_v22 }
  0xdf   :  { %v288_v38 = vpop.f32.mrb[0].mxu1 }
  0xe0   :  { %v488_v39 = vpop.f32.mrb[1].mxu1 }
  0xe1   :  { %v291_v40 = vpop.f32.mrb[2].mxu1 }
  0xe2   :  { %v489_v41 = vpop.f32.mrb[3].mxu1 }
  0xf5   :  { %v468_v42 = vpop.f32.mrb[0].mxu0 }
  0xf6   :  { %v469_v43 = vpop.f32.mrb[1].mxu0 }
  0xf7   :  { %v470_v45 = vadd.f32 %v469_v43, %v468_v42  ;;  %v471_v46 = vpop.f32.mrb[2].mxu0 }
  0xf8   :  { %v472_v47 = vpop.f32.mrb[3].mxu0 }
  0xf9   :  { %v249_v48 = vadd.f32 %v470_v45, %v427_v44 }
  0xfb   :  { %v289_v49 = vadd.f32 %v288_v38, %v249_v48 }
  0xfd   :  { %v295_v50 = vsel %vm294_vm2, %v289_v49, 0.0  ;;  %v304_v51 = vmul.f32 %v289_v49, %v289_v49 }
  0xfe   :  { %v296_v52 = vrot.slane %v295_v50, 4 }
  0xff   :  { %v305_v53 = vsel %vm294_vm2, %v304_v51, 0.0 }
 0x100   :  { %v297_v54 = vadd.f32 %v296_v52, %v295_v50  ;;  %v306_v55 = vrot.slane %v305_v53, 4 }
 0x102   :  { %v298_v56 = vrot.slane %v297_v54, 2  ;;  %v307_v57 = vadd.f32 %v306_v55, %v305_v53 }
 0x104   :  { %v299_v58 = vadd.f32 %v298_v56, %v297_v54  ;;  %v308_v59 = vrot.slane %v307_v57, 2 }
 0x106   :  { %v300_v60 = vrot.slane %v299_v58, 1  ;;  %v309_v61 = vadd.f32 %v308_v59, %v307_v57 }
 0x108   :  { %v301_v62 = vadd.f32 %v300_v60, %v299_v58  ;;  %v310_v63 = vrot.slane %v309_v61, 1 }
 0x10a   :  { %v303_v0 = vmul.f32 0.5, %v301_v62  ;;  %v311_v1 = vadd.f32 %v310_v63, %v309_v61 }
 0x10c   :  { %v312_v2 = vmul.f32 0.5, %v311_v1  ;;  %v313_v3 = vmul.f32 %v303_v0, %v303_v0  ;;  %v315_v6 = vsub.f32 %v289_v49, %v303_v0 }
 0x10e   :  { %v314_v4 = vsub.f32 %v312_v2, %v313_v3 }
 0x110   :  { %v316_v5 = vadd.f32 1e-05, %v314_v4 }
 0x112   :  { %529 = vrsqrt.f32 %v316_v5 }
 0x11c   :  { %v530_v7 = vpop.eup %529 }
 0x11d   :  { %v318_v9 = vmul.f32 %v530_v7, %v315_v6 }
 0x11f   :  { %v326_v11 = vmul.f32 %v448_v8, %v318_v9 }
 0x121   :  { %v334_v12 = vadd.f32 %v449_v10, %v326_v11 }
 0x123   :  { %v335_v13 = vmax.f32 %v334_v12, 0.0 }
 0x125   :  { %v336_v14 = vmax.f32 %v335_v13, 0.0 }
 0x127   :  { %499 = vmatmul.mubr.msk.f32.vlgmr.msra.gmra.mrb[4].mxu1 %vm210_vm1, %v336_v14 }
 0x1fa   :  { %v417_v16 = vpop.f32.mrb[4].mxu1 }
 0x1fb   :  { %v418_v17 = vadd.f32 %v450_v15, %v417_v16  ;;  %v500_v18 = vpop.f32.mrb[5].mxu1 }
 0x1fd   :  { %422 = vst.msk [vmem:[%s676_s8] sm:$0x3] %vm421_vm3, %v418_v17 }

</bundles_post_ra>
